<compile_context>
chip_gen: v7x
topology: tpu7x:2x2x1
jax: 0.10.0
libtpu: 0.0.40
codegen_flags: <defaults>
</compile_context>

<pallas_src>
import jax
import jax.numpy as jnp
from jax.experimental import pallas as pl
from jax.experimental.pallas import tpu as pltpu


_VMEM = pl.BlockSpec(memory_space=pltpu.MemorySpace.VMEM)
_SMEM = pl.BlockSpec(memory_space=pltpu.MemorySpace.SMEM)


# --------------------------------------------------------------------------- #
# Fused Pallas kernel: conv1+pool -> conv2+pool -> MLP -> mean
# --------------------------------------------------------------------------- #
def _fused_meta_loss_kernel(p_ref, x_ref, w1_ref, w2_ref, b2_ref,
                            w1x_ref, w1y_ref, bf1_ref,
                            wf2_ref, bf2_ref, wf3_ref, bf3_ref,
                            wo_ref, bo_ref,
                            out_ref, y1s_ref, y2n_ref, y2f_ref):
    f32 = jnp.float32
    b = x_ref.shape[0]
    n1 = b * 192                 # rows per conv1 pool offset: b * 12(h) * 16(w pad)

    # ---- conv1 + bias + ReLU: ONE matmul over all 4 pool offsets (stacked rows).
    # Bias is folded in via the constant-1 column of the patches / bias row of w1.
    a1 = jnp.dot(p_ref[...], w1_ref[...], preferred_element_type=f32)
    a1 = jnp.maximum(a1, 0.0)                               # (4*n1, 20)
    a1 = a1.reshape(4, n1, 20)
    y1 = jnp.maximum(jnp.maximum(a1[0], a1[1]),
                     jnp.maximum(a1[2], a1[3]))             # maxpool(relu(conv1))
    # y1 rows are ordered (b, h%2, h//2, w%2, w//2 padded to 8); keep it in VMEM.
    y1s_ref[...] = y1.reshape(b, 2, 6, 2, 8, 20)

    # ---- conv2 + bias + ReLU + 2x2 maxpool, fully in VMEM.
    # Accumulate over the 25 kernel taps.  The 4 pool offsets are stacked on rows
    # so each tap is one (4*b*16, 20) x (20, 20) matmul, and the pool is a max
    # over the four leading row-blocks.  Thanks to the parity-split y1 layout all
    # window reads are contiguous unit-stride slices (no strided / masked gather).
    acc = None
    for kh in range(5):
        for kw in range(5):
            parts = []
            for dh in range(2):
                for dw in range(2):
                    hp, h0 = (dh + kh) & 1, (dh + kh) >> 1
                    wp, w0 = (dw + kw) & 1, (dw + kw) >> 1
                    # (b, 4, 4, 20) = y1[b, 2*ph+dh+kh, 2*pw+dw+kw, :]
                    parts.append(
                        y1s_ref[:, hp, pl.ds(h0, 4), wp, pl.ds(w0, 4), :])
            lhs = jnp.stack(parts, axis=0).reshape(4 * b * 16, 20)
            tap = jnp.dot(lhs, w2_ref[kh * 5 + kw].reshape(20, 20),
                          preferred_element_type=f32)
            acc = tap if acc is None else acc + tap
    a2 = jnp.maximum(acc + b2_ref[...], 0.0).reshape(4, b * 16, 20)
    y2 = jnp.maximum(jnp.maximum(a2[0], a2[1]),
                     jnp.maximum(a2[2], a2[3]))             # (b*16, 20), rows (b,ph,pw)
    y2n_ref[...] = y2.reshape(b, 16, 20)

    # Gather the conv features into a lane-dense (b, 320) buffer, NHWC-flat
    # (ph, pw, c) order -- params["w1y"] rows use the same order.
    for p in range(16):
        y2f_ref[:, pl.ds(20 * p, 20)] = y2n_ref[:, p, :].reshape(b, 20)

    # ---- MLP head.  fc1 is split into the x-part and the conv-feature part
    # (algebraically identical to concat @ W); output linear applied after the
    # batch mean: mean(h @ wo + bo) == mean(h) @ wo + bo.
    xs = x_ref[...] * 0.01
    h = (jnp.dot(xs, w1x_ref[...], preferred_element_type=f32)
         + jnp.dot(y2f_ref[...], w1y_ref[...], preferred_element_type=f32)
         + bf1_ref[...])
    h = jnp.tanh(h * 0.01)
    h = jnp.tanh((jnp.dot(h, wf2_ref[...], preferred_element_type=f32)
                  + bf2_ref[...]) * 0.01)
    h = jnp.tanh((jnp.dot(h, wf3_ref[...], preferred_element_type=f32)
                  + bf3_ref[...]) * 0.01)
    m = jnp.sum(h, axis=0, keepdims=True) * (1.0 / b)        # batch mean first
    out_ref[...] = (jnp.dot(m, wo_ref[...], preferred_element_type=f32)
                    + bo_ref[0, 0])


# --------------------------------------------------------------------------- #
# Host-side glue (im2col for conv1 only; everything else lives in the kernel)
# --------------------------------------------------------------------------- #
def _conv1_pool_patches(img):
    """im2col patches for conv1 with the four 2x2-pool offsets stacked on the
    leading axis.  Per offset, rows are ordered (b, h%2, h//2, w%2, w//2) with
    the w//2 axis zero-padded 6 -> 8 so all in-kernel reshapes stay tile
    aligned.  K is padded 25 -> 32: 25 taps, a constant 1.0 at column 25
    (folds the conv1 bias into the matmul), zeros after."""
    b = img.shape[0]
    pos = []
    for dh in (0, 1):
        for dw in (0, 1):
            taps = [img[:, dh + kh: dh + kh + 24: 2, dw + kw: dw + kw + 24: 2]
                    for kh in range(5) for kw in range(5)]
            pos.append(jnp.stack(taps, axis=-1))          # (b, 12, 12, 25)
    p = jnp.stack(pos, axis=0)                            # (d, b, 12, 12, 25)
    p = p.reshape(4, b, 6, 2, 6, 2, 25)                   # (d, b, hh, hp, wh, wp, k)
    p = p.transpose(0, 1, 3, 2, 5, 4, 6)                  # (d, b, hp, hh, wp, wh, k)
    p = jnp.pad(p, ((0, 0),) * 5 + ((0, 2), (0, 0)))      # pad wh: 6 -> 8
    ones = jnp.ones(p.shape[:-1] + (1,), jnp.float32)     # bias column
    zeros = jnp.zeros(p.shape[:-1] + (6,), jnp.float32)   # pad k: 26 -> 32
    p = jnp.concatenate([p, ones, zeros], axis=-1)
    return p.reshape(4 * b * 192, 32)


def meta_loss_forward(params, x, image):
    b = x.shape[0]
    img = image.reshape(b, 28, 28).astype(jnp.float32)
    patches = _conv1_pool_patches(img)                    # (4*b*192, 32)
    w1a = jnp.concatenate(
        [params["w1"], params["b1"], jnp.zeros((6, 20), jnp.float32)], axis=0)

    out = pl.pallas_call(
        _fused_meta_loss_kernel,
        out_shape=jax.ShapeDtypeStruct((1, 1), jnp.float32),
        in_specs=[_VMEM] * 13 + [_SMEM],
        out_specs=_VMEM,
        scratch_shapes=[
            pltpu.VMEM((b, 2, 6, 2, 8, 20), jnp.float32),  # y1 (parity layout)
            pltpu.VMEM((b, 16, 20), jnp.float32),          # y2, rows (b, ph*4+pw)
            pltpu.VMEM((b, 320), jnp.float32),             # y2 flattened, lane-dense
        ],
    )(patches, x.astype(jnp.float32), w1a,
      params["w2"], params["b2"],
      params["w1x"], params["w1y"], params["bf1"],
      params["wf2"], params["bf2"], params["wf3"], params["bf3"],
      params["wo"], params["bo"])
    return out[0, 0]


# --------------------------------------------------------------------------- #
# Pure-JAX reference (sanity check for the Pallas implementation)
# --------------------------------------------------------------------------- #
def reference_forward(params, x, image):
    b = x.shape[0]
    img = image.reshape(b, 28, 28, 1).astype(jnp.float32)

    def conv_relu_pool(inp, w, bias):
        y = jax.lax.conv_general_dilated(
            inp, w, (1, 1), "VALID",
            dimension_numbers=("NHWC", "HWIO", "NHWC"))
        y = jax.nn.relu(y + bias.reshape(1, 1, 1, -1))
        return jax.lax.reduce_window(y, -jnp.inf, jax.lax.max,
                                     (1, 2, 2, 1), (1, 2, 2, 1), "VALID")

    y = conv_relu_pool(img, params["w1"].reshape(5, 5, 1, 20), params["b1"])
    y = conv_relu_pool(y, params["w2"].reshape(5, 5, 20, 20), params["b2"])
    # NHWC-flat conv features; params["w1y"] rows follow this same (h, w, c)
    # order (a fixed permutation of PyTorch's NCHW-flat fc1 columns).
    y = y.reshape(b, 320)
    h = jnp.concatenate([x.astype(jnp.float32) * 0.01, y], axis=1)
    w_fc1 = jnp.concatenate([params["w1x"], params["w1y"]], axis=0)
    h = jnp.tanh((h @ w_fc1 + params["bf1"]) * 0.01)
    h = jnp.tanh((h @ params["wf2"] + params["bf2"]) * 0.01)
    h = jnp.tanh((h @ params["wf3"] + params["bf3"]) * 0.01)
    o = h @ params["wo"] + params["bo"]
    return jnp.mean(o)


# --------------------------------------------------------------------------- #
# Deterministic parameter init (shapes follow the PyTorch module)
# --------------------------------------------------------------------------- #
def init_params(key):
    ks = jax.random.split(key, 12)

    def rnd(k, shape, scale):
        return jax.random.normal(k, shape, jnp.float32) * scale

    return {
        # conv1: Conv2d(1, 20, 5, 1); rows ordered (kh*5 + kw), HWIO-flat
        "w1": rnd(ks[0], (25, 20), 0.1),
        "b1": rnd(ks[1], (1, 20), 0.1),
        # conv2: Conv2d(20, 20, 5, 1); (kh*5 + kw, cin, cout)
        "w2": rnd(ks[2], (25, 20, 20), 0.05),
        "b2": rnd(ks[3], (1, 20), 0.05),
        # fc1: Linear(12 + 320, 200) split into x-part / conv-feature part.
        # w1y rows are in NHWC-flat (h, w, c) order (fixed permutation of the
        # PyTorch NCHW-flat layout -- baked in so no transpose is ever needed).
        "w1x": rnd(ks[4], (12, 200), 0.05),
        "w1y": rnd(ks[5], (320, 200), 0.05),
        "bf1": rnd(ks[6], (1, 200), 0.05),
        # fc2 / fc3: Linear(200, 200)
        "wf2": rnd(ks[7], (200, 200), 0.05),
        "bf2": rnd(ks[8], (1, 200), 0.05),
        "wf3": rnd(ks[9], (200, 200), 0.05),
        "bf3": rnd(ks[10], (1, 200), 0.05),
        # output: Linear(200, 1)
        "wo": rnd(ks[11], (200, 1), 0.05),
        "bo": jnp.zeros((1, 1), jnp.float32),
    }


if __name__ == "__main__":
    key = jax.random.PRNGKey(0)
    kx, kimg, kp = jax.random.split(key, 3)

    B = 2
    x = jax.random.normal(kx, (B, 12), jnp.float32)          # input = 3 + 9
    image = jax.random.normal(kimg, (B, 1, 28, 28), jnp.float32)
    params = init_params(kp)

    out = jax.jit(meta_loss_forward)(params, x, image)
    out = jax.block_until_ready(out)

    ref = jax.block_until_ready(reference_forward(params, x, image))
    assert jnp.isfinite(out), "non-finite kernel output"
    assert abs(float(out) - float(ref)) < 1e-3 + 1e-2 * abs(float(ref)), (
        f"mismatch: pallas={float(out)} ref={float(ref)}")

    print("KERNEL_OK")
</pallas_src>

<mosaic_0001>
module attributes {stable_mosaic.version = 11 : i64} {
  func.func @_fused_meta_loss_kernel(%arg0: memref<1536x32xf32, #tpu.memory_space<vmem>>, %arg1: memref<2x12xf32, #tpu.memory_space<vmem>>, %arg2: memref<32x20xf32, #tpu.memory_space<vmem>>, %arg3: memref<25x20x20xf32, #tpu.memory_space<vmem>>, %arg4: memref<1x20xf32, #tpu.memory_space<vmem>>, %arg5: memref<12x200xf32, #tpu.memory_space<vmem>>, %arg6: memref<320x200xf32, #tpu.memory_space<vmem>>, %arg7: memref<1x200xf32, #tpu.memory_space<vmem>>, %arg8: memref<200x200xf32, #tpu.memory_space<vmem>>, %arg9: memref<1x200xf32, #tpu.memory_space<vmem>>, %arg10: memref<200x200xf32, #tpu.memory_space<vmem>>, %arg11: memref<1x200xf32, #tpu.memory_space<vmem>>, %arg12: memref<200x1xf32, #tpu.memory_space<vmem>>, %arg13: memref<1x1xf32, #tpu.memory_space<smem>>, %arg14: memref<1x1xf32, #tpu.memory_space<vmem>>, %arg15: memref<2x2x6x2x8x20xf32, #tpu.memory_space<vmem>>, %arg16: memref<2x16x20xf32, #tpu.memory_space<vmem>>, %arg17: memref<2x320xf32, #tpu.memory_space<vmem>>) attributes {dimension_semantics = [], scalar_prefetch = 0 : i64, scratch_operands = 3 : i64, tpu.core_type = #tpu.core_type<tc>} {
    %c0 = arith.constant 0 : index
    %c0_0 = arith.constant 0 : index
    %0 = vector.load %arg0[%c0, %c0_0] : memref<1536x32xf32, #tpu.memory_space<vmem>>, vector<1536x32xf32>
    %c0_1 = arith.constant 0 : index
    %c0_2 = arith.constant 0 : index
    %1 = vector.load %arg2[%c0_1, %c0_2] : memref<32x20xf32, #tpu.memory_space<vmem>>, vector<32x20xf32>
    %cst = arith.constant dense<0.000000e+00> : vector<1536x20xf32>
    %2 = tpu.matmul %0, %1, %cst {dimension_numbers = #tpu.dot_dimension_numbers<[1], [0], [0], [1], [0, 0, 1, 1], [], []>} : vector<1536x32xf32>, vector<32x20xf32>, vector<1536x20xf32> -> vector<1536x20xf32>
    %cst_3 = arith.constant 0.000000e+00 : f32
    %3 = vector.broadcast %cst_3 : f32 to vector<1536x20xf32>
    %4 = arith.maximumf %2, %3 : vector<1536x20xf32>
    %5 = vector.shape_cast %4 : vector<1536x20xf32> to vector<4x384x20xf32>
    %6 = vector.extract_strided_slice %5 {offsets = [0, 0, 0], sizes = [1, 384, 20], strides = [1, 1, 1]} : vector<4x384x20xf32> to vector<1x384x20xf32>
    %7 = vector.shape_cast %6 : vector<1x384x20xf32> to vector<384x20xf32>
    %8 = vector.extract_strided_slice %5 {offsets = [1, 0, 0], sizes = [1, 384, 20], strides = [1, 1, 1]} : vector<4x384x20xf32> to vector<1x384x20xf32>
    %9 = vector.shape_cast %8 : vector<1x384x20xf32> to vector<384x20xf32>
    %10 = arith.maximumf %7, %9 : vector<384x20xf32>
    %11 = vector.extract_strided_slice %5 {offsets = [2, 0, 0], sizes = [1, 384, 20], strides = [1, 1, 1]} : vector<4x384x20xf32> to vector<1x384x20xf32>
    %12 = vector.shape_cast %11 : vector<1x384x20xf32> to vector<384x20xf32>
    %13 = vector.extract_strided_slice %5 {offsets = [3, 0, 0], sizes = [1, 384, 20], strides = [1, 1, 1]} : vector<4x384x20xf32> to vector<1x384x20xf32>
    %14 = vector.shape_cast %13 : vector<1x384x20xf32> to vector<384x20xf32>
    %15 = arith.maximumf %12, %14 : vector<384x20xf32>
    %16 = arith.maximumf %10, %15 : vector<384x20xf32>
    %17 = vector.shape_cast %16 : vector<384x20xf32> to vector<2x2x6x2x8x20xf32>
    %c0_4 = arith.constant 0 : index
    %c0_5 = arith.constant 0 : index
    %c0_6 = arith.constant 0 : index
    %c0_7 = arith.constant 0 : index
    %c0_8 = arith.constant 0 : index
    %c0_9 = arith.constant 0 : index
    %18 = vector.load %arg15[%c0_4, %c0_5, %c0_6, %c0_7, %c0_8, %c0_9] : memref<2x2x6x2x8x20xf32, #tpu.memory_space<vmem>>, vector<2x2x6x2x8x20xf32>
    tpu.vector_store %arg15[%c0_4, %c0_5, %c0_6, %c0_7, %c0_8, %c0_9], %17 {strides = array<i32>} : memref<2x2x6x2x8x20xf32, #tpu.memory_space<vmem>>, vector<2x2x6x2x8x20xf32>,
    %c0_10 = arith.constant 0 : index
    %c0_11 = arith.constant 0 : index
    %c0_12 = arith.constant 0 : index
    %c0_13 = arith.constant 0 : index
    %c0_14 = arith.constant 0 : index
    %c0_15 = arith.constant 0 : index
    %19 = vector.load %arg15[%c0_10, %c0_11, %c0_12, %c0_13, %c0_14, %c0_15] : memref<2x2x6x2x8x20xf32, #tpu.memory_space<vmem>>, vector<2x1x4x1x4x20xf32>
    %20 = vector.shape_cast %19 : vector<2x1x4x1x4x20xf32> to vector<2x4x4x20xf32>
    %c0_16 = arith.constant 0 : index
    %c0_17 = arith.constant 0 : index
    %c0_18 = arith.constant 0 : index
    %c1 = arith.constant 1 : index
    %c0_19 = arith.constant 0 : index
    %c0_20 = arith.constant 0 : index
    %21 = vector.load %arg15[%c0_16, %c0_17, %c0_18, %c1, %c0_19, %c0_20] : memref<2x2x6x2x8x20xf32, #tpu.memory_space<vmem>>, vector<2x1x4x1x4x20xf32>
    %22 = vector.shape_cast %21 : vector<2x1x4x1x4x20xf32> to vector<2x4x4x20xf32>
    %c0_21 = arith.constant 0 : index
    %c1_22 = arith.constant 1 : index
    %c0_23 = arith.constant 0 : index
    %c0_24 = arith.constant 0 : index
    %c0_25 = arith.constant 0 : index
    %c0_26 = arith.constant 0 : index
    %23 = vector.load %arg15[%c0_21, %c1_22, %c0_23, %c0_24, %c0_25, %c0_26] : memref<2x2x6x2x8x20xf32, #tpu.memory_space<vmem>>, vector<2x1x4x1x4x20xf32>
    %24 = vector.shape_cast %23 : vector<2x1x4x1x4x20xf32> to vector<2x4x4x20xf32>
    %c0_27 = arith.constant 0 : index
    %c1_28 = arith.constant 1 : index
    %c0_29 = arith.constant 0 : index
    %c1_30 = arith.constant 1 : index
    %c0_31 = arith.constant 0 : index
    %c0_32 = arith.constant 0 : index
    %25 = vector.load %arg15[%c0_27, %c1_28, %c0_29, %c1_30, %c0_31, %c0_32] : memref<2x2x6x2x8x20xf32, #tpu.memory_space<vmem>>, vector<2x1x4x1x4x20xf32>
    %26 = vector.shape_cast %25 : vector<2x1x4x1x4x20xf32> to vector<2x4x4x20xf32>
    %27 = vector.shape_cast %20 : vector<2x4x4x20xf32> to vector<1x2x4x4x20xf32>
    %28 = vector.shape_cast %22 : vector<2x4x4x20xf32> to vector<1x2x4x4x20xf32>
    %29 = vector.shape_cast %24 : vector<2x4x4x20xf32> to vector<1x2x4x4x20xf32>
    %30 = vector.shape_cast %26 : vector<2x4x4x20xf32> to vector<1x2x4x4x20xf32>
    %31 = tpu.concatenate %27, %28, %29, %30 in 0 : vector<1x2x4x4x20xf32>, vector<1x2x4x4x20xf32>, vector<1x2x4x4x20xf32>, vector<1x2x4x4x20xf32> -> vector<4x2x4x4x20xf32>
    %32 = vector.shape_cast %31 : vector<4x2x4x4x20xf32> to vector<128x20xf32>
    %c0_33 = arith.constant 0 : index
    %c0_34 = arith.constant 0 : index
    %c0_35 = arith.constant 0 : index
    %33 = vector.load %arg3[%c0_33, %c0_34, %c0_35] : memref<25x20x20xf32, #tpu.memory_space<vmem>>, vector<1x20x20xf32>
    %34 = vector.shape_cast %33 : vector<1x20x20xf32> to vector<20x20xf32>
    %cst_36 = arith.constant dense<0.000000e+00> : vector<128x20xf32>
    %35 = tpu.matmul %32, %34, %cst_36 {dimension_numbers = #tpu.dot_dimension_numbers<[1], [0], [0], [1], [0, 0, 1, 1], [], []>} : vector<128x20xf32>, vector<20x20xf32>, vector<128x20xf32> -> vector<128x20xf32>
    %c0_37 = arith.constant 0 : index
    %c0_38 = arith.constant 0 : index
    %c0_39 = arith.constant 0 : index
    %c1_40 = arith.constant 1 : index
    %c0_41 = arith.constant 0 : index
    %c0_42 = arith.constant 0 : index
    %36 = vector.load %arg15[%c0_37, %c0_38, %c0_39, %c1_40, %c0_41, %c0_42] : memref<2x2x6x2x8x20xf32, #tpu.memory_space<vmem>>, vector<2x1x4x1x4x20xf32>
    %37 = vector.shape_cast %36 : vector<2x1x4x1x4x20xf32> to vector<2x4x4x20xf32>
    %c0_43 = arith.constant 0 : index
    %c0_44 = arith.constant 0 : index
    %c0_45 = arith.constant 0 : index
    %c0_46 = arith.constant 0 : index
    %c1_47 = arith.constant 1 : index
    %c0_48 = arith.constant 0 : index
    %38 = vector.load %arg15[%c0_43, %c0_44, %c0_45, %c0_46, %c1_47, %c0_48] : memref<2x2x6x2x8x20xf32, #tpu.memory_space<vmem>>, vector<2x1x4x1x4x20xf32>
    %39 = vector.shape_cast %38 : vector<2x1x4x1x4x20xf32> to vector<2x4x4x20xf32>
    %c0_49 = arith.constant 0 : index
    %c1_50 = arith.constant 1 : index
    %c0_51 = arith.constant 0 : index
    %c1_52 = arith.constant 1 : index
    %c0_53 = arith.constant 0 : index
    %c0_54 = arith.constant 0 : index
    %40 = vector.load %arg15[%c0_49, %c1_50, %c0_51, %c1_52, %c0_53, %c0_54] : memref<2x2x6x2x8x20xf32, #tpu.memory_space<vmem>>, vector<2x1x4x1x4x20xf32>
    %41 = vector.shape_cast %40 : vector<2x1x4x1x4x20xf32> to vector<2x4x4x20xf32>
    %c0_55 = arith.constant 0 : index
    %c1_56 = arith.constant 1 : index
    %c0_57 = arith.constant 0 : index
    %c0_58 = arith.constant 0 : index
    %c1_59 = arith.constant 1 : index
    %c0_60 = arith.constant 0 : index
    %42 = vector.load %arg15[%c0_55, %c1_56, %c0_57, %c0_58, %c1_59, %c0_60] : memref<2x2x6x2x8x20xf32, #tpu.memory_space<vmem>>, vector<2x1x4x1x4x20xf32>
    %43 = vector.shape_cast %42 : vector<2x1x4x1x4x20xf32> to vector<2x4x4x20xf32>
    %44 = vector.shape_cast %37 : vector<2x4x4x20xf32> to vector<1x2x4x4x20xf32>
    %45 = vector.shape_cast %39 : vector<2x4x4x20xf32> to vector<1x2x4x4x20xf32>
    %46 = vector.shape_cast %41 : vector<2x4x4x20xf32> to vector<1x2x4x4x20xf32>
    %47 = vector.shape_cast %43 : vector<2x4x4x20xf32> to vector<1x2x4x4x20xf32>
    %48 = tpu.concatenate %44, %45, %46, %47 in 0 : vector<1x2x4x4x20xf32>, vector<1x2x4x4x20xf32>, vector<1x2x4x4x20xf32>, vector<1x2x4x4x20xf32> -> vector<4x2x4x4x20xf32>
    %49 = vector.shape_cast %48 : vector<4x2x4x4x20xf32> to vector<128x20xf32>
    %c1_61 = arith.constant 1 : index
    %c0_62 = arith.constant 0 : index
    %c0_63 = arith.constant 0 : index
    %50 = vector.load %arg3[%c1_61, %c0_62, %c0_63] : memref<25x20x20xf32, #tpu.memory_space<vmem>>, vector<1x20x20xf32>
    %51 = vector.shape_cast %50 : vector<1x20x20xf32> to vector<20x20xf32>
    %cst_64 = arith.constant dense<0.000000e+00> : vector<128x20xf32>
    %52 = tpu.matmul %49, %51, %cst_64 {dimension_numbers = #tpu.dot_dimension_numbers<[1], [0], [0], [1], [0, 0, 1, 1], [], []>} : vector<128x20xf32>, vector<20x20xf32>, vector<128x20xf32> -> vector<128x20xf32>
    %53 = arith.addf %35, %52 : vector<128x20xf32>
    %c0_65 = arith.constant 0 : index
    %c0_66 = arith.constant 0 : index
    %c0_67 = arith.constant 0 : index
    %c0_68 = arith.constant 0 : index
    %c1_69 = arith.constant 1 : index
    %c0_70 = arith.constant 0 : index
    %54 = vector.load %arg15[%c0_65, %c0_66, %c0_67, %c0_68, %c1_69, %c0_70] : memref<2x2x6x2x8x20xf32, #tpu.memory_space<vmem>>, vector<2x1x4x1x4x20xf32>
    %55 = vector.shape_cast %54 : vector<2x1x4x1x4x20xf32> to vector<2x4x4x20xf32>
    %c0_71 = arith.constant 0 : index
    %c0_72 = arith.constant 0 : index
    %c0_73 = arith.constant 0 : index
    %c1_74 = arith.constant 1 : index
    %c1_75 = arith.constant 1 : index
    %c0_76 = arith.constant 0 : index
    %56 = vector.load %arg15[%c0_71, %c0_72, %c0_73, %c1_74, %c1_75, %c0_76] : memref<2x2x6x2x8x20xf32, #tpu.memory_space<vmem>>, vector<2x1x4x1x4x20xf32>
    %57 = vector.shape_cast %56 : vector<2x1x4x1x4x20xf32> to vector<2x4x4x20xf32>
    %c0_77 = arith.constant 0 : index
    %c1_78 = arith.constant 1 : index
    %c0_79 = arith.constant 0 : index
    %c0_80 = arith.constant 0 : index
    %c1_81 = arith.constant 1 : index
    %c0_82 = arith.constant 0 : index
    %58 = vector.load %arg15[%c0_77, %c1_78, %c0_79, %c0_80, %c1_81, %c0_82] : memref<2x2x6x2x8x20xf32, #tpu.memory_space<vmem>>, vector<2x1x4x1x4x20xf32>
    %59 = vector.shape_cast %58 : vector<2x1x4x1x4x20xf32> to vector<2x4x4x20xf32>
    %c0_83 = arith.constant 0 : index
    %c1_84 = arith.constant 1 : index
    %c0_85 = arith.constant 0 : index
    %c1_86 = arith.constant 1 : index
    %c1_87 = arith.constant 1 : index
    %c0_88 = arith.constant 0 : index
    %60 = vector.load %arg15[%c0_83, %c1_84, %c0_85, %c1_86, %c1_87, %c0_88] : memref<2x2x6x2x8x20xf32, #tpu.memory_space<vmem>>, vector<2x1x4x1x4x20xf32>
    %61 = vector.shape_cast %60 : vector<2x1x4x1x4x20xf32> to vector<2x4x4x20xf32>
    %62 = vector.shape_cast %55 : vector<2x4x4x20xf32> to vector<1x2x4x4x20xf32>
    %63 = vector.shape_cast %57 : vector<2x4x4x20xf32> to vector<1x2x4x4x20xf32>
    %64 = vector.shape_cast %59 : vector<2x4x4x20xf32> to vector<1x2x4x4x20xf32>
    %65 = vector.shape_cast %61 : vector<2x4x4x20xf32> to vector<1x2x4x4x20xf32>
    %66 = tpu.concatenate %62, %63, %64, %65 in 0 : vector<1x2x4x4x20xf32>, vector<1x2x4x4x20xf32>, vector<1x2x4x4x20xf32>, vector<1x2x4x4x20xf32> -> vector<4x2x4x4x20xf32>
    %67 = vector.shape_cast %66 : vector<4x2x4x4x20xf32> to vector<128x20xf32>
    %c2 = arith.constant 2 : index
    %c0_89 = arith.constant 0 : index
    %c0_90 = arith.constant 0 : index
    %68 = vector.load %arg3[%c2, %c0_89, %c0_90] : memref<25x20x20xf32, #tpu.memory_space<vmem>>, vector<1x20x20xf32>
    %69 = vector.shape_cast %68 : vector<1x20x20xf32> to vector<20x20xf32>
    %cst_91 = arith.constant dense<0.000000e+00> : vector<128x20xf32>
    %70 = tpu.matmul %67, %69, %cst_91 {dimension_numbers = #tpu.dot_dimension_numbers<[1], [0], [0], [1], [0, 0, 1, 1], [], []>} : vector<128x20xf32>, vector<20x20xf32>, vector<128x20xf32> -> vector<128x20xf32>
    %71 = arith.addf %53, %70 : vector<128x20xf32>
    %c0_92 = arith.constant 0 : index
    %c0_93 = arith.constant 0 : index
    %c0_94 = arith.constant 0 : index
    %c1_95 = arith.constant 1 : index
    %c1_96 = arith.constant 1 : index
    %c0_97 = arith.constant 0 : index
    %72 = vector.load %arg15[%c0_92, %c0_93, %c0_94, %c1_95, %c1_96, %c0_97] : memref<2x2x6x2x8x20xf32, #tpu.memory_space<vmem>>, vector<2x1x4x1x4x20xf32>
    %73 = vector.shape_cast %72 : vector<2x1x4x1x4x20xf32> to vector<2x4x4x20xf32>
    %c0_98 = arith.constant 0 : index
    %c0_99 = arith.constant 0 : index
    %c0_100 = arith.constant 0 : index
    %c0_101 = arith.constant 0 : index
    %c2_102 = arith.constant 2 : index
    %c0_103 = arith.constant 0 : index
    %74 = vector.load %arg15[%c0_98, %c0_99, %c0_100, %c0_101, %c2_102, %c0_103] : memref<2x2x6x2x8x20xf32, #tpu.memory_space<vmem>>, vector<2x1x4x1x4x20xf32>
    %75 = vector.shape_cast %74 : vector<2x1x4x1x4x20xf32> to vector<2x4x4x20xf32>
    %c0_104 = arith.constant 0 : index
    %c1_105 = arith.constant 1 : index
    %c0_106 = arith.constant 0 : index
    %c1_107 = arith.constant 1 : index
    %c1_108 = arith.constant 1 : index
    %c0_109 = arith.constant 0 : index
    %76 = vector.load %arg15[%c0_104, %c1_105, %c0_106, %c1_107, %c1_108, %c0_109] : memref<2x2x6x2x8x20xf32, #tpu.memory_space<vmem>>, vector<2x1x4x1x4x20xf32>
    %77 = vector.shape_cast %76 : vector<2x1x4x1x4x20xf32> to vector<2x4x4x20xf32>
    %c0_110 = arith.constant 0 : index
    %c1_111 = arith.constant 1 : index
    %c0_112 = arith.constant 0 : index
    %c0_113 = arith.constant 0 : index
    %c2_114 = arith.constant 2 : index
    %c0_115 = arith.constant 0 : index
    %78 = vector.load %arg15[%c0_110, %c1_111, %c0_112, %c0_113, %c2_114, %c0_115] : memref<2x2x6x2x8x20xf32, #tpu.memory_space<vmem>>, vector<2x1x4x1x4x20xf32>
    %79 = vector.shape_cast %78 : vector<2x1x4x1x4x20xf32> to vector<2x4x4x20xf32>
    %80 = vector.shape_cast %73 : vector<2x4x4x20xf32> to vector<1x2x4x4x20xf32>
    %81 = vector.shape_cast %75 : vector<2x4x4x20xf32> to vector<1x2x4x4x20xf32>
    %82 = vector.shape_cast %77 : vector<2x4x4x20xf32> to vector<1x2x4x4x20xf32>
    %83 = vector.shape_cast %79 : vector<2x4x4x20xf32> to vector<1x2x4x4x20xf32>
    %84 = tpu.concatenate %80, %81, %82, %83 in 0 : vector<1x2x4x4x20xf32>, vector<1x2x4x4x20xf32>, vector<1x2x4x4x20xf32>, vector<1x2x4x4x20xf32> -> vector<4x2x4x4x20xf32>
    %85 = vector.shape_cast %84 : vector<4x2x4x4x20xf32> to vector<128x20xf32>
    %c3 = arith.constant 3 : index
    %c0_116 = arith.constant 0 : index
    %c0_117 = arith.constant 0 : index
    %86 = vector.load %arg3[%c3, %c0_116, %c0_117] : memref<25x20x20xf32, #tpu.memory_space<vmem>>, vector<1x20x20xf32>
    %87 = vector.shape_cast %86 : vector<1x20x20xf32> to vector<20x20xf32>
    %cst_118 = arith.constant dense<0.000000e+00> : vector<128x20xf32>
    %88 = tpu.matmul %85, %87, %cst_118 {dimension_numbers = #tpu.dot_dimension_numbers<[1], [0], [0], [1], [0, 0, 1, 1], [], []>} : vector<128x20xf32>, vector<20x20xf32>, vector<128x20xf32> -> vector<128x20xf32>
    %89 = arith.addf %71, %88 : vector<128x20xf32>
    %c0_119 = arith.constant 0 : index
    %c0_120 = arith.constant 0 : index
    %c0_121 = arith.constant 0 : index
    %c0_122 = arith.constant 0 : index
    %c2_123 = arith.constant 2 : index
    %c0_124 = arith.constant 0 : index
    %90 = vector.load %arg15[%c0_119, %c0_120, %c0_121, %c0_122, %c2_123, %c0_124] : memref<2x2x6x2x8x20xf32, #tpu.memory_space<vmem>>, vector<2x1x4x1x4x20xf32>
    %91 = vector.shape_cast %90 : vector<2x1x4x1x4x20xf32> to vector<2x4x4x20xf32>
    %c0_125 = arith.constant 0 : index
    %c0_126 = arith.constant 0 : index
    %c0_127 = arith.constant 0 : index
    %c1_128 = arith.constant 1 : index
    %c2_129 = arith.constant 2 : index
    %c0_130 = arith.constant 0 : index
    %92 = vector.load %arg15[%c0_125, %c0_126, %c0_127, %c1_128, %c2_129, %c0_130] : memref<2x2x6x2x8x20xf32, #tpu.memory_space<vmem>>, vector<2x1x4x1x4x20xf32>
    %93 = vector.shape_cast %92 : vector<2x1x4x1x4x20xf32> to vector<2x4x4x20xf32>
    %c0_131 = arith.constant 0 : index
    %c1_132 = arith.constant 1 : index
    %c0_133 = arith.constant 0 : index
    %c0_134 = arith.constant 0 : index
    %c2_135 = arith.constant 2 : index
    %c0_136 = arith.constant 0 : index
    %94 = vector.load %arg15[%c0_131, %c1_132, %c0_133, %c0_134, %c2_135, %c0_136] : memref<2x2x6x2x8x20xf32, #tpu.memory_space<vmem>>, vector<2x1x4x1x4x20xf32>
    %95 = vector.shape_cast %94 : vector<2x1x4x1x4x20xf32> to vector<2x4x4x20xf32>
    %c0_137 = arith.constant 0 : index
    %c1_138 = arith.constant 1 : index
    %c0_139 = arith.constant 0 : index
    %c1_140 = arith.constant 1 : index
    %c2_141 = arith.constant 2 : index
    %c0_142 = arith.constant 0 : index
    %96 = vector.load %arg15[%c0_137, %c1_138, %c0_139, %c1_140, %c2_141, %c0_142] : memref<2x2x6x2x8x20xf32, #tpu.memory_space<vmem>>, vector<2x1x4x1x4x20xf32>
    %97 = vector.shape_cast %96 : vector<2x1x4x1x4x20xf32> to vector<2x4x4x20xf32>
    %98 = vector.shape_cast %91 : vector<2x4x4x20xf32> to vector<1x2x4x4x20xf32>
    %99 = vector.shape_cast %93 : vector<2x4x4x20xf32> to vector<1x2x4x4x20xf32>
    %100 = vector.shape_cast %95 : vector<2x4x4x20xf32> to vector<1x2x4x4x20xf32>
    %101 = vector.shape_cast %97 : vector<2x4x4x20xf32> to vector<1x2x4x4x20xf32>
    %102 = tpu.concatenate %98, %99, %100, %101 in 0 : vector<1x2x4x4x20xf32>, vector<1x2x4x4x20xf32>, vector<1x2x4x4x20xf32>, vector<1x2x4x4x20xf32> -> vector<4x2x4x4x20xf32>
    %103 = vector.shape_cast %102 : vector<4x2x4x4x20xf32> to vector<128x20xf32>
    %c4 = arith.constant 4 : index
    %c0_143 = arith.constant 0 : index
    %c0_144 = arith.constant 0 : index
    %104 = vector.load %arg3[%c4, %c0_143, %c0_144] : memref<25x20x20xf32, #tpu.memory_space<vmem>>, vector<1x20x20xf32>
    %105 = vector.shape_cast %104 : vector<1x20x20xf32> to vector<20x20xf32>
    %cst_145 = arith.constant dense<0.000000e+00> : vector<128x20xf32>
    %106 = tpu.matmul %103, %105, %cst_145 {dimension_numbers = #tpu.dot_dimension_numbers<[1], [0], [0], [1], [0, 0, 1, 1], [], []>} : vector<128x20xf32>, vector<20x20xf32>, vector<128x20xf32> -> vector<128x20xf32>
    %107 = arith.addf %89, %106 : vector<128x20xf32>
    %c0_146 = arith.constant 0 : index
    %c1_147 = arith.constant 1 : index
    %c0_148 = arith.constant 0 : index
    %c0_149 = arith.constant 0 : index
    %c0_150 = arith.constant 0 : index
    %c0_151 = arith.constant 0 : index
    %108 = vector.load %arg15[%c0_146, %c1_147, %c0_148, %c0_149, %c0_150, %c0_151] : memref<2x2x6x2x8x20xf32, #tpu.memory_space<vmem>>, vector<2x1x4x1x4x20xf32>
    %109 = vector.shape_cast %108 : vector<2x1x4x1x4x20xf32> to vector<2x4x4x20xf32>
    %c0_152 = arith.constant 0 : index
    %c1_153 = arith.constant 1 : index
    %c0_154 = arith.constant 0 : index
    %c1_155 = arith.constant 1 : index
    %c0_156 = arith.constant 0 : index
    %c0_157 = arith.constant 0 : index
    %110 = vector.load %arg15[%c0_152, %c1_153, %c0_154, %c1_155, %c0_156, %c0_157] : memref<2x2x6x2x8x20xf32, #tpu.memory_space<vmem>>, vector<2x1x4x1x4x20xf32>
    %111 = vector.shape_cast %110 : vector<2x1x4x1x4x20xf32> to vector<2x4x4x20xf32>
    %c0_158 = arith.constant 0 : index
    %c0_159 = arith.constant 0 : index
    %c1_160 = arith.constant 1 : index
    %c0_161 = arith.constant 0 : index
    %c0_162 = arith.constant 0 : index
    %c0_163 = arith.constant 0 : index
    %112 = vector.load %arg15[%c0_158, %c0_159, %c1_160, %c0_161, %c0_162, %c0_163] : memref<2x2x6x2x8x20xf32, #tpu.memory_space<vmem>>, vector<2x1x4x1x4x20xf32>
    %113 = vector.shape_cast %112 : vector<2x1x4x1x4x20xf32> to vector<2x4x4x20xf32>
    %c0_164 = arith.constant 0 : index
    %c0_165 = arith.constant 0 : index
    %c1_166 = arith.constant 1 : index
    %c1_167 = arith.constant 1 : index
    %c0_168 = arith.constant 0 : index
    %c0_169 = arith.constant 0 : index
    %114 = vector.load %arg15[%c0_164, %c0_165, %c1_166, %c1_167, %c0_168, %c0_169] : memref<2x2x6x2x8x20xf32, #tpu.memory_space<vmem>>, vector<2x1x4x1x4x20xf32>
    %115 = vector.shape_cast %114 : vector<2x1x4x1x4x20xf32> to vector<2x4x4x20xf32>
    %116 = vector.shape_cast %109 : vector<2x4x4x20xf32> to vector<1x2x4x4x20xf32>
    %117 = vector.shape_cast %111 : vector<2x4x4x20xf32> to vector<1x2x4x4x20xf32>
    %118 = vector.shape_cast %113 : vector<2x4x4x20xf32> to vector<1x2x4x4x20xf32>
    %119 = vector.shape_cast %115 : vector<2x4x4x20xf32> to vector<1x2x4x4x20xf32>
    %120 = tpu.concatenate %116, %117, %118, %119 in 0 : vector<1x2x4x4x20xf32>, vector<1x2x4x4x20xf32>, vector<1x2x4x4x20xf32>, vector<1x2x4x4x20xf32> -> vector<4x2x4x4x20xf32>
    %121 = vector.shape_cast %120 : vector<4x2x4x4x20xf32> to vector<128x20xf32>
    %c5 = arith.constant 5 : index
    %c0_170 = arith.constant 0 : index
    %c0_171 = arith.constant 0 : index
    %122 = vector.load %arg3[%c5, %c0_170, %c0_171] : memref<25x20x20xf32, #tpu.memory_space<vmem>>, vector<1x20x20xf32>
    %123 = vector.shape_cast %122 : vector<1x20x20xf32> to vector<20x20xf32>
    %cst_172 = arith.constant dense<0.000000e+00> : vector<128x20xf32>
    %124 = tpu.matmul %121, %123, %cst_172 {dimension_numbers = #tpu.dot_dimension_numbers<[1], [0], [0], [1], [0, 0, 1, 1], [], []>} : vector<128x20xf32>, vector<20x20xf32>, vector<128x20xf32> -> vector<128x20xf32>
    %125 = arith.addf %107, %124 : vector<128x20xf32>
    %c0_173 = arith.constant 0 : index
    %c1_174 = arith.constant 1 : index
    %c0_175 = arith.constant 0 : index
    %c1_176 = arith.constant 1 : index
    %c0_177 = arith.constant 0 : index
    %c0_178 = arith.constant 0 : index
    %126 = vector.load %arg15[%c0_173, %c1_174, %c0_175, %c1_176, %c0_177, %c0_178] : memref<2x2x6x2x8x20xf32, #tpu.memory_space<vmem>>, vector<2x1x4x1x4x20xf32>
    %127 = vector.shape_cast %126 : vector<2x1x4x1x4x20xf32> to vector<2x4x4x20xf32>
    %c0_179 = arith.constant 0 : index
    %c1_180 = arith.constant 1 : index
    %c0_181 = arith.constant 0 : index
    %c0_182 = arith.constant 0 : index
    %c1_183 = arith.constant 1 : index
    %c0_184 = arith.constant 0 : index
    %128 = vector.load %arg15[%c0_179, %c1_180, %c0_181, %c0_182, %c1_183, %c0_184] : memref<2x2x6x2x8x20xf32, #tpu.memory_space<vmem>>, vector<2x1x4x1x4x20xf32>
    %129 = vector.shape_cast %128 : vector<2x1x4x1x4x20xf32> to vector<2x4x4x20xf32>
    %c0_185 = arith.constant 0 : index
    %c0_186 = arith.constant 0 : index
    %c1_187 = arith.constant 1 : index
    %c1_188 = arith.constant 1 : index
    %c0_189 = arith.constant 0 : index
    %c0_190 = arith.constant 0 : index
    %130 = vector.load %arg15[%c0_185, %c0_186, %c1_187, %c1_188, %c0_189, %c0_190] : memref<2x2x6x2x8x20xf32, #tpu.memory_space<vmem>>, vector<2x1x4x1x4x20xf32>
    %131 = vector.shape_cast %130 : vector<2x1x4x1x4x20xf32> to vector<2x4x4x20xf32>
    %c0_191 = arith.constant 0 : index
    %c0_192 = arith.constant 0 : index
    %c1_193 = arith.constant 1 : index
    %c0_194 = arith.constant 0 : index
    %c1_195 = arith.constant 1 : index
    %c0_196 = arith.constant 0 : index
    %132 = vector.load %arg15[%c0_191, %c0_192, %c1_193, %c0_194, %c1_195, %c0_196] : memref<2x2x6x2x8x20xf32, #tpu.memory_space<vmem>>, vector<2x1x4x1x4x20xf32>
    %133 = vector.shape_cast %132 : vector<2x1x4x1x4x20xf32> to vector<2x4x4x20xf32>
    %134 = vector.shape_cast %127 : vector<2x4x4x20xf32> to vector<1x2x4x4x20xf32>
    %135 = vector.shape_cast %129 : vector<2x4x4x20xf32> to vector<1x2x4x4x20xf32>
    %136 = vector.shape_cast %131 : vector<2x4x4x20xf32> to vector<1x2x4x4x20xf32>
    %137 = vector.shape_cast %133 : vector<2x4x4x20xf32> to vector<1x2x4x4x20xf32>
    %138 = tpu.concatenate %134, %135, %136, %137 in 0 : vector<1x2x4x4x20xf32>, vector<1x2x4x4x20xf32>, vector<1x2x4x4x20xf32>, vector<1x2x4x4x20xf32> -> vector<4x2x4x4x20xf32>
    %139 = vector.shape_cast %138 : vector<4x2x4x4x20xf32> to vector<128x20xf32>
    %c6 = arith.constant 6 : index
    %c0_197 = arith.constant 0 : index
    %c0_198 = arith.constant 0 : index
    %140 = vector.load %arg3[%c6, %c0_197, %c0_198] : memref<25x20x20xf32, #tpu.memory_space<vmem>>, vector<1x20x20xf32>
    %141 = vector.shape_cast %140 : vector<1x20x20xf32> to vector<20x20xf32>
    %cst_199 = arith.constant dense<0.000000e+00> : vector<128x20xf32>
    %142 = tpu.matmul %139, %141, %cst_199 {dimension_numbers = #tpu.dot_dimension_numbers<[1], [0], [0], [1], [0, 0, 1, 1], [], []>} : vector<128x20xf32>, vector<20x20xf32>, vector<128x20xf32> -> vector<128x20xf32>
    %143 = arith.addf %125, %142 : vector<128x20xf32>
    %c0_200 = arith.constant 0 : index
    %c1_201 = arith.constant 1 : index
    %c0_202 = arith.constant 0 : index
    %c0_203 = arith.constant 0 : index
    %c1_204 = arith.constant 1 : index
    %c0_205 = arith.constant 0 : index
    %144 = vector.load %arg15[%c0_200, %c1_201, %c0_202, %c0_203, %c1_204, %c0_205] : memref<2x2x6x2x8x20xf32, #tpu.memory_space<vmem>>, vector<2x1x4x1x4x20xf32>
    %145 = vector.shape_cast %144 : vector<2x1x4x1x4x20xf32> to vector<2x4x4x20xf32>
    %c0_206 = arith.constant 0 : index
    %c1_207 = arith.constant 1 : index
    %c0_208 = arith.constant 0 : index
    %c1_209 = arith.constant 1 : index
    %c1_210 = arith.constant 1 : index
    %c0_211 = arith.constant 0 : index
    %146 = vector.load %arg15[%c0_206, %c1_207, %c0_208, %c1_209, %c1_210, %c0_211] : memref<2x2x6x2x8x20xf32, #tpu.memory_space<vmem>>, vector<2x1x4x1x4x20xf32>
    %147 = vector.shape_cast %146 : vector<2x1x4x1x4x20xf32> to vector<2x4x4x20xf32>
    %c0_212 = arith.constant 0 : index
    %c0_213 = arith.constant 0 : index
    %c1_214 = arith.constant 1 : index
    %c0_215 = arith.constant 0 : index
    %c1_216 = arith.constant 1 : index
    %c0_217 = arith.constant 0 : index
    %148 = vector.load %arg15[%c0_212, %c0_213, %c1_214, %c0_215, %c1_216, %c0_217] : memref<2x2x6x2x8x20xf32, #tpu.memory_space<vmem>>, vector<2x1x4x1x4x20xf32>
    %149 = vector.shape_cast %148 : vector<2x1x4x1x4x20xf32> to vector<2x4x4x20xf32>
    %c0_218 = arith.constant 0 : index
    %c0_219 = arith.constant 0 : index
    %c1_220 = arith.constant 1 : index
    %c1_221 = arith.constant 1 : index
    %c1_222 = arith.constant 1 : index
    %c0_223 = arith.constant 0 : index
    %150 = vector.load %arg15[%c0_218, %c0_219, %c1_220, %c1_221, %c1_222, %c0_223] : memref<2x2x6x2x8x20xf32, #tpu.memory_space<vmem>>, vector<2x1x4x1x4x20xf32>
    %151 = vector.shape_cast %150 : vector<2x1x4x1x4x20xf32> to vector<2x4x4x20xf32>
    %152 = vector.shape_cast %145 : vector<2x4x4x20xf32> to vector<1x2x4x4x20xf32>
    %153 = vector.shape_cast %147 : vector<2x4x4x20xf32> to vector<1x2x4x4x20xf32>
    %154 = vector.shape_cast %149 : vector<2x4x4x20xf32> to vector<1x2x4x4x20xf32>
    %155 = vector.shape_cast %151 : vector<2x4x4x20xf32> to vector<1x2x4x4x20xf32>
    %156 = tpu.concatenate %152, %153, %154, %155 in 0 : vector<1x2x4x4x20xf32>, vector<1x2x4x4x20xf32>, vector<1x2x4x4x20xf32>, vector<1x2x4x4x20xf32> -> vector<4x2x4x4x20xf32>
    %157 = vector.shape_cast %156 : vector<4x2x4x4x20xf32> to vector<128x20xf32>
    %c7 = arith.constant 7 : index
    %c0_224 = arith.constant 0 : index
    %c0_225 = arith.constant 0 : index
    %158 = vector.load %arg3[%c7, %c0_224, %c0_225] : memref<25x20x20xf32, #tpu.memory_space<vmem>>, vector<1x20x20xf32>
    %159 = vector.shape_cast %158 : vector<1x20x20xf32> to vector<20x20xf32>
    %cst_226 = arith.constant dense<0.000000e+00> : vector<128x20xf32>
    %160 = tpu.matmul %157, %159, %cst_226 {dimension_numbers = #tpu.dot_dimension_numbers<[1], [0], [0], [1], [0, 0, 1, 1], [], []>} : vector<128x20xf32>, vector<20x20xf32>, vector<128x20xf32> -> vector<128x20xf32>
    %161 = arith.addf %143, %160 : vector<128x20xf32>
    %c0_227 = arith.constant 0 : index
    %c1_228 = arith.constant 1 : index
    %c0_229 = arith.constant 0 : index
    %c1_230 = arith.constant 1 : index
    %c1_231 = arith.constant 1 : index
    %c0_232 = arith.constant 0 : index
    %162 = vector.load %arg15[%c0_227, %c1_228, %c0_229, %c1_230, %c1_231, %c0_232] : memref<2x2x6x2x8x20xf32, #tpu.memory_space<vmem>>, vector<2x1x4x1x4x20xf32>
    %163 = vector.shape_cast %162 : vector<2x1x4x1x4x20xf32> to vector<2x4x4x20xf32>
    %c0_233 = arith.constant 0 : index
    %c1_234 = arith.constant 1 : index
    %c0_235 = arith.constant 0 : index
    %c0_236 = arith.constant 0 : index
    %c2_237 = arith.constant 2 : index
    %c0_238 = arith.constant 0 : index
    %164 = vector.load %arg15[%c0_233, %c1_234, %c0_235, %c0_236, %c2_237, %c0_238] : memref<2x2x6x2x8x20xf32, #tpu.memory_space<vmem>>, vector<2x1x4x1x4x20xf32>
    %165 = vector.shape_cast %164 : vector<2x1x4x1x4x20xf32> to vector<2x4x4x20xf32>
    %c0_239 = arith.constant 0 : index
    %c0_240 = arith.constant 0 : index
    %c1_241 = arith.constant 1 : index
    %c1_242 = arith.constant 1 : index
    %c1_243 = arith.constant 1 : index
    %c0_244 = arith.constant 0 : index
    %166 = vector.load %arg15[%c0_239, %c0_240, %c1_241, %c1_242, %c1_243, %c0_244] : memref<2x2x6x2x8x20xf32, #tpu.memory_space<vmem>>, vector<2x1x4x1x4x20xf32>
    %167 = vector.shape_cast %166 : vector<2x1x4x1x4x20xf32> to vector<2x4x4x20xf32>
    %c0_245 = arith.constant 0 : index
    %c0_246 = arith.constant 0 : index
    %c1_247 = arith.constant 1 : index
    %c0_248 = arith.constant 0 : index
    %c2_249 = arith.constant 2 : index
    %c0_250 = arith.constant 0 : index
    %168 = vector.load %arg15[%c0_245, %c0_246, %c1_247, %c0_248, %c2_249, %c0_250] : memref<2x2x6x2x8x20xf32, #tpu.memory_space<vmem>>, vector<2x1x4x1x4x20xf32>
    %169 = vector.shape_cast %168 : vector<2x1x4x1x4x20xf32> to vector<2x4x4x20xf32>
    %170 = vector.shape_cast %163 : vector<2x4x4x20xf32> to vector<1x2x4x4x20xf32>
    %171 = vector.shape_cast %165 : vector<2x4x4x20xf32> to vector<1x2x4x4x20xf32>
    %172 = vector.shape_cast %167 : vector<2x4x4x20xf32> to vector<1x2x4x4x20xf32>
    %173 = vector.shape_cast %169 : vector<2x4x4x20xf32> to vector<1x2x4x4x20xf32>
    %174 = tpu.concatenate %170, %171, %172, %173 in 0 : vector<1x2x4x4x20xf32>, vector<1x2x4x4x20xf32>, vector<1x2x4x4x20xf32>, vector<1x2x4x4x20xf32> -> vector<4x2x4x4x20xf32>
    %175 = vector.shape_cast %174 : vector<4x2x4x4x20xf32> to vector<128x20xf32>
    %c8 = arith.constant 8 : index
    %c0_251 = arith.constant 0 : index
    %c0_252 = arith.constant 0 : index
    %176 = vector.load %arg3[%c8, %c0_251, %c0_252] : memref<25x20x20xf32, #tpu.memory_space<vmem>>, vector<1x20x20xf32>
    %177 = vector.shape_cast %176 : vector<1x20x20xf32> to vector<20x20xf32>
    %cst_253 = arith.constant dense<0.000000e+00> : vector<128x20xf32>
    %178 = tpu.matmul %175, %177, %cst_253 {dimension_numbers = #tpu.dot_dimension_numbers<[1], [0], [0], [1], [0, 0, 1, 1], [], []>} : vector<128x20xf32>, vector<20x20xf32>, vector<128x20xf32> -> vector<128x20xf32>
    %179 = arith.addf %161, %178 : vector<128x20xf32>
    %c0_254 = arith.constant 0 : index
    %c1_255 = arith.constant 1 : index
    %c0_256 = arith.constant 0 : index
    %c0_257 = arith.constant 0 : index
    %c2_258 = arith.constant 2 : index
    %c0_259 = arith.constant 0 : index
    %180 = vector.load %arg15[%c0_254, %c1_255, %c0_256, %c0_257, %c2_258, %c0_259] : memref<2x2x6x2x8x20xf32, #tpu.memory_space<vmem>>, vector<2x1x4x1x4x20xf32>
    %181 = vector.shape_cast %180 : vector<2x1x4x1x4x20xf32> to vector<2x4x4x20xf32>
    %c0_260 = arith.constant 0 : index
    %c1_261 = arith.constant 1 : index
    %c0_262 = arith.constant 0 : index
    %c1_263 = arith.constant 1 : index
    %c2_264 = arith.constant 2 : index
    %c0_265 = arith.constant 0 : index
    %182 = vector.load %arg15[%c0_260, %c1_261, %c0_262, %c1_263, %c2_264, %c0_265] : memref<2x2x6x2x8x20xf32, #tpu.memory_space<vmem>>, vector<2x1x4x1x4x20xf32>
    %183 = vector.shape_cast %182 : vector<2x1x4x1x4x20xf32> to vector<2x4x4x20xf32>
    %c0_266 = arith.constant 0 : index
    %c0_267 = arith.constant 0 : index
    %c1_268 = arith.constant 1 : index
    %c0_269 = arith.constant 0 : index
    %c2_270 = arith.constant 2 : index
    %c0_271 = arith.constant 0 : index
    %184 = vector.load %arg15[%c0_266, %c0_267, %c1_268, %c0_269, %c2_270, %c0_271] : memref<2x2x6x2x8x20xf32, #tpu.memory_space<vmem>>, vector<2x1x4x1x4x20xf32>
    %185 = vector.shape_cast %184 : vector<2x1x4x1x4x20xf32> to vector<2x4x4x20xf32>
    %c0_272 = arith.constant 0 : index
    %c0_273 = arith.constant 0 : index
    %c1_274 = arith.constant 1 : index
    %c1_275 = arith.constant 1 : index
    %c2_276 = arith.constant 2 : index
    %c0_277 = arith.constant 0 : index
    %186 = vector.load %arg15[%c0_272, %c0_273, %c1_274, %c1_275, %c2_276, %c0_277] : memref<2x2x6x2x8x20xf32, #tpu.memory_space<vmem>>, vector<2x1x4x1x4x20xf32>
    %187 = vector.shape_cast %186 : vector<2x1x4x1x4x20xf32> to vector<2x4x4x20xf32>
    %188 = vector.shape_cast %181 : vector<2x4x4x20xf32> to vector<1x2x4x4x20xf32>
    %189 = vector.shape_cast %183 : vector<2x4x4x20xf32> to vector<1x2x4x4x20xf32>
    %190 = vector.shape_cast %185 : vector<2x4x4x20xf32> to vector<1x2x4x4x20xf32>
    %191 = vector.shape_cast %187 : vector<2x4x4x20xf32> to vector<1x2x4x4x20xf32>
    %192 = tpu.concatenate %188, %189, %190, %191 in 0 : vector<1x2x4x4x20xf32>, vector<1x2x4x4x20xf32>, vector<1x2x4x4x20xf32>, vector<1x2x4x4x20xf32> -> vector<4x2x4x4x20xf32>
    %193 = vector.shape_cast %192 : vector<4x2x4x4x20xf32> to vector<128x20xf32>
    %c9 = arith.constant 9 : index
    %c0_278 = arith.constant 0 : index
    %c0_279 = arith.constant 0 : index
    %194 = vector.load %arg3[%c9, %c0_278, %c0_279] : memref<25x20x20xf32, #tpu.memory_space<vmem>>, vector<1x20x20xf32>
    %195 = vector.shape_cast %194 : vector<1x20x20xf32> to vector<20x20xf32>
    %cst_280 = arith.constant dense<0.000000e+00> : vector<128x20xf32>
    %196 = tpu.matmul %193, %195, %cst_280 {dimension_numbers = #tpu.dot_dimension_numbers<[1], [0], [0], [1], [0, 0, 1, 1], [], []>} : vector<128x20xf32>, vector<20x20xf32>, vector<128x20xf32> -> vector<128x20xf32>
    %197 = arith.addf %179, %196 : vector<128x20xf32>
    %c0_281 = arith.constant 0 : index
    %c0_282 = arith.constant 0 : index
    %c1_283 = arith.constant 1 : index
    %c0_284 = arith.constant 0 : index
    %c0_285 = arith.constant 0 : index
    %c0_286 = arith.constant 0 : index
    %198 = vector.load %arg15[%c0_281, %c0_282, %c1_283, %c0_284, %c0_285, %c0_286] : memref<2x2x6x2x8x20xf32, #tpu.memory_space<vmem>>, vector<2x1x4x1x4x20xf32>
    %199 = vector.shape_cast %198 : vector<2x1x4x1x4x20xf32> to vector<2x4x4x20xf32>
    %c0_287 = arith.constant 0 : index
    %c0_288 = arith.constant 0 : index
    %c1_289 = arith.constant 1 : index
    %c1_290 = arith.constant 1 : index
    %c0_291 = arith.constant 0 : index
    %c0_292 = arith.constant 0 : index
    %200 = vector.load %arg15[%c0_287, %c0_288, %c1_289, %c1_290, %c0_291, %c0_292] : memref<2x2x6x2x8x20xf32, #tpu.memory_space<vmem>>, vector<2x1x4x1x4x20xf32>
    %201 = vector.shape_cast %200 : vector<2x1x4x1x4x20xf32> to vector<2x4x4x20xf32>
    %c0_293 = arith.constant 0 : index
    %c1_294 = arith.constant 1 : index
    %c1_295 = arith.constant 1 : index
    %c0_296 = arith.constant 0 : index
    %c0_297 = arith.constant 0 : index
    %c0_298 = arith.constant 0 : index
    %202 = vector.load %arg15[%c0_293, %c1_294, %c1_295, %c0_296, %c0_297, %c0_298] : memref<2x2x6x2x8x20xf32, #tpu.memory_space<vmem>>, vector<2x1x4x1x4x20xf32>
    %203 = vector.shape_cast %202 : vector<2x1x4x1x4x20xf32> to vector<2x4x4x20xf32>
    %c0_299 = arith.constant 0 : index
    %c1_300 = arith.constant 1 : index
    %c1_301 = arith.constant 1 : index
    %c1_302 = arith.constant 1 : index
    %c0_303 = arith.constant 0 : index
    %c0_304 = arith.constant 0 : index
    %204 = vector.load %arg15[%c0_299, %c1_300, %c1_301, %c1_302, %c0_303, %c0_304] : memref<2x2x6x2x8x20xf32, #tpu.memory_space<vmem>>, vector<2x1x4x1x4x20xf32>
    %205 = vector.shape_cast %204 : vector<2x1x4x1x4x20xf32> to vector<2x4x4x20xf32>
    %206 = vector.shape_cast %199 : vector<2x4x4x20xf32> to vector<1x2x4x4x20xf32>
    %207 = vector.shape_cast %201 : vector<2x4x4x20xf32> to vector<1x2x4x4x20xf32>
    %208 = vector.shape_cast %203 : vector<2x4x4x20xf32> to vector<1x2x4x4x20xf32>
    %209 = vector.shape_cast %205 : vector<2x4x4x20xf32> to vector<1x2x4x4x20xf32>
    %210 = tpu.concatenate %206, %207, %208, %209 in 0 : vector<1x2x4x4x20xf32>, vector<1x2x4x4x20xf32>, vector<1x2x4x4x20xf32>, vector<1x2x4x4x20xf32> -> vector<4x2x4x4x20xf32>
    %211 = vector.shape_cast %210 : vector<4x2x4x4x20xf32> to vector<128x20xf32>
    %c10 = arith.constant 10 : index
    %c0_305 = arith.constant 0 : index
    %c0_306 = arith.constant 0 : index
    %212 = vector.load %arg3[%c10, %c0_305, %c0_306] : memref<25x20x20xf32, #tpu.memory_space<vmem>>, vector<1x20x20xf32>
    %213 = vector.shape_cast %212 : vector<1x20x20xf32> to vector<20x20xf32>
    %cst_307 = arith.constant dense<0.000000e+00> : vector<128x20xf32>
    %214 = tpu.matmul %211, %213, %cst_307 {dimension_numbers = #tpu.dot_dimension_numbers<[1], [0], [0], [1], [0, 0, 1, 1], [], []>} : vector<128x20xf32>, vector<20x20xf32>, vector<128x20xf32> -> vector<128x20xf32>
    %215 = arith.addf %197, %214 : vector<128x20xf32>
    %c0_308 = arith.constant 0 : index
    %c0_309 = arith.constant 0 : index
    %c1_310 = arith.constant 1 : index
    %c1_311 = arith.constant 1 : index
    %c0_312 = arith.constant 0 : index
    %c0_313 = arith.constant 0 : index
    %216 = vector.load %arg15[%c0_308, %c0_309, %c1_310, %c1_311, %c0_312, %c0_313] : memref<2x2x6x2x8x20xf32, #tpu.memory_space<vmem>>, vector<2x1x4x1x4x20xf32>
    %217 = vector.shape_cast %216 : vector<2x1x4x1x4x20xf32> to vector<2x4x4x20xf32>
    %c0_314 = arith.constant 0 : index
    %c0_315 = arith.constant 0 : index
    %c1_316 = arith.constant 1 : index
    %c0_317 = arith.constant 0 : index
    %c1_318 = arith.constant 1 : index
    %c0_319 = arith.constant 0 : index
    %218 = vector.load %arg15[%c0_314, %c0_315, %c1_316, %c0_317, %c1_318, %c0_319] : memref<2x2x6x2x8x20xf32, #tpu.memory_space<vmem>>, vector<2x1x4x1x4x20xf32>
    %219 = vector.shape_cast %218 : vector<2x1x4x1x4x20xf32> to vector<2x4x4x20xf32>
    %c0_320 = arith.constant 0 : index
    %c1_321 = arith.constant 1 : index
    %c1_322 = arith.constant 1 : index
    %c1_323 = arith.constant 1 : index
    %c0_324 = arith.constant 0 : index
    %c0_325 = arith.constant 0 : index
    %220 = vector.load %arg15[%c0_320, %c1_321, %c1_322, %c1_323, %c0_324, %c0_325] : memref<2x2x6x2x8x20xf32, #tpu.memory_space<vmem>>, vector<2x1x4x1x4x20xf32>
    %221 = vector.shape_cast %220 : vector<2x1x4x1x4x20xf32> to vector<2x4x4x20xf32>
    %c0_326 = arith.constant 0 : index
    %c1_327 = arith.constant 1 : index
    %c1_328 = arith.constant 1 : index
    %c0_329 = arith.constant 0 : index
    %c1_330 = arith.constant 1 : index
    %c0_331 = arith.constant 0 : index
    %222 = vector.load %arg15[%c0_326, %c1_327, %c1_328, %c0_329, %c1_330, %c0_331] : memref<2x2x6x2x8x20xf32, #tpu.memory_space<vmem>>, vector<2x1x4x1x4x20xf32>
    %223 = vector.shape_cast %222 : vector<2x1x4x1x4x20xf32> to vector<2x4x4x20xf32>
    %224 = vector.shape_cast %217 : vector<2x4x4x20xf32> to vector<1x2x4x4x20xf32>
    %225 = vector.shape_cast %219 : vector<2x4x4x20xf32> to vector<1x2x4x4x20xf32>
    %226 = vector.shape_cast %221 : vector<2x4x4x20xf32> to vector<1x2x4x4x20xf32>
    %227 = vector.shape_cast %223 : vector<2x4x4x20xf32> to vector<1x2x4x4x20xf32>
    %228 = tpu.concatenate %224, %225, %226, %227 in 0 : vector<1x2x4x4x20xf32>, vector<1x2x4x4x20xf32>, vector<1x2x4x4x20xf32>, vector<1x2x4x4x20xf32> -> vector<4x2x4x4x20xf32>
    %229 = vector.shape_cast %228 : vector<4x2x4x4x20xf32> to vector<128x20xf32>
    %c11 = arith.constant 11 : index
    %c0_332 = arith.constant 0 : index
    %c0_333 = arith.constant 0 : index
    %230 = vector.load %arg3[%c11, %c0_332, %c0_333] : memref<25x20x20xf32, #tpu.memory_space<vmem>>, vector<1x20x20xf32>
    %231 = vector.shape_cast %230 : vector<1x20x20xf32> to vector<20x20xf32>
    %cst_334 = arith.constant dense<0.000000e+00> : vector<128x20xf32>
    %232 = tpu.matmul %229, %231, %cst_334 {dimension_numbers = #tpu.dot_dimension_numbers<[1], [0], [0], [1], [0, 0, 1, 1], [], []>} : vector<128x20xf32>, vector<20x20xf32>, vector<128x20xf32> -> vector<128x20xf32>
    %233 = arith.addf %215, %232 : vector<128x20xf32>
    %c0_335 = arith.constant 0 : index
    %c0_336 = arith.constant 0 : index
    %c1_337 = arith.constant 1 : index
    %c0_338 = arith.constant 0 : index
    %c1_339 = arith.constant 1 : index
    %c0_340 = arith.constant 0 : index
    %234 = vector.load %arg15[%c0_335, %c0_336, %c1_337, %c0_338, %c1_339, %c0_340] : memref<2x2x6x2x8x20xf32, #tpu.memory_space<vmem>>, vector<2x1x4x1x4x20xf32>
    %235 = vector.shape_cast %234 : vector<2x1x4x1x4x20xf32> to vector<2x4x4x20xf32>
    %c0_341 = arith.constant 0 : index
    %c0_342 = arith.constant 0 : index
    %c1_343 = arith.constant 1 : index
    %c1_344 = arith.constant 1 : index
    %c1_345 = arith.constant 1 : index
    %c0_346 = arith.constant 0 : index
    %236 = vector.load %arg15[%c0_341, %c0_342, %c1_343, %c1_344, %c1_345, %c0_346] : memref<2x2x6x2x8x20xf32, #tpu.memory_space<vmem>>, vector<2x1x4x1x4x20xf32>
    %237 = vector.shape_cast %236 : vector<2x1x4x1x4x20xf32> to vector<2x4x4x20xf32>
    %c0_347 = arith.constant 0 : index
    %c1_348 = arith.constant 1 : index
    %c1_349 = arith.constant 1 : index
    %c0_350 = arith.constant 0 : index
    %c1_351 = arith.constant 1 : index
    %c0_352 = arith.constant 0 : index
    %238 = vector.load %arg15[%c0_347, %c1_348, %c1_349, %c0_350, %c1_351, %c0_352] : memref<2x2x6x2x8x20xf32, #tpu.memory_space<vmem>>, vector<2x1x4x1x4x20xf32>
    %239 = vector.shape_cast %238 : vector<2x1x4x1x4x20xf32> to vector<2x4x4x20xf32>
    %c0_353 = arith.constant 0 : index
    %c1_354 = arith.constant 1 : index
    %c1_355 = arith.constant 1 : index
    %c1_356 = arith.constant 1 : index
    %c1_357 = arith.constant 1 : index
    %c0_358 = arith.constant 0 : index
    %240 = vector.load %arg15[%c0_353, %c1_354, %c1_355, %c1_356, %c1_357, %c0_358] : memref<2x2x6x2x8x20xf32, #tpu.memory_space<vmem>>, vector<2x1x4x1x4x20xf32>
    %241 = vector.shape_cast %240 : vector<2x1x4x1x4x20xf32> to vector<2x4x4x20xf32>
    %242 = vector.shape_cast %235 : vector<2x4x4x20xf32> to vector<1x2x4x4x20xf32>
    %243 = vector.shape_cast %237 : vector<2x4x4x20xf32> to vector<1x2x4x4x20xf32>
    %244 = vector.shape_cast %239 : vector<2x4x4x20xf32> to vector<1x2x4x4x20xf32>
    %245 = vector.shape_cast %241 : vector<2x4x4x20xf32> to vector<1x2x4x4x20xf32>
    %246 = tpu.concatenate %242, %243, %244, %245 in 0 : vector<1x2x4x4x20xf32>, vector<1x2x4x4x20xf32>, vector<1x2x4x4x20xf32>, vector<1x2x4x4x20xf32> -> vector<4x2x4x4x20xf32>
    %247 = vector.shape_cast %246 : vector<4x2x4x4x20xf32> to vector<128x20xf32>
    %c12 = arith.constant 12 : index
    %c0_359 = arith.constant 0 : index
    %c0_360 = arith.constant 0 : index
    %248 = vector.load %arg3[%c12, %c0_359, %c0_360] : memref<25x20x20xf32, #tpu.memory_space<vmem>>, vector<1x20x20xf32>
    %249 = vector.shape_cast %248 : vector<1x20x20xf32> to vector<20x20xf32>
    %cst_361 = arith.constant dense<0.000000e+00> : vector<128x20xf32>
    %250 = tpu.matmul %247, %249, %cst_361 {dimension_numbers = #tpu.dot_dimension_numbers<[1], [0], [0], [1], [0, 0, 1, 1], [], []>} : vector<128x20xf32>, vector<20x20xf32>, vector<128x20xf32> -> vector<128x20xf32>
    %251 = arith.addf %233, %250 : vector<128x20xf32>
    %c0_362 = arith.constant 0 : index
    %c0_363 = arith.constant 0 : index
    %c1_364 = arith.constant 1 : index
    %c1_365 = arith.constant 1 : index
    %c1_366 = arith.constant 1 : index
    %c0_367 = arith.constant 0 : index
    %252 = vector.load %arg15[%c0_362, %c0_363, %c1_364, %c1_365, %c1_366, %c0_367] : memref<2x2x6x2x8x20xf32, #tpu.memory_space<vmem>>, vector<2x1x4x1x4x20xf32>
    %253 = vector.shape_cast %252 : vector<2x1x4x1x4x20xf32> to vector<2x4x4x20xf32>
    %c0_368 = arith.constant 0 : index
    %c0_369 = arith.constant 0 : index
    %c1_370 = arith.constant 1 : index
    %c0_371 = arith.constant 0 : index
    %c2_372 = arith.constant 2 : index
    %c0_373 = arith.constant 0 : index
    %254 = vector.load %arg15[%c0_368, %c0_369, %c1_370, %c0_371, %c2_372, %c0_373] : memref<2x2x6x2x8x20xf32, #tpu.memory_space<vmem>>, vector<2x1x4x1x4x20xf32>
    %255 = vector.shape_cast %254 : vector<2x1x4x1x4x20xf32> to vector<2x4x4x20xf32>
    %c0_374 = arith.constant 0 : index
    %c1_375 = arith.constant 1 : index
    %c1_376 = arith.constant 1 : index
    %c1_377 = arith.constant 1 : index
    %c1_378 = arith.constant 1 : index
    %c0_379 = arith.constant 0 : index
    %256 = vector.load %arg15[%c0_374, %c1_375, %c1_376, %c1_377, %c1_378, %c0_379] : memref<2x2x6x2x8x20xf32, #tpu.memory_space<vmem>>, vector<2x1x4x1x4x20xf32>
    %257 = vector.shape_cast %256 : vector<2x1x4x1x4x20xf32> to vector<2x4x4x20xf32>
    %c0_380 = arith.constant 0 : index
    %c1_381 = arith.constant 1 : index
    %c1_382 = arith.constant 1 : index
    %c0_383 = arith.constant 0 : index
    %c2_384 = arith.constant 2 : index
    %c0_385 = arith.constant 0 : index
    %258 = vector.load %arg15[%c0_380, %c1_381, %c1_382, %c0_383, %c2_384, %c0_385] : memref<2x2x6x2x8x20xf32, #tpu.memory_space<vmem>>, vector<2x1x4x1x4x20xf32>
    %259 = vector.shape_cast %258 : vector<2x1x4x1x4x20xf32> to vector<2x4x4x20xf32>
    %260 = vector.shape_cast %253 : vector<2x4x4x20xf32> to vector<1x2x4x4x20xf32>
    %261 = vector.shape_cast %255 : vector<2x4x4x20xf32> to vector<1x2x4x4x20xf32>
    %262 = vector.shape_cast %257 : vector<2x4x4x20xf32> to vector<1x2x4x4x20xf32>
    %263 = vector.shape_cast %259 : vector<2x4x4x20xf32> to vector<1x2x4x4x20xf32>
    %264 = tpu.concatenate %260, %261, %262, %263 in 0 : vector<1x2x4x4x20xf32>, vector<1x2x4x4x20xf32>, vector<1x2x4x4x20xf32>, vector<1x2x4x4x20xf32> -> vector<4x2x4x4x20xf32>
    %265 = vector.shape_cast %264 : vector<4x2x4x4x20xf32> to vector<128x20xf32>
    %c13 = arith.constant 13 : index
    %c0_386 = arith.constant 0 : index
    %c0_387 = arith.constant 0 : index
    %266 = vector.load %arg3[%c13, %c0_386, %c0_387] : memref<25x20x20xf32, #tpu.memory_space<vmem>>, vector<1x20x20xf32>
    %267 = vector.shape_cast %266 : vector<1x20x20xf32> to vector<20x20xf32>
    %cst_388 = arith.constant dense<0.000000e+00> : vector<128x20xf32>
    %268 = tpu.matmul %265, %267, %cst_388 {dimension_numbers = #tpu.dot_dimension_numbers<[1], [0], [0], [1], [0, 0, 1, 1], [], []>} : vector<128x20xf32>, vector<20x20xf32>, vector<128x20xf32> -> vector<128x20xf32>
    %269 = arith.addf %251, %268 : vector<128x20xf32>
    %c0_389 = arith.constant 0 : index
    %c0_390 = arith.constant 0 : index
    %c1_391 = arith.constant 1 : index
    %c0_392 = arith.constant 0 : index
    %c2_393 = arith.constant 2 : index
    %c0_394 = arith.constant 0 : index
    %270 = vector.load %arg15[%c0_389, %c0_390, %c1_391, %c0_392, %c2_393, %c0_394] : memref<2x2x6x2x8x20xf32, #tpu.memory_space<vmem>>, vector<2x1x4x1x4x20xf32>
    %271 = vector.shape_cast %270 : vector<2x1x4x1x4x20xf32> to vector<2x4x4x20xf32>
    %c0_395 = arith.constant 0 : index
    %c0_396 = arith.constant 0 : index
    %c1_397 = arith.constant 1 : index
    %c1_398 = arith.constant 1 : index
    %c2_399 = arith.constant 2 : index
    %c0_400 = arith.constant 0 : index
    %272 = vector.load %arg15[%c0_395, %c0_396, %c1_397, %c1_398, %c2_399, %c0_400] : memref<2x2x6x2x8x20xf32, #tpu.memory_space<vmem>>, vector<2x1x4x1x4x20xf32>
    %273 = vector.shape_cast %272 : vector<2x1x4x1x4x20xf32> to vector<2x4x4x20xf32>
    %c0_401 = arith.constant 0 : index
    %c1_402 = arith.constant 1 : index
    %c1_403 = arith.constant 1 : index
    %c0_404 = arith.constant 0 : index
    %c2_405 = arith.constant 2 : index
    %c0_406 = arith.constant 0 : index
    %274 = vector.load %arg15[%c0_401, %c1_402, %c1_403, %c0_404, %c2_405, %c0_406] : memref<2x2x6x2x8x20xf32, #tpu.memory_space<vmem>>, vector<2x1x4x1x4x20xf32>
    %275 = vector.shape_cast %274 : vector<2x1x4x1x4x20xf32> to vector<2x4x4x20xf32>
    %c0_407 = arith.constant 0 : index
    %c1_408 = arith.constant 1 : index
    %c1_409 = arith.constant 1 : index
    %c1_410 = arith.constant 1 : index
    %c2_411 = arith.constant 2 : index
    %c0_412 = arith.constant 0 : index
    %276 = vector.load %arg15[%c0_407, %c1_408, %c1_409, %c1_410, %c2_411, %c0_412] : memref<2x2x6x2x8x20xf32, #tpu.memory_space<vmem>>, vector<2x1x4x1x4x20xf32>
    %277 = vector.shape_cast %276 : vector<2x1x4x1x4x20xf32> to vector<2x4x4x20xf32>
    %278 = vector.shape_cast %271 : vector<2x4x4x20xf32> to vector<1x2x4x4x20xf32>
    %279 = vector.shape_cast %273 : vector<2x4x4x20xf32> to vector<1x2x4x4x20xf32>
    %280 = vector.shape_cast %275 : vector<2x4x4x20xf32> to vector<1x2x4x4x20xf32>
    %281 = vector.shape_cast %277 : vector<2x4x4x20xf32> to vector<1x2x4x4x20xf32>
    %282 = tpu.concatenate %278, %279, %280, %281 in 0 : vector<1x2x4x4x20xf32>, vector<1x2x4x4x20xf32>, vector<1x2x4x4x20xf32>, vector<1x2x4x4x20xf32> -> vector<4x2x4x4x20xf32>
    %283 = vector.shape_cast %282 : vector<4x2x4x4x20xf32> to vector<128x20xf32>
    %c14 = arith.constant 14 : index
    %c0_413 = arith.constant 0 : index
    %c0_414 = arith.constant 0 : index
    %284 = vector.load %arg3[%c14, %c0_413, %c0_414] : memref<25x20x20xf32, #tpu.memory_space<vmem>>, vector<1x20x20xf32>
    %285 = vector.shape_cast %284 : vector<1x20x20xf32> to vector<20x20xf32>
    %cst_415 = arith.constant dense<0.000000e+00> : vector<128x20xf32>
    %286 = tpu.matmul %283, %285, %cst_415 {dimension_numbers = #tpu.dot_dimension_numbers<[1], [0], [0], [1], [0, 0, 1, 1], [], []>} : vector<128x20xf32>, vector<20x20xf32>, vector<128x20xf32> -> vector<128x20xf32>
    %287 = arith.addf %269, %286 : vector<128x20xf32>
    %c0_416 = arith.constant 0 : index
    %c1_417 = arith.constant 1 : index
    %c1_418 = arith.constant 1 : index
    %c0_419 = arith.constant 0 : index
    %c0_420 = arith.constant 0 : index
    %c0_421 = arith.constant 0 : index
    %288 = vector.load %arg15[%c0_416, %c1_417, %c1_418, %c0_419, %c0_420, %c0_421] : memref<2x2x6x2x8x20xf32, #tpu.memory_space<vmem>>, vector<2x1x4x1x4x20xf32>
    %289 = vector.shape_cast %288 : vector<2x1x4x1x4x20xf32> to vector<2x4x4x20xf32>
    %c0_422 = arith.constant 0 : index
    %c1_423 = arith.constant 1 : index
    %c1_424 = arith.constant 1 : index
    %c1_425 = arith.constant 1 : index
    %c0_426 = arith.constant 0 : index
    %c0_427 = arith.constant 0 : index
    %290 = vector.load %arg15[%c0_422, %c1_423, %c1_424, %c1_425, %c0_426, %c0_427] : memref<2x2x6x2x8x20xf32, #tpu.memory_space<vmem>>, vector<2x1x4x1x4x20xf32>
    %291 = vector.shape_cast %290 : vector<2x1x4x1x4x20xf32> to vector<2x4x4x20xf32>
    %c0_428 = arith.constant 0 : index
    %c0_429 = arith.constant 0 : index
    %c2_430 = arith.constant 2 : index
    %c0_431 = arith.constant 0 : index
    %c0_432 = arith.constant 0 : index
    %c0_433 = arith.constant 0 : index
    %292 = vector.load %arg15[%c0_428, %c0_429, %c2_430, %c0_431, %c0_432, %c0_433] : memref<2x2x6x2x8x20xf32, #tpu.memory_space<vmem>>, vector<2x1x4x1x4x20xf32>
    %293 = vector.shape_cast %292 : vector<2x1x4x1x4x20xf32> to vector<2x4x4x20xf32>
    %c0_434 = arith.constant 0 : index
    %c0_435 = arith.constant 0 : index
    %c2_436 = arith.constant 2 : index
    %c1_437 = arith.constant 1 : index
    %c0_438 = arith.constant 0 : index
    %c0_439 = arith.constant 0 : index
    %294 = vector.load %arg15[%c0_434, %c0_435, %c2_436, %c1_437, %c0_438, %c0_439] : memref<2x2x6x2x8x20xf32, #tpu.memory_space<vmem>>, vector<2x1x4x1x4x20xf32>
    %295 = vector.shape_cast %294 : vector<2x1x4x1x4x20xf32> to vector<2x4x4x20xf32>
    %296 = vector.shape_cast %289 : vector<2x4x4x20xf32> to vector<1x2x4x4x20xf32>
    %297 = vector.shape_cast %291 : vector<2x4x4x20xf32> to vector<1x2x4x4x20xf32>
    %298 = vector.shape_cast %293 : vector<2x4x4x20xf32> to vector<1x2x4x4x20xf32>
    %299 = vector.shape_cast %295 : vector<2x4x4x20xf32> to vector<1x2x4x4x20xf32>
    %300 = tpu.concatenate %296, %297, %298, %299 in 0 : vector<1x2x4x4x20xf32>, vector<1x2x4x4x20xf32>, vector<1x2x4x4x20xf32>, vector<1x2x4x4x20xf32> -> vector<4x2x4x4x20xf32>
    %301 = vector.shape_cast %300 : vector<4x2x4x4x20xf32> to vector<128x20xf32>
    %c15 = arith.constant 15 : index
    %c0_440 = arith.constant 0 : index
    %c0_441 = arith.constant 0 : index
    %302 = vector.load %arg3[%c15, %c0_440, %c0_441] : memref<25x20x20xf32, #tpu.memory_space<vmem>>, vector<1x20x20xf32>
    %303 = vector.shape_cast %302 : vector<1x20x20xf32> to vector<20x20xf32>
    %cst_442 = arith.constant dense<0.000000e+00> : vector<128x20xf32>
    %304 = tpu.matmul %301, %303, %cst_442 {dimension_numbers = #tpu.dot_dimension_numbers<[1], [0], [0], [1], [0, 0, 1, 1], [], []>} : vector<128x20xf32>, vector<20x20xf32>, vector<128x20xf32> -> vector<128x20xf32>
    %305 = arith.addf %287, %304 : vector<128x20xf32>
    %c0_443 = arith.constant 0 : index
    %c1_444 = arith.constant 1 : index
    %c1_445 = arith.constant 1 : index
    %c1_446 = arith.constant 1 : index
    %c0_447 = arith.constant 0 : index
    %c0_448 = arith.constant 0 : index
    %306 = vector.load %arg15[%c0_443, %c1_444, %c1_445, %c1_446, %c0_447, %c0_448] : memref<2x2x6x2x8x20xf32, #tpu.memory_space<vmem>>, vector<2x1x4x1x4x20xf32>
    %307 = vector.shape_cast %306 : vector<2x1x4x1x4x20xf32> to vector<2x4x4x20xf32>
    %c0_449 = arith.constant 0 : index
    %c1_450 = arith.constant 1 : index
    %c1_451 = arith.constant 1 : index
    %c0_452 = arith.constant 0 : index
    %c1_453 = arith.constant 1 : index
    %c0_454 = arith.constant 0 : index
    %308 = vector.load %arg15[%c0_449, %c1_450, %c1_451, %c0_452, %c1_453, %c0_454] : memref<2x2x6x2x8x20xf32, #tpu.memory_space<vmem>>, vector<2x1x4x1x4x20xf32>
    %309 = vector.shape_cast %308 : vector<2x1x4x1x4x20xf32> to vector<2x4x4x20xf32>
    %c0_455 = arith.constant 0 : index
    %c0_456 = arith.constant 0 : index
    %c2_457 = arith.constant 2 : index
    %c1_458 = arith.constant 1 : index
    %c0_459 = arith.constant 0 : index
    %c0_460 = arith.constant 0 : index
    %310 = vector.load %arg15[%c0_455, %c0_456, %c2_457, %c1_458, %c0_459, %c0_460] : memref<2x2x6x2x8x20xf32, #tpu.memory_space<vmem>>, vector<2x1x4x1x4x20xf32>
    %311 = vector.shape_cast %310 : vector<2x1x4x1x4x20xf32> to vector<2x4x4x20xf32>
    %c0_461 = arith.constant 0 : index
    %c0_462 = arith.constant 0 : index
    %c2_463 = arith.constant 2 : index
    %c0_464 = arith.constant 0 : index
    %c1_465 = arith.constant 1 : index
    %c0_466 = arith.constant 0 : index
    %312 = vector.load %arg15[%c0_461, %c0_462, %c2_463, %c0_464, %c1_465, %c0_466] : memref<2x2x6x2x8x20xf32, #tpu.memory_space<vmem>>, vector<2x1x4x1x4x20xf32>
    %313 = vector.shape_cast %312 : vector<2x1x4x1x4x20xf32> to vector<2x4x4x20xf32>
    %314 = vector.shape_cast %307 : vector<2x4x4x20xf32> to vector<1x2x4x4x20xf32>
    %315 = vector.shape_cast %309 : vector<2x4x4x20xf32> to vector<1x2x4x4x20xf32>
    %316 = vector.shape_cast %311 : vector<2x4x4x20xf32> to vector<1x2x4x4x20xf32>
    %317 = vector.shape_cast %313 : vector<2x4x4x20xf32> to vector<1x2x4x4x20xf32>
    %318 = tpu.concatenate %314, %315, %316, %317 in 0 : vector<1x2x4x4x20xf32>, vector<1x2x4x4x20xf32>, vector<1x2x4x4x20xf32>, vector<1x2x4x4x20xf32> -> vector<4x2x4x4x20xf32>
    %319 = vector.shape_cast %318 : vector<4x2x4x4x20xf32> to vector<128x20xf32>
    %c16 = arith.constant 16 : index
    %c0_467 = arith.constant 0 : index
    %c0_468 = arith.constant 0 : index
    %320 = vector.load %arg3[%c16, %c0_467, %c0_468] : memref<25x20x20xf32, #tpu.memory_space<vmem>>, vector<1x20x20xf32>
    %321 = vector.shape_cast %320 : vector<1x20x20xf32> to vector<20x20xf32>
    %cst_469 = arith.constant dense<0.000000e+00> : vector<128x20xf32>
    %322 = tpu.matmul %319, %321, %cst_469 {dimension_numbers = #tpu.dot_dimension_numbers<[1], [0], [0], [1], [0, 0, 1, 1], [], []>} : vector<128x20xf32>, vector<20x20xf32>, vector<128x20xf32> -> vector<128x20xf32>
    %323 = arith.addf %305, %322 : vector<128x20xf32>
    %c0_470 = arith.constant 0 : index
    %c1_471 = arith.constant 1 : index
    %c1_472 = arith.constant 1 : index
    %c0_473 = arith.constant 0 : index
    %c1_474 = arith.constant 1 : index
    %c0_475 = arith.constant 0 : index
    %324 = vector.load %arg15[%c0_470, %c1_471, %c1_472, %c0_473, %c1_474, %c0_475] : memref<2x2x6x2x8x20xf32, #tpu.memory_space<vmem>>, vector<2x1x4x1x4x20xf32>
    %325 = vector.shape_cast %324 : vector<2x1x4x1x4x20xf32> to vector<2x4x4x20xf32>
    %c0_476 = arith.constant 0 : index
    %c1_477 = arith.constant 1 : index
    %c1_478 = arith.constant 1 : index
    %c1_479 = arith.constant 1 : index
    %c1_480 = arith.constant 1 : index
    %c0_481 = arith.constant 0 : index
    %326 = vector.load %arg15[%c0_476, %c1_477, %c1_478, %c1_479, %c1_480, %c0_481] : memref<2x2x6x2x8x20xf32, #tpu.memory_space<vmem>>, vector<2x1x4x1x4x20xf32>
    %327 = vector.shape_cast %326 : vector<2x1x4x1x4x20xf32> to vector<2x4x4x20xf32>
    %c0_482 = arith.constant 0 : index
    %c0_483 = arith.constant 0 : index
    %c2_484 = arith.constant 2 : index
    %c0_485 = arith.constant 0 : index
    %c1_486 = arith.constant 1 : index
    %c0_487 = arith.constant 0 : index
    %328 = vector.load %arg15[%c0_482, %c0_483, %c2_484, %c0_485, %c1_486, %c0_487] : memref<2x2x6x2x8x20xf32, #tpu.memory_space<vmem>>, vector<2x1x4x1x4x20xf32>
    %329 = vector.shape_cast %328 : vector<2x1x4x1x4x20xf32> to vector<2x4x4x20xf32>
    %c0_488 = arith.constant 0 : index
    %c0_489 = arith.constant 0 : index
    %c2_490 = arith.constant 2 : index
    %c1_491 = arith.constant 1 : index
    %c1_492 = arith.constant 1 : index
    %c0_493 = arith.constant 0 : index
    %330 = vector.load %arg15[%c0_488, %c0_489, %c2_490, %c1_491, %c1_492, %c0_493] : memref<2x2x6x2x8x20xf32, #tpu.memory_space<vmem>>, vector<2x1x4x1x4x20xf32>
    %331 = vector.shape_cast %330 : vector<2x1x4x1x4x20xf32> to vector<2x4x4x20xf32>
    %332 = vector.shape_cast %325 : vector<2x4x4x20xf32> to vector<1x2x4x4x20xf32>
    %333 = vector.shape_cast %327 : vector<2x4x4x20xf32> to vector<1x2x4x4x20xf32>
    %334 = vector.shape_cast %329 : vector<2x4x4x20xf32> to vector<1x2x4x4x20xf32>
    %335 = vector.shape_cast %331 : vector<2x4x4x20xf32> to vector<1x2x4x4x20xf32>
    %336 = tpu.concatenate %332, %333, %334, %335 in 0 : vector<1x2x4x4x20xf32>, vector<1x2x4x4x20xf32>, vector<1x2x4x4x20xf32>, vector<1x2x4x4x20xf32> -> vector<4x2x4x4x20xf32>
    %337 = vector.shape_cast %336 : vector<4x2x4x4x20xf32> to vector<128x20xf32>
    %c17 = arith.constant 17 : index
    %c0_494 = arith.constant 0 : index
    %c0_495 = arith.constant 0 : index
    %338 = vector.load %arg3[%c17, %c0_494, %c0_495] : memref<25x20x20xf32, #tpu.memory_space<vmem>>, vector<1x20x20xf32>
    %339 = vector.shape_cast %338 : vector<1x20x20xf32> to vector<20x20xf32>
    %cst_496 = arith.constant dense<0.000000e+00> : vector<128x20xf32>
    %340 = tpu.matmul %337, %339, %cst_496 {dimension_numbers = #tpu.dot_dimension_numbers<[1], [0], [0], [1], [0, 0, 1, 1], [], []>} : vector<128x20xf32>, vector<20x20xf32>, vector<128x20xf32> -> vector<128x20xf32>
    %341 = arith.addf %323, %340 : vector<128x20xf32>
    %c0_497 = arith.constant 0 : index
    %c1_498 = arith.constant 1 : index
    %c1_499 = arith.constant 1 : index
    %c1_500 = arith.constant 1 : index
    %c1_501 = arith.constant 1 : index
    %c0_502 = arith.constant 0 : index
    %342 = vector.load %arg15[%c0_497, %c1_498, %c1_499, %c1_500, %c1_501, %c0_502] : memref<2x2x6x2x8x20xf32, #tpu.memory_space<vmem>>, vector<2x1x4x1x4x20xf32>
    %343 = vector.shape_cast %342 : vector<2x1x4x1x4x20xf32> to vector<2x4x4x20xf32>
    %c0_503 = arith.constant 0 : index
    %c1_504 = arith.constant 1 : index
    %c1_505 = arith.constant 1 : index
    %c0_506 = arith.constant 0 : index
    %c2_507 = arith.constant 2 : index
    %c0_508 = arith.constant 0 : index
    %344 = vector.load %arg15[%c0_503, %c1_504, %c1_505, %c0_506, %c2_507, %c0_508] : memref<2x2x6x2x8x20xf32, #tpu.memory_space<vmem>>, vector<2x1x4x1x4x20xf32>
    %345 = vector.shape_cast %344 : vector<2x1x4x1x4x20xf32> to vector<2x4x4x20xf32>
    %c0_509 = arith.constant 0 : index
    %c0_510 = arith.constant 0 : index
    %c2_511 = arith.constant 2 : index
    %c1_512 = arith.constant 1 : index
    %c1_513 = arith.constant 1 : index
    %c0_514 = arith.constant 0 : index
    %346 = vector.load %arg15[%c0_509, %c0_510, %c2_511, %c1_512, %c1_513, %c0_514] : memref<2x2x6x2x8x20xf32, #tpu.memory_space<vmem>>, vector<2x1x4x1x4x20xf32>
    %347 = vector.shape_cast %346 : vector<2x1x4x1x4x20xf32> to vector<2x4x4x20xf32>
    %c0_515 = arith.constant 0 : index
    %c0_516 = arith.constant 0 : index
    %c2_517 = arith.constant 2 : index
    %c0_518 = arith.constant 0 : index
    %c2_519 = arith.constant 2 : index
    %c0_520 = arith.constant 0 : index
    %348 = vector.load %arg15[%c0_515, %c0_516, %c2_517, %c0_518, %c2_519, %c0_520] : memref<2x2x6x2x8x20xf32, #tpu.memory_space<vmem>>, vector<2x1x4x1x4x20xf32>
    %349 = vector.shape_cast %348 : vector<2x1x4x1x4x20xf32> to vector<2x4x4x20xf32>
    %350 = vector.shape_cast %343 : vector<2x4x4x20xf32> to vector<1x2x4x4x20xf32>
    %351 = vector.shape_cast %345 : vector<2x4x4x20xf32> to vector<1x2x4x4x20xf32>
    %352 = vector.shape_cast %347 : vector<2x4x4x20xf32> to vector<1x2x4x4x20xf32>
    %353 = vector.shape_cast %349 : vector<2x4x4x20xf32> to vector<1x2x4x4x20xf32>
    %354 = tpu.concatenate %350, %351, %352, %353 in 0 : vector<1x2x4x4x20xf32>, vector<1x2x4x4x20xf32>, vector<1x2x4x4x20xf32>, vector<1x2x4x4x20xf32> -> vector<4x2x4x4x20xf32>
    %355 = vector.shape_cast %354 : vector<4x2x4x4x20xf32> to vector<128x20xf32>
    %c18 = arith.constant 18 : index
    %c0_521 = arith.constant 0 : index
    %c0_522 = arith.constant 0 : index
    %356 = vector.load %arg3[%c18, %c0_521, %c0_522] : memref<25x20x20xf32, #tpu.memory_space<vmem>>, vector<1x20x20xf32>
    %357 = vector.shape_cast %356 : vector<1x20x20xf32> to vector<20x20xf32>
    %cst_523 = arith.constant dense<0.000000e+00> : vector<128x20xf32>
    %358 = tpu.matmul %355, %357, %cst_523 {dimension_numbers = #tpu.dot_dimension_numbers<[1], [0], [0], [1], [0, 0, 1, 1], [], []>} : vector<128x20xf32>, vector<20x20xf32>, vector<128x20xf32> -> vector<128x20xf32>
    %359 = arith.addf %341, %358 : vector<128x20xf32>
    %c0_524 = arith.constant 0 : index
    %c1_525 = arith.constant 1 : index
    %c1_526 = arith.constant 1 : index
    %c0_527 = arith.constant 0 : index
    %c2_528 = arith.constant 2 : index
    %c0_529 = arith.constant 0 : index
    %360 = vector.load %arg15[%c0_524, %c1_525, %c1_526, %c0_527, %c2_528, %c0_529] : memref<2x2x6x2x8x20xf32, #tpu.memory_space<vmem>>, vector<2x1x4x1x4x20xf32>
    %361 = vector.shape_cast %360 : vector<2x1x4x1x4x20xf32> to vector<2x4x4x20xf32>
    %c0_530 = arith.constant 0 : index
    %c1_531 = arith.constant 1 : index
    %c1_532 = arith.constant 1 : index
    %c1_533 = arith.constant 1 : index
    %c2_534 = arith.constant 2 : index
    %c0_535 = arith.constant 0 : index
    %362 = vector.load %arg15[%c0_530, %c1_531, %c1_532, %c1_533, %c2_534, %c0_535] : memref<2x2x6x2x8x20xf32, #tpu.memory_space<vmem>>, vector<2x1x4x1x4x20xf32>
    %363 = vector.shape_cast %362 : vector<2x1x4x1x4x20xf32> to vector<2x4x4x20xf32>
    %c0_536 = arith.constant 0 : index
    %c0_537 = arith.constant 0 : index
    %c2_538 = arith.constant 2 : index
    %c0_539 = arith.constant 0 : index
    %c2_540 = arith.constant 2 : index
    %c0_541 = arith.constant 0 : index
    %364 = vector.load %arg15[%c0_536, %c0_537, %c2_538, %c0_539, %c2_540, %c0_541] : memref<2x2x6x2x8x20xf32, #tpu.memory_space<vmem>>, vector<2x1x4x1x4x20xf32>
    %365 = vector.shape_cast %364 : vector<2x1x4x1x4x20xf32> to vector<2x4x4x20xf32>
    %c0_542 = arith.constant 0 : index
    %c0_543 = arith.constant 0 : index
    %c2_544 = arith.constant 2 : index
    %c1_545 = arith.constant 1 : index
    %c2_546 = arith.constant 2 : index
    %c0_547 = arith.constant 0 : index
    %366 = vector.load %arg15[%c0_542, %c0_543, %c2_544, %c1_545, %c2_546, %c0_547] : memref<2x2x6x2x8x20xf32, #tpu.memory_space<vmem>>, vector<2x1x4x1x4x20xf32>
    %367 = vector.shape_cast %366 : vector<2x1x4x1x4x20xf32> to vector<2x4x4x20xf32>
    %368 = vector.shape_cast %361 : vector<2x4x4x20xf32> to vector<1x2x4x4x20xf32>
    %369 = vector.shape_cast %363 : vector<2x4x4x20xf32> to vector<1x2x4x4x20xf32>
    %370 = vector.shape_cast %365 : vector<2x4x4x20xf32> to vector<1x2x4x4x20xf32>
    %371 = vector.shape_cast %367 : vector<2x4x4x20xf32> to vector<1x2x4x4x20xf32>
    %372 = tpu.concatenate %368, %369, %370, %371 in 0 : vector<1x2x4x4x20xf32>, vector<1x2x4x4x20xf32>, vector<1x2x4x4x20xf32>, vector<1x2x4x4x20xf32> -> vector<4x2x4x4x20xf32>
    %373 = vector.shape_cast %372 : vector<4x2x4x4x20xf32> to vector<128x20xf32>
    %c19 = arith.constant 19 : index
    %c0_548 = arith.constant 0 : index
    %c0_549 = arith.constant 0 : index
    %374 = vector.load %arg3[%c19, %c0_548, %c0_549] : memref<25x20x20xf32, #tpu.memory_space<vmem>>, vector<1x20x20xf32>
    %375 = vector.shape_cast %374 : vector<1x20x20xf32> to vector<20x20xf32>
    %cst_550 = arith.constant dense<0.000000e+00> : vector<128x20xf32>
    %376 = tpu.matmul %373, %375, %cst_550 {dimension_numbers = #tpu.dot_dimension_numbers<[1], [0], [0], [1], [0, 0, 1, 1], [], []>} : vector<128x20xf32>, vector<20x20xf32>, vector<128x20xf32> -> vector<128x20xf32>
    %377 = arith.addf %359, %376 : vector<128x20xf32>
    %c0_551 = arith.constant 0 : index
    %c0_552 = arith.constant 0 : index
    %c2_553 = arith.constant 2 : index
    %c0_554 = arith.constant 0 : index
    %c0_555 = arith.constant 0 : index
    %c0_556 = arith.constant 0 : index
    %378 = vector.load %arg15[%c0_551, %c0_552, %c2_553, %c0_554, %c0_555, %c0_556] : memref<2x2x6x2x8x20xf32, #tpu.memory_space<vmem>>, vector<2x1x4x1x4x20xf32>
    %379 = vector.shape_cast %378 : vector<2x1x4x1x4x20xf32> to vector<2x4x4x20xf32>
    %c0_557 = arith.constant 0 : index
    %c0_558 = arith.constant 0 : index
    %c2_559 = arith.constant 2 : index
    %c1_560 = arith.constant 1 : index
    %c0_561 = arith.constant 0 : index
    %c0_562 = arith.constant 0 : index
    %380 = vector.load %arg15[%c0_557, %c0_558, %c2_559, %c1_560, %c0_561, %c0_562] : memref<2x2x6x2x8x20xf32, #tpu.memory_space<vmem>>, vector<2x1x4x1x4x20xf32>
    %381 = vector.shape_cast %380 : vector<2x1x4x1x4x20xf32> to vector<2x4x4x20xf32>
    %c0_563 = arith.constant 0 : index
    %c1_564 = arith.constant 1 : index
    %c2_565 = arith.constant 2 : index
    %c0_566 = arith.constant 0 : index
    %c0_567 = arith.constant 0 : index
    %c0_568 = arith.constant 0 : index
    %382 = vector.load %arg15[%c0_563, %c1_564, %c2_565, %c0_566, %c0_567, %c0_568] : memref<2x2x6x2x8x20xf32, #tpu.memory_space<vmem>>, vector<2x1x4x1x4x20xf32>
    %383 = vector.shape_cast %382 : vector<2x1x4x1x4x20xf32> to vector<2x4x4x20xf32>
    %c0_569 = arith.constant 0 : index
    %c1_570 = arith.constant 1 : index
    %c2_571 = arith.constant 2 : index
    %c1_572 = arith.constant 1 : index
    %c0_573 = arith.constant 0 : index
    %c0_574 = arith.constant 0 : index
    %384 = vector.load %arg15[%c0_569, %c1_570, %c2_571, %c1_572, %c0_573, %c0_574] : memref<2x2x6x2x8x20xf32, #tpu.memory_space<vmem>>, vector<2x1x4x1x4x20xf32>
    %385 = vector.shape_cast %384 : vector<2x1x4x1x4x20xf32> to vector<2x4x4x20xf32>
    %386 = vector.shape_cast %379 : vector<2x4x4x20xf32> to vector<1x2x4x4x20xf32>
    %387 = vector.shape_cast %381 : vector<2x4x4x20xf32> to vector<1x2x4x4x20xf32>
    %388 = vector.shape_cast %383 : vector<2x4x4x20xf32> to vector<1x2x4x4x20xf32>
    %389 = vector.shape_cast %385 : vector<2x4x4x20xf32> to vector<1x2x4x4x20xf32>
    %390 = tpu.concatenate %386, %387, %388, %389 in 0 : vector<1x2x4x4x20xf32>, vector<1x2x4x4x20xf32>, vector<1x2x4x4x20xf32>, vector<1x2x4x4x20xf32> -> vector<4x2x4x4x20xf32>
    %391 = vector.shape_cast %390 : vector<4x2x4x4x20xf32> to vector<128x20xf32>
    %c20 = arith.constant 20 : index
    %c0_575 = arith.constant 0 : index
    %c0_576 = arith.constant 0 : index
    %392 = vector.load %arg3[%c20, %c0_575, %c0_576] : memref<25x20x20xf32, #tpu.memory_space<vmem>>, vector<1x20x20xf32>
    %393 = vector.shape_cast %392 : vector<1x20x20xf32> to vector<20x20xf32>
    %cst_577 = arith.constant dense<0.000000e+00> : vector<128x20xf32>
    %394 = tpu.matmul %391, %393, %cst_577 {dimension_numbers = #tpu.dot_dimension_numbers<[1], [0], [0], [1], [0, 0, 1, 1], [], []>} : vector<128x20xf32>, vector<20x20xf32>, vector<128x20xf32> -> vector<128x20xf32>
    %395 = arith.addf %377, %394 : vector<128x20xf32>
    %c0_578 = arith.constant 0 : index
    %c0_579 = arith.constant 0 : index
    %c2_580 = arith.constant 2 : index
    %c1_581 = arith.constant 1 : index
    %c0_582 = arith.constant 0 : index
    %c0_583 = arith.constant 0 : index
    %396 = vector.load %arg15[%c0_578, %c0_579, %c2_580, %c1_581, %c0_582, %c0_583] : memref<2x2x6x2x8x20xf32, #tpu.memory_space<vmem>>, vector<2x1x4x1x4x20xf32>
    %397 = vector.shape_cast %396 : vector<2x1x4x1x4x20xf32> to vector<2x4x4x20xf32>
    %c0_584 = arith.constant 0 : index
    %c0_585 = arith.constant 0 : index
    %c2_586 = arith.constant 2 : index
    %c0_587 = arith.constant 0 : index
    %c1_588 = arith.constant 1 : index
    %c0_589 = arith.constant 0 : index
    %398 = vector.load %arg15[%c0_584, %c0_585, %c2_586, %c0_587, %c1_588, %c0_589] : memref<2x2x6x2x8x20xf32, #tpu.memory_space<vmem>>, vector<2x1x4x1x4x20xf32>
    %399 = vector.shape_cast %398 : vector<2x1x4x1x4x20xf32> to vector<2x4x4x20xf32>
    %c0_590 = arith.constant 0 : index
    %c1_591 = arith.constant 1 : index
    %c2_592 = arith.constant 2 : index
    %c1_593 = arith.constant 1 : index
    %c0_594 = arith.constant 0 : index
    %c0_595 = arith.constant 0 : index
    %400 = vector.load %arg15[%c0_590, %c1_591, %c2_592, %c1_593, %c0_594, %c0_595] : memref<2x2x6x2x8x20xf32, #tpu.memory_space<vmem>>, vector<2x1x4x1x4x20xf32>
    %401 = vector.shape_cast %400 : vector<2x1x4x1x4x20xf32> to vector<2x4x4x20xf32>
    %c0_596 = arith.constant 0 : index
    %c1_597 = arith.constant 1 : index
    %c2_598 = arith.constant 2 : index
    %c0_599 = arith.constant 0 : index
    %c1_600 = arith.constant 1 : index
    %c0_601 = arith.constant 0 : index
    %402 = vector.load %arg15[%c0_596, %c1_597, %c2_598, %c0_599, %c1_600, %c0_601] : memref<2x2x6x2x8x20xf32, #tpu.memory_space<vmem>>, vector<2x1x4x1x4x20xf32>
    %403 = vector.shape_cast %402 : vector<2x1x4x1x4x20xf32> to vector<2x4x4x20xf32>
    %404 = vector.shape_cast %397 : vector<2x4x4x20xf32> to vector<1x2x4x4x20xf32>
    %405 = vector.shape_cast %399 : vector<2x4x4x20xf32> to vector<1x2x4x4x20xf32>
    %406 = vector.shape_cast %401 : vector<2x4x4x20xf32> to vector<1x2x4x4x20xf32>
    %407 = vector.shape_cast %403 : vector<2x4x4x20xf32> to vector<1x2x4x4x20xf32>
    %408 = tpu.concatenate %404, %405, %406, %407 in 0 : vector<1x2x4x4x20xf32>, vector<1x2x4x4x20xf32>, vector<1x2x4x4x20xf32>, vector<1x2x4x4x20xf32> -> vector<4x2x4x4x20xf32>
    %409 = vector.shape_cast %408 : vector<4x2x4x4x20xf32> to vector<128x20xf32>
    %c21 = arith.constant 21 : index
    %c0_602 = arith.constant 0 : index
    %c0_603 = arith.constant 0 : index
    %410 = vector.load %arg3[%c21, %c0_602, %c0_603] : memref<25x20x20xf32, #tpu.memory_space<vmem>>, vector<1x20x20xf32>
    %411 = vector.shape_cast %410 : vector<1x20x20xf32> to vector<20x20xf32>
    %cst_604 = arith.constant dense<0.000000e+00> : vector<128x20xf32>
    %412 = tpu.matmul %409, %411, %cst_604 {dimension_numbers = #tpu.dot_dimension_numbers<[1], [0], [0], [1], [0, 0, 1, 1], [], []>} : vector<128x20xf32>, vector<20x20xf32>, vector<128x20xf32> -> vector<128x20xf32>
    %413 = arith.addf %395, %412 : vector<128x20xf32>
    %c0_605 = arith.constant 0 : index
    %c0_606 = arith.constant 0 : index
    %c2_607 = arith.constant 2 : index
    %c0_608 = arith.constant 0 : index
    %c1_609 = arith.constant 1 : index
    %c0_610 = arith.constant 0 : index
    %414 = vector.load %arg15[%c0_605, %c0_606, %c2_607, %c0_608, %c1_609, %c0_610] : memref<2x2x6x2x8x20xf32, #tpu.memory_space<vmem>>, vector<2x1x4x1x4x20xf32>
    %415 = vector.shape_cast %414 : vector<2x1x4x1x4x20xf32> to vector<2x4x4x20xf32>
    %c0_611 = arith.constant 0 : index
    %c0_612 = arith.constant 0 : index
    %c2_613 = arith.constant 2 : index
    %c1_614 = arith.constant 1 : index
    %c1_615 = arith.constant 1 : index
    %c0_616 = arith.constant 0 : index
    %416 = vector.load %arg15[%c0_611, %c0_612, %c2_613, %c1_614, %c1_615, %c0_616] : memref<2x2x6x2x8x20xf32, #tpu.memory_space<vmem>>, vector<2x1x4x1x4x20xf32>
    %417 = vector.shape_cast %416 : vector<2x1x4x1x4x20xf32> to vector<2x4x4x20xf32>
    %c0_617 = arith.constant 0 : index
    %c1_618 = arith.constant 1 : index
    %c2_619 = arith.constant 2 : index
    %c0_620 = arith.constant 0 : index
    %c1_621 = arith.constant 1 : index
    %c0_622 = arith.constant 0 : index
    %418 = vector.load %arg15[%c0_617, %c1_618, %c2_619, %c0_620, %c1_621, %c0_622] : memref<2x2x6x2x8x20xf32, #tpu.memory_space<vmem>>, vector<2x1x4x1x4x20xf32>
    %419 = vector.shape_cast %418 : vector<2x1x4x1x4x20xf32> to vector<2x4x4x20xf32>
    %c0_623 = arith.constant 0 : index
    %c1_624 = arith.constant 1 : index
    %c2_625 = arith.constant 2 : index
    %c1_626 = arith.constant 1 : index
    %c1_627 = arith.constant 1 : index
    %c0_628 = arith.constant 0 : index
    %420 = vector.load %arg15[%c0_623, %c1_624, %c2_625, %c1_626, %c1_627, %c0_628] : memref<2x2x6x2x8x20xf32, #tpu.memory_space<vmem>>, vector<2x1x4x1x4x20xf32>
    %421 = vector.shape_cast %420 : vector<2x1x4x1x4x20xf32> to vector<2x4x4x20xf32>
    %422 = vector.shape_cast %415 : vector<2x4x4x20xf32> to vector<1x2x4x4x20xf32>
    %423 = vector.shape_cast %417 : vector<2x4x4x20xf32> to vector<1x2x4x4x20xf32>
    %424 = vector.shape_cast %419 : vector<2x4x4x20xf32> to vector<1x2x4x4x20xf32>
    %425 = vector.shape_cast %421 : vector<2x4x4x20xf32> to vector<1x2x4x4x20xf32>
    %426 = tpu.concatenate %422, %423, %424, %425 in 0 : vector<1x2x4x4x20xf32>, vector<1x2x4x4x20xf32>, vector<1x2x4x4x20xf32>, vector<1x2x4x4x20xf32> -> vector<4x2x4x4x20xf32>
    %427 = vector.shape_cast %426 : vector<4x2x4x4x20xf32> to vector<128x20xf32>
    %c22 = arith.constant 22 : index
    %c0_629 = arith.constant 0 : index
    %c0_630 = arith.constant 0 : index
    %428 = vector.load %arg3[%c22, %c0_629, %c0_630] : memref<25x20x20xf32, #tpu.memory_space<vmem>>, vector<1x20x20xf32>
    %429 = vector.shape_cast %428 : vector<1x20x20xf32> to vector<20x20xf32>
    %cst_631 = arith.constant dense<0.000000e+00> : vector<128x20xf32>
    %430 = tpu.matmul %427, %429, %cst_631 {dimension_numbers = #tpu.dot_dimension_numbers<[1], [0], [0], [1], [0, 0, 1, 1], [], []>} : vector<128x20xf32>, vector<20x20xf32>, vector<128x20xf32> -> vector<128x20xf32>
    %431 = arith.addf %413, %430 : vector<128x20xf32>
    %c0_632 = arith.constant 0 : index
    %c0_633 = arith.constant 0 : index
    %c2_634 = arith.constant 2 : index
    %c1_635 = arith.constant 1 : index
    %c1_636 = arith.constant 1 : index
    %c0_637 = arith.constant 0 : index
    %432 = vector.load %arg15[%c0_632, %c0_633, %c2_634, %c1_635, %c1_636, %c0_637] : memref<2x2x6x2x8x20xf32, #tpu.memory_space<vmem>>, vector<2x1x4x1x4x20xf32>
    %433 = vector.shape_cast %432 : vector<2x1x4x1x4x20xf32> to vector<2x4x4x20xf32>
    %c0_638 = arith.constant 0 : index
    %c0_639 = arith.constant 0 : index
    %c2_640 = arith.constant 2 : index
    %c0_641 = arith.constant 0 : index
    %c2_642 = arith.constant 2 : index
    %c0_643 = arith.constant 0 : index
    %434 = vector.load %arg15[%c0_638, %c0_639, %c2_640, %c0_641, %c2_642, %c0_643] : memref<2x2x6x2x8x20xf32, #tpu.memory_space<vmem>>, vector<2x1x4x1x4x20xf32>
    %435 = vector.shape_cast %434 : vector<2x1x4x1x4x20xf32> to vector<2x4x4x20xf32>
    %c0_644 = arith.constant 0 : index
    %c1_645 = arith.constant 1 : index
    %c2_646 = arith.constant 2 : index
    %c1_647 = arith.constant 1 : index
    %c1_648 = arith.constant 1 : index
    %c0_649 = arith.constant 0 : index
    %436 = vector.load %arg15[%c0_644, %c1_645, %c2_646, %c1_647, %c1_648, %c0_649] : memref<2x2x6x2x8x20xf32, #tpu.memory_space<vmem>>, vector<2x1x4x1x4x20xf32>
    %437 = vector.shape_cast %436 : vector<2x1x4x1x4x20xf32> to vector<2x4x4x20xf32>
    %c0_650 = arith.constant 0 : index
    %c1_651 = arith.constant 1 : index
    %c2_652 = arith.constant 2 : index
    %c0_653 = arith.constant 0 : index
    %c2_654 = arith.constant 2 : index
    %c0_655 = arith.constant 0 : index
    %438 = vector.load %arg15[%c0_650, %c1_651, %c2_652, %c0_653, %c2_654, %c0_655] : memref<2x2x6x2x8x20xf32, #tpu.memory_space<vmem>>, vector<2x1x4x1x4x20xf32>
    %439 = vector.shape_cast %438 : vector<2x1x4x1x4x20xf32> to vector<2x4x4x20xf32>
    %440 = vector.shape_cast %433 : vector<2x4x4x20xf32> to vector<1x2x4x4x20xf32>
    %441 = vector.shape_cast %435 : vector<2x4x4x20xf32> to vector<1x2x4x4x20xf32>
    %442 = vector.shape_cast %437 : vector<2x4x4x20xf32> to vector<1x2x4x4x20xf32>
    %443 = vector.shape_cast %439 : vector<2x4x4x20xf32> to vector<1x2x4x4x20xf32>
    %444 = tpu.concatenate %440, %441, %442, %443 in 0 : vector<1x2x4x4x20xf32>, vector<1x2x4x4x20xf32>, vector<1x2x4x4x20xf32>, vector<1x2x4x4x20xf32> -> vector<4x2x4x4x20xf32>
    %445 = vector.shape_cast %444 : vector<4x2x4x4x20xf32> to vector<128x20xf32>
    %c23 = arith.constant 23 : index
    %c0_656 = arith.constant 0 : index
    %c0_657 = arith.constant 0 : index
    %446 = vector.load %arg3[%c23, %c0_656, %c0_657] : memref<25x20x20xf32, #tpu.memory_space<vmem>>, vector<1x20x20xf32>
    %447 = vector.shape_cast %446 : vector<1x20x20xf32> to vector<20x20xf32>
    %cst_658 = arith.constant dense<0.000000e+00> : vector<128x20xf32>
    %448 = tpu.matmul %445, %447, %cst_658 {dimension_numbers = #tpu.dot_dimension_numbers<[1], [0], [0], [1], [0, 0, 1, 1], [], []>} : vector<128x20xf32>, vector<20x20xf32>, vector<128x20xf32> -> vector<128x20xf32>
    %449 = arith.addf %431, %448 : vector<128x20xf32>
    %c0_659 = arith.constant 0 : index
    %c0_660 = arith.constant 0 : index
    %c2_661 = arith.constant 2 : index
    %c0_662 = arith.constant 0 : index
    %c2_663 = arith.constant 2 : index
    %c0_664 = arith.constant 0 : index
    %450 = vector.load %arg15[%c0_659, %c0_660, %c2_661, %c0_662, %c2_663, %c0_664] : memref<2x2x6x2x8x20xf32, #tpu.memory_space<vmem>>, vector<2x1x4x1x4x20xf32>
    %451 = vector.shape_cast %450 : vector<2x1x4x1x4x20xf32> to vector<2x4x4x20xf32>
    %c0_665 = arith.constant 0 : index
    %c0_666 = arith.constant 0 : index
    %c2_667 = arith.constant 2 : index
    %c1_668 = arith.constant 1 : index
    %c2_669 = arith.constant 2 : index
    %c0_670 = arith.constant 0 : index
    %452 = vector.load %arg15[%c0_665, %c0_666, %c2_667, %c1_668, %c2_669, %c0_670] : memref<2x2x6x2x8x20xf32, #tpu.memory_space<vmem>>, vector<2x1x4x1x4x20xf32>
    %453 = vector.shape_cast %452 : vector<2x1x4x1x4x20xf32> to vector<2x4x4x20xf32>
    %c0_671 = arith.constant 0 : index
    %c1_672 = arith.constant 1 : index
    %c2_673 = arith.constant 2 : index
    %c0_674 = arith.constant 0 : index
    %c2_675 = arith.constant 2 : index
    %c0_676 = arith.constant 0 : index
    %454 = vector.load %arg15[%c0_671, %c1_672, %c2_673, %c0_674, %c2_675, %c0_676] : memref<2x2x6x2x8x20xf32, #tpu.memory_space<vmem>>, vector<2x1x4x1x4x20xf32>
    %455 = vector.shape_cast %454 : vector<2x1x4x1x4x20xf32> to vector<2x4x4x20xf32>
    %c0_677 = arith.constant 0 : index
    %c1_678 = arith.constant 1 : index
    %c2_679 = arith.constant 2 : index
    %c1_680 = arith.constant 1 : index
    %c2_681 = arith.constant 2 : index
    %c0_682 = arith.constant 0 : index
    %456 = vector.load %arg15[%c0_677, %c1_678, %c2_679, %c1_680, %c2_681, %c0_682] : memref<2x2x6x2x8x20xf32, #tpu.memory_space<vmem>>, vector<2x1x4x1x4x20xf32>
    %457 = vector.shape_cast %456 : vector<2x1x4x1x4x20xf32> to vector<2x4x4x20xf32>
    %458 = vector.shape_cast %451 : vector<2x4x4x20xf32> to vector<1x2x4x4x20xf32>
    %459 = vector.shape_cast %453 : vector<2x4x4x20xf32> to vector<1x2x4x4x20xf32>
    %460 = vector.shape_cast %455 : vector<2x4x4x20xf32> to vector<1x2x4x4x20xf32>
    %461 = vector.shape_cast %457 : vector<2x4x4x20xf32> to vector<1x2x4x4x20xf32>
    %462 = tpu.concatenate %458, %459, %460, %461 in 0 : vector<1x2x4x4x20xf32>, vector<1x2x4x4x20xf32>, vector<1x2x4x4x20xf32>, vector<1x2x4x4x20xf32> -> vector<4x2x4x4x20xf32>
    %463 = vector.shape_cast %462 : vector<4x2x4x4x20xf32> to vector<128x20xf32>
    %c24 = arith.constant 24 : index
    %c0_683 = arith.constant 0 : index
    %c0_684 = arith.constant 0 : index
    %464 = vector.load %arg3[%c24, %c0_683, %c0_684] : memref<25x20x20xf32, #tpu.memory_space<vmem>>, vector<1x20x20xf32>
    %465 = vector.shape_cast %464 : vector<1x20x20xf32> to vector<20x20xf32>
    %cst_685 = arith.constant dense<0.000000e+00> : vector<128x20xf32>
    %466 = tpu.matmul %463, %465, %cst_685 {dimension_numbers = #tpu.dot_dimension_numbers<[1], [0], [0], [1], [0, 0, 1, 1], [], []>} : vector<128x20xf32>, vector<20x20xf32>, vector<128x20xf32> -> vector<128x20xf32>
    %467 = arith.addf %449, %466 : vector<128x20xf32>
    %c0_686 = arith.constant 0 : index
    %c0_687 = arith.constant 0 : index
    %468 = vector.load %arg4[%c0_686, %c0_687] : memref<1x20xf32, #tpu.memory_space<vmem>>, vector<1x20xf32>
    %469 = vector.broadcast %468 : vector<1x20xf32> to vector<128x20xf32>
    %470 = arith.addf %467, %469 : vector<128x20xf32>
    %cst_688 = arith.constant 0.000000e+00 : f32
    %471 = vector.broadcast %cst_688 : f32 to vector<128x20xf32>
    %472 = arith.maximumf %470, %471 : vector<128x20xf32>
    %473 = vector.shape_cast %472 : vector<128x20xf32> to vector<4x32x20xf32>
    %474 = vector.extract_strided_slice %473 {offsets = [0, 0, 0], sizes = [1, 32, 20], strides = [1, 1, 1]} : vector<4x32x20xf32> to vector<1x32x20xf32>
    %475 = vector.shape_cast %474 : vector<1x32x20xf32> to vector<32x20xf32>
    %476 = vector.extract_strided_slice %473 {offsets = [1, 0, 0], sizes = [1, 32, 20], strides = [1, 1, 1]} : vector<4x32x20xf32> to vector<1x32x20xf32>
    %477 = vector.shape_cast %476 : vector<1x32x20xf32> to vector<32x20xf32>
    %478 = arith.maximumf %475, %477 : vector<32x20xf32>
    %479 = vector.extract_strided_slice %473 {offsets = [2, 0, 0], sizes = [1, 32, 20], strides = [1, 1, 1]} : vector<4x32x20xf32> to vector<1x32x20xf32>
    %480 = vector.shape_cast %479 : vector<1x32x20xf32> to vector<32x20xf32>
    %481 = vector.extract_strided_slice %473 {offsets = [3, 0, 0], sizes = [1, 32, 20], strides = [1, 1, 1]} : vector<4x32x20xf32> to vector<1x32x20xf32>
    %482 = vector.shape_cast %481 : vector<1x32x20xf32> to vector<32x20xf32>
    %483 = arith.maximumf %480, %482 : vector<32x20xf32>
    %484 = arith.maximumf %478, %483 : vector<32x20xf32>
    %485 = vector.shape_cast %484 : vector<32x20xf32> to vector<2x16x20xf32>
    %c0_689 = arith.constant 0 : index
    %c0_690 = arith.constant 0 : index
    %c0_691 = arith.constant 0 : index
    %486 = vector.load %arg16[%c0_689, %c0_690, %c0_691] : memref<2x16x20xf32, #tpu.memory_space<vmem>>, vector<2x16x20xf32>
    tpu.vector_store %arg16[%c0_689, %c0_690, %c0_691], %485 {strides = array<i32>} : memref<2x16x20xf32, #tpu.memory_space<vmem>>, vector<2x16x20xf32>,
    %c0_692 = arith.constant 0 : index
    %c0_693 = arith.constant 0 : index
    %c0_694 = arith.constant 0 : index
    %487 = vector.load %arg16[%c0_692, %c0_693, %c0_694] : memref<2x16x20xf32, #tpu.memory_space<vmem>>, vector<2x1x20xf32>
    %488 = vector.shape_cast %487 : vector<2x1x20xf32> to vector<2x20xf32>
    %c0_695 = arith.constant 0 : index
    %c0_696 = arith.constant 0 : index
    %489 = vector.load %arg17[%c0_695, %c0_696] : memref<2x320xf32, #tpu.memory_space<vmem>>, vector<2x20xf32>
    tpu.vector_store %arg17[%c0_695, %c0_696], %488 {strides = array<i32>} : memref<2x320xf32, #tpu.memory_space<vmem>>, vector<2x20xf32>,
    %c0_697 = arith.constant 0 : index
    %c1_698 = arith.constant 1 : index
    %c0_699 = arith.constant 0 : index
    %490 = vector.load %arg16[%c0_697, %c1_698, %c0_699] : memref<2x16x20xf32, #tpu.memory_space<vmem>>, vector<2x1x20xf32>
    %491 = vector.shape_cast %490 : vector<2x1x20xf32> to vector<2x20xf32>
    %c0_700 = arith.constant 0 : index
    %c20_701 = arith.constant 20 : index
    %492 = vector.load %arg17[%c0_700, %c20_701] : memref<2x320xf32, #tpu.memory_space<vmem>>, vector<2x20xf32>
    tpu.vector_store %arg17[%c0_700, %c20_701], %491 {strides = array<i32>} : memref<2x320xf32, #tpu.memory_space<vmem>>, vector<2x20xf32>,
    %c0_702 = arith.constant 0 : index
    %c2_703 = arith.constant 2 : index
    %c0_704 = arith.constant 0 : index
    %493 = vector.load %arg16[%c0_702, %c2_703, %c0_704] : memref<2x16x20xf32, #tpu.memory_space<vmem>>, vector<2x1x20xf32>
    %494 = vector.shape_cast %493 : vector<2x1x20xf32> to vector<2x20xf32>
    %c0_705 = arith.constant 0 : index
    %c40 = arith.constant 40 : index
    %495 = vector.load %arg17[%c0_705, %c40] : memref<2x320xf32, #tpu.memory_space<vmem>>, vector<2x20xf32>
    tpu.vector_store %arg17[%c0_705, %c40], %494 {strides = array<i32>} : memref<2x320xf32, #tpu.memory_space<vmem>>, vector<2x20xf32>,
    %c0_706 = arith.constant 0 : index
    %c3_707 = arith.constant 3 : index
    %c0_708 = arith.constant 0 : index
    %496 = vector.load %arg16[%c0_706, %c3_707, %c0_708] : memref<2x16x20xf32, #tpu.memory_space<vmem>>, vector<2x1x20xf32>
    %497 = vector.shape_cast %496 : vector<2x1x20xf32> to vector<2x20xf32>
    %c0_709 = arith.constant 0 : index
    %c60 = arith.constant 60 : index
    %498 = vector.load %arg17[%c0_709, %c60] : memref<2x320xf32, #tpu.memory_space<vmem>>, vector<2x20xf32>
    tpu.vector_store %arg17[%c0_709, %c60], %497 {strides = array<i32>} : memref<2x320xf32, #tpu.memory_space<vmem>>, vector<2x20xf32>,
    %c0_710 = arith.constant 0 : index
    %c4_711 = arith.constant 4 : index
    %c0_712 = arith.constant 0 : index
    %499 = vector.load %arg16[%c0_710, %c4_711, %c0_712] : memref<2x16x20xf32, #tpu.memory_space<vmem>>, vector<2x1x20xf32>
    %500 = vector.shape_cast %499 : vector<2x1x20xf32> to vector<2x20xf32>
    %c0_713 = arith.constant 0 : index
    %c80 = arith.constant 80 : index
    %501 = vector.load %arg17[%c0_713, %c80] : memref<2x320xf32, #tpu.memory_space<vmem>>, vector<2x20xf32>
    tpu.vector_store %arg17[%c0_713, %c80], %500 {strides = array<i32>} : memref<2x320xf32, #tpu.memory_space<vmem>>, vector<2x20xf32>,
    %c0_714 = arith.constant 0 : index
    %c5_715 = arith.constant 5 : index
    %c0_716 = arith.constant 0 : index
    %502 = vector.load %arg16[%c0_714, %c5_715, %c0_716] : memref<2x16x20xf32, #tpu.memory_space<vmem>>, vector<2x1x20xf32>
    %503 = vector.shape_cast %502 : vector<2x1x20xf32> to vector<2x20xf32>
    %c0_717 = arith.constant 0 : index
    %c100 = arith.constant 100 : index
    %504 = vector.load %arg17[%c0_717, %c100] : memref<2x320xf32, #tpu.memory_space<vmem>>, vector<2x20xf32>
    tpu.vector_store %arg17[%c0_717, %c100], %503 {strides = array<i32>} : memref<2x320xf32, #tpu.memory_space<vmem>>, vector<2x20xf32>,
    %c0_718 = arith.constant 0 : index
    %c6_719 = arith.constant 6 : index
    %c0_720 = arith.constant 0 : index
    %505 = vector.load %arg16[%c0_718, %c6_719, %c0_720] : memref<2x16x20xf32, #tpu.memory_space<vmem>>, vector<2x1x20xf32>
    %506 = vector.shape_cast %505 : vector<2x1x20xf32> to vector<2x20xf32>
    %c0_721 = arith.constant 0 : index
    %c120 = arith.constant 120 : index
    %507 = vector.load %arg17[%c0_721, %c120] : memref<2x320xf32, #tpu.memory_space<vmem>>, vector<2x20xf32>
    tpu.vector_store %arg17[%c0_721, %c120], %506 {strides = array<i32>} : memref<2x320xf32, #tpu.memory_space<vmem>>, vector<2x20xf32>,
    %c0_722 = arith.constant 0 : index
    %c7_723 = arith.constant 7 : index
    %c0_724 = arith.constant 0 : index
    %508 = vector.load %arg16[%c0_722, %c7_723, %c0_724] : memref<2x16x20xf32, #tpu.memory_space<vmem>>, vector<2x1x20xf32>
    %509 = vector.shape_cast %508 : vector<2x1x20xf32> to vector<2x20xf32>
    %c0_725 = arith.constant 0 : index
    %c140 = arith.constant 140 : index
    %510 = vector.load %arg17[%c0_725, %c140] : memref<2x320xf32, #tpu.memory_space<vmem>>, vector<2x20xf32>
    tpu.vector_store %arg17[%c0_725, %c140], %509 {strides = array<i32>} : memref<2x320xf32, #tpu.memory_space<vmem>>, vector<2x20xf32>,
    %c0_726 = arith.constant 0 : index
    %c8_727 = arith.constant 8 : index
    %c0_728 = arith.constant 0 : index
    %511 = vector.load %arg16[%c0_726, %c8_727, %c0_728] : memref<2x16x20xf32, #tpu.memory_space<vmem>>, vector<2x1x20xf32>
    %512 = vector.shape_cast %511 : vector<2x1x20xf32> to vector<2x20xf32>
    %c0_729 = arith.constant 0 : index
    %c160 = arith.constant 160 : index
    %513 = vector.load %arg17[%c0_729, %c160] : memref<2x320xf32, #tpu.memory_space<vmem>>, vector<2x20xf32>
    tpu.vector_store %arg17[%c0_729, %c160], %512 {strides = array<i32>} : memref<2x320xf32, #tpu.memory_space<vmem>>, vector<2x20xf32>,
    %c0_730 = arith.constant 0 : index
    %c9_731 = arith.constant 9 : index
    %c0_732 = arith.constant 0 : index
    %514 = vector.load %arg16[%c0_730, %c9_731, %c0_732] : memref<2x16x20xf32, #tpu.memory_space<vmem>>, vector<2x1x20xf32>
    %515 = vector.shape_cast %514 : vector<2x1x20xf32> to vector<2x20xf32>
    %c0_733 = arith.constant 0 : index
    %c180 = arith.constant 180 : index
    %516 = vector.load %arg17[%c0_733, %c180] : memref<2x320xf32, #tpu.memory_space<vmem>>, vector<2x20xf32>
    tpu.vector_store %arg17[%c0_733, %c180], %515 {strides = array<i32>} : memref<2x320xf32, #tpu.memory_space<vmem>>, vector<2x20xf32>,
    %c0_734 = arith.constant 0 : index
    %c10_735 = arith.constant 10 : index
    %c0_736 = arith.constant 0 : index
    %517 = vector.load %arg16[%c0_734, %c10_735, %c0_736] : memref<2x16x20xf32, #tpu.memory_space<vmem>>, vector<2x1x20xf32>
    %518 = vector.shape_cast %517 : vector<2x1x20xf32> to vector<2x20xf32>
    %c0_737 = arith.constant 0 : index
    %c200 = arith.constant 200 : index
    %519 = vector.load %arg17[%c0_737, %c200] : memref<2x320xf32, #tpu.memory_space<vmem>>, vector<2x20xf32>
    tpu.vector_store %arg17[%c0_737, %c200], %518 {strides = array<i32>} : memref<2x320xf32, #tpu.memory_space<vmem>>, vector<2x20xf32>,
    %c0_738 = arith.constant 0 : index
    %c11_739 = arith.constant 11 : index
    %c0_740 = arith.constant 0 : index
    %520 = vector.load %arg16[%c0_738, %c11_739, %c0_740] : memref<2x16x20xf32, #tpu.memory_space<vmem>>, vector<2x1x20xf32>
    %521 = vector.shape_cast %520 : vector<2x1x20xf32> to vector<2x20xf32>
    %c0_741 = arith.constant 0 : index
    %c220 = arith.constant 220 : index
    %522 = vector.load %arg17[%c0_741, %c220] : memref<2x320xf32, #tpu.memory_space<vmem>>, vector<2x20xf32>
    tpu.vector_store %arg17[%c0_741, %c220], %521 {strides = array<i32>} : memref<2x320xf32, #tpu.memory_space<vmem>>, vector<2x20xf32>,
    %c0_742 = arith.constant 0 : index
    %c12_743 = arith.constant 12 : index
    %c0_744 = arith.constant 0 : index
    %523 = vector.load %arg16[%c0_742, %c12_743, %c0_744] : memref<2x16x20xf32, #tpu.memory_space<vmem>>, vector<2x1x20xf32>
    %524 = vector.shape_cast %523 : vector<2x1x20xf32> to vector<2x20xf32>
    %c0_745 = arith.constant 0 : index
    %c240 = arith.constant 240 : index
    %525 = vector.load %arg17[%c0_745, %c240] : memref<2x320xf32, #tpu.memory_space<vmem>>, vector<2x20xf32>
    tpu.vector_store %arg17[%c0_745, %c240], %524 {strides = array<i32>} : memref<2x320xf32, #tpu.memory_space<vmem>>, vector<2x20xf32>,
    %c0_746 = arith.constant 0 : index
    %c13_747 = arith.constant 13 : index
    %c0_748 = arith.constant 0 : index
    %526 = vector.load %arg16[%c0_746, %c13_747, %c0_748] : memref<2x16x20xf32, #tpu.memory_space<vmem>>, vector<2x1x20xf32>
    %527 = vector.shape_cast %526 : vector<2x1x20xf32> to vector<2x20xf32>
    %c0_749 = arith.constant 0 : index
    %c260 = arith.constant 260 : index
    %528 = vector.load %arg17[%c0_749, %c260] : memref<2x320xf32, #tpu.memory_space<vmem>>, vector<2x20xf32>
    tpu.vector_store %arg17[%c0_749, %c260], %527 {strides = array<i32>} : memref<2x320xf32, #tpu.memory_space<vmem>>, vector<2x20xf32>,
    %c0_750 = arith.constant 0 : index
    %c14_751 = arith.constant 14 : index
    %c0_752 = arith.constant 0 : index
    %529 = vector.load %arg16[%c0_750, %c14_751, %c0_752] : memref<2x16x20xf32, #tpu.memory_space<vmem>>, vector<2x1x20xf32>
    %530 = vector.shape_cast %529 : vector<2x1x20xf32> to vector<2x20xf32>
    %c0_753 = arith.constant 0 : index
    %c280 = arith.constant 280 : index
    %531 = vector.load %arg17[%c0_753, %c280] : memref<2x320xf32, #tpu.memory_space<vmem>>, vector<2x20xf32>
    tpu.vector_store %arg17[%c0_753, %c280], %530 {strides = array<i32>} : memref<2x320xf32, #tpu.memory_space<vmem>>, vector<2x20xf32>,
    %c0_754 = arith.constant 0 : index
    %c15_755 = arith.constant 15 : index
    %c0_756 = arith.constant 0 : index
    %532 = vector.load %arg16[%c0_754, %c15_755, %c0_756] : memref<2x16x20xf32, #tpu.memory_space<vmem>>, vector<2x1x20xf32>
    %533 = vector.shape_cast %532 : vector<2x1x20xf32> to vector<2x20xf32>
    %c0_757 = arith.constant 0 : index
    %c300 = arith.constant 300 : index
    %534 = vector.load %arg17[%c0_757, %c300] : memref<2x320xf32, #tpu.memory_space<vmem>>, vector<2x20xf32>
    tpu.vector_store %arg17[%c0_757, %c300], %533 {strides = array<i32>} : memref<2x320xf32, #tpu.memory_space<vmem>>, vector<2x20xf32>,
    %c0_758 = arith.constant 0 : index
    %c0_759 = arith.constant 0 : index
    %535 = vector.load %arg1[%c0_758, %c0_759] : memref<2x12xf32, #tpu.memory_space<vmem>>, vector<2x12xf32>
    %cst_760 = arith.constant 0.00999999977 : f32
    %536 = vector.broadcast %cst_760 : f32 to vector<2x12xf32>
    %537 = arith.mulf %535, %536 : vector<2x12xf32>
    %c0_761 = arith.constant 0 : index
    %c0_762 = arith.constant 0 : index
    %538 = vector.load %arg5[%c0_761, %c0_762] : memref<12x200xf32, #tpu.memory_space<vmem>>, vector<12x200xf32>
    %cst_763 = arith.constant dense<0.000000e+00> : vector<2x200xf32>
    %539 = tpu.matmul %537, %538, %cst_763 {dimension_numbers = #tpu.dot_dimension_numbers<[1], [0], [0], [1], [0, 0, 1, 1], [], []>} : vector<2x12xf32>, vector<12x200xf32>, vector<2x200xf32> -> vector<2x200xf32>
    %c0_764 = arith.constant 0 : index
    %c0_765 = arith.constant 0 : index
    %540 = vector.load %arg17[%c0_764, %c0_765] : memref<2x320xf32, #tpu.memory_space<vmem>>, vector<2x320xf32>
    %c0_766 = arith.constant 0 : index
    %c0_767 = arith.constant 0 : index
    %541 = vector.load %arg6[%c0_766, %c0_767] : memref<320x200xf32, #tpu.memory_space<vmem>>, vector<320x200xf32>
    %cst_768 = arith.constant dense<0.000000e+00> : vector<2x200xf32>
    %542 = tpu.matmul %540, %541, %cst_768 {dimension_numbers = #tpu.dot_dimension_numbers<[1], [0], [0], [1], [0, 0, 1, 1], [], []>} : vector<2x320xf32>, vector<320x200xf32>, vector<2x200xf32> -> vector<2x200xf32>
    %543 = arith.addf %539, %542 : vector<2x200xf32>
    %c0_769 = arith.constant 0 : index
    %c0_770 = arith.constant 0 : index
    %544 = vector.load %arg7[%c0_769, %c0_770] : memref<1x200xf32, #tpu.memory_space<vmem>>, vector<1x200xf32>
    %545 = vector.broadcast %544 : vector<1x200xf32> to vector<2x200xf32>
    %546 = arith.addf %543, %545 : vector<2x200xf32>
    %cst_771 = arith.constant 0.00999999977 : f32
    %547 = vector.broadcast %cst_771 : f32 to vector<2x200xf32>
    %548 = arith.mulf %546, %547 : vector<2x200xf32>
    %549 = math.tanh %548 : vector<2x200xf32>
    %c0_772 = arith.constant 0 : index
    %c0_773 = arith.constant 0 : index
    %550 = vector.load %arg8[%c0_772, %c0_773] : memref<200x200xf32, #tpu.memory_space<vmem>>, vector<200x200xf32>
    %cst_774 = arith.constant dense<0.000000e+00> : vector<2x200xf32>
    %551 = tpu.matmul %549, %550, %cst_774 {dimension_numbers = #tpu.dot_dimension_numbers<[1], [0], [0], [1], [0, 0, 1, 1], [], []>} : vector<2x200xf32>, vector<200x200xf32>, vector<2x200xf32> -> vector<2x200xf32>
    %c0_775 = arith.constant 0 : index
    %c0_776 = arith.constant 0 : index
    %552 = vector.load %arg9[%c0_775, %c0_776] : memref<1x200xf32, #tpu.memory_space<vmem>>, vector<1x200xf32>
    %553 = vector.broadcast %552 : vector<1x200xf32> to vector<2x200xf32>
    %554 = arith.addf %551, %553 : vector<2x200xf32>
    %cst_777 = arith.constant 0.00999999977 : f32
    %555 = vector.broadcast %cst_777 : f32 to vector<2x200xf32>
    %556 = arith.mulf %554, %555 : vector<2x200xf32>
    %557 = math.tanh %556 : vector<2x200xf32>
    %c0_778 = arith.constant 0 : index
    %c0_779 = arith.constant 0 : index
    %558 = vector.load %arg10[%c0_778, %c0_779] : memref<200x200xf32, #tpu.memory_space<vmem>>, vector<200x200xf32>
    %cst_780 = arith.constant dense<0.000000e+00> : vector<2x200xf32>
    %559 = tpu.matmul %557, %558, %cst_780 {dimension_numbers = #tpu.dot_dimension_numbers<[1], [0], [0], [1], [0, 0, 1, 1], [], []>} : vector<2x200xf32>, vector<200x200xf32>, vector<2x200xf32> -> vector<2x200xf32>
    %c0_781 = arith.constant 0 : index
    %c0_782 = arith.constant 0 : index
    %560 = vector.load %arg11[%c0_781, %c0_782] : memref<1x200xf32, #tpu.memory_space<vmem>>, vector<1x200xf32>
    %561 = vector.broadcast %560 : vector<1x200xf32> to vector<2x200xf32>
    %562 = arith.addf %559, %561 : vector<2x200xf32>
    %cst_783 = arith.constant 0.00999999977 : f32
    %563 = vector.broadcast %cst_783 : f32 to vector<2x200xf32>
    %564 = arith.mulf %562, %563 : vector<2x200xf32>
    %565 = math.tanh %564 : vector<2x200xf32>
    %cst_784 = arith.constant dense<0.000000e+00> : vector<200xf32>
    %566 = vector.multi_reduction <add>, %565, %cst_784 [0] : vector<2x200xf32> to vector<200xf32>
    %567 = vector.shape_cast %566 : vector<200xf32> to vector<1x200xf32>
    %cst_785 = arith.constant 5.000000e-01 : f32
    %568 = vector.broadcast %cst_785 : f32 to vector<1x200xf32>
    %569 = arith.mulf %567, %568 : vector<1x200xf32>
    %c0_786 = arith.constant 0 : index
    %c0_787 = arith.constant 0 : index
    %570 = vector.load %arg12[%c0_786, %c0_787] : memref<200x1xf32, #tpu.memory_space<vmem>>, vector<200x1xf32>
    %cst_788 = arith.constant dense<0.000000e+00> : vector<1x1xf32>
    %571 = tpu.matmul %569, %570, %cst_788 {dimension_numbers = #tpu.dot_dimension_numbers<[1], [0], [0], [1], [0, 0, 1, 1], [], []>} : vector<1x200xf32>, vector<200x1xf32>, vector<1x1xf32> -> vector<1x1xf32>
    %c0_789 = arith.constant 0 : index
    %c0_790 = arith.constant 0 : index
    %572 = memref.load %arg13[%c0_789, %c0_790] : memref<1x1xf32, #tpu.memory_space<smem>>
    %573 = vector.broadcast %572 : f32 to vector<1x1xf32>
    %574 = arith.addf %571, %573 : vector<1x1xf32>
    %c0_791 = arith.constant 0 : index
    %c0_792 = arith.constant 0 : index
    %575 = vector.load %arg14[%c0_791, %c0_792] : memref<1x1xf32, #tpu.memory_space<vmem>>, vector<1x1xf32>
    tpu.vector_store %arg14[%c0_791, %c0_792], %574 {strides = array<i32>} : memref<1x1xf32, #tpu.memory_space<vmem>>, vector<1x1xf32>,
    return
  }
}

</mosaic_0001>

<bundles_post_ra>
// kernel: meta_loss_forward.1
= control target key start
LH: loop header
LB: loop body
LE: loop exit
PB: predicated region body
PF: predicated region fallthrough
CT: control target
= control target key end

     0   :  { %vm245_vm0 = vcmask 261120   ;;  %s15502_s0 = inlined_call_operand.vmem [shape: f32[1536,32], index: 0, kind: input, shape index: {}]   ;;  %s15503_s1 = inlined_call_operand.vmem [shape: f32[2,12], index: 1, kind: input, shape index: {}]   ;;  %s15504_s2 = inlined_call_operand.vmem [shape: f32[32,20], index: 2, kind: input, shape index: {}]   ;;  %s15505_s3 = inlined_call_operand.vmem [shape: f32[25,20,20], index: 3, kind: input, shape index: {}]   ;;  %s15506_s4 = inlined_call_operand.vmem [shape: f32[1,20], index: 4, kind: input, shape index: {}]   ;;  %s15507_s5 = inlined_call_operand.vmem [shape: f32[12,200], index: 5, kind: input, shape index: {}]   ;;  %s15508_s6 = inlined_call_operand.vmem [shape: f32[320,200], index: 6, kind: input, shape index: {}]   ;;  %s15509_s7 = inlined_call_operand.vmem [shape: f32[1,200], index: 7, kind: input, shape index: {}]   ;;  %s15510_s8 = inlined_call_operand.vmem [shape: f32[200,200], index: 8, kind: input, shape index: {}]   ;;  %s15511_s9 = inlined_call_operand.vmem [shape: f32[1,200], index: 9, kind: input, shape index: {}]   ;;  %s15512_s10 = inlined_call_operand.vmem [shape: f32[200,200], index: 10, kind: input, shape index: {}]   ;;  %s15513_s11 = inlined_call_operand.vmem [shape: f32[1,200], index: 11, kind: input, shape index: {}]   ;;  %s15514_s12 = inlined_call_operand.vmem [shape: f32[200,1], index: 12, kind: input, shape index: {}]   ;;  %s15515_s13 = inlined_call_operand.<no memory space> [shape: f32[1,1], index: 13, kind: input, shape index: {}]   ;;  %s15516_s14 = inlined_call_operand.hbm [shape: f32[1,1], index: 14, kind: output, shape index: {}]  }
   0x1   :  { %v241_v0 = vld [vmem:[%s15504_s2] sm:$0xff]  ;;  %v242_v1 = vld [vmem:[%s15504_s2 + $0x8] sm:$0xff]  ;;  %v243_v2 = vld [vmem:[%s15504_s2 + $0x10] sm:$0xff] }
   0x2   :  { %v11179_v3 = vpack.c.bf16 %v242_v1, %v241_v0  ;;  %v244_v4 = vld [vmem:[%s15504_s2 + $0x18] sm:$0xff]  ;;  %v49_v5 = vld [vmem:[%s15502_s0] sm:$0xff]  ;;  %v50_v7 = vld [vmem:[%s15502_s0 + $0x8] sm:$0xff] }
   0x3   :  { %v11183_v6 = vpack.c.bf16 %v244_v4, %v243_v2  ;;  %10141 = vmatprep.mubr.msk.f32.mxu0 %vm245_vm0, %v49_v5  ;;  %v51_v8 = vld [vmem:[%s15502_s0 + $0x10] sm:$0xff]  ;;  %v52_v9 = vld [vmem:[%s15502_s0 + $0x18] sm:$0xff]  ;;  %v53_v10 = vld [vmem:[%s15502_s0 + $0x20] sm:$0xff] }
   0x4   :  { %11180 = vmatprep.subr.bf16.mxu0 %v11179_v3  ;;  %v54_v11 = vld [vmem:[%s15502_s0 + $0x28] sm:$0xff]  ;;  %v55_v12 = vld [vmem:[%s15502_s0 + $0x30] sm:$0xff]  ;;  %v56_v13 = vld [vmem:[%s15502_s0 + $0x38] sm:$0xff] }
   0x5   :  { %11182 = vmatpush3.bf16.msra.mxu0 %v11179_v3  ;;  %v57_v14 = vld [vmem:[%s15502_s0 + $0x40] sm:$0xff]  ;;  %v58_v15 = vld [vmem:[%s15502_s0 + $0x48] sm:$0xff]  ;;  %v59_v16 = vld [vmem:[%s15502_s0 + $0x50] sm:$0xff] }
   0x6   :  { %11184 = vmatprep.subr.bf16.mxu0 %v11183_v6 }
   0x9   :  { %11186 = vmatpush3.bf16.msra.mxu0 %v11183_v6 }
   0xc   :  { %10142 = vmatmul.mubr.msk.f32.vlgmr.msra.gmra.mrb[0].mxu0 %vm245_vm0, %v50_v7 }
   0xd   :  { %10144 = vmatprep.mubr.msk.f32.mxu0 %vm245_vm0, %v51_v8 }
  0x10   :  { %10145 = vmatmul.mubr.msk.f32.gmra.mrb[2].mxu0 %vm245_vm0, %v52_v9 }
  0x11   :  { %10147 = vmatprep.mubr.msk.f32.mxu0 %vm245_vm0, %v53_v10 }
  0x14   :  { %10148 = vmatmul.mubr.msk.f32.gmra.mrb[4].mxu0 %vm245_vm0, %v54_v11 }
  0x15   :  { %10150 = vmatprep.mubr.msk.f32.mxu0 %vm245_vm0, %v55_v12 }
  0x18   :  { %10151 = vmatmul.mubr.msk.f32.gmra.mrb[6].mxu0 %vm245_vm0, %v56_v13 }
  0x19   :  { %10153 = vmatprep.mubr.msk.f32.mxu0 %vm245_vm0, %v57_v14 }
  0x1a   :  { %20 = vsyncpa [#allocation7], 0  ;;  %v60_v17 = vld [vmem:[%s15502_s0 + $0x58] sm:$0xff]  ;;  %v61_v18 = vld [vmem:[%s15502_s0 + $0x60] sm:$0xff]  ;;  %vm2370_vm1 = vcmask 1043456   ;;  %vm2183_vm2 = vcmask 162816  }
  0x1b   :  { %v62_v19 = vld [vmem:[%s15502_s0 + $0x68] sm:$0xff]  ;;  %v63_v20 = vld [vmem:[%s15502_s0 + $0x70] sm:$0xff]  ;;  %v64_v21 = vld [vmem:[%s15502_s0 + $0x78] sm:$0xff]  ;;  %vm7497_vm3 = vcmask 1041409   ;;  %vm7499_vm4 = vcmask 1043459   ;;  %vm7501_vm5 = vcmask 1045509  }
  0x1c   :  { %10154 = vmatmul.mubr.msk.f32.gmra.mrb[8].mxu0 %vm245_vm0, %v58_v15  ;;  %v65_v22 = vld [vmem:[%s15502_s0 + $0x80] sm:$0xff]  ;;  %v66_v23 = vld [vmem:[%s15502_s0 + $0x88] sm:$0xff]  ;;  %v67_v24 = vld [vmem:[%s15502_s0 + $0x90] sm:$0xff]  ;;  %vm7503_vm6 = vcmask 1047559   ;;  %s12097_s16 = smov 32   ;;  %s12098_s20 = smov 20  }
  0x1d   :  { %10156 = vmatprep.mubr.msk.f32.mxu0 %vm245_vm0, %v59_v16  ;;  %v68_v25 = vld [vmem:[%s15502_s0 + $0x98] sm:$0xff]  ;;  %v69_v26 = vld [vmem:[%s15502_s0 + $0xa0] sm:$0xff]  ;;  %v70_v27 = vld [vmem:[%s15502_s0 + $0xa8] sm:$0xff]  ;;  %s12099_s23 = smov 60   ;;  %s12103_s19 = smov 100   ;;  %vm7506_vm7 = vcmask 156672  }
  0x1e   :  { %v71_v28 = vld [vmem:[%s15502_s0 + $0xb0] sm:$0xff]  ;;  %v72_v29 = vld [vmem:[%s15502_s0 + $0xb8] sm:$0xff]  ;;  %v73_v30 = vld [vmem:[%s15502_s0 + $0xc0] sm:$0xff]  ;;  %s12104_s26 = smov 72   ;;  %s12105_s2 = smov 112   ;;  %vm7536_vm8 = vcmask 320672  }
  0x1f   :  { %v74_v31 = vld [vmem:[%s15502_s0 + $0xc8] sm:$0xff]  ;;  %v75_v32 = vld [vmem:[%s15502_s0 + $0xd0] sm:$0xff]  ;;  %v76_v33 = vld [vmem:[%s15502_s0 + $0xd8] sm:$0xff]  ;;  %s12107_s18 = smov 92   ;;  %vm7566_vm9 = vcmask 484672   ;;  %vm7596_vm10 = vcmask 648672  }
  0x20   :  { %10157 = vmatmul.mubr.msk.f32.gmra.mrb[10].mxu0 %vm245_vm0, %v60_v17  ;;  %v77_v34 = vld [vmem:[%s15502_s0 + $0xe0] sm:$0xff]  ;;  %v78_v35 = vld [vmem:[%s15502_s0 + $0xe8] sm:$0xff]  ;;  %v79_v36 = vld [vmem:[%s15502_s0 + $0xf0] sm:$0xff]  ;;  %vm7689_vm11 = vcmask 1042368   ;;  %vm7690_vm12 = vcmask 93186   ;;  %vm7626_vm13 = vcmask 812672  }
  0x21   :  { %10159 = vmatprep.mubr.msk.f32.mxu0 %vm245_vm0, %v61_v18  ;;  %v80_v37 = vld [vmem:[%s15502_s0 + $0xf8] sm:$0xff]  ;;  %v81_v38 = vld [vmem:[%s15502_s0 + $0x100] sm:$0xff]  ;;  %v82_v39 = vld [vmem:[%s15502_s0 + $0x108] sm:$0xff]  ;;  %vm7686_vm14 = vcmask 982016   ;;  %vm7656_vm15 = vcmask 976672  }
  0x22   :  { %v83_v40 = vld [vmem:[%s15502_s0 + $0x110] sm:$0xff]  ;;  %v84_v41 = vld [vmem:[%s15502_s0 + $0x118] sm:$0xff]  ;;  %v85_v42 = vld [vmem:[%s15502_s0 + $0x120] sm:$0xff] }
  0x23   :  { %v86_v43 = vld [vmem:[%s15502_s0 + $0x128] sm:$0xff]  ;;  %v87_v44 = vld [vmem:[%s15502_s0 + $0x130] sm:$0xff]  ;;  %v88_v45 = vld [vmem:[%s15502_s0 + $0x138] sm:$0xff] }
  0x24   :  { %10160 = vmatmul.mubr.msk.f32.gmra.mrb[12].mxu0 %vm245_vm0, %v62_v19  ;;  %v89_v46 = vld [vmem:[%s15502_s0 + $0x140] sm:$0xff]  ;;  %v90_v47 = vld [vmem:[%s15502_s0 + $0x148] sm:$0xff]  ;;  %v91_v48 = vld [vmem:[%s15502_s0 + $0x150] sm:$0xff] }
  0x25   :  { %10162 = vmatprep.mubr.msk.f32.mxu0 %vm245_vm0, %v63_v20  ;;  %v92_v49 = vld [vmem:[%s15502_s0 + $0x158] sm:$0xff]  ;;  %v93_v50 = vld [vmem:[%s15502_s0 + $0x160] sm:$0xff]  ;;  %v94_v51 = vld [vmem:[%s15502_s0 + $0x168] sm:$0xff] }
  0x26   :  { %v95_v52 = vld [vmem:[%s15502_s0 + $0x170] sm:$0xff]  ;;  %v96_v53 = vld [vmem:[%s15502_s0 + $0x178] sm:$0xff]  ;;  %v97_v54 = vld [vmem:[%s15502_s0 + $0x180] sm:$0xff] }
  0x27   :  { %v98_v55 = vld [vmem:[%s15502_s0 + $0x188] sm:$0xff]  ;;  %v99_v56 = vld [vmem:[%s15502_s0 + $0x190] sm:$0xff]  ;;  %v100_v57 = vld [vmem:[%s15502_s0 + $0x198] sm:$0xff] }
  0x28   :  { %10163 = vmatmul.mubr.msk.f32.gmra.mrb[14].mxu0 %vm245_vm0, %v64_v21  ;;  %v101_v58 = vld [vmem:[%s15502_s0 + $0x1a0] sm:$0xff]  ;;  %v102_v59 = vld [vmem:[%s15502_s0 + $0x1a8] sm:$0xff]  ;;  %v103_v60 = vld [vmem:[%s15502_s0 + $0x1b0] sm:$0xff] }
  0x29   :  { %10165 = vmatprep.mubr.msk.f32.mxu0 %vm245_vm0, %v65_v22  ;;  %v104_v61 = vld [vmem:[%s15502_s0 + $0x1b8] sm:$0xff]  ;;  %v105_v62 = vld [vmem:[%s15502_s0 + $0x1c0] sm:$0xff]  ;;  %v106_v63 = vld [vmem:[%s15502_s0 + $0x1c8] sm:$0xff] }
  0x2a   :  { %v107_v0 = vld [vmem:[%s15502_s0 + $0x1d0] sm:$0xff]  ;;  %v108_v1 = vld [vmem:[%s15502_s0 + $0x1d8] sm:$0xff]  ;;  %v109_v2 = vld [vmem:[%s15502_s0 + $0x1e0] sm:$0xff] }
  0x2b   :  { %v110_v3 = vld [vmem:[%s15502_s0 + $0x1e8] sm:$0xff]  ;;  %v111_v4 = vld [vmem:[%s15502_s0 + $0x1f0] sm:$0xff]  ;;  %v112_v5 = vld [vmem:[%s15502_s0 + $0x1f8] sm:$0xff] }
  0x2c   :  { %10166 = vmatmul.mubr.msk.f32.gmra.mrb[16].mxu0 %vm245_vm0, %v66_v23  ;;  %v113_v6 = vld [vmem:[%s15502_s0 + $0x200] sm:$0xff]  ;;  %v114_v7 = vld [vmem:[%s15502_s0 + $0x208] sm:$0xff]  ;;  %v115_v8 = vld [vmem:[%s15502_s0 + $0x210] sm:$0xff] }
  0x2d   :  { %10168 = vmatprep.mubr.msk.f32.mxu0 %vm245_vm0, %v67_v24  ;;  %v116_v9 = vld [vmem:[%s15502_s0 + $0x218] sm:$0xff]  ;;  %v117_v10 = vld [vmem:[%s15502_s0 + $0x220] sm:$0xff]  ;;  %v118_v11 = vld [vmem:[%s15502_s0 + $0x228] sm:$0xff] }
  0x2e   :  { %v119_v12 = vld [vmem:[%s15502_s0 + $0x230] sm:$0xff]  ;;  %v120_v13 = vld [vmem:[%s15502_s0 + $0x238] sm:$0xff]  ;;  %v121_v14 = vld [vmem:[%s15502_s0 + $0x240] sm:$0xff] }
  0x2f   :  { %v122_v15 = vld [vmem:[%s15502_s0 + $0x248] sm:$0xff]  ;;  %v123_v16 = vld [vmem:[%s15502_s0 + $0x250] sm:$0xff]  ;;  %v124_v17 = vld [vmem:[%s15502_s0 + $0x258] sm:$0xff] }
  0x30   :  { %10169 = vmatmul.mubr.msk.f32.gmra.mrb[18].mxu0 %vm245_vm0, %v68_v25  ;;  %v125_v18 = vld [vmem:[%s15502_s0 + $0x260] sm:$0xff]  ;;  %v126_v19 = vld [vmem:[%s15502_s0 + $0x268] sm:$0xff]  ;;  %v127_v20 = vld [vmem:[%s15502_s0 + $0x270] sm:$0xff] }
  0x31   :  { %10171 = vmatprep.mubr.msk.f32.mxu0 %vm245_vm0, %v69_v26  ;;  %v128_v21 = vld [vmem:[%s15502_s0 + $0x278] sm:$0xff]  ;;  %v129_v22 = vld [vmem:[%s15502_s0 + $0x280] sm:$0xff]  ;;  %v130_v23 = vld [vmem:[%s15502_s0 + $0x288] sm:$0xff] }
  0x32   :  { %v131_v24 = vld [vmem:[%s15502_s0 + $0x290] sm:$0xff]  ;;  %v132_v25 = vld [vmem:[%s15502_s0 + $0x298] sm:$0xff]  ;;  %v133_v26 = vld [vmem:[%s15502_s0 + $0x2a0] sm:$0xff] }
  0x34   :  { %10172 = vmatmul.mubr.msk.f32.gmra.mrb[20].mxu0 %vm245_vm0, %v70_v27  ;;  %v134_v27 = vld [vmem:[%s15502_s0 + $0x2a8] sm:$0xff] }
  0x35   :  { %10174 = vmatprep.mubr.msk.f32.mxu0 %vm245_vm0, %v71_v28  ;;  %v135_v28 = vld [vmem:[%s15502_s0 + $0x2b0] sm:$0xff] }
  0x38   :  { %10175 = vmatmul.mubr.msk.f32.gmra.mrb[22].mxu0 %vm245_vm0, %v72_v29  ;;  %v136_v29 = vld [vmem:[%s15502_s0 + $0x2b8] sm:$0xff] }
  0x39   :  { %10177 = vmatprep.mubr.msk.f32.mxu0 %vm245_vm0, %v73_v30  ;;  %v137_v30 = vld [vmem:[%s15502_s0 + $0x2c0] sm:$0xff] }
  0x3c   :  { %10178 = vmatmul.mubr.msk.f32.gmra.mrb[24].mxu0 %vm245_vm0, %v74_v31  ;;  %v138_v31 = vld [vmem:[%s15502_s0 + $0x2c8] sm:$0xff] }
  0x3d   :  { %10180 = vmatprep.mubr.msk.f32.mxu0 %vm245_vm0, %v75_v32  ;;  %v139_v32 = vld [vmem:[%s15502_s0 + $0x2d0] sm:$0xff] }
  0x40   :  { %10181 = vmatmul.mubr.msk.f32.gmra.mrb[26].mxu0 %vm245_vm0, %v76_v33  ;;  %v140_v33 = vld [vmem:[%s15502_s0 + $0x2d8] sm:$0xff] }
  0x41   :  { %10183 = vmatprep.mubr.msk.f32.mxu0 %vm245_vm0, %v77_v34  ;;  %v141_v34 = vld [vmem:[%s15502_s0 + $0x2e0] sm:$0xff] }
  0x44   :  { %10184 = vmatmul.mubr.msk.f32.gmra.mrb[28].mxu0 %vm245_vm0, %v78_v35  ;;  %v142_v35 = vld [vmem:[%s15502_s0 + $0x2e8] sm:$0xff] }
  0x45   :  { %10186 = vmatprep.mubr.msk.f32.mxu0 %vm245_vm0, %v79_v36  ;;  %v143_v36 = vld [vmem:[%s15502_s0 + $0x2f0] sm:$0xff] }
  0x48   :  { %10187 = vmatmul.mubr.msk.f32.gmra.mrb[30].mxu0 %vm245_vm0, %v80_v37  ;;  %v144_v37 = vld [vmem:[%s15502_s0 + $0x2f8] sm:$0xff] }
  0x49   :  { %10189 = vmatprep.mubr.msk.f32.mxu0 %vm245_vm0, %v81_v38  ;;  %v145_v38 = vld [vmem:[%s15502_s0 + $0x300] sm:$0xff] }
  0x4c   :  { %10190 = vmatmul.mubr.msk.f32.gmra.mrb[32].mxu0 %vm245_vm0, %v82_v39  ;;  %v146_v39 = vld [vmem:[%s15502_s0 + $0x308] sm:$0xff] }
  0x4d   :  { %10192 = vmatprep.mubr.msk.f32.mxu0 %vm245_vm0, %v83_v40  ;;  %v147_v40 = vld [vmem:[%s15502_s0 + $0x310] sm:$0xff] }
  0x50   :  { %10193 = vmatmul.mubr.msk.f32.gmra.mrb[34].mxu0 %vm245_vm0, %v84_v41  ;;  %v148_v41 = vld [vmem:[%s15502_s0 + $0x318] sm:$0xff] }
  0x51   :  { %10195 = vmatprep.mubr.msk.f32.mxu0 %vm245_vm0, %v85_v42  ;;  %v149_v42 = vld [vmem:[%s15502_s0 + $0x320] sm:$0xff] }
  0x54   :  { %10196 = vmatmul.mubr.msk.f32.gmra.mrb[36].mxu0 %vm245_vm0, %v86_v43  ;;  %v150_v43 = vld [vmem:[%s15502_s0 + $0x328] sm:$0xff] }
  0x55   :  { %10198 = vmatprep.mubr.msk.f32.mxu0 %vm245_vm0, %v87_v44  ;;  %v151_v44 = vld [vmem:[%s15502_s0 + $0x330] sm:$0xff] }
  0x58   :  { %10199 = vmatmul.mubr.msk.f32.gmra.mrb[38].mxu0 %vm245_vm0, %v88_v45  ;;  %v152_v45 = vld [vmem:[%s15502_s0 + $0x338] sm:$0xff] }
  0x59   :  { %10201 = vmatprep.mubr.msk.f32.mxu0 %vm245_vm0, %v89_v46  ;;  %v153_v46 = vld [vmem:[%s15502_s0 + $0x340] sm:$0xff] }
  0x5c   :  { %10202 = vmatmul.mubr.msk.f32.gmra.mrb[40].mxu0 %vm245_vm0, %v90_v47  ;;  %v154_v47 = vld [vmem:[%s15502_s0 + $0x348] sm:$0xff] }
  0x5d   :  { %10204 = vmatprep.mubr.msk.f32.mxu0 %vm245_vm0, %v91_v48  ;;  %v155_v48 = vld [vmem:[%s15502_s0 + $0x350] sm:$0xff] }
  0x60   :  { %10205 = vmatmul.mubr.msk.f32.gmra.mrb[42].mxu0 %vm245_vm0, %v92_v49  ;;  %v156_v49 = vld [vmem:[%s15502_s0 + $0x358] sm:$0xff] }
  0x61   :  { %10207 = vmatprep.mubr.msk.f32.mxu0 %vm245_vm0, %v93_v50  ;;  %v157_v50 = vld [vmem:[%s15502_s0 + $0x360] sm:$0xff] }
  0x64   :  { %10208 = vmatmul.mubr.msk.f32.gmra.mrb[44].mxu0 %vm245_vm0, %v94_v51 }
  0x65   :  { %10210 = vmatprep.mubr.msk.f32.mxu0 %vm245_vm0, %v95_v52 }
  0x68   :  { %10211 = vmatmul.mubr.msk.f32.gmra.mrb[46].mxu0 %vm245_vm0, %v96_v53  ;;  %v158_v53 = vld [vmem:[%s15502_s0 + $0x368] sm:$0xff] }
  0x69   :  { %10213 = vmatprep.mubr.msk.f32.mxu0 %vm245_vm0, %v97_v54  ;;  %v159_v54 = vld [vmem:[%s15502_s0 + $0x370] sm:$0xff] }
  0x6c   :  { %10214 = vmatmul.mubr.msk.f32.gmra.mrb[48].mxu0 %vm245_vm0, %v98_v55 }
  0x6d   :  { %10216 = vmatprep.mubr.msk.f32.mxu0 %vm245_vm0, %v99_v56 }
  0x70   :  { %10217 = vmatmul.mubr.msk.f32.gmra.mrb[50].mxu0 %vm245_vm0, %v100_v57  ;;  %v160_v57 = vld [vmem:[%s15502_s0 + $0x378] sm:$0xff] }
  0x71   :  { %10219 = vmatprep.mubr.msk.f32.mxu0 %vm245_vm0, %v101_v58  ;;  %v161_v58 = vld [vmem:[%s15502_s0 + $0x380] sm:$0xff] }
  0x74   :  { %10220 = vmatmul.mubr.msk.f32.gmra.mrb[52].mxu0 %vm245_vm0, %v102_v59 }
  0x75   :  { %10222 = vmatprep.mubr.msk.f32.mxu0 %vm245_vm0, %v103_v60 }
  0x78   :  { %10223 = vmatmul.mubr.msk.f32.gmra.mrb[54].mxu0 %vm245_vm0, %v104_v61  ;;  %v162_v61 = vld [vmem:[%s15502_s0 + $0x388] sm:$0xff] }
  0x79   :  { %10225 = vmatprep.mubr.msk.f32.mxu0 %vm245_vm0, %v105_v62  ;;  %v163_v62 = vld [vmem:[%s15502_s0 + $0x390] sm:$0xff] }
  0x7c   :  { %10226 = vmatmul.mubr.msk.f32.gmra.mrb[56].mxu0 %vm245_vm0, %v106_v63 }
  0x7d   :  { %10228 = vmatprep.mubr.msk.f32.mxu0 %vm245_vm0, %v107_v0 }
  0x80   :  { %10229 = vmatmul.mubr.msk.f32.gmra.mrb[58].mxu0 %vm245_vm0, %v108_v1  ;;  %v164_v1 = vld [vmem:[%s15502_s0 + $0x398] sm:$0xff] }
  0x81   :  { %10231 = vmatprep.mubr.msk.f32.mxu0 %vm245_vm0, %v109_v2  ;;  %v165_v2 = vld [vmem:[%s15502_s0 + $0x3a0] sm:$0xff] }
  0x84   :  { %10232 = vmatmul.mubr.msk.f32.gmra.mrb[60].mxu0 %vm245_vm0, %v110_v3 }
  0x85   :  { %10234 = vmatprep.mubr.msk.f32.mxu0 %vm245_vm0, %v111_v4 }
  0x88   :  { %10235 = vmatmul.mubr.msk.f32.gmra.mrb[62].mxu0 %vm245_vm0, %v112_v5  ;;  %v166_v5 = vld [vmem:[%s15502_s0 + $0x3a8] sm:$0xff] }
  0x89   :  { %10237 = vmatprep.mubr.msk.f32.mxu0 %vm245_vm0, %v113_v6  ;;  %v167_v6 = vld [vmem:[%s15502_s0 + $0x3b0] sm:$0xff] }
  0x8c   :  { %10238 = vmatmul.mubr.msk.f32.gmra.mrb[64].mxu0 %vm245_vm0, %v114_v7 }
  0x8d   :  { %10240 = vmatprep.mubr.msk.f32.mxu0 %vm245_vm0, %v115_v8 }
  0x90   :  { %10241 = vmatmul.mubr.msk.f32.gmra.mrb[66].mxu0 %vm245_vm0, %v116_v9  ;;  %v168_v9 = vld [vmem:[%s15502_s0 + $0x3b8] sm:$0xff] }
  0x91   :  { %10243 = vmatprep.mubr.msk.f32.mxu0 %vm245_vm0, %v117_v10  ;;  %v169_v10 = vld [vmem:[%s15502_s0 + $0x3c0] sm:$0xff] }
  0x94   :  { %10244 = vmatmul.mubr.msk.f32.gmra.mrb[68].mxu0 %vm245_vm0, %v118_v11 }
  0x95   :  { %10246 = vmatprep.mubr.msk.f32.mxu0 %vm245_vm0, %v119_v12 }
  0x98   :  { %10247 = vmatmul.mubr.msk.f32.gmra.mrb[70].mxu0 %vm245_vm0, %v120_v13  ;;  %v170_v13 = vld [vmem:[%s15502_s0 + $0x3c8] sm:$0xff] }
  0x99   :  { %10249 = vmatprep.mubr.msk.f32.mxu0 %vm245_vm0, %v121_v14  ;;  %v171_v14 = vld [vmem:[%s15502_s0 + $0x3d0] sm:$0xff] }
  0x9c   :  { %10250 = vmatmul.mubr.msk.f32.gmra.mrb[72].mxu0 %vm245_vm0, %v122_v15 }
  0x9d   :  { %10252 = vmatprep.mubr.msk.f32.mxu0 %vm245_vm0, %v123_v16 }
  0xa0   :  { %10253 = vmatmul.mubr.msk.f32.gmra.mrb[74].mxu0 %vm245_vm0, %v124_v17  ;;  %v172_v17 = vld [vmem:[%s15502_s0 + $0x3d8] sm:$0xff] }
  0xa1   :  { %10255 = vmatprep.mubr.msk.f32.mxu0 %vm245_vm0, %v125_v18  ;;  %v173_v18 = vld [vmem:[%s15502_s0 + $0x3e0] sm:$0xff] }
  0xa4   :  { %10256 = vmatmul.mubr.msk.f32.gmra.mrb[76].mxu0 %vm245_vm0, %v126_v19 }
  0xa5   :  { %10258 = vmatprep.mubr.msk.f32.mxu0 %vm245_vm0, %v127_v20 }
  0xa8   :  { %10259 = vmatmul.mubr.msk.f32.gmra.mrb[78].mxu0 %vm245_vm0, %v128_v21  ;;  %v174_v21 = vld [vmem:[%s15502_s0 + $0x3e8] sm:$0xff] }
  0xa9   :  { %10261 = vmatprep.mubr.msk.f32.mxu0 %vm245_vm0, %v129_v22  ;;  %v175_v22 = vld [vmem:[%s15502_s0 + $0x3f0] sm:$0xff] }
  0xac   :  { %10262 = vmatmul.mubr.msk.f32.gmra.mrb[80].mxu0 %vm245_vm0, %v130_v23 }
  0xad   :  { %10264 = vmatprep.mubr.msk.f32.mxu0 %vm245_vm0, %v131_v24 }
  0xb0   :  { %10265 = vmatmul.mubr.msk.f32.gmra.mrb[82].mxu0 %vm245_vm0, %v132_v25  ;;  %v176_v25 = vld [vmem:[%s15502_s0 + $0x3f8] sm:$0xff] }
  0xb1   :  { %10267 = vmatprep.mubr.msk.f32.mxu0 %vm245_vm0, %v133_v26  ;;  %v177_v26 = vld [vmem:[%s15502_s0 + $0x400] sm:$0xff] }
  0xb4   :  { %10268 = vmatmul.mubr.msk.f32.gmra.mrb[84].mxu0 %vm245_vm0, %v134_v27 }
  0xb5   :  { %10270 = vmatprep.mubr.msk.f32.mxu0 %vm245_vm0, %v135_v28 }
  0xb8   :  { %10271 = vmatmul.mubr.msk.f32.gmra.mrb[86].mxu0 %vm245_vm0, %v136_v29  ;;  %v178_v29 = vld [vmem:[%s15502_s0 + $0x408] sm:$0xff] }
  0xb9   :  { %10273 = vmatprep.mubr.msk.f32.mxu0 %vm245_vm0, %v137_v30  ;;  %v179_v30 = vld [vmem:[%s15502_s0 + $0x410] sm:$0xff] }
  0xbc   :  { %10274 = vmatmul.mubr.msk.f32.gmra.mrb[88].mxu0 %vm245_vm0, %v138_v31 }
  0xbd   :  { %10276 = vmatprep.mubr.msk.f32.mxu0 %vm245_vm0, %v139_v32 }
  0xc0   :  { %10277 = vmatmul.mubr.msk.f32.gmra.mrb[90].mxu0 %vm245_vm0, %v140_v33  ;;  %v180_v33 = vld [vmem:[%s15502_s0 + $0x418] sm:$0xff] }
  0xc1   :  { %10279 = vmatprep.mubr.msk.f32.mxu0 %vm245_vm0, %v141_v34  ;;  %v181_v34 = vld [vmem:[%s15502_s0 + $0x420] sm:$0xff] }
  0xc4   :  { %10280 = vmatmul.mubr.msk.f32.gmra.mrb[92].mxu0 %vm245_vm0, %v142_v35 }
  0xc5   :  { %10282 = vmatprep.mubr.msk.f32.mxu0 %vm245_vm0, %v143_v36 }
  0xc8   :  { %10283 = vmatmul.mubr.msk.f32.gmra.mrb[94].mxu0 %vm245_vm0, %v144_v37  ;;  %v182_v37 = vld [vmem:[%s15502_s0 + $0x428] sm:$0xff] }
  0xc9   :  { %10285 = vmatprep.mubr.msk.f32.mxu0 %vm245_vm0, %v145_v38  ;;  %v183_v38 = vld [vmem:[%s15502_s0 + $0x430] sm:$0xff] }
  0xcc   :  { %10286 = vmatmul.mubr.msk.f32.gmra.mrb[96].mxu0 %vm245_vm0, %v146_v39 }
  0xcd   :  { %10288 = vmatprep.mubr.msk.f32.mxu0 %vm245_vm0, %v147_v40 }
  0xd0   :  { %10289 = vmatmul.mubr.msk.f32.gmra.mrb[98].mxu0 %vm245_vm0, %v148_v41  ;;  %v184_v41 = vld [vmem:[%s15502_s0 + $0x438] sm:$0xff] }
  0xd1   :  { %10291 = vmatprep.mubr.msk.f32.mxu0 %vm245_vm0, %v149_v42  ;;  %v185_v42 = vld [vmem:[%s15502_s0 + $0x440] sm:$0xff] }
  0xd4   :  { %10292 = vmatmul.mubr.msk.f32.gmra.mrb[100].mxu0 %vm245_vm0, %v150_v43 }
  0xd5   :  { %10294 = vmatprep.mubr.msk.f32.mxu0 %vm245_vm0, %v151_v44 }
  0xd8   :  { %10295 = vmatmul.mubr.msk.f32.gmra.mrb[102].mxu0 %vm245_vm0, %v152_v45  ;;  %v186_v45 = vld [vmem:[%s15502_s0 + $0x448] sm:$0xff] }
  0xd9   :  { %10297 = vmatprep.mubr.msk.f32.mxu0 %vm245_vm0, %v153_v46  ;;  %v187_v46 = vld [vmem:[%s15502_s0 + $0x450] sm:$0xff] }
  0xdc   :  { %10298 = vmatmul.mubr.msk.f32.gmra.mrb[104].mxu0 %vm245_vm0, %v154_v47 }
  0xdd   :  { %10300 = vmatprep.mubr.msk.f32.mxu0 %vm245_vm0, %v155_v48 }
  0xdf   :  { %v12637_v51 = vpop.f32.mrb[0].mxu0 }
  0xe0   :  { %v12639_v52 = vpop.f32.mrb[1].mxu0  ;;  %10301 = vmatmul.mubr.msk.f32.gmra.mrb[106].mxu0 %vm245_vm0, %v156_v49  ;;  %v188_v49 = vld [vmem:[%s15502_s0 + $0x458] sm:$0xff] }
  0xe1   :  { %10303 = vmatprep.mubr.msk.f32.mxu0 %vm245_vm0, %v157_v50  ;;  %v189_v50 = vld [vmem:[%s15502_s0 + $0x460] sm:$0xff] }
  0xe3   :  { %v12649_v55 = vpop.f32.mrb[2].mxu0 }
  0xe4   :  { %v12651_v56 = vpop.f32.mrb[3].mxu0  ;;  %10304 = vmatmul.mubr.msk.f32.gmra.mrb[108].mxu0 %vm245_vm0, %v158_v53 }
  0xe5   :  { %10306 = vmatprep.mubr.msk.f32.mxu0 %vm245_vm0, %v159_v54 }
  0xe7   :  { %v12661_v59 = vpop.f32.mrb[4].mxu0 }
  0xe8   :  { %v12663_v60 = vpop.f32.mrb[5].mxu0  ;;  %10307 = vmatmul.mubr.msk.f32.gmra.mrb[110].mxu0 %vm245_vm0, %v160_v57  ;;  %v190_v57 = vld [vmem:[%s15502_s0 + $0x468] sm:$0xff] }
  0xe9   :  { %10309 = vmatprep.mubr.msk.f32.mxu0 %vm245_vm0, %v161_v58  ;;  %v191_v58 = vld [vmem:[%s15502_s0 + $0x470] sm:$0xff] }
  0xeb   :  { %v12673_v63 = vpop.f32.mrb[6].mxu0 }
  0xec   :  { %v12675_v0 = vpop.f32.mrb[7].mxu0  ;;  %10310 = vmatmul.mubr.msk.f32.gmra.mrb[112].mxu0 %vm245_vm0, %v162_v61 }
  0xed   :  { %10312 = vmatprep.mubr.msk.f32.mxu0 %vm245_vm0, %v163_v62 }
  0xef   :  { %v12685_v3 = vpop.f32.mrb[8].mxu0 }
  0xf0   :  { %v12687_v4 = vpop.f32.mrb[9].mxu0  ;;  %10313 = vmatmul.mubr.msk.f32.gmra.mrb[114].mxu0 %vm245_vm0, %v164_v1  ;;  %v192_v1 = vld [vmem:[%s15502_s0 + $0x478] sm:$0xff] }
  0xf1   :  { %10315 = vmatprep.mubr.msk.f32.mxu0 %vm245_vm0, %v165_v2  ;;  %v193_v2 = vld [vmem:[%s15502_s0 + $0x480] sm:$0xff] }
  0xf3   :  { %v12697_v7 = vpop.f32.mrb[10].mxu0 }
  0xf4   :  { %v12699_v8 = vpop.f32.mrb[11].mxu0  ;;  %10316 = vmatmul.mubr.msk.f32.gmra.mrb[116].mxu0 %vm245_vm0, %v166_v5 }
  0xf5   :  { %10318 = vmatprep.mubr.msk.f32.mxu0 %vm245_vm0, %v167_v6 }
  0xf7   :  { %v12709_v11 = vpop.f32.mrb[12].mxu0 }
  0xf8   :  { %v12711_v12 = vpop.f32.mrb[13].mxu0  ;;  %10319 = vmatmul.mubr.msk.f32.gmra.mrb[118].mxu0 %vm245_vm0, %v168_v9  ;;  %v194_v9 = vld [vmem:[%s15502_s0 + $0x488] sm:$0xff] }
  0xf9   :  { %10321 = vmatprep.mubr.msk.f32.mxu0 %vm245_vm0, %v169_v10  ;;  %v195_v10 = vld [vmem:[%s15502_s0 + $0x490] sm:$0xff] }
  0xfb   :  { %v12721_v15 = vpop.f32.mrb[14].mxu0 }
  0xfc   :  { %v12723_v16 = vpop.f32.mrb[15].mxu0  ;;  %10322 = vmatmul.mubr.msk.f32.gmra.mrb[120].mxu0 %vm245_vm0, %v170_v13 }
  0xfd   :  { %10324 = vmatprep.mubr.msk.f32.mxu0 %vm245_vm0, %v171_v14 }
  0xff   :  { %v12733_v19 = vpop.f32.mrb[16].mxu0 }
 0x100   :  { %v12735_v20 = vpop.f32.mrb[17].mxu0  ;;  %10325 = vmatmul.mubr.msk.f32.gmra.mrb[122].mxu0 %vm245_vm0, %v172_v17  ;;  %v196_v17 = vld [vmem:[%s15502_s0 + $0x498] sm:$0xff] }
 0x101   :  { %10327 = vmatprep.mubr.msk.f32.mxu0 %vm245_vm0, %v173_v18  ;;  %v197_v18 = vld [vmem:[%s15502_s0 + $0x4a0] sm:$0xff] }
 0x103   :  { %v12745_v23 = vpop.f32.mrb[18].mxu0 }
 0x104   :  { %v12747_v24 = vpop.f32.mrb[19].mxu0  ;;  %10328 = vmatmul.mubr.msk.f32.gmra.mrb[124].mxu0 %vm245_vm0, %v174_v21 }
 0x105   :  { %10330 = vmatprep.mubr.msk.f32.mxu0 %vm245_vm0, %v175_v22 }
 0x107   :  { %v12757_v27 = vpop.f32.mrb[20].mxu0 }
 0x108   :  { %v12759_v28 = vpop.f32.mrb[21].mxu0  ;;  %10331 = vmatmul.mubr.msk.f32.gmra.mrb[126].mxu0 %vm245_vm0, %v176_v25  ;;  %v198_v25 = vld [vmem:[%s15502_s0 + $0x4a8] sm:$0xff] }
 0x109   :  { %10333 = vmatprep.mubr.msk.f32.mxu0 %vm245_vm0, %v177_v26  ;;  %v199_v26 = vld [vmem:[%s15502_s0 + $0x4b0] sm:$0xff] }
 0x10b   :  { %v12769_v31 = vpop.f32.mrb[22].mxu0 }
 0x10c   :  { %v12771_v32 = vpop.f32.mrb[23].mxu0  ;;  %10334 = vmatmul.mubr.msk.f32.gmra.mrb[128].mxu0 %vm245_vm0, %v178_v29 }
 0x10d   :  { %10336 = vmatprep.mubr.msk.f32.mxu0 %vm245_vm0, %v179_v30 }
 0x10f   :  { %v12781_v35 = vpop.f32.mrb[24].mxu0 }
 0x110   :  { %v12783_v36 = vpop.f32.mrb[25].mxu0  ;;  %10337 = vmatmul.mubr.msk.f32.gmra.mrb[130].mxu0 %vm245_vm0, %v180_v33  ;;  %v200_v33 = vld [vmem:[%s15502_s0 + $0x4b8] sm:$0xff] }
 0x111   :  { %10339 = vmatprep.mubr.msk.f32.mxu0 %vm245_vm0, %v181_v34  ;;  %v201_v34 = vld [vmem:[%s15502_s0 + $0x4c0] sm:$0xff] }
 0x113   :  { %v12793_v39 = vpop.f32.mrb[26].mxu0 }
 0x114   :  { %v12795_v40 = vpop.f32.mrb[27].mxu0  ;;  %10340 = vmatmul.mubr.msk.f32.gmra.mrb[132].mxu0 %vm245_vm0, %v182_v37 }
 0x115   :  { %10342 = vmatprep.mubr.msk.f32.mxu0 %vm245_vm0, %v183_v38 }
 0x117   :  { %v12805_v43 = vpop.f32.mrb[28].mxu0 }
 0x118   :  { %v12807_v44 = vpop.f32.mrb[29].mxu0  ;;  %10343 = vmatmul.mubr.msk.f32.gmra.mrb[134].mxu0 %vm245_vm0, %v184_v41  ;;  %v202_v41 = vld [vmem:[%s15502_s0 + $0x4c8] sm:$0xff] }
 0x119   :  { %10345 = vmatprep.mubr.msk.f32.mxu0 %vm245_vm0, %v185_v42  ;;  %v203_v42 = vld [vmem:[%s15502_s0 + $0x4d0] sm:$0xff] }
 0x11b   :  { %v12817_v47 = vpop.f32.mrb[30].mxu0 }
 0x11c   :  { %v12819_v48 = vpop.f32.mrb[31].mxu0  ;;  %10346 = vmatmul.mubr.msk.f32.gmra.mrb[136].mxu0 %vm245_vm0, %v186_v45 }
 0x11d   :  { %10348 = vmatprep.mubr.msk.f32.mxu0 %vm245_vm0, %v187_v46 }
 0x11f   :  { %v12829_v53 = vpop.f32.mrb[32].mxu0 }
 0x120   :  { %v12831_v54 = vpop.f32.mrb[33].mxu0  ;;  %10349 = vmatmul.mubr.msk.f32.gmra.mrb[138].mxu0 %vm245_vm0, %v188_v49  ;;  %v204_v49 = vld [vmem:[%s15502_s0 + $0x4d8] sm:$0xff] }
 0x121   :  { %10351 = vmatprep.mubr.msk.f32.mxu0 %vm245_vm0, %v189_v50  ;;  %v205_v50 = vld [vmem:[%s15502_s0 + $0x4e0] sm:$0xff] }
 0x123   :  { %v12841_v61 = vpop.f32.mrb[34].mxu0 }
 0x124   :  { %v12843_v62 = vpop.f32.mrb[35].mxu0  ;;  %10352 = vmatmul.mubr.msk.f32.gmra.mrb[140].mxu0 %vm245_vm0, %v190_v57 }
 0x125   :  { %10354 = vmatprep.mubr.msk.f32.mxu0 %vm245_vm0, %v191_v58  ;;  %v1848_v58 = vmax.f32 %v12637_v51, 0.0 }
 0x127   :  { %v12853_v5 = vpop.f32.mrb[36].mxu0 }
 0x128   :  { %v12855_v6 = vpop.f32.mrb[37].mxu0  ;;  %10355 = vmatmul.mubr.msk.f32.gmra.mrb[142].mxu0 %vm245_vm0, %v192_v1 }
 0x129   :  { %10357 = vmatprep.mubr.msk.f32.mxu0 %vm245_vm0, %v193_v2 }
 0x12b   :  { %v12865_v13 = vpop.f32.mrb[38].mxu0 }
 0x12c   :  { %v12867_v14 = vpop.f32.mrb[39].mxu0  ;;  %10358 = vmatmul.mubr.msk.f32.gmra.mrb[144].mxu0 %vm245_vm0, %v194_v9  ;;  %v1847_v9 = vmax.f32 %v12639_v52, 0.0 }
 0x12d   :  { %10360 = vmatprep.mubr.msk.f32.mxu0 %vm245_vm0, %v195_v10 }
 0x12f   :  { %v12877_v21 = vpop.f32.mrb[40].mxu0 }
 0x130   :  { %v12879_v22 = vpop.f32.mrb[41].mxu0  ;;  %10361 = vmatmul.mubr.msk.f32.gmra.mrb[146].mxu0 %vm245_vm0, %v196_v17  ;;  %v206_v17 = vld [vmem:[%s15502_s0 + $0x4e8] sm:$0xff] }
 0x131   :  { %10363 = vmatprep.mubr.msk.f32.mxu0 %vm245_vm0, %v197_v18 }
 0x133   :  { %v12889_v29 = vpop.f32.mrb[42].mxu0 }
 0x134   :  { %v12891_v30 = vpop.f32.mrb[43].mxu0  ;;  %10364 = vmatmul.mubr.msk.f32.gmra.mrb[148].mxu0 %vm245_vm0, %v198_v25  ;;  %v207_v25 = vld [vmem:[%s15502_s0 + $0x4f0] sm:$0xff] }
 0x135   :  { %10366 = vmatprep.mubr.msk.f32.mxu0 %vm245_vm0, %v199_v26 }
 0x137   :  { %v12901_v37 = vpop.f32.mrb[44].mxu0 }
 0x138   :  { %v12903_v38 = vpop.f32.mrb[45].mxu0  ;;  %10367 = vmatmul.mubr.msk.f32.gmra.mrb[150].mxu0 %vm245_vm0, %v200_v33  ;;  %v1850_v33 = vmax.f32 %v12649_v55, 0.0 }
 0x139   :  { %10369 = vmatprep.mubr.msk.f32.mxu0 %vm245_vm0, %v201_v34 }
 0x13b   :  { %v12913_v45 = vpop.f32.mrb[46].mxu0 }
 0x13c   :  { %v12915_v46 = vpop.f32.mrb[47].mxu0  ;;  %10370 = vmatmul.mubr.msk.f32.gmra.mrb[152].mxu0 %vm245_vm0, %v202_v41  ;;  %v1849_v41 = vmax.f32 %v12651_v56, 0.0 }
 0x13d   :  { %10372 = vmatprep.mubr.msk.f32.mxu0 %vm245_vm0, %v203_v42 }
 0x13f   :  { %v10215_v57 = vpop.f32.mrb[48].mxu0 }
 0x140   :  { %v1896_v1 = vmax.f32 %v10215_v57, 0.0  ;;  %v1128_v2 = vpop.f32.mrb[49].mxu0  ;;  %10373 = vmatmul.mubr.msk.f32.gmra.mrb[154].mxu0 %vm245_vm0, %v204_v49  ;;  %v208_v49 = vld [vmem:[%s15502_s0 + $0x4f8] sm:$0xff]  ;;  %v209_v57 = vld [vmem:[%s15502_s0 + $0x500] sm:$0xff] }
 0x141   :  { %v1895_v10 = vmax.f32 %v1128_v2, 0.0  ;;  %10375 = vmatprep.mubr.msk.f32.mxu0 %vm245_vm0, %v205_v50 }
 0x142   :  { %v12932_v18 = vmax.f32 %v1848_v58, %v1896_v1  ;;  %v1852_v1 = vmax.f32 %v12661_v59, 0.0 }
 0x143   :  { %v12937_v51 = vmax.f32 %v1847_v9, %v1895_v10  ;;  %v10218_v26 = vpop.f32.mrb[50].mxu0  ;;  %v1851_v9 = vmax.f32 %v12663_v60, 0.0 }
 0x144   :  { %v1898_v34 = vmax.f32 %v10218_v26, 0.0  ;;  %v1138_v52 = vpop.f32.mrb[51].mxu0  ;;  %10376 = vmatmul.mubr.msk.f32.gmra.mrb[156].mxu0 %vm245_vm0, %v206_v17  ;;  %v210_v17 = vld [vmem:[%s15502_s0 + $0x508] sm:$0xff]  ;;  %v211_v26 = vld [vmem:[%s15502_s0 + $0x510] sm:$0xff] }
 0x145   :  { %v1897_v42 = vmax.f32 %v1138_v52, 0.0  ;;  %10378 = vmatprep.mubr.msk.f32.mxu0 %vm245_vm0, %v207_v25 }
 0x146   :  { %v12946_v50 = vmax.f32 %v1850_v33, %v1898_v34  ;;  %v1854_v34 = vmax.f32 %v12673_v63, 0.0 }
 0x147   :  { %v12951_v55 = vmax.f32 %v1849_v41, %v1897_v42  ;;  %v10221_v58 = vpop.f32.mrb[52].mxu0  ;;  %v1853_v41 = vmax.f32 %v12675_v0, 0.0 }
 0x148   :  { %v1900_v2 = vmax.f32 %v10221_v58, 0.0  ;;  %v1148_v56 = vpop.f32.mrb[53].mxu0  ;;  %10379 = vmatmul.mubr.msk.f32.gmra.mrb[158].mxu0 %vm245_vm0, %v208_v49  ;;  %v212_v49 = vld [vmem:[%s15502_s0 + $0x518] sm:$0xff]  ;;  %v213_v58 = vld [vmem:[%s15502_s0 + $0x520] sm:$0xff] }
 0x149   :  { %v1899_v10 = vmax.f32 %v1148_v56, 0.0  ;;  %10381 = vmatprep.mubr.msk.f32.mxu0 %vm245_vm0, %v209_v57 }
 0x14a   :  { %v12960_v25 = vmax.f32 %v1852_v1, %v1900_v2  ;;  %v1856_v2 = vmax.f32 %v12685_v3, 0.0 }
 0x14b   :  { %v12965_v59 = vmax.f32 %v1851_v9, %v1899_v10  ;;  %v10224_v33 = vpop.f32.mrb[54].mxu0  ;;  %v1855_v9 = vmax.f32 %v12687_v4, 0.0 }
 0x14c   :  { %v1902_v52 = vmax.f32 %v10224_v33, 0.0  ;;  %v1158_v60 = vpop.f32.mrb[55].mxu0  ;;  %10382 = vmatmul.mubr.msk.f32.gmra.mrb[160].mxu0 %vm245_vm0, %v210_v17  ;;  %v214_v17 = vld [vmem:[%s15502_s0 + $0x528] sm:$0xff]  ;;  %v215_v33 = vld [vmem:[%s15502_s0 + $0x530] sm:$0xff] }
 0x14d   :  { %v1901_v42 = vmax.f32 %v1158_v60, 0.0  ;;  %10384 = vmatprep.mubr.msk.f32.mxu0 %vm245_vm0, %v211_v26 }
 0x14e   :  { %v12974_v57 = vmax.f32 %v1854_v34, %v1902_v52  ;;  %v1858_v52 = vmax.f32 %v12697_v7, 0.0 }
 0x14f   :  { %v12979_v63 = vmax.f32 %v1853_v41, %v1901_v42  ;;  %v10227_v1 = vpop.f32.mrb[56].mxu0  ;;  %v1857_v41 = vmax.f32 %v12699_v8, 0.0 }
 0x150   :  { %v1904_v56 = vmax.f32 %v10227_v1, 0.0  ;;  %v1168_v0 = vpop.f32.mrb[57].mxu0  ;;  %10385 = vmatmul.mubr.msk.f32.gmra.mrb[162].mxu0 %vm245_vm0, %v212_v49  ;;  %v216_v49 = vld [vmem:[%s15502_s0 + $0x538] sm:$0xff]  ;;  %v217_v1 = vld [vmem:[%s15502_s0 + $0x540] sm:$0xff] }
 0x151   :  { %v1903_v10 = vmax.f32 %v1168_v0, 0.0  ;;  %10387 = vmatprep.mubr.msk.f32.mxu0 %vm245_vm0, %v213_v58 }
 0x152   :  { %v12988_v26 = vmax.f32 %v1856_v2, %v1904_v56  ;;  %v1860_v56 = vmax.f32 %v12709_v11, 0.0 }
 0x153   :  { %v12993_v3 = vmax.f32 %v1855_v9, %v1903_v10  ;;  %v10230_v34 = vpop.f32.mrb[58].mxu0  ;;  %v1859_v9 = vmax.f32 %v12711_v12, 0.0 }
 0x154   :  { %v1906_v60 = vmax.f32 %v10230_v34, 0.0  ;;  %v1178_v4 = vpop.f32.mrb[59].mxu0  ;;  %10388 = vmatmul.mubr.msk.f32.gmra.mrb[164].mxu0 %vm245_vm0, %v214_v17  ;;  %v218_v17 = vld [vmem:[%s15502_s0 + $0x548] sm:$0xff]  ;;  %v219_v34 = vld [vmem:[%s15502_s0 + $0x550] sm:$0xff] }
 0x155   :  { %v1905_v42 = vmax.f32 %v1178_v4, 0.0  ;;  %10390 = vmatprep.mubr.msk.f32.mxu0 %vm245_vm0, %v215_v33 }
 0x156   :  { %v13002_v58 = vmax.f32 %v1858_v52, %v1906_v60  ;;  %v1862_v60 = vmax.f32 %v12721_v15, 0.0 }
 0x157   :  { %v13007_v7 = vmax.f32 %v1857_v41, %v1905_v42  ;;  %v10233_v2 = vpop.f32.mrb[60].mxu0  ;;  %v1861_v41 = vmax.f32 %v12723_v16, 0.0 }
 0x158   :  { %v1908_v0 = vmax.f32 %v10233_v2, 0.0  ;;  %v1188_v8 = vpop.f32.mrb[61].mxu0  ;;  %10391 = vmatmul.mubr.msk.f32.gmra.mrb[166].mxu0 %vm245_vm0, %v216_v49  ;;  %v220_v49 = vld [vmem:[%s15502_s0 + $0x558] sm:$0xff]  ;;  %v221_v2 = vld [vmem:[%s15502_s0 + $0x560] sm:$0xff] }
 0x159   :  { %v1907_v10 = vmax.f32 %v1188_v8, 0.0  ;;  %10393 = vmatprep.mubr.msk.f32.mxu0 %vm245_vm0, %v217_v1 }
 0x15a   :  { %v13016_v33 = vmax.f32 %v1860_v56, %v1908_v0  ;;  %v1864_v0 = vmax.f32 %v12733_v19, 0.0 }
 0x15b   :  { %v13021_v11 = vmax.f32 %v1859_v9, %v1907_v10  ;;  %v10236_v52 = vpop.f32.mrb[62].mxu0  ;;  %v1863_v9 = vmax.f32 %v12735_v20, 0.0 }
 0x15c   :  { %v1910_v4 = vmax.f32 %v10236_v52, 0.0  ;;  %v1198_v12 = vpop.f32.mrb[63].mxu0  ;;  %10394 = vmatmul.mubr.msk.f32.gmra.mrb[168].mxu0 %vm245_vm0, %v218_v17  ;;  %v222_v17 = vld [vmem:[%s15502_s0 + $0x568] sm:$0xff]  ;;  %v223_v52 = vld [vmem:[%s15502_s0 + $0x570] sm:$0xff] }
 0x15d   :  { %v1909_v42 = vmax.f32 %v1198_v12, 0.0  ;;  %10396 = vmatprep.mubr.msk.f32.mxu0 %vm245_vm0, %v219_v34 }
 0x15e   :  { %v13030_v1 = vmax.f32 %v1862_v60, %v1910_v4  ;;  %v1866_v4 = vmax.f32 %v12745_v23, 0.0 }
 0x15f   :  { %v13035_v15 = vmax.f32 %v1861_v41, %v1909_v42  ;;  %v10239_v56 = vpop.f32.mrb[64].mxu0  ;;  %v1865_v41 = vmax.f32 %v12747_v24, 0.0 }
 0x160   :  { %v1912_v8 = vmax.f32 %v10239_v56, 0.0  ;;  %v1208_v16 = vpop.f32.mrb[65].mxu0  ;;  %10397 = vmatmul.mubr.msk.f32.gmra.mrb[170].mxu0 %vm245_vm0, %v220_v49  ;;  %v224_v49 = vld [vmem:[%s15502_s0 + $0x578] sm:$0xff]  ;;  %v225_v56 = vld [vmem:[%s15502_s0 + $0x580] sm:$0xff] }
 0x161   :  { %v1911_v10 = vmax.f32 %v1208_v16, 0.0  ;;  %10399 = vmatprep.mubr.msk.f32.mxu0 %vm245_vm0, %v221_v2 }
 0x162   :  { %v13044_v34 = vmax.f32 %v1864_v0, %v1912_v8  ;;  %v1868_v8 = vmax.f32 %v12757_v27, 0.0 }
 0x163   :  { %v13049_v19 = vmax.f32 %v1863_v9, %v1911_v10  ;;  %v10242_v60 = vpop.f32.mrb[66].mxu0  ;;  %v1867_v9 = vmax.f32 %v12759_v28, 0.0 }
 0x164   :  { %v1914_v12 = vmax.f32 %v10242_v60, 0.0  ;;  %v1218_v20 = vpop.f32.mrb[67].mxu0  ;;  %10400 = vmatmul.mubr.msk.f32.gmra.mrb[172].mxu0 %vm245_vm0, %v222_v17  ;;  %v226_v17 = vld [vmem:[%s15502_s0 + $0x588] sm:$0xff]  ;;  %v227_v60 = vld [vmem:[%s15502_s0 + $0x590] sm:$0xff] }
 0x165   :  { %v1913_v42 = vmax.f32 %v1218_v20, 0.0  ;;  %10402 = vmatprep.mubr.msk.f32.mxu0 %vm245_vm0, %v223_v52 }
 0x166   :  { %v13058_v2 = vmax.f32 %v1866_v4, %v1914_v12  ;;  %v1870_v12 = vmax.f32 %v12769_v31, 0.0 }
 0x167   :  { %v13063_v23 = vmax.f32 %v1865_v41, %v1913_v42  ;;  %v10245_v0 = vpop.f32.mrb[68].mxu0  ;;  %v1869_v41 = vmax.f32 %v12771_v32, 0.0 }
 0x168   :  { %v1916_v16 = vmax.f32 %v10245_v0, 0.0  ;;  %v1228_v24 = vpop.f32.mrb[69].mxu0  ;;  %10403 = vmatmul.mubr.msk.f32.gmra.mrb[174].mxu0 %vm245_vm0, %v224_v49  ;;  %v228_v49 = vld [vmem:[%s15502_s0 + $0x598] sm:$0xff]  ;;  %v229_v0 = vld [vmem:[%s15502_s0 + $0x5a0] sm:$0xff] }
 0x169   :  { %v1915_v10 = vmax.f32 %v1228_v24, 0.0  ;;  %10405 = vmatprep.mubr.msk.f32.mxu0 %vm245_vm0, %v225_v56 }
 0x16a   :  { %v13072_v52 = vmax.f32 %v1868_v8, %v1916_v16  ;;  %v1872_v16 = vmax.f32 %v12781_v35, 0.0 }
 0x16b   :  { %v13077_v27 = vmax.f32 %v1867_v9, %v1915_v10  ;;  %v10248_v4 = vpop.f32.mrb[70].mxu0  ;;  %v1871_v9 = vmax.f32 %v12783_v36, 0.0 }
 0x16c   :  { %v1918_v20 = vmax.f32 %v10248_v4, 0.0  ;;  %v1238_v28 = vpop.f32.mrb[71].mxu0  ;;  %10406 = vmatmul.mubr.msk.f32.gmra.mrb[176].mxu0 %vm245_vm0, %v226_v17  ;;  %v230_v17 = vld [vmem:[%s15502_s0 + $0x5a8] sm:$0xff]  ;;  %v231_v4 = vld [vmem:[%s15502_s0 + $0x5b0] sm:$0xff] }
 0x16d   :  { %v1917_v42 = vmax.f32 %v1238_v28, 0.0  ;;  %10408 = vmatprep.mubr.msk.f32.mxu0 %vm245_vm0, %v227_v60 }
 0x16e   :  { %v13086_v56 = vmax.f32 %v1870_v12, %v1918_v20  ;;  %v1874_v20 = vmax.f32 %v12793_v39, 0.0 }
 0x16f   :  { %v13091_v31 = vmax.f32 %v1869_v41, %v1917_v42  ;;  %v10251_v8 = vpop.f32.mrb[72].mxu0  ;;  %v1873_v41 = vmax.f32 %v12795_v40, 0.0 }
 0x170   :  { %15517 = vst [vmem:[#allocation9_spill] sm:$0xff] %v13086_v56  ;;  %v1920_v24 = vmax.f32 %v10251_v8, 0.0  ;;  %v1248_v32 = vpop.f32.mrb[73].mxu0  ;;  %10409 = vmatmul.mubr.msk.f32.gmra.mrb[178].mxu0 %vm245_vm0, %v228_v49  ;;  %v232_v49 = vld [vmem:[%s15502_s0 + $0x5b8] sm:$0xff]  ;;  %v233_v8 = vld [vmem:[%s15502_s0 + $0x5c0] sm:$0xff] }
 0x171   :  { %15518 = vst [vmem:[#allocation10_spill] sm:$0xff] %v13091_v31  ;;  %v1919_v10 = vmax.f32 %v1248_v32, 0.0  ;;  %10411 = vmatprep.mubr.msk.f32.mxu0 %vm245_vm0, %v229_v0 }
 0x172   :  { %v13100_v60 = vmax.f32 %v1872_v16, %v1920_v24  ;;  %v1876_v24 = vmax.f32 %v12805_v43, 0.0 }
 0x173   :  { %v13105_v35 = vmax.f32 %v1871_v9, %v1919_v10  ;;  %v10254_v12 = vpop.f32.mrb[74].mxu0  ;;  %v1875_v9 = vmax.f32 %v12807_v44, 0.0 }
 0x174   :  { %15519 = vst [vmem:[#allocation11_spill] sm:$0xff] %v13100_v60  ;;  %v1922_v28 = vmax.f32 %v10254_v12, 0.0  ;;  %v1258_v36 = vpop.f32.mrb[75].mxu0  ;;  %10412 = vmatmul.mubr.msk.f32.gmra.mrb[180].mxu0 %vm245_vm0, %v230_v17  ;;  %v234_v17 = vld [vmem:[%s15502_s0 + $0x5c8] sm:$0xff]  ;;  %v235_v12 = vld [vmem:[%s15502_s0 + $0x5d0] sm:$0xff] }
 0x175   :  { %15520 = vst [vmem:[#allocation12_spill] sm:$0xff] %v13105_v35  ;;  %v1921_v42 = vmax.f32 %v1258_v36, 0.0  ;;  %10414 = vmatprep.mubr.msk.f32.mxu0 %vm245_vm0, %v231_v4 }
 0x176   :  { %v13114_v0 = vmax.f32 %v1874_v20, %v1922_v28  ;;  %v1878_v28 = vmax.f32 %v12817_v47, 0.0 }
 0x177   :  { %v13119_v39 = vmax.f32 %v1873_v41, %v1921_v42  ;;  %v10257_v16 = vpop.f32.mrb[76].mxu0  ;;  %v1877_v41 = vmax.f32 %v12819_v48, 0.0 }
 0x178   :  { %15521 = vst [vmem:[#allocation13_spill] sm:$0xff] %v13114_v0  ;;  %v1924_v32 = vmax.f32 %v10257_v16, 0.0  ;;  %v1268_v40 = vpop.f32.mrb[77].mxu0  ;;  %10415 = vmatmul.mubr.msk.f32.gmra.mrb[182].mxu0 %vm245_vm0, %v232_v49  ;;  %v236_v49 = vld [vmem:[%s15502_s0 + $0x5d8] sm:$0xff]  ;;  %v237_v16 = vld [vmem:[%s15502_s0 + $0x5e0] sm:$0xff] }
 0x179   :  { %15522 = vst [vmem:[#allocation14_spill] sm:$0xff] %v13119_v39  ;;  %v1923_v10 = vmax.f32 %v1268_v40, 0.0  ;;  %10417 = vmatprep.mubr.msk.f32.mxu0 %vm245_vm0, %v233_v8 }
 0x17a   :  { %v13128_v4 = vmax.f32 %v1876_v24, %v1924_v32  ;;  %v1880_v32 = vmax.f32 %v12829_v53, 0.0 }
 0x17b   :  { %v13133_v43 = vmax.f32 %v1875_v9, %v1923_v10  ;;  %v10260_v20 = vpop.f32.mrb[78].mxu0  ;;  %v1879_v9 = vmax.f32 %v12831_v54, 0.0 }
 0x17c   :  { %15523 = vst [vmem:[#allocation15_spill] sm:$0xff] %v13128_v4  ;;  %v1926_v36 = vmax.f32 %v10260_v20, 0.0  ;;  %v1278_v44 = vpop.f32.mrb[79].mxu0  ;;  %10418 = vmatmul.mubr.msk.f32.gmra.mrb[184].mxu0 %vm245_vm0, %v234_v17  ;;  %v238_v17 = vld [vmem:[%s15502_s0 + $0x5e8] sm:$0xff]  ;;  %v239_v20 = vld [vmem:[%s15502_s0 + $0x5f0] sm:$0xff] }
 0x17d   :  { %15524 = vst [vmem:[#allocation16_spill] sm:$0xff] %v13133_v43  ;;  %v1925_v42 = vmax.f32 %v1278_v44, 0.0  ;;  %10420 = vmatprep.mubr.msk.f32.mxu0 %vm245_vm0, %v235_v12 }
 0x17e   :  { %v13142_v8 = vmax.f32 %v1878_v28, %v1926_v36  ;;  %v1882_v36 = vmax.f32 %v12841_v61, 0.0  ;;  %v1884_v61 = vmax.f32 %v12853_v5, 0.0 }
 0x17f   :  { %v13147_v47 = vmax.f32 %v1877_v41, %v1925_v42  ;;  %v10263_v24 = vpop.f32.mrb[80].mxu0  ;;  %v1881_v41 = vmax.f32 %v12843_v62, 0.0  ;;  %v1883_v62 = vmax.f32 %v12855_v6, 0.0  ;;  %v1888_v6 = vmax.f32 %v12877_v21, 0.0  ;;  %v8982_v21 = vld [vmem:[%s15505_s3 + $0x48] sm:$0xff] }
 0x180   :  { %15525 = vst [vmem:[#allocation17_spill] sm:$0xff] %v13142_v8  ;;  %v1928_v40 = vmax.f32 %v10263_v24, 0.0  ;;  %v1288_v48 = vpop.f32.mrb[81].mxu0  ;;  %10421 = vmatmul.mubr.msk.f32.gmra.mrb[186].mxu0 %vm245_vm0, %v236_v49  ;;  %v240_v49 = vld [vmem:[%s15502_s0 + $0x5f8] sm:$0xff]  ;;  %s12096_s0 = smov 52  }
 0x181   :  { %15526 = vst [vmem:[#allocation18_spill] sm:$0xff] %v13147_v47  ;;  %v1927_v10 = vmax.f32 %v1288_v48, 0.0  ;;  %10423 = vmatprep.mubr.msk.f32.mxu0 %vm245_vm0, %v237_v16 }
 0x182   :  { %v13156_v12 = vmax.f32 %v1880_v32, %v1928_v40 }
 0x183   :  { %v13161_v53 = vmax.f32 %v1879_v9, %v1927_v10  ;;  %v10266_v28 = vpop.f32.mrb[82].mxu0 }
 0x184   :  { %15527 = vst [vmem:[#allocation19_spill] sm:$0xff] %v13156_v12  ;;  %v1930_v44 = vmax.f32 %v10266_v28, 0.0  ;;  %v1298_v54 = vpop.f32.mrb[83].mxu0  ;;  %10424 = vmatmul.mubr.msk.f32.gmra.mrb[188].mxu0 %vm245_vm0, %v238_v17  ;;  %v1886_v28 = vmax.f32 %v12865_v13, 0.0 }
 0x185   :  { %15528 = vst [vmem:[#allocation20_spill] sm:$0xff] %v13161_v53  ;;  %v1929_v42 = vmax.f32 %v1298_v54, 0.0  ;;  %10426 = vmatprep.mubr.msk.f32.mxu0 %vm245_vm0, %v239_v20  ;;  %v1885_v54 = vmax.f32 %v12867_v14, 0.0  ;;  %v8925_v14 = vld [vmem:[%s15505_s3 + $0x18] sm:$0xff]  ;;  %v9003_v53 = vld [vmem:[%s15505_s3 + $0x68] sm:$0xff] }
 0x186   :  { %v13170_v16 = vmax.f32 %v1882_v36, %v1930_v44 }
 0x187   :  { %v13172_v24 = vmax.f32 %v1881_v41, %v1929_v42  ;;  %v10269_v32 = vpop.f32.mrb[84].mxu0 }
 0x188   :  { %15529 = vst [vmem:[#allocation21_spill] sm:$0xff] %v13170_v16  ;;  %v1932_v40 = vmax.f32 %v10269_v32, 0.0  ;;  %v1308_v48 = vpop.f32.mrb[85].mxu0  ;;  %10427 = vmatmul.mubr.msk.f32.gmra.mrb[190].mxu0 %vm245_vm0, %v240_v49  ;;  %v9002_v16 = vld [vmem:[%s15505_s3 + $0x60] sm:$0xff]  ;;  %vm7691_vm0 = vmor %vm7690_vm12, %vm7689_vm11  ;;  %vm7906_vm11 = vcmask 189472   ;;  %vm7936_vm12 = vcmask 353472  }
 0x189   :  { %15530 = vst [vmem:[#allocation22_spill] sm:$0xff] %v13172_v24  ;;  %v1931_v9 = vmax.f32 %v1308_v48, 0.0  ;;  %v13299_v47 = vpack.c.bf16 %v9003_v53, %v9002_v16  ;;  %v2267_v53 = vld [vmem:[%s15505_s3] sm:$0xff]  ;;  %v2268_v16 = vld [vmem:[%s15505_s3 + $0x8] sm:$0xff] }
 0x18a   :  { %v13177_v10 = vmax.f32 %v1884_v61, %v1932_v40  ;;  %v1887_v40 = vmax.f32 %v12879_v22, 0.0  ;;  %v1890_v22 = vmax.f32 %v12889_v29, 0.0  ;;  %v1892_v29 = vmax.f32 %v12901_v37, 0.0 }
 0x18b   :  { %v13179_v17 = vmax.f32 %v1883_v62, %v1931_v9  ;;  %v10272_v20 = vpop.f32.mrb[86].mxu0 }
 0x18c   :  { %15531 = vst [vmem:[#allocation23_spill] sm:$0xff] %v13177_v10  ;;  %v1934_v36 = vmax.f32 %v10272_v20, 0.0  ;;  %v1318_v44 = vpop.f32.mrb[87].mxu0  ;;  %v8926_v20 = vld [vmem:[%s15505_s3 + $0x20] sm:$0xff] }
 0x18d   :  { %15532 = vst [vmem:[#allocation24_spill] sm:$0xff] %v13179_v17  ;;  %v1933_v41 = vmax.f32 %v1318_v44, 0.0  ;;  %v11187_v44 = vpack.c.bf16 %v8926_v20, %v8925_v14 }
 0x18e   :  { %v13183_v5 = vmax.f32 %v1886_v28, %v1934_v36 }
 0x18f   :  { %v13185_v42 = vmax.f32 %v1885_v54, %v1933_v41  ;;  %v10275_v49 = vpop.f32.mrb[88].mxu0  ;;  %v8983_v54 = vld [vmem:[%s15505_s3 + $0x50] sm:$0xff]  ;;  %v1889_v41 = vmax.f32 %v12891_v30, 0.0  ;;  %11188 = vmatprep.subr.bf16.mxu0 %v11187_v44  ;;  %v8927_v30 = vld [vmem:[%s15505_s3 + $0x28] sm:$0xf] }
 0x190   :  { %15533 = vst [vmem:[#allocation25_spill] sm:$0xff] %v13183_v5  ;;  %v1936_v32 = vmax.f32 %v10275_v49, 0.0  ;;  %v1328_v61 = vpop.f32.mrb[89].mxu0  ;;  %11190 = vmatpush3.bf16.msra.mxu0 %v11187_v44 }
 0x191   :  { %15534 = vst [vmem:[#allocation26_spill] sm:$0xff] %v13185_v42  ;;  %v1935_v48 = vmax.f32 %v1328_v61, 0.0  ;;  %10433 = vmatprep.subr.msk.mxu0 %vm2370_vm1, %v8927_v30 }
 0x192   :  { %v13189_v62 = vmax.f32 %v1888_v6, %v1936_v32  ;;  %v11199_v6 = vpack.c.bf16 %v8983_v54, %v8982_v21  ;;  %v8984_v21 = vld [vmem:[%s15505_s3 + $0x58] sm:$0xf]  ;;  %v1893_v54 = vmax.f32 %v12915_v46, 0.0 }
 0x193   :  { %v13191_v13 = vmax.f32 %v1887_v40, %v1935_v48  ;;  %v10278_v9 = vpop.f32.mrb[90].mxu0  ;;  %v1891_v48 = vmax.f32 %v12903_v38, 0.0 }
 0x194   :  { %15535 = vst [vmem:[#allocation27_spill] sm:$0xff] %v13189_v62  ;;  %v1938_v28 = vmax.f32 %v10278_v9, 0.0  ;;  %v1338_v36 = vpop.f32.mrb[91].mxu0  ;;  %11200 = vmatprep.subr.bf16.mxu1 %v11199_v6  ;;  %10434 = vmatpush3.msk.msra.mxu0 %vm2370_vm1, %v8927_v30 }
 0x195   :  { %15536 = vst [vmem:[#allocation28_spill] sm:$0xff] %v13191_v13  ;;  %v1937_v49 = vmax.f32 %v1338_v36, 0.0  ;;  %11202 = vmatpush3.bf16.msra.mxu1 %v11199_v6 }
 0x196   :  { %v13207_v32 = vmax.f32 %v1890_v22, %v1938_v28  ;;  %10523 = vmatprep.subr.msk.mxu1 %vm2370_vm1, %v8984_v21  ;;  %v1894_v28 = vmax.f32 %v12913_v45, 0.0 }
 0x197   :  { %v13209_v61 = vmax.f32 %v1889_v41, %v1937_v49  ;;  %v10281_v40 = vpop.f32.mrb[92].mxu0 }
 0x198   :  { %15537 = vst [vmem:[#allocation29_spill] sm:$0xff] %v13207_v32  ;;  %v1940_v9 = vmax.f32 %v10281_v40, 0.0  ;;  %v1348_v14 = vpop.f32.mrb[93].mxu0 }
 0x199   :  { %15538 = vst [vmem:[#allocation30_spill] sm:$0xff] %v13209_v61  ;;  %v1939_v20 = vmax.f32 %v1348_v14, 0.0  ;;  %10524 = vmatpush3.msk.msra.mxu1 %vm2370_vm1, %v8984_v21 }
 0x19a   :  { %v13219_v22 = vmax.f32 %v1892_v29, %v1940_v9  ;;  %11204 = vmatprep.subr.bf16.mxu1 %v13299_v47 }
 0x19b   :  { %v13223_v37 = vmax.f32 %v1891_v48, %v1939_v20  ;;  %v10284_v38 = vpop.f32.mrb[94].mxu0 }
 0x19c   :  { %15539 = vst [vmem:[#allocation31_spill] sm:$0xff] %v13219_v22  ;;  %v1942_v36 = vmax.f32 %v10284_v38, 0.0  ;;  %v1358_v44 = vpop.f32.mrb[95].mxu0 }
 0x19d   :  { %15540 = vst [vmem:[#allocation32_spill] sm:$0xff] %v13223_v37  ;;  %v1941_v41 = vmax.f32 %v1358_v44, 0.0 }
 0x19e   :  { %v13229_v49 = vmax.f32 %v1894_v28, %v1942_v36 }
 0x19f   :  { %v13231_v6 = vmax.f32 %v1893_v54, %v1941_v41  ;;  %v13233_v40 = vpop.f32.mrb[96].mxu0 }
 0x1a0   :  { %15541 = vst [vmem:[#allocation33_spill] sm:$0xff] %v13229_v49  ;;  %v13235_v29 = vpop.f32.mrb[97].mxu0  ;;  %v1944_v60 = vmax.f32 %v13233_v40, 0.0 }
 0x1a1   :  { %15542 = vst [vmem:[#allocation34_spill] sm:$0xff] %v13231_v6 }
 0x1a3   :  { %v13237_v48 = vpop.f32.mrb[98].mxu0 }
 0x1a4   :  { %v13239_v9 = vpop.f32.mrb[99].mxu0 }
 0x1a7   :  { %v13241_v45 = vpop.f32.mrb[100].mxu0 }
 0x1a8   :  { %v13243_v14 = vpop.f32.mrb[101].mxu0 }
 0x1ab   :  { %v13245_v20 = vpop.f32.mrb[102].mxu0 }
 0x1ac   :  { %v13247_v46 = vpop.f32.mrb[103].mxu0 }
 0x1af   :  { %v13249_v30 = vpop.f32.mrb[104].mxu0 }
 0x1b0   :  { %v13251_v21 = vpop.f32.mrb[105].mxu0 }
 0x1b3   :  { %v13253_v38 = vpop.f32.mrb[106].mxu0 }
 0x1b4   :  { %v13255_v28 = vpop.f32.mrb[107].mxu0 }
 0x1b7   :  { %v13257_v36 = vpop.f32.mrb[108].mxu0 }
 0x1b8   :  { %v13259_v44 = vpop.f32.mrb[109].mxu0 }
 0x1bb   :  { %v13261_v54 = vpop.f32.mrb[110].mxu0 }
 0x1bc   :  { %v13263_v41 = vpop.f32.mrb[111].mxu0 }
 0x1bf   :  { %v13265_v6 = vpop.f32.mrb[112].mxu0 }
 0x1c0   :  { %v13267_v49 = vpop.f32.mrb[113].mxu0 }
 0x1c3   :  { %v13269_v37 = vpop.f32.mrb[114].mxu0 }
 0x1c4   :  { %v13271_v22 = vpop.f32.mrb[115].mxu0 }
 0x1c7   :  { %v13273_v61 = vpop.f32.mrb[116].mxu0 }
 0x1c8   :  { %v13275_v32 = vpop.f32.mrb[117].mxu0 }
 0x1cb   :  { %v13277_v13 = vpop.f32.mrb[118].mxu0 }
 0x1cc   :  { %v13279_v62 = vpop.f32.mrb[119].mxu0 }
 0x1cf   :  { %v13281_v42 = vpop.f32.mrb[120].mxu0 }
 0x1d0   :  { %v13283_v5 = vpop.f32.mrb[121].mxu0 }
 0x1d1   :  { %15543 = vst [vmem:[#allocation35_spill] sm:$0xff] %v13283_v5 }
 0x1d3   :  { %v13285_v17 = vpop.f32.mrb[122].mxu0 }
 0x1d4   :  { %15544 = vst [vmem:[#allocation36_spill] sm:$0xff] %v13285_v17  ;;  %v13287_v10 = vpop.f32.mrb[123].mxu0 }
 0x1d5   :  { %15545 = vst [vmem:[#allocation37_spill] sm:$0xff] %v13287_v10 }
 0x1d7   :  { %v13289_v24 = vpop.f32.mrb[124].mxu0 }
 0x1d8   :  { %15546 = vst [vmem:[#allocation38_spill] sm:$0xff] %v13289_v24  ;;  %v13297_v12 = vpop.f32.mrb[125].mxu0 }
 0x1d9   :  { %15547 = vst [vmem:[#allocation39_spill] sm:$0xff] %v13297_v12 }
 0x1db   :  { %v13302_v8 = vpop.f32.mrb[126].mxu0 }
 0x1dc   :  { %15548 = vst [vmem:[#allocation40_spill] sm:$0xff] %v13302_v8  ;;  %v13304_v43 = vpop.f32.mrb[127].mxu0 }
 0x1dd   :  { %15549 = vst [vmem:[#allocation41_spill] sm:$0xff] %v13304_v43  ;;  %v13324_v43 = vpack.c.bf16 %v2268_v16, %v2267_v53 }
 0x1df   :  { %v13306_v4 = vpop.f32.mrb[128].mxu0  ;;  %11192 = vmatprep.subr.bf16.mxu0 %v13324_v43 }
 0x1e0   :  { %15550 = vst [vmem:[#allocation42_spill] sm:$0xff] %v13306_v4  ;;  %v13308_v39 = vpop.f32.mrb[129].mxu0 }
 0x1e1   :  { %15551 = vst [vmem:[#allocation43_spill] sm:$0xff] %v13308_v39 }
 0x1e3   :  { %v13310_v0 = vpop.f32.mrb[130].mxu0 }
 0x1e4   :  { %15552 = vst [vmem:[#allocation44_spill] sm:$0xff] %v13310_v0  ;;  %v13312_v24 = vpop.f32.mrb[131].mxu0 }
 0x1e5   :  { %15553 = vst [vmem:[#allocation45_spill] sm:$0xff] %v13312_v24 }
 0x1e7   :  { %v13314_v35 = vpop.f32.mrb[132].mxu0 }
 0x1e8   :  { %15554 = vst [vmem:[#allocation46_spill] sm:$0xff] %v13314_v35  ;;  %v13316_v10 = vpop.f32.mrb[133].mxu0 }
 0x1e9   :  { %15555 = vst [vmem:[#allocation47_spill] sm:$0xff] %v13316_v10 }
 0x1eb   :  { %v13326_v4 = vpop.f32.mrb[134].mxu0 }
 0x1ec   :  { %15556 = vst [vmem:[#allocation48_spill] sm:$0xff] %v13326_v4  ;;  %v13329_v0 = vpop.f32.mrb[135].mxu0 }
 0x1ed   :  { %15557 = vst [vmem:[#allocation49_spill] sm:$0xff] %v13329_v0 }
 0x1ef   :  { %v13331_v24 = vpop.f32.mrb[136].mxu0 }
 0x1f0   :  { %15558 = vst [vmem:[#allocation50_spill] sm:$0xff] %v13331_v24  ;;  %v13333_v35 = vpop.f32.mrb[137].mxu0  ;;  %v1943_v24 = vmax.f32 %v13235_v29, 0.0 }
 0x1f1   :  { %15559 = vst [vmem:[#allocation51_spill] sm:$0xff] %v13333_v35 }
 0x1f3   :  { %v13335_v10 = vpop.f32.mrb[138].mxu0 }
 0x1f4   :  { %15560 = vst [vmem:[#allocation52_spill] sm:$0xff] %v13335_v10  ;;  %v13337_v39 = vpop.f32.mrb[139].mxu0 }
 0x1f5   :  { %15561 = vst [vmem:[#allocation53_spill] sm:$0xff] %v13337_v39 }
 0x1f7   :  { %v13339_v8 = vpop.f32.mrb[140].mxu0 }
 0x1f8   :  { %15562 = vst [vmem:[#allocation54_spill] sm:$0xff] %v13339_v8  ;;  %v13341_v12 = vpop.f32.mrb[141].mxu0  ;;  %v1946_v8 = vmax.f32 %v13237_v48, 0.0  ;;  %v1949_v48 = vmax.f32 %v13247_v46, 0.0 }
 0x1f9   :  { %15563 = vst [vmem:[#allocation55_spill] sm:$0xff] %v13341_v12 }
 0x1fb   :  { %v13343_v53 = vpop.f32.mrb[142].mxu0 }
 0x1fc   :  { %15564 = vst [vmem:[#allocation56_spill] sm:$0xff] %v13343_v53  ;;  %v13345_v16 = vpop.f32.mrb[143].mxu0 }
 0x1fd   :  { %15565 = vst [vmem:[#allocation57_spill] sm:$0xff] %v13345_v16  ;;  %v1945_v16 = vmax.f32 %v13239_v9, 0.0 }
 0x1ff   :  { %v10359_v4 = vpop.f32.mrb[144].mxu0 }
 0x200   :  { %v1992_v0 = vmax.f32 %v10359_v4, 0.0  ;;  %v1608_v17 = vpop.f32.mrb[145].mxu0 }
 0x201   :  { %v1991_v35 = vmax.f32 %v1608_v17, 0.0 }
 0x202   :  { %v2088_v31 = vmax.f32 %v1944_v60, %v1992_v0 }
 0x203   :  { %v2087_v10 = vmax.f32 %v1943_v24, %v1991_v35  ;;  %v10362_v39 = vpop.f32.mrb[146].mxu0  ;;  %v1948_v35 = vmax.f32 %v13241_v45, 0.0 }
 0x204   :  { %v2136_v12 = vmax.f32 %v12932_v18, %v2088_v31  ;;  %v1994_v5 = vmax.f32 %v10362_v39, 0.0  ;;  %v1618_v53 = vpop.f32.mrb[147].mxu0  ;;  %v1947_v31 = vmax.f32 %v13243_v14, 0.0 }
 0x205   :  { %v2135_v56 = vmax.f32 %v12937_v51, %v2087_v10  ;;  %v1993_v40 = vmax.f32 %v1618_v53, 0.0 }
 0x206   :  { %2185 = vst.msk [vmem:[#allocation2 + $0x8] sm:$0xff] %vm2183_vm2, %v2136_v12  ;;  %v2090_v4 = vmax.f32 %v1946_v8, %v1994_v5  ;;  %v1950_v12 = vmax.f32 %v13245_v20, 0.0 }
 0x207   :  { %2184 = vst.msk [vmem:[#allocation2] sm:$0xff] %vm2183_vm2, %v2135_v56  ;;  %v2089_v60 = vmax.f32 %v1945_v16, %v1993_v40  ;;  %v10365_v0 = vpop.f32.mrb[148].mxu0  ;;  %v1952_v16 = vmax.f32 %v13249_v30, 0.0 }
 0x208   :  { %v2138_v24 = vmax.f32 %v12946_v50, %v2090_v4  ;;  %v1996_v17 = vmax.f32 %v10365_v0, 0.0  ;;  %v1628_v18 = vpop.f32.mrb[149].mxu0  ;;  %v1951_v4 = vmax.f32 %v13251_v21, 0.0 }
 0x209   :  { %v2137_v39 = vmax.f32 %v12951_v55, %v2089_v60  ;;  %v1995_v29 = vmax.f32 %v1628_v18, 0.0  ;;  %v1953_v18 = vmax.f32 %v13255_v28, 0.0  ;;  %v8962_v28 = vld [vmem:[%s15505_s3 + $0x30] sm:$0xff] }
 0x20a   :  { %2187 = vst.msk [vmem:[#allocation2 + $0x18] sm:$0xff] %vm2183_vm2, %v2138_v24  ;;  %v2092_v51 = vmax.f32 %v1948_v35, %v1996_v17 }
 0x20b   :  { %2186 = vst.msk [vmem:[#allocation2 + $0x10] sm:$0xff] %vm2183_vm2, %v2137_v39  ;;  %v2091_v8 = vmax.f32 %v1947_v31, %v1995_v29  ;;  %v10368_v56 = vpop.f32.mrb[150].mxu0 }
 0x20c   :  { %v2140_v10 = vmax.f32 %v12960_v25, %v2092_v51  ;;  %v1998_v5 = vmax.f32 %v10368_v56, 0.0  ;;  %v1638_v50 = vpop.f32.mrb[151].mxu0  ;;  %v1956_v51 = vmax.f32 %v13257_v36, 0.0 }
 0x20d   :  { %v2139_v9 = vmax.f32 %v12965_v59, %v2091_v8  ;;  %v1997_v45 = vmax.f32 %v1638_v50, 0.0 }
 0x20e   :  { %2189 = vst.msk [vmem:[#allocation2 + $0x28] sm:$0xff] %vm2183_vm2, %v2140_v10  ;;  %v2094_v55 = vmax.f32 %v1950_v12, %v1998_v5 }
 0x20f   :  { %2188 = vst.msk [vmem:[#allocation2 + $0x20] sm:$0xff] %vm2183_vm2, %v2139_v9  ;;  %v2093_v14 = vmax.f32 %v1949_v48, %v1997_v45  ;;  %v10371_v53 = vpop.f32.mrb[152].mxu0 }
 0x210   :  { %v2142_v20 = vmax.f32 %v12974_v57, %v2094_v55  ;;  %v2000_v40 = vmax.f32 %v10371_v53, 0.0  ;;  %v1648_v25 = vpop.f32.mrb[153].mxu0  ;;  %v1954_v57 = vmax.f32 %v13253_v38, 0.0  ;;  %v1958_v53 = vmax.f32 %v13261_v54, 0.0 }
 0x211   :  { %v2141_v46 = vmax.f32 %v12979_v63, %v2093_v14  ;;  %v1999_v60 = vmax.f32 %v1648_v25, 0.0  ;;  %v13371_v59 = vld [vmem:[#allocation2 + $0x8] ss:$16 sps:$4 sm:$0xff]   ;;  %v9023_v14 = vld [vmem:[%s15505_s3 + $0x80] sm:$0xff]  ;;  %v1957_v25 = vmax.f32 %v13263_v41, 0.0 }
 0x212   :  { %2191 = vst.msk [vmem:[#allocation2 + $0x38] sm:$0xff] %vm2183_vm2, %v2142_v20  ;;  %v2096_v0 = vmax.f32 %v1952_v16, %v2000_v40  ;;  %v11914_v35 = vld [vmem:[#allocation2 + $0x9] ss:$16 sps:$4 sm:$0xff]   ;;  %10435 = vmatprep.mubr.msk.f32.mxu0 %vm2183_vm2, %v13371_v59 }
 0x213   :  { %2190 = vst.msk [vmem:[#allocation2 + $0x30] sm:$0xff] %vm2183_vm2, %v2141_v46  ;;  %v2095_v24 = vmax.f32 %v1951_v4, %v1999_v60  ;;  %v10374_v17 = vpop.f32.mrb[154].mxu0  ;;  %10525 = vmatprep.mubr.msk.f32.mxu1 %vm2183_vm2, %v11914_v35 }
 0x214   :  { %v2144_v30 = vmax.f32 %v12988_v26, %v2096_v0  ;;  %v2002_v21 = vmax.f32 %v10374_v17, 0.0  ;;  %v1658_v63 = vpop.f32.mrb[155].mxu0  ;;  %v1955_v26 = vmax.f32 %v13259_v44, 0.0  ;;  %v9004_v44 = vld [vmem:[%s15505_s3 + $0x70] sm:$0xf] }
 0x215   :  { %v2143_v31 = vmax.f32 %v12993_v3, %v2095_v24  ;;  %v2001_v39 = vmax.f32 %v1658_v63, 0.0  ;;  %v2269_v3 = vld [vmem:[%s15505_s3 + $0x10] sm:$0xf]  ;;  %v1959_v24 = vmax.f32 %v13267_v49, 0.0 }
 0x216   :  { %2193 = vst.msk [vmem:[#allocation2 + $0x48] sm:$0xff] %vm2183_vm2, %v2144_v30  ;;  %v2098_v29 = vmax.f32 %v1954_v57, %v2002_v21 }
 0x217   :  { %2192 = vst.msk [vmem:[#allocation2 + $0x40] sm:$0xff] %vm2183_vm2, %v2143_v31  ;;  %v2097_v8 = vmax.f32 %v1953_v18, %v2001_v39  ;;  %v10377_v38 = vpop.f32.mrb[156].mxu0  ;;  %v1961_v18 = vmax.f32 %v13271_v22, 0.0 }
 0x218   :  { %v2146_v56 = vmax.f32 %v13002_v58, %v2098_v29  ;;  %v2004_v12 = vmax.f32 %v10377_v38, 0.0  ;;  %v1668_v10 = vpop.f32.mrb[157].mxu0  ;;  %v8963_v58 = vld [vmem:[%s15505_s3 + $0x38] sm:$0xff] }
 0x219   :  { %v2145_v36 = vmax.f32 %v13007_v7, %v2097_v8  ;;  %v2003_v5 = vmax.f32 %v1668_v10, 0.0  ;;  %v13394_v50 = vld [vmem:[#allocation2 + $0x28] ss:$16 sps:$4 sm:$0xff]   ;;  %v13420_v60 = vpack.c.bf16 %v8963_v58, %v8962_v28 }
 0x21a   :  { %2195 = vst.msk [vmem:[#allocation2 + $0x58] sm:$0xff] %vm2183_vm2, %v2146_v56  ;;  %v2100_v48 = vmax.f32 %v1956_v51, %v2004_v12  ;;  %v11916_v9 = vld [vmem:[#allocation2 + $0x29] ss:$16 sps:$4 sm:$0xff]   ;;  %10436 = vmatmul.mubr.msk.f32.vlgmr.msra.gmra.mrb[192].mxu0 %vm2183_vm2, %v13394_v50  ;;  %v1964_v51 = vmax.f32 %v13273_v61, 0.0  ;;  %v1963_v56 = vmax.f32 %v13275_v32, 0.0 }
 0x21b   :  { %2194 = vst.msk [vmem:[#allocation2 + $0x50] sm:$0xff] %vm2183_vm2, %v2145_v36  ;;  %v2099_v45 = vmax.f32 %v1955_v26, %v2003_v5  ;;  %v10380_v55 = vpop.f32.mrb[158].mxu0  ;;  %v9022_v7 = vld [vmem:[%s15505_s3 + $0x78] sm:$0xff]  ;;  %10526 = vmatmul.mubr.msk.f32.vlgmr.msra.gmra.mrb[0].mxu1 %vm2183_vm2, %v11916_v9  ;;  %11194 = vmatpush3.bf16.msra.mxu0 %v13324_v43  ;;  %v1965_v5 = vmax.f32 %v13279_v62, 0.0  ;;  %v1968_v9 = vmax.f32 %v13281_v42, 0.0 }
 0x21c   :  { %v2148_v16 = vmax.f32 %v13016_v33, %v2100_v48  ;;  %v2006_v20 = vmax.f32 %v10380_v55, 0.0  ;;  %v1678_v40 = vpop.f32.mrb[159].mxu0  ;;  %11206 = vmatpush3.bf16.msra.mxu1 %v13299_v47  ;;  %10463 = vmatprep.subr.msk.mxu0 %vm2370_vm1, %v2269_v3  ;;  %v13424_v54 = vpack.c.bf16 %v9023_v14, %v9022_v7  ;;  %v15567_v7 = vld [vmem:[#allocation35_spill] sm:$0xff] }
 0x21d   :  { %v2147_v4 = vmax.f32 %v13021_v11, %v2099_v45  ;;  %v2005_v46 = vmax.f32 %v1678_v40, 0.0  ;;  %10553 = vmatprep.subr.msk.mxu1 %vm2370_vm1, %v9004_v44  ;;  %v1960_v11 = vmax.f32 %v13265_v6, 0.0  ;;  %v15566_v45 = vld [vmem:[#allocation9_spill] sm:$0xff]  ;;  %v1967_v14 = vmax.f32 %v15567_v7, 0.0 }
 0x21e   :  { %2197 = vst.msk [vmem:[#allocation2 + $0x68] sm:$0xff] %vm2183_vm2, %v2148_v16  ;;  %v2102_v33 = vmax.f32 %v1958_v53, %v2006_v20  ;;  %v15568_v53 = vld [vmem:[#allocation10_spill] sm:$0xff] }
 0x21f   :  { %2196 = vst.msk [vmem:[#allocation2 + $0x60] sm:$0xff] %vm2183_vm2, %v2147_v4  ;;  %v2101_v43 = vmax.f32 %v1957_v25, %v2005_v46  ;;  %v10383_v41 = vpop.f32.mrb[160].mxu0  ;;  %10464 = vmatpush3.msk.msra.mxu0 %vm2370_vm1, %v2269_v3  ;;  %v1966_v3 = vmax.f32 %v13277_v13, 0.0  ;;  %v15569_v25 = vld [vmem:[#allocation36_spill] sm:$0xff]  ;;  %v15570_v46 = vld [vmem:[#allocation11_spill] sm:$0xff] }
 0x220   :  { %v2150_v0 = vmax.f32 %v13030_v1, %v2102_v33  ;;  %v2008_v47 = vmax.f32 %v10383_v41, 0.0  ;;  %v1688_v35 = vpop.f32.mrb[161].mxu0  ;;  %10554 = vmatpush3.msk.msra.mxu1 %vm2370_vm1, %v9004_v44  ;;  %11196 = vmatprep.subr.bf16.mxu0 %v13420_v60  ;;  %v1962_v1 = vmax.f32 %v13269_v37, 0.0  ;;  %v1970_v4 = vmax.f32 %v15569_v25, 0.0  ;;  %v15571_v41 = vld [vmem:[#allocation37_spill] sm:$0xff]  ;;  %v15586_v25 = vld [vmem:[#allocation19_spill] sm:$0xff] }
 0x221   :  { %v2149_v17 = vmax.f32 %v13035_v15, %v2101_v43  ;;  %v2007_v57 = vmax.f32 %v1688_v35, 0.0  ;;  %11208 = vmatprep.subr.bf16.mxu1 %v13424_v54 }
 0x222   :  { %2199 = vst.msk [vmem:[#allocation2 + $0x78] sm:$0xff] %vm2183_vm2, %v2150_v0  ;;  %v2104_v30 = vmax.f32 %v1960_v11, %v2008_v47  ;;  %v1969_v11 = vmax.f32 %v15571_v41, 0.0  ;;  %v15572_v0 = vld [vmem:[#allocation12_spill] sm:$0xff] }
 0x223   :  { %2198 = vst.msk [vmem:[#allocation2 + $0x70] sm:$0xff] %vm2183_vm2, %v2149_v17  ;;  %v2103_v6 = vmax.f32 %v1959_v24, %v2007_v57  ;;  %v10386_v21 = vpop.f32.mrb[162].mxu0  ;;  %v15573_v17 = vld [vmem:[#allocation38_spill] sm:$0xff]  ;;  %v15588_v41 = vld [vmem:[#allocation20_spill] sm:$0xff] }
 0x224   :  { %v2152_v49 = vmax.f32 %v13044_v34, %v2104_v30  ;;  %v2010_v63 = vmax.f32 %v10386_v21, 0.0  ;;  %v1698_v15 = vpop.f32.mrb[163].mxu0  ;;  %v1972_v57 = vmax.f32 %v15573_v17, 0.0 }
 0x225   :  { %v2151_v31 = vmax.f32 %v13049_v19, %v2103_v6  ;;  %v2009_v39 = vmax.f32 %v1698_v15, 0.0  ;;  %v15574_v6 = vld [vmem:[#allocation13_spill] sm:$0xff]  ;;  %v15575_v15 = vld [vmem:[#allocation39_spill] sm:$0xff] }
 0x226   :  { %2201 = vst.msk [vmem:[#allocation2 + $0x88] sm:$0xff] %vm2183_vm2, %v2152_v49  ;;  %v2106_v29 = vmax.f32 %v1962_v1, %v2010_v63 }
 0x227   :  { %2200 = vst.msk [vmem:[#allocation2 + $0x80] sm:$0xff] %vm2183_vm2, %v2151_v31  ;;  %v2105_v37 = vmax.f32 %v1961_v18, %v2009_v39  ;;  %v10389_v8 = vpop.f32.mrb[164].mxu0  ;;  %v1971_v18 = vmax.f32 %v15575_v15, 0.0  ;;  %v15576_v31 = vld [vmem:[#allocation14_spill] sm:$0xff] }
 0x228   :  { %v2154_v38 = vmax.f32 %v13058_v2, %v2106_v29  ;;  %v2012_v26 = vmax.f32 %v10389_v8, 0.0  ;;  %v1708_v34 = vpop.f32.mrb[165].mxu0 }
 0x229   :  { %v2153_v22 = vmax.f32 %v13063_v23, %v2105_v37  ;;  %v2011_v12 = vmax.f32 %v1708_v34, 0.0  ;;  %v15577_v37 = vld [vmem:[#allocation40_spill] sm:$0xff]  ;;  %v15578_v34 = vld [vmem:[#allocation15_spill] sm:$0xff] }
 0x22a   :  { %2203 = vst.msk [vmem:[#allocation2 + $0x98] sm:$0xff] %vm2183_vm2, %v2154_v38  ;;  %v2108_v19 = vmax.f32 %v1964_v51, %v2012_v26  ;;  %v1974_v8 = vmax.f32 %v15577_v37, 0.0 }
 0x22b   :  { %2202 = vst.msk [vmem:[#allocation2 + $0x90] sm:$0xff] %vm2183_vm2, %v2153_v22  ;;  %v2107_v10 = vmax.f32 %v1963_v56, %v2011_v12  ;;  %v10392_v61 = vpop.f32.mrb[166].mxu0 }
 0x22c   :  { %v2156_v28 = vmax.f32 %v13072_v52, %v2108_v19  ;;  %v2014_v36 = vmax.f32 %v10392_v61, 0.0  ;;  %v1718_v2 = vpop.f32.mrb[167].mxu0  ;;  %v15579_v19 = vld [vmem:[#allocation41_spill] sm:$0xff]  ;;  %v15580_v61 = vld [vmem:[#allocation16_spill] sm:$0xff] }
 0x22d   :  { %v2155_v32 = vmax.f32 %v13077_v27, %v2107_v10  ;;  %v2013_v44 = vmax.f32 %v1718_v2, 0.0  ;;  %v1973_v10 = vmax.f32 %v15579_v19, 0.0 }
 0x22e   :  { %2205 = vst.msk [vmem:[#allocation2 + $0xa8] sm:$0xff] %vm2183_vm2, %v2156_v28  ;;  %v2110_v23 = vmax.f32 %v1966_v3, %v2014_v36 }
 0x22f   :  { %2204 = vst.msk [vmem:[#allocation2 + $0xa0] sm:$0xff] %vm2183_vm2, %v2155_v32  ;;  %v2109_v58 = vmax.f32 %v1965_v5, %v2013_v44  ;;  %v10395_v48 = vpop.f32.mrb[168].mxu0  ;;  %v15581_v32 = vld [vmem:[#allocation42_spill] sm:$0xff] }
 0x230   :  { %v2158_v13 = vmax.f32 %v15566_v45, %v2110_v23  ;;  %v2016_v55 = vmax.f32 %v10395_v48, 0.0  ;;  %v1728_v52 = vpop.f32.mrb[169].mxu0  ;;  %v1976_v44 = vmax.f32 %v15581_v32, 0.0  ;;  %v15582_v23 = vld [vmem:[#allocation17_spill] sm:$0xff]  ;;  %v15583_v45 = vld [vmem:[#allocation43_spill] sm:$0xff] }
 0x231   :  { %v2157_v62 = vmax.f32 %v15568_v53, %v2109_v58  ;;  %v2015_v16 = vmax.f32 %v1728_v52, 0.0  ;;  %v13527_v32 = vld [vmem:[#allocation2 + $0x22] ss:$16 sps:$4 sm:$0xff]  }
 0x232   :  { %2207 = vst.msk [vmem:[#allocation2 + $0xb8] sm:$0xff] %vm2183_vm2, %v2158_v13  ;;  %v2112_v27 = vmax.f32 %v1968_v9, %v2016_v55  ;;  %v1975_v13 = vmax.f32 %v15583_v45, 0.0  ;;  %v15584_v55 = vld [vmem:[#allocation18_spill] sm:$0xff] }
 0x233   :  { %2206 = vst.msk [vmem:[#allocation2 + $0xb0] sm:$0xff] %vm2183_vm2, %v2157_v62  ;;  %v2111_v20 = vmax.f32 %v1967_v14, %v2015_v16  ;;  %v10398_v40 = vpop.f32.mrb[170].mxu0 }
 0x234   :  { %v2160_v42 = vmax.f32 %v15570_v46, %v2112_v27  ;;  %v2018_v33 = vmax.f32 %v10398_v40, 0.0  ;;  %v1738_v43 = vpop.f32.mrb[171].mxu0 }
 0x235   :  { %v2159_v47 = vmax.f32 %v15572_v0, %v2111_v20  ;;  %v2017_v35 = vmax.f32 %v1738_v43, 0.0  ;;  %v15585_v20 = vld [vmem:[#allocation44_spill] sm:$0xff] }
 0x236   :  { %2209 = vst.msk [vmem:[#allocation2 + $0xc8] sm:$0xff] %vm2183_vm2, %v2160_v42  ;;  %v2114_v24 = vmax.f32 %v1970_v4, %v2018_v33  ;;  %v1978_v40 = vmax.f32 %v15585_v20, 0.0  ;;  %v15587_v33 = vld [vmem:[#allocation45_spill] sm:$0xff]  ;;  %v15599_v20 = vld [vmem:[#allocation51_spill] sm:$0xff] }
 0x237   :  { %2208 = vst.msk [vmem:[#allocation2 + $0xc0] sm:$0xff] %vm2183_vm2, %v2159_v47  ;;  %v2113_v30 = vmax.f32 %v1969_v11, %v2017_v35  ;;  %v10401_v1 = vpop.f32.mrb[172].mxu0  ;;  %v1977_v43 = vmax.f32 %v15587_v33, 0.0  ;;  %v15589_v35 = vld [vmem:[#allocation46_spill] sm:$0xff] }
 0x238   :  { %v2162_v21 = vmax.f32 %v15574_v6, %v2114_v24  ;;  %v2020_v49 = vmax.f32 %v10401_v1, 0.0  ;;  %v1748_v63 = vpop.f32.mrb[173].mxu0  ;;  %v1980_v24 = vmax.f32 %v15589_v35, 0.0  ;;  %v13560_v35 = vld [vmem:[#allocation2 + $0x88] ss:$16 sps:$4 sm:$0xff]  }
 0x239   :  { %v2161_v39 = vmax.f32 %v15576_v31, %v2113_v30  ;;  %v2019_v29 = vmax.f32 %v1748_v63, 0.0  ;;  %v15590_v30 = vld [vmem:[#allocation21_spill] sm:$0xff]  ;;  %v15591_v63 = vld [vmem:[#allocation47_spill] sm:$0xff] }
 0x23a   :  { %2211 = vst.msk [vmem:[#allocation2 + $0xd8] sm:$0xff] %vm2183_vm2, %v2162_v21  ;;  %v2116_v51 = vmax.f32 %v1972_v57, %v2020_v49  ;;  %v13501_v49 = vld [vmem:[#allocation2 + $0x1] ss:$16 sps:$4 sm:$0xff]   ;;  %v1979_v15 = vmax.f32 %v15591_v63, 0.0 }
 0x23b   :  { %2210 = vst.msk [vmem:[#allocation2 + $0xd0] sm:$0xff] %vm2183_vm2, %v2161_v39  ;;  %v2115_v38 = vmax.f32 %v1971_v18, %v2019_v29  ;;  %v10404_v26 = vpop.f32.mrb[174].mxu0  ;;  %v15592_v18 = vld [vmem:[#allocation22_spill] sm:$0xff]  ;;  %v15604_v63 = vld [vmem:[#allocation28_spill] sm:$0xff] }
 0x23c   :  { %v2164_v56 = vmax.f32 %v15578_v34, %v2116_v51  ;;  %v2022_v22 = vmax.f32 %v10404_v26, 0.0  ;;  %v1758_v12 = vpop.f32.mrb[175].mxu0 }
 0x23d   :  { %v2163_v3 = vmax.f32 %v15580_v61, %v2115_v38  ;;  %v2021_v28 = vmax.f32 %v1758_v12, 0.0  ;;  %v13521_v61 = vld [vmem:[#allocation2 + $0x21] ss:$16 sps:$4 sm:$0xff]  }
 0x23e   :  { %2213 = vst.msk [vmem:[#allocation2 + $0xe8] sm:$0xff] %vm2183_vm2, %v2164_v56  ;;  %v2118_v36 = vmax.f32 %v1974_v8, %v2022_v22  ;;  %v15593_v8 = vld [vmem:[#allocation48_spill] sm:$0xff]  ;;  %v15594_v22 = vld [vmem:[#allocation23_spill] sm:$0xff] }
 0x23f   :  { %2212 = vst.msk [vmem:[#allocation2 + $0xe0] sm:$0xff] %vm2183_vm2, %v2163_v3  ;;  %v2117_v2 = vmax.f32 %v1973_v10, %v2021_v28  ;;  %v10407_v5 = vpop.f32.mrb[176].mxu0  ;;  %v1982_v38 = vmax.f32 %v15593_v8, 0.0  ;;  %v13514_v56 = vld [vmem:[#allocation2 + $0x2] ss:$16 sps:$4 sm:$0xff]   ;;  %v15595_v3 = vld [vmem:[#allocation49_spill] sm:$0xff] }
 0x240   :  { %v2166_v58 = vmax.f32 %v15582_v23, %v2118_v36  ;;  %v2024_v48 = vmax.f32 %v10407_v5, 0.0  ;;  %v1768_v9 = vpop.f32.mrb[177].mxu0  ;;  %v1981_v28 = vmax.f32 %v15595_v3, 0.0  ;;  %v15596_v36 = vld [vmem:[#allocation24_spill] sm:$0xff]  ;;  %v15605_v8 = vld [vmem:[#allocation54_spill] sm:$0xff] }
 0x241   :  { %v2165_v52 = vmax.f32 %v15584_v55, %v2117_v2  ;;  %v2023_v7 = vmax.f32 %v1768_v9, 0.0  ;;  %v13483_v14 = vld [vmem:[#allocation2 + $0xc8] ss:$16 sps:$4 sm:$0xff]   ;;  %v15608_v3 = vld [vmem:[#allocation30_spill] sm:$0xff] }
 0x242   :  { %2215 = vst.msk [vmem:[#allocation2 + $0xf8] sm:$0xff] %vm2183_vm2, %v2166_v58  ;;  %v2120_v53 = vmax.f32 %v1976_v44, %v2024_v48  ;;  %v13486_v62 = vld [vmem:[#allocation2 + $0xc9] ss:$16 sps:$4 sm:$0xff]   ;;  %10438 = vmatprep.mubr.msk.f32.mxu0 %vm2183_vm2, %v13483_v14  ;;  %v13530_v23 = vld [vmem:[#allocation2 + $0xc1] ss:$16 sps:$4 sm:$0xff]  }
 0x243   :  { %2214 = vst.msk [vmem:[#allocation2 + $0xf0] sm:$0xff] %vm2183_vm2, %v2165_v52  ;;  %v2119_v16 = vmax.f32 %v1975_v13, %v2023_v7  ;;  %v10410_v27 = vpop.f32.mrb[178].mxu0  ;;  %10528 = vmatprep.mubr.msk.f32.mxu1 %vm2183_vm2, %v13486_v62  ;;  %v15597_v58 = vld [vmem:[#allocation50_spill] sm:$0xff]  ;;  %v15598_v55 = vld [vmem:[#allocation25_spill] sm:$0xff] }
 0x244   :  { %v2168_v4 = vmax.f32 %v15586_v25, %v2120_v53  ;;  %v2026_v46 = vmax.f32 %v10410_v27, 0.0  ;;  %v1778_v42 = vpop.f32.mrb[179].mxu0  ;;  %v1984_v48 = vmax.f32 %v15597_v58, 0.0  ;;  %v13536_v13 = vld [vmem:[#allocation2 + $0xc2] ss:$16 sps:$4 sm:$0xff]  }
 0x245   :  { %v2167_v11 = vmax.f32 %v15588_v41, %v2119_v16  ;;  %v2025_v0 = vmax.f32 %v1778_v42, 0.0  ;;  %v13545_v27 = vld [vmem:[#allocation2 + $0x68] ss:$16 sps:$4 sm:$0xff]   ;;  %v15600_v25 = vld [vmem:[#allocation26_spill] sm:$0xff]  ;;  %v15601_v41 = vld [vmem:[#allocation52_spill] sm:$0xff] }
 0x246   :  { %2217 = vst.msk [vmem:[#allocation2 + $0x108] sm:$0xff] %vm2183_vm2, %v2168_v4  ;;  %v2122_v47 = vmax.f32 %v1978_v40, %v2026_v46  ;;  %v1983_v40 = vmax.f32 %v15599_v20, 0.0  ;;  %v13551_v42 = vld [vmem:[#allocation2 + $0x69] ss:$16 sps:$4 sm:$0xff]  }
 0x247   :  { %2216 = vst.msk [vmem:[#allocation2 + $0x100] sm:$0xff] %vm2183_vm2, %v2167_v11  ;;  %v2121_v17 = vmax.f32 %v1977_v43, %v2025_v0  ;;  %v10413_v57 = vpop.f32.mrb[180].mxu0  ;;  %v1986_v11 = vmax.f32 %v15601_v41, 0.0  ;;  %v15611_v20 = vld [vmem:[#allocation57_spill] sm:$0xff] }
 0x248   :  { %v2170_v1 = vmax.f32 %v15590_v30, %v2122_v47  ;;  %v2028_v6 = vmax.f32 %v10413_v57, 0.0  ;;  %v1788_v21 = vpop.f32.mrb[181].mxu0 }
 0x249   :  { %v2169_v31 = vmax.f32 %v15592_v18, %v2121_v17  ;;  %v2027_v39 = vmax.f32 %v1788_v21, 0.0  ;;  %v13505_v29 = vld [vmem:[#allocation2 + $0xe8] ss:$16 sps:$4 sm:$0xff]  }
 0x24a   :  { %2219 = vst.msk [vmem:[#allocation2 + $0x118] sm:$0xff] %vm2183_vm2, %v2170_v1  ;;  %v2124_v51 = vmax.f32 %v1980_v24, %v2028_v6  ;;  %v13508_v37 = vld [vmem:[#allocation2 + $0xe9] ss:$16 sps:$4 sm:$0xff]   ;;  %10439 = vmatmul.mubr.msk.f32.gmra.mrb[194].mxu0 %vm2183_vm2, %v13505_v29  ;;  %v13543_v16 = vld [vmem:[#allocation2 + $0xe1] ss:$16 sps:$4 sm:$0xff]  }
 0x24b   :  { %2218 = vst.msk [vmem:[#allocation2 + $0x110] sm:$0xff] %vm2183_vm2, %v2169_v31  ;;  %v2123_v26 = vmax.f32 %v1979_v15, %v2027_v39  ;;  %v10416_v34 = vpop.f32.mrb[182].mxu0  ;;  %10529 = vmatmul.mubr.msk.f32.gmra.mrb[2].mxu1 %vm2183_vm2, %v13508_v37  ;;  %10441 = vmatprep.mubr.msk.f32.mxu0 %vm2183_vm2, %v13501_v49  ;;  %v13554_v43 = vld [vmem:[#allocation2 + $0xe2] ss:$16 sps:$4 sm:$0xff]   ;;  %v15602_v24 = vld [vmem:[#allocation27_spill] sm:$0xff]  ;;  %v15603_v6 = vld [vmem:[#allocation53_spill] sm:$0xff] }
 0x24c   :  { %v2172_v12 = vmax.f32 %v15594_v22, %v2124_v51  ;;  %v2030_v19 = vmax.f32 %v10416_v34, 0.0  ;;  %v1798_v10 = vpop.f32.mrb[183].mxu0  ;;  %10531 = vmatprep.mubr.msk.f32.mxu1 %vm2183_vm2, %v13514_v56  ;;  %v13567_v1 = vld [vmem:[#allocation2 + $0x89] ss:$16 sps:$4 sm:$0xff]   ;;  %v1985_v21 = vmax.f32 %v15603_v6, 0.0 }
 0x24d   :  { %v2171_v2 = vmax.f32 %v15596_v36, %v2123_v26  ;;  %v2029_v5 = vmax.f32 %v1798_v10, 0.0  ;;  %v15606_v26 = vld [vmem:[#allocation29_spill] sm:$0xff]  ;;  %v13611_v6 = vld [vmem:[#allocation2 + $0x62] ss:$16 sps:$4 sm:$0xff]  }
 0x24e   :  { %2221 = vst.msk [vmem:[#allocation2 + $0x128] sm:$0xff] %vm2183_vm2, %v2172_v12  ;;  %v2126_v44 = vmax.f32 %v1982_v38, %v2030_v19  ;;  %10442 = vmatmul.mubr.msk.f32.gmra.mrb[196].mxu0 %vm2183_vm2, %v13521_v61  ;;  %v1988_v38 = vmax.f32 %v15605_v8, 0.0  ;;  %v15607_v19 = vld [vmem:[#allocation55_spill] sm:$0xff]  ;;  %v11946_v8 = vld [vmem:[#allocation2 + $0x20] ss:$16 sps:$4 sm:$0xff]  }
 0x24f   :  { %2220 = vst.msk [vmem:[#allocation2 + $0x120] sm:$0xff] %vm2183_vm2, %v2171_v2  ;;  %v2125_v9 = vmax.f32 %v1981_v28, %v2029_v5  ;;  %v10419_v45 = vpop.f32.mrb[184].mxu0  ;;  %10532 = vmatmul.mubr.msk.f32.gmra.mrb[4].mxu1 %vm2183_vm2, %v13527_v32  ;;  %10444 = vmatprep.mubr.msk.f32.mxu0 %vm2183_vm2, %v13530_v23  ;;  %v1987_v10 = vmax.f32 %v15607_v19, 0.0 }
 0x250   :  { %v2174_v52 = vmax.f32 %v15598_v55, %v2126_v44  ;;  %v2032_v7 = vmax.f32 %v10419_v45, 0.0  ;;  %v1808_v53 = vpop.f32.mrb[185].mxu0  ;;  %10534 = vmatprep.mubr.msk.f32.mxu1 %vm2183_vm2, %v13536_v13  ;;  %v15610_v55 = vld [vmem:[#allocation31_spill] sm:$0xff] }
 0x251   :  { %v2173_v4 = vmax.f32 %v15600_v25, %v2125_v9  ;;  %v2031_v46 = vmax.f32 %v1808_v53, 0.0  ;;  %v15609_v9 = vld [vmem:[#allocation56_spill] sm:$0xff] }
 0x252   :  { %2223 = vst.msk [vmem:[#allocation2 + $0x138] sm:$0xff] %vm2183_vm2, %v2174_v52  ;;  %v2128_v33 = vmax.f32 %v1984_v48, %v2032_v7  ;;  %10445 = vmatmul.mubr.msk.f32.gmra.mrb[198].mxu0 %vm2183_vm2, %v13543_v16  ;;  %v1990_v45 = vmax.f32 %v15609_v9, 0.0  ;;  %v15612_v25 = vld [vmem:[#allocation32_spill] sm:$0xff]  ;;  %v13780_v9 = vld [vmem:[#allocation2 + $0x18] ss:$16 sps:$4 sm:$0xff]  }
 0x253   :  { %2222 = vst.msk [vmem:[#allocation2 + $0x130] sm:$0xff] %vm2183_vm2, %v2173_v4  ;;  %v2127_v0 = vmax.f32 %v1983_v40, %v2031_v46  ;;  %v10422_v47 = vpop.f32.mrb[186].mxu0  ;;  %10535 = vmatmul.mubr.msk.f32.gmra.mrb[6].mxu1 %vm2183_vm2, %v13554_v43  ;;  %10447 = vmatprep.mubr.msk.f32.mxu0 %vm2183_vm2, %v13545_v27  ;;  %v1989_v40 = vmax.f32 %v15611_v20, 0.0  ;;  %v9083_v20 = vld [vmem:[%s15505_s3 + $0xc8] sm:$0xff] }
 0x254   :  { %v2176_v17 = vmax.f32 %v15602_v24, %v2128_v33  ;;  %v2034_v57 = vmax.f32 %v10422_v47, 0.0  ;;  %v1818_v30 = vpop.f32.mrb[187].mxu0  ;;  %10537 = vmatprep.mubr.msk.f32.mxu1 %vm2183_vm2, %v13551_v42  ;;  %v15614_v47 = vld [vmem:[#allocation34_spill] sm:$0xff] }
 0x255   :  { %v2175_v15 = vmax.f32 %v15604_v63, %v2127_v0  ;;  %v2033_v18 = vmax.f32 %v1818_v30, 0.0  ;;  %v13606_v30 = vld [vmem:[#allocation2 + $0x61] ss:$16 sps:$4 sm:$0xff]  }
 0x256   :  { %2225 = vst.msk [vmem:[#allocation2 + $0x148] sm:$0xff] %vm2183_vm2, %v2176_v17  ;;  %v2130_v31 = vmax.f32 %v1986_v11, %v2034_v57  ;;  %10448 = vmatmul.mubr.msk.f32.gmra.mrb[200].mxu0 %vm2183_vm2, %v13560_v35  ;;  %v15613_v11 = vld [vmem:[#allocation33_spill] sm:$0xff]  ;;  %v13621_v63 = vld [vmem:[#allocation2 + $0x82] ss:$16 sps:$4 sm:$0xff]  }
 0x257   :  { %2224 = vst.msk [vmem:[#allocation2 + $0x140] sm:$0xff] %vm2183_vm2, %v2175_v15  ;;  %v2129_v39 = vmax.f32 %v1985_v21, %v2033_v18  ;;  %v10425_v51 = vpop.f32.mrb[188].mxu0  ;;  %10538 = vmatmul.mubr.msk.f32.gmra.mrb[8].mxu1 %vm2183_vm2, %v13567_v1  ;;  %v13617_v21 = vld [vmem:[#allocation2 + $0x81] ss:$16 sps:$4 sm:$0xff]  }
 0x258   :  { %v2178_v34 = vmax.f32 %v15606_v26, %v2130_v31  ;;  %v2036_v22 = vmax.f32 %v10425_v51, 0.0  ;;  %v1828_v12 = vpop.f32.mrb[189].mxu0  ;;  %v11945_v31 = vld [vmem:[#allocation2] ss:$16 sps:$4 sm:$0xff]  }
 0x259   :  { %v2177_v28 = vmax.f32 %v15608_v3, %v2129_v39  ;;  %v2035_v36 = vmax.f32 %v1828_v12, 0.0  ;;  %v13583_v2 = vld [vmem:[#allocation2 + $0x128] ss:$16 sps:$4 sm:$0xff]   ;;  %v9042_v26 = vld [vmem:[%s15505_s3 + $0x90] sm:$0xff] }
 0x25a   :  { %2227 = vst.msk [vmem:[#allocation2 + $0x158] sm:$0xff] %vm2183_vm2, %v2178_v34  ;;  %v2132_v5 = vmax.f32 %v1988_v38, %v2036_v22  ;;  %v13586_v44 = vld [vmem:[#allocation2 + $0x129] ss:$16 sps:$4 sm:$0xff]   ;;  %10450 = vmatprep.mubr.msk.f32.mxu0 %vm2183_vm2, %v13583_v2  ;;  %v13623_v15 = vld [vmem:[#allocation2 + $0x121] ss:$16 sps:$4 sm:$0xff]  }
 0x25b   :  { %2226 = vst.msk [vmem:[#allocation2 + $0x150] sm:$0xff] %vm2183_vm2, %v2177_v28  ;;  %v2131_v58 = vmax.f32 %v1987_v10, %v2035_v36  ;;  %v10428_v48 = vpop.f32.mrb[190].mxu0  ;;  %10540 = vmatprep.mubr.msk.f32.mxu1 %vm2183_vm2, %v13586_v44  ;;  %v13627_v18 = vld [vmem:[#allocation2 + $0x122] ss:$16 sps:$4 sm:$0xff]   ;;  %v9024_v38 = vld [vmem:[%s15505_s3 + $0x88] sm:$0xf] }
 0x25c   :  { %v2180_v52 = vmax.f32 %v15610_v55, %v2132_v5  ;;  %v2038_v7 = vmax.f32 %v10428_v48, 0.0  ;;  %v1838_v53 = vpop.f32.mrb[191].mxu0  ;;  %v11947_v34 = vld [vmem:[#allocation2 + $0xc0] ss:$16 sps:$4 sm:$0xff]   ;;  %v9043_v22 = vld [vmem:[%s15505_s3 + $0x98] sm:$0xff]  ;;  %v9062_v5 = vld [vmem:[%s15505_s3 + $0xa8] sm:$0xff] }
 0x25d   :  { %v2179_v4 = vmax.f32 %v15612_v25, %v2131_v58  ;;  %v2037_v46 = vmax.f32 %v1838_v53, 0.0  ;;  %v11948_v12 = vld [vmem:[#allocation2 + $0xe0] ss:$16 sps:$4 sm:$0xff]   ;;  %v11211_v19 = vpack.c.bf16 %v9043_v22, %v9042_v26  ;;  %v13703_v10 = vld [vmem:[#allocation2 + $0x8a] ss:$16 sps:$4 sm:$0xff]  }
 0x25e   :  { %2229 = vst.msk [vmem:[#allocation2 + $0x168] sm:$0xff] %vm2183_vm2, %v2180_v52  ;;  %v2134_v33 = vmax.f32 %v1990_v45, %v2038_v7  ;;  %v13707_v3 = vld [vmem:[#allocation2 + $0x12a] ss:$16 sps:$4 sm:$0xff]   ;;  %v9044_v36 = vld [vmem:[%s15505_s3 + $0xa0] sm:$0xf]  ;;  %v9063_v58 = vld [vmem:[%s15505_s3 + $0xb0] sm:$0xff] }
 0x25f   :  { %2228 = vst.msk [vmem:[#allocation2 + $0x160] sm:$0xff] %vm2183_vm2, %v2179_v4  ;;  %v2133_v41 = vmax.f32 %v1989_v40, %v2037_v46  ;;  %v13764_v48 = vld [vmem:[#allocation2 + $0x30] ss:$16 sps:$4 sm:$0xff]   ;;  %v13788_v45 = vld [vmem:[#allocation2 + $0x38] ss:$16 sps:$4 sm:$0xff]  }
 0x260   :  { %v2182_v0 = vmax.f32 %v15613_v11, %v2134_v33  ;;  %v13792_v55 = vld [vmem:[#allocation2 + $0xd8] ss:$16 sps:$4 sm:$0xff]   ;;  %v9082_v53 = vld [vmem:[%s15505_s3 + $0xc0] sm:$0xff]  ;;  %v9084_v4 = vld [vmem:[%s15505_s3 + $0xd0] sm:$0xf] }
 0x261   :  { %v2181_v24 = vmax.f32 %v15614_v47, %v2133_v41  ;;  %v13601_v17 = vld [vmem:[#allocation2 + $0x148] ss:$16 sps:$4 sm:$0xff]   ;;  %v13847_v40 = vld [vmem:[#allocation2 + $0xd1] ss:$16 sps:$4 sm:$0xff]  }
 0x262   :  { %2231 = vst.msk [vmem:[#allocation2 + $0x178] sm:$0xff] %vm2183_vm2, %v2182_v0  ;;  %v13604_v57 = vld [vmem:[#allocation2 + $0x149] ss:$16 sps:$4 sm:$0xff]   ;;  %10451 = vmatmul.mubr.msk.f32.gmra.mrb[202].mxu0 %vm2183_vm2, %v13601_v17  ;;  %v13635_v39 = vld [vmem:[#allocation2 + $0x141] ss:$16 sps:$4 sm:$0xff]  }
 0x263   :  { %2230 = vst.msk [vmem:[#allocation2 + $0x170] sm:$0xff] %vm2183_vm2, %v2181_v24  ;;  %10541 = vmatmul.mubr.msk.f32.gmra.mrb[10].mxu1 %vm2183_vm2, %v13604_v57  ;;  %10453 = vmatprep.mubr.msk.f32.mxu0 %vm2183_vm2, %v13606_v30  ;;  %v13637_v51 = vld [vmem:[#allocation2 + $0x142] ss:$16 sps:$4 sm:$0xff]   ;;  %v13715_v28 = vld [vmem:[#allocation2 + $0x14a] ss:$16 sps:$4 sm:$0xff]  }
 0x264   :  { %10543 = vmatprep.mubr.msk.f32.mxu1 %vm2183_vm2, %v13611_v6  ;;  %v13800_v52 = vld [vmem:[#allocation2 + $0xf8] ss:$16 sps:$4 sm:$0xff]   ;;  %v13853_v25 = vld [vmem:[#allocation2 + $0xf1] ss:$16 sps:$4 sm:$0xff]  }
 0x265   :  { %v9064_v7 = vld [vmem:[%s15505_s3 + $0xb8] sm:$0xf]  ;;  %v9103_v33 = vld [vmem:[%s15505_s3 + $0xe0] sm:$0xff]  ;;  %v9163_v22 = vld [vmem:[%s15505_s3 + $0x128] sm:$0xff] }
 0x266   :  { %10454 = vmatmul.mubr.msk.f32.gmra.mrb[204].mxu0 %vm2183_vm2, %v13617_v21  ;;  %v9102_v46 = vld [vmem:[%s15505_s3 + $0xd8] sm:$0xff] }
 0x267   :  { %10544 = vmatmul.mubr.msk.f32.gmra.mrb[12].mxu1 %vm2183_vm2, %v13621_v63  ;;  %10456 = vmatprep.mubr.msk.f32.mxu0 %vm2183_vm2, %v13623_v15  ;;  %v11223_v41 = vpack.c.bf16 %v9103_v33, %v9102_v46  ;;  %v13890_v11 = vld [vmem:[#allocation2 + $0x19] ss:$16 sps:$4 sm:$0xff]  }
 0x268   :  { %10546 = vmatprep.mubr.msk.f32.mxu1 %vm2183_vm2, %v13627_v18  ;;  %v13896_v0 = vld [vmem:[#allocation2 + $0x39] ss:$16 sps:$4 sm:$0xff]  }
 0x269   :  { %v13898_v47 = vld [vmem:[#allocation2 + $0xd9] ss:$16 sps:$4 sm:$0xff]  }
 0x26a   :  { %10457 = vmatmul.mubr.msk.f32.gmra.mrb[206].mxu0 %vm2183_vm2, %v13635_v39  ;;  %v13904_v24 = vld [vmem:[#allocation2 + $0xf9] ss:$16 sps:$4 sm:$0xff]  }
 0x26b   :  { %10547 = vmatmul.mubr.msk.f32.gmra.mrb[14].mxu1 %vm2183_vm2, %v13637_v51  ;;  %10465 = vmatprep.mubr.msk.f32.mxu0 %vm2183_vm2, %v11945_v31  ;;  %v9124_v31 = vld [vmem:[%s15505_s3 + $0x100] sm:$0xf]  ;;  %v9144_v26 = vld [vmem:[%s15505_s3 + $0x118] sm:$0xf] }
 0x26c   :  { %10555 = vmatprep.mubr.msk.f32.mxu1 %vm2183_vm2, %v13514_v56  ;;  %v8964_v56 = vld [vmem:[%s15505_s3 + $0x40] sm:$0xf]  ;;  %v14191_v46 = vld [vmem:[#allocation2 + $0x99] ss:$16 sps:$4 sm:$0xff]  }
 0x26d   :  { %v14193_v33 = vld [vmem:[#allocation2 + $0x139] ss:$16 sps:$4 sm:$0xff]  }
 0x26e   :  { %10466 = vmatmul.mubr.msk.f32.vlgmr.msra.gmra.mrb[192].mxu0 %vm2183_vm2, %v11946_v8  ;;  %v9143_v8 = vld [vmem:[%s15505_s3 + $0x110] sm:$0xff] }
 0x26f   :  { %10556 = vmatmul.mubr.msk.f32.vlgmr.msra.gmra.mrb[0].mxu1 %vm2183_vm2, %v13527_v32  ;;  %10468 = vmatprep.mubr.msk.f32.mxu0 %vm2183_vm2, %v11947_v34  ;;  %v11949_v32 = vld [vmem:[#allocation2 + $0xa] ss:$16 sps:$4 sm:$0xff]   ;;  %v9162_v34 = vld [vmem:[%s15505_s3 + $0x120] sm:$0xff] }
 0x270   :  { %10558 = vmatprep.mubr.msk.f32.mxu1 %vm2183_vm2, %v13536_v13  ;;  %11210 = vmatpush3.bf16.msra.mxu1 %v13424_v54  ;;  %v11950_v54 = vld [vmem:[#allocation2 + $0x2a] ss:$16 sps:$4 sm:$0xff]  }
 0x271   :  { %10583 = vmatprep.subr.msk.mxu1 %vm2370_vm1, %v9024_v38  ;;  %11198 = vmatpush3.bf16.msra.mxu0 %v13420_v60  ;;  %v11951_v60 = vld [vmem:[#allocation2 + $0xca] ss:$16 sps:$4 sm:$0xff]  }
 0x272   :  { %10469 = vmatmul.mubr.msk.f32.gmra.mrb[194].mxu0 %vm2183_vm2, %v11948_v12  ;;  %10493 = vmatprep.subr.msk.mxu0 %vm2370_vm1, %v8964_v56  ;;  %v11952_v13 = vld [vmem:[#allocation2 + $0xea] ss:$16 sps:$4 sm:$0xff]   ;;  %v14035_v12 = vld [vmem:[#allocation2 + $0x70] ss:$16 sps:$4 sm:$0xff]  }
 0x273   :  { %10559 = vmatmul.mubr.msk.f32.gmra.mrb[2].mxu1 %vm2183_vm2, %v13554_v43  ;;  %10471 = vmatprep.mubr.msk.f32.mxu0 %vm2183_vm2, %v13371_v59  ;;  %v11953_v59 = vld [vmem:[#allocation2 + $0x60] ss:$16 sps:$4 sm:$0xff]  }
 0x274   :  { %10561 = vmatprep.mubr.msk.f32.mxu1 %vm2183_vm2, %v11949_v32  ;;  %10584 = vmatpush3.msk.msra.mxu1 %vm2370_vm1, %v9024_v38  ;;  %v11955_v43 = vld [vmem:[#allocation2 + $0x120] ss:$16 sps:$4 sm:$0xff]   ;;  %v14006_v38 = vld [vmem:[#allocation2 + $0xfa] ss:$16 sps:$4 sm:$0xff]  }
 0x275   :  { %10494 = vmatpush3.msk.msra.mxu0 %vm2370_vm1, %v8964_v56  ;;  %11212 = vmatprep.subr.bf16.mxu1 %v11211_v19  ;;  %v11235_v56 = vpack.c.bf16 %v9163_v22, %v9162_v34  ;;  %v14043_v32 = vld [vmem:[#allocation2 + $0x130] ss:$16 sps:$4 sm:$0xff]  }
 0x276   :  { %10472 = vmatmul.mubr.msk.f32.gmra.mrb[196].mxu0 %vm2183_vm2, %v13394_v50  ;;  %v11954_v50 = vld [vmem:[#allocation2 + $0x80] ss:$16 sps:$4 sm:$0xff]  }
 0x277   :  { %10562 = vmatmul.mubr.msk.f32.gmra.mrb[4].mxu1 %vm2183_vm2, %v11950_v54  ;;  %10474 = vmatprep.mubr.msk.f32.mxu0 %vm2183_vm2, %v13483_v14  ;;  %v11956_v14 = vld [vmem:[#allocation2 + $0x140] ss:$16 sps:$4 sm:$0xff]  }
 0x278   :  { %10564 = vmatprep.mubr.msk.f32.mxu1 %vm2183_vm2, %v11951_v60  ;;  %v14049_v54 = vld [vmem:[#allocation2 + $0x150] ss:$16 sps:$4 sm:$0xff]   ;;  %v14051_v60 = vld [vmem:[#allocation2 + $0x78] ss:$16 sps:$4 sm:$0xff]  }
 0x279   :  { %v14336_v34 = vld [vmem:[#allocation2 + $0x40] ss:$16 sps:$4 sm:$0xff]  }
 0x27a   :  { %10475 = vmatmul.mubr.msk.f32.gmra.mrb[198].mxu0 %vm2183_vm2, %v13505_v29  ;;  %v13695_v29 = vld [vmem:[#allocation2 + $0x6a] ss:$16 sps:$4 sm:$0xff]   ;;  %v14338_v22 = vld [vmem:[#allocation2 + $0xe0] ss:$16 sps:$4 sm:$0xff]  }
 0x27b   :  { %10565 = vmatmul.mubr.msk.f32.gmra.mrb[6].mxu1 %vm2183_vm2, %v11952_v13  ;;  %10477 = vmatprep.mubr.msk.f32.mxu0 %vm2183_vm2, %v11953_v59  ;;  %v14059_v13 = vld [vmem:[#allocation2 + $0x138] ss:$16 sps:$4 sm:$0xff]  }
 0x27c   :  { %10567 = vmatprep.mubr.msk.f32.mxu1 %vm2183_vm2, %v13611_v6 }
 0x27e   :  { %10478 = vmatmul.mubr.msk.f32.gmra.mrb[200].mxu0 %vm2183_vm2, %v11954_v50 }
 0x27f   :  { %10568 = vmatmul.mubr.msk.f32.gmra.mrb[8].mxu1 %vm2183_vm2, %v13621_v63  ;;  %10480 = vmatprep.mubr.msk.f32.mxu0 %vm2183_vm2, %v11955_v43 }
 0x280   :  { %10570 = vmatprep.mubr.msk.f32.mxu1 %vm2183_vm2, %v13627_v18 }
 0x282   :  { %10481 = vmatmul.mubr.msk.f32.gmra.mrb[202].mxu0 %vm2183_vm2, %v11956_v14 }
 0x283   :  { %10571 = vmatmul.mubr.msk.f32.gmra.mrb[10].mxu1 %vm2183_vm2, %v13637_v51  ;;  %10483 = vmatprep.mubr.msk.f32.mxu0 %vm2183_vm2, %v13545_v27 }
 0x284   :  { %10573 = vmatprep.mubr.msk.f32.mxu1 %vm2183_vm2, %v13695_v29 }
 0x286   :  { %10484 = vmatmul.mubr.msk.f32.gmra.mrb[204].mxu0 %vm2183_vm2, %v13560_v35 }
 0x287   :  { %10574 = vmatmul.mubr.msk.f32.gmra.mrb[12].mxu1 %vm2183_vm2, %v13703_v10  ;;  %10486 = vmatprep.mubr.msk.f32.mxu0 %vm2183_vm2, %v13583_v2 }
 0x288   :  { %10576 = vmatprep.mubr.msk.f32.mxu1 %vm2183_vm2, %v13707_v3 }
 0x28a   :  { %10487 = vmatmul.mubr.msk.f32.gmra.mrb[206].mxu0 %vm2183_vm2, %v13601_v17 }
 0x28b   :  { %10577 = vmatmul.mubr.msk.f32.gmra.mrb[14].mxu1 %vm2183_vm2, %v13715_v28  ;;  %10495 = vmatprep.mubr.msk.f32.mxu0 %vm2183_vm2, %v13501_v49  ;;  %v11215_v49 = vpack.c.bf16 %v9063_v58, %v9062_v5  ;;  %v14114_v58 = vld [vmem:[#allocation2 + $0x91] ss:$16 sps:$4 sm:$0xff]  }
 0x28c   :  { %10585 = vmatprep.mubr.msk.f32.mxu1 %vm2183_vm2, %v11953_v59  ;;  %v14057_v59 = vld [vmem:[#allocation2 + $0x98] ss:$16 sps:$4 sm:$0xff]  }
 0x28e   :  { %10496 = vmatmul.mubr.msk.f32.vlgmr.msra.gmra.mrb[192].mxu0 %vm2183_vm2, %v13521_v61  ;;  %v12070_v61 = vld [vmem:[#allocation2 + $0x9] ss:$16 sps:$4 sm:$0xff]  }
 0x28f   :  { %10586 = vmatmul.mubr.msk.f32.vlgmr.msra.gmra.mrb[0].mxu1 %vm2183_vm2, %v11954_v50  ;;  %10498 = vmatprep.mubr.msk.f32.mxu0 %vm2183_vm2, %v13530_v23  ;;  %v12071_v23 = vld [vmem:[#allocation2 + $0x29] ss:$16 sps:$4 sm:$0xff]  }
 0x290   :  { %10588 = vmatprep.mubr.msk.f32.mxu1 %vm2183_vm2, %v11955_v43  ;;  %11214 = vmatpush3.bf16.msra.mxu1 %v11211_v19  ;;  %v14041_v19 = vld [vmem:[#allocation2 + $0x90] ss:$16 sps:$4 sm:$0xff]   ;;  %v14065_v50 = vld [vmem:[#allocation2 + $0x158] ss:$16 sps:$4 sm:$0xff]  }
 0x291   :  { %10613 = vmatprep.subr.msk.mxu1 %vm2370_vm1, %v9044_v36  ;;  %v9164_v43 = vld [vmem:[%s15505_s3 + $0x130] sm:$0xf] }
 0x292   :  { %10499 = vmatmul.mubr.msk.f32.gmra.mrb[194].mxu0 %vm2183_vm2, %v13543_v16  ;;  %v13756_v16 = vld [vmem:[#allocation2 + $0x10] ss:$16 sps:$4 sm:$0xff]  }
 0x293   :  { %10589 = vmatmul.mubr.msk.f32.gmra.mrb[2].mxu1 %vm2183_vm2, %v11956_v14  ;;  %10501 = vmatprep.mubr.msk.f32.mxu0 %vm2183_vm2, %v12070_v61  ;;  %v9182_v14 = vld [vmem:[%s15505_s3 + $0x138] sm:$0xff]  ;;  %v14118_v61 = vld [vmem:[#allocation2 + $0x131] ss:$16 sps:$4 sm:$0xff]  }
 0x294   :  { %10591 = vmatprep.mubr.msk.f32.mxu1 %vm2183_vm2, %v13545_v27  ;;  %10614 = vmatpush3.msk.msra.mxu1 %vm2370_vm1, %v9044_v36  ;;  %v14106_v36 = vld [vmem:[#allocation2 + $0x71] ss:$16 sps:$4 sm:$0xff]  }
 0x295   :  { %11216 = vmatprep.subr.bf16.mxu1 %v11215_v49 }
 0x296   :  { %10502 = vmatmul.mubr.msk.f32.gmra.mrb[196].mxu0 %vm2183_vm2, %v12071_v23 }
 0x297   :  { %10592 = vmatmul.mubr.msk.f32.gmra.mrb[4].mxu1 %vm2183_vm2, %v13560_v35  ;;  %10504 = vmatprep.mubr.msk.f32.mxu0 %vm2183_vm2, %v13486_v62  ;;  %v13768_v62 = vld [vmem:[#allocation2 + $0xd0] ss:$16 sps:$4 sm:$0xff]  }
 0x298   :  { %10594 = vmatprep.mubr.msk.f32.mxu1 %vm2183_vm2, %v13583_v2 }
 0x29a   :  { %10505 = vmatmul.mubr.msk.f32.gmra.mrb[198].mxu0 %vm2183_vm2, %v13508_v37  ;;  %v13776_v37 = vld [vmem:[#allocation2 + $0xf0] ss:$16 sps:$4 sm:$0xff]  }
 0x29b   :  { %10595 = vmatmul.mubr.msk.f32.gmra.mrb[6].mxu1 %vm2183_vm2, %v13601_v17  ;;  %10507 = vmatprep.mubr.msk.f32.mxu0 %vm2183_vm2, %v13606_v30 }
 0x29c   :  { %10597 = vmatprep.mubr.msk.f32.mxu1 %vm2183_vm2, %v13756_v16 }
 0x29e   :  { %10508 = vmatmul.mubr.msk.f32.gmra.mrb[200].mxu0 %vm2183_vm2, %v13617_v21 }
 0x29f   :  { %10598 = vmatmul.mubr.msk.f32.gmra.mrb[8].mxu1 %vm2183_vm2, %v13764_v48  ;;  %10510 = vmatprep.mubr.msk.f32.mxu0 %vm2183_vm2, %v13623_v15 }
 0x2a0   :  { %10600 = vmatprep.mubr.msk.f32.mxu1 %vm2183_vm2, %v13768_v62 }
 0x2a2   :  { %10511 = vmatmul.mubr.msk.f32.gmra.mrb[202].mxu0 %vm2183_vm2, %v13635_v39 }
 0x2a3   :  { %10601 = vmatmul.mubr.msk.f32.gmra.mrb[10].mxu1 %vm2183_vm2, %v13776_v37  ;;  %10513 = vmatprep.mubr.msk.f32.mxu0 %vm2183_vm2, %v13551_v42 }
 0x2a4   :  { %10603 = vmatprep.mubr.msk.f32.mxu1 %vm2183_vm2, %v13780_v9 }
 0x2a6   :  { %10514 = vmatmul.mubr.msk.f32.gmra.mrb[204].mxu0 %vm2183_vm2, %v13567_v1 }
 0x2a7   :  { %10604 = vmatmul.mubr.msk.f32.gmra.mrb[12].mxu1 %vm2183_vm2, %v13788_v45  ;;  %10516 = vmatprep.mubr.msk.f32.mxu0 %vm2183_vm2, %v13586_v44 }
 0x2a8   :  { %10606 = vmatprep.mubr.msk.f32.mxu1 %vm2183_vm2, %v13792_v55 }
 0x2aa   :  { %10517 = vmatmul.mubr.msk.f32.gmra.mrb[206].mxu0 %vm2183_vm2, %v13604_v57 }
 0x2ab   :  { %10607 = vmatmul.mubr.msk.f32.gmra.mrb[14].mxu1 %vm2183_vm2, %v13800_v52 }
 0x2ac   :  { %10615 = vmatprep.mubr.msk.f32.mxu1 %vm2183_vm2, %v13545_v27  ;;  %v11219_v27 = vpack.c.bf16 %v9083_v20, %v9082_v53 }
 0x2af   :  { %10616 = vmatmul.mubr.msk.f32.vlgmr.msra.gmra.mrb[0].mxu1 %vm2183_vm2, %v13560_v35  ;;  %v13839_v35 = vld [vmem:[#allocation2 + $0x11] ss:$16 sps:$4 sm:$0xff]  }
 0x2b0   :  { %10618 = vmatprep.mubr.msk.f32.mxu1 %vm2183_vm2, %v13583_v2  ;;  %11218 = vmatpush3.bf16.msra.mxu1 %v11215_v49  ;;  %v13845_v2 = vld [vmem:[#allocation2 + $0x31] ss:$16 sps:$4 sm:$0xff]  }
 0x2b1   :  { %10643 = vmatprep.subr.msk.mxu1 %vm2370_vm1, %v9064_v7 }
 0x2b3   :  { %10619 = vmatmul.mubr.msk.f32.gmra.mrb[2].mxu1 %vm2183_vm2, %v13601_v17  ;;  %v9104_v17 = vld [vmem:[%s15505_s3 + $0xe8] sm:$0xf] }
 0x2b4   :  { %10621 = vmatprep.mubr.msk.f32.mxu1 %vm2183_vm2, %v13606_v30  ;;  %10644 = vmatpush3.msk.msra.mxu1 %vm2370_vm1, %v9064_v7 }
 0x2b5   :  { %11220 = vmatprep.subr.bf16.mxu1 %v11219_v27 }
 0x2b7   :  { %10622 = vmatmul.mubr.msk.f32.gmra.mrb[4].mxu1 %vm2183_vm2, %v13617_v21 }
 0x2b8   :  { %10624 = vmatprep.mubr.msk.f32.mxu1 %vm2183_vm2, %v13623_v15 }
 0x2bb   :  { %10625 = vmatmul.mubr.msk.f32.gmra.mrb[6].mxu1 %vm2183_vm2, %v13635_v39 }
 0x2bc   :  { %10627 = vmatprep.mubr.msk.f32.mxu1 %vm2183_vm2, %v13780_v9 }
 0x2bf   :  { %10628 = vmatmul.mubr.msk.f32.gmra.mrb[8].mxu1 %vm2183_vm2, %v13788_v45 }
 0x2c0   :  { %10630 = vmatprep.mubr.msk.f32.mxu1 %vm2183_vm2, %v13792_v55 }
 0x2c3   :  { %10631 = vmatmul.mubr.msk.f32.gmra.mrb[10].mxu1 %vm2183_vm2, %v13800_v52 }
 0x2c4   :  { %10633 = vmatprep.mubr.msk.f32.mxu1 %vm2183_vm2, %v13839_v35 }
 0x2c7   :  { %10634 = vmatmul.mubr.msk.f32.gmra.mrb[12].mxu1 %vm2183_vm2, %v13845_v2 }
 0x2c8   :  { %10636 = vmatprep.mubr.msk.f32.mxu1 %vm2183_vm2, %v13847_v40 }
 0x2cb   :  { %10637 = vmatmul.mubr.msk.f32.gmra.mrb[14].mxu1 %vm2183_vm2, %v13853_v25 }
 0x2cc   :  { %10645 = vmatprep.mubr.msk.f32.mxu1 %vm2183_vm2, %v13606_v30  ;;  %v9122_v30 = vld [vmem:[%s15505_s3 + $0xf0] sm:$0xff] }
 0x2cf   :  { %10646 = vmatmul.mubr.msk.f32.vlgmr.msra.gmra.mrb[0].mxu1 %vm2183_vm2, %v13617_v21  ;;  %v9123_v21 = vld [vmem:[%s15505_s3 + $0xf8] sm:$0xff] }
 0x2d0   :  { %10648 = vmatprep.mubr.msk.f32.mxu1 %vm2183_vm2, %v13623_v15  ;;  %11222 = vmatpush3.bf16.msra.mxu1 %v11219_v27  ;;  %v13955_v15 = vld [vmem:[#allocation2 + $0xf2] ss:$16 sps:$4 sm:$0xff]  }
 0x2d1   :  { %10673 = vmatprep.subr.msk.mxu1 %vm2370_vm1, %v9084_v4 }
 0x2d3   :  { %10649 = vmatmul.mubr.msk.f32.gmra.mrb[2].mxu1 %vm2183_vm2, %v13635_v39  ;;  %v9142_v39 = vld [vmem:[%s15505_s3 + $0x108] sm:$0xff] }
 0x2d4   :  { %10651 = vmatprep.mubr.msk.f32.mxu1 %vm2183_vm2, %v13551_v42  ;;  %10674 = vmatpush3.msk.msra.mxu1 %vm2370_vm1, %v9084_v4  ;;  %v14185_v4 = vld [vmem:[#allocation2 + $0x79] ss:$16 sps:$4 sm:$0xff]  }
 0x2d5   :  { %11224 = vmatprep.subr.bf16.mxu1 %v11223_v41 }
 0x2d7   :  { %10652 = vmatmul.mubr.msk.f32.gmra.mrb[4].mxu1 %vm2183_vm2, %v13567_v1 }
 0x2d8   :  { %10654 = vmatprep.mubr.msk.f32.mxu1 %vm2183_vm2, %v13586_v44 }
 0x2db   :  { %10655 = vmatmul.mubr.msk.f32.gmra.mrb[6].mxu1 %vm2183_vm2, %v13604_v57 }
 0x2dc   :  { %10657 = vmatprep.mubr.msk.f32.mxu1 %vm2183_vm2, %v13839_v35 }
 0x2df   :  { %10658 = vmatmul.mubr.msk.f32.gmra.mrb[8].mxu1 %vm2183_vm2, %v13845_v2 }
 0x2e0   :  { %10660 = vmatprep.mubr.msk.f32.mxu1 %vm2183_vm2, %v13847_v40 }
 0x2e3   :  { %10661 = vmatmul.mubr.msk.f32.gmra.mrb[10].mxu1 %vm2183_vm2, %v13853_v25 }
 0x2e4   :  { %10663 = vmatprep.mubr.msk.f32.mxu1 %vm2183_vm2, %v13890_v11 }
 0x2e7   :  { %10664 = vmatmul.mubr.msk.f32.gmra.mrb[12].mxu1 %vm2183_vm2, %v13896_v0 }
 0x2e8   :  { %10666 = vmatprep.mubr.msk.f32.mxu1 %vm2183_vm2, %v13898_v47 }
 0x2eb   :  { %10667 = vmatmul.mubr.msk.f32.gmra.mrb[14].mxu1 %vm2183_vm2, %v13904_v24 }
 0x2ec   :  { %10675 = vmatprep.mubr.msk.f32.mxu1 %vm2183_vm2, %v13551_v42  ;;  %v11227_v42 = vpack.c.bf16 %v9123_v21, %v9122_v30  ;;  %v9222_v30 = vld [vmem:[%s15505_s3 + $0x168] sm:$0xff]  ;;  %v9223_v21 = vld [vmem:[%s15505_s3 + $0x170] sm:$0xff] }
 0x2ef   :  { %10676 = vmatmul.mubr.msk.f32.vlgmr.msra.gmra.mrb[0].mxu1 %vm2183_vm2, %v13567_v1  ;;  %v13941_v1 = vld [vmem:[#allocation2 + $0x12] ss:$16 sps:$4 sm:$0xff]  }
 0x2f0   :  { %10678 = vmatprep.mubr.msk.f32.mxu1 %vm2183_vm2, %v13586_v44  ;;  %11226 = vmatpush3.bf16.msra.mxu1 %v11223_v41  ;;  %v13947_v44 = vld [vmem:[#allocation2 + $0x32] ss:$16 sps:$4 sm:$0xff]   ;;  %v14199_v41 = vld [vmem:[#allocation2 + $0x159] ss:$16 sps:$4 sm:$0xff]  }
 0x2f1   :  { %10703 = vmatprep.subr.msk.mxu1 %vm2370_vm1, %v9104_v17 }
 0x2f3   :  { %10679 = vmatmul.mubr.msk.f32.gmra.mrb[2].mxu1 %vm2183_vm2, %v13604_v57  ;;  %v13949_v57 = vld [vmem:[#allocation2 + $0xd2] ss:$16 sps:$4 sm:$0xff]  }
 0x2f4   :  { %10681 = vmatprep.mubr.msk.f32.mxu1 %vm2183_vm2, %v13611_v6  ;;  %10704 = vmatpush3.msk.msra.mxu1 %vm2370_vm1, %v9104_v17  ;;  %v9204_v17 = vld [vmem:[%s15505_s3 + $0x160] sm:$0xf] }
 0x2f5   :  { %11228 = vmatprep.subr.bf16.mxu1 %v11227_v42 }
 0x2f7   :  { %10682 = vmatmul.mubr.msk.f32.gmra.mrb[4].mxu1 %vm2183_vm2, %v13621_v63 }
 0x2f8   :  { %10684 = vmatprep.mubr.msk.f32.mxu1 %vm2183_vm2, %v13627_v18 }
 0x2fb   :  { %10685 = vmatmul.mubr.msk.f32.gmra.mrb[6].mxu1 %vm2183_vm2, %v13637_v51 }
 0x2fc   :  { %10687 = vmatprep.mubr.msk.f32.mxu1 %vm2183_vm2, %v13890_v11 }
 0x2ff   :  { %10688 = vmatmul.mubr.msk.f32.gmra.mrb[8].mxu1 %vm2183_vm2, %v13896_v0 }
 0x300   :  { %10690 = vmatprep.mubr.msk.f32.mxu1 %vm2183_vm2, %v13898_v47 }
 0x303   :  { %10691 = vmatmul.mubr.msk.f32.gmra.mrb[10].mxu1 %vm2183_vm2, %v13904_v24 }
 0x304   :  { %10693 = vmatprep.mubr.msk.f32.mxu1 %vm2183_vm2, %v13941_v1 }
 0x307   :  { %10694 = vmatmul.mubr.msk.f32.gmra.mrb[12].mxu1 %vm2183_vm2, %v13947_v44 }
 0x308   :  { %10696 = vmatprep.mubr.msk.f32.mxu1 %vm2183_vm2, %v13949_v57 }
 0x30b   :  { %10697 = vmatmul.mubr.msk.f32.gmra.mrb[14].mxu1 %vm2183_vm2, %v13955_v15 }
 0x30c   :  { %10705 = vmatprep.mubr.msk.f32.mxu1 %vm2183_vm2, %v13611_v6  ;;  %v11231_v6 = vpack.c.bf16 %v9143_v8, %v9142_v39  ;;  %v9242_v39 = vld [vmem:[%s15505_s3 + $0x180] sm:$0xff]  ;;  %v9243_v8 = vld [vmem:[%s15505_s3 + $0x188] sm:$0xff] }
 0x30f   :  { %10706 = vmatmul.mubr.msk.f32.vlgmr.msra.gmra.mrb[0].mxu1 %vm2183_vm2, %v13621_v63  ;;  %v13992_v63 = vld [vmem:[#allocation2 + $0x1a] ss:$16 sps:$4 sm:$0xff]  }
 0x310   :  { %10708 = vmatprep.mubr.msk.f32.mxu1 %vm2183_vm2, %v13627_v18  ;;  %11230 = vmatpush3.bf16.msra.mxu1 %v11227_v42  ;;  %v13998_v18 = vld [vmem:[#allocation2 + $0x3a] ss:$16 sps:$4 sm:$0xff]   ;;  %v14250_v42 = vld [vmem:[#allocation2 + $0x152] ss:$16 sps:$4 sm:$0xff]  }
 0x311   :  { %10733 = vmatprep.subr.msk.mxu1 %vm2370_vm1, %v9124_v31 }
 0x313   :  { %10709 = vmatmul.mubr.msk.f32.gmra.mrb[2].mxu1 %vm2183_vm2, %v13637_v51  ;;  %v14000_v51 = vld [vmem:[#allocation2 + $0xda] ss:$16 sps:$4 sm:$0xff]  }
 0x314   :  { %10711 = vmatprep.mubr.msk.f32.mxu1 %vm2183_vm2, %v13695_v29  ;;  %10734 = vmatpush3.msk.msra.mxu1 %vm2370_vm1, %v9124_v31  ;;  %v9183_v29 = vld [vmem:[%s15505_s3 + $0x140] sm:$0xff]  ;;  %v9224_v31 = vld [vmem:[%s15505_s3 + $0x178] sm:$0xf] }
 0x315   :  { %11232 = vmatprep.subr.bf16.mxu1 %v11231_v6 }
 0x317   :  { %10712 = vmatmul.mubr.msk.f32.gmra.mrb[4].mxu1 %vm2183_vm2, %v13703_v10  ;;  %v11239_v10 = vpack.c.bf16 %v9183_v29, %v9182_v14  ;;  %v9282_v14 = vld [vmem:[%s15505_s3 + $0x1b0] sm:$0xff]  ;;  %v9283_v29 = vld [vmem:[%s15505_s3 + $0x1b8] sm:$0xff] }
 0x318   :  { %10714 = vmatprep.mubr.msk.f32.mxu1 %vm2183_vm2, %v13707_v3 }
 0x31b   :  { %10715 = vmatmul.mubr.msk.f32.gmra.mrb[6].mxu1 %vm2183_vm2, %v13715_v28 }
 0x31c   :  { %10717 = vmatprep.mubr.msk.f32.mxu1 %vm2183_vm2, %v13941_v1 }
 0x31f   :  { %10718 = vmatmul.mubr.msk.f32.gmra.mrb[8].mxu1 %vm2183_vm2, %v13947_v44 }
 0x320   :  { %10720 = vmatprep.mubr.msk.f32.mxu1 %vm2183_vm2, %v13949_v57 }
 0x323   :  { %10721 = vmatmul.mubr.msk.f32.gmra.mrb[10].mxu1 %vm2183_vm2, %v13955_v15 }
 0x324   :  { %10723 = vmatprep.mubr.msk.f32.mxu1 %vm2183_vm2, %v13992_v63 }
 0x327   :  { %10724 = vmatmul.mubr.msk.f32.gmra.mrb[12].mxu1 %vm2183_vm2, %v13998_v18 }
 0x328   :  { %10726 = vmatprep.mubr.msk.f32.mxu1 %vm2183_vm2, %v14000_v51 }
 0x32b   :  { %10727 = vmatmul.mubr.msk.f32.gmra.mrb[14].mxu1 %vm2183_vm2, %v14006_v38 }
 0x32c   :  { %10735 = vmatprep.mubr.msk.f32.mxu1 %vm2183_vm2, %v13756_v16  ;;  %v14126_v16 = vld [vmem:[#allocation2 + $0x151] ss:$16 sps:$4 sm:$0xff]  }
 0x32f   :  { %10736 = vmatmul.mubr.msk.f32.vlgmr.msra.gmra.mrb[0].mxu1 %vm2183_vm2, %v13764_v48 }
 0x330   :  { %10738 = vmatprep.mubr.msk.f32.mxu1 %vm2183_vm2, %v13768_v62  ;;  %11234 = vmatpush3.bf16.msra.mxu1 %v11231_v6  ;;  %v14301_v6 = vld [vmem:[#allocation2 + $0x15a] ss:$16 sps:$4 sm:$0xff]  }
 0x331   :  { %10763 = vmatprep.subr.msk.mxu1 %vm2370_vm1, %v9144_v26 }
 0x333   :  { %10739 = vmatmul.mubr.msk.f32.gmra.mrb[2].mxu1 %vm2183_vm2, %v13776_v37 }
 0x334   :  { %10741 = vmatprep.mubr.msk.f32.mxu1 %vm2183_vm2, %v13780_v9  ;;  %10764 = vmatpush3.msk.msra.mxu1 %vm2370_vm1, %v9144_v26  ;;  %v14330_v26 = vld [vmem:[#allocation2 + $0x20] ss:$16 sps:$4 sm:$0xff]  }
 0x335   :  { %11236 = vmatprep.subr.bf16.mxu1 %v11235_v56 }
 0x337   :  { %10742 = vmatmul.mubr.msk.f32.gmra.mrb[4].mxu1 %vm2183_vm2, %v13788_v45 }
 0x338   :  { %10744 = vmatprep.mubr.msk.f32.mxu1 %vm2183_vm2, %v13792_v55 }
 0x33b   :  { %10745 = vmatmul.mubr.msk.f32.gmra.mrb[6].mxu1 %vm2183_vm2, %v13800_v52 }
 0x33c   :  { %10747 = vmatprep.mubr.msk.f32.mxu1 %vm2183_vm2, %v14035_v12 }
 0x33f   :  { %10748 = vmatmul.mubr.msk.f32.gmra.mrb[8].mxu1 %vm2183_vm2, %v14041_v19 }
 0x340   :  { %10750 = vmatprep.mubr.msk.f32.mxu1 %vm2183_vm2, %v14043_v32 }
 0x343   :  { %10751 = vmatmul.mubr.msk.f32.gmra.mrb[10].mxu1 %vm2183_vm2, %v14049_v54 }
 0x344   :  { %10753 = vmatprep.mubr.msk.f32.mxu1 %vm2183_vm2, %v14051_v60 }
 0x347   :  { %10754 = vmatmul.mubr.msk.f32.gmra.mrb[12].mxu1 %vm2183_vm2, %v14057_v59 }
 0x348   :  { %10756 = vmatprep.mubr.msk.f32.mxu1 %vm2183_vm2, %v14059_v13 }
 0x34b   :  { %10757 = vmatmul.mubr.msk.f32.gmra.mrb[14].mxu1 %vm2183_vm2, %v14065_v50 }
 0x34c   :  { %10765 = vmatprep.mubr.msk.f32.mxu1 %vm2183_vm2, %v13780_v9  ;;  %v9184_v9 = vld [vmem:[%s15505_s3 + $0x148] sm:$0xf] }
 0x34f   :  { %10766 = vmatmul.mubr.msk.f32.vlgmr.msra.gmra.mrb[0].mxu1 %vm2183_vm2, %v13788_v45  ;;  %v9202_v45 = vld [vmem:[%s15505_s3 + $0x150] sm:$0xff] }
 0x350   :  { %10768 = vmatprep.mubr.msk.f32.mxu1 %vm2183_vm2, %v13792_v55  ;;  %11238 = vmatpush3.bf16.msra.mxu1 %v11235_v56  ;;  %v9203_v55 = vld [vmem:[%s15505_s3 + $0x158] sm:$0xff]  ;;  %v14344_v56 = vld [vmem:[#allocation2 + $0x100] ss:$16 sps:$4 sm:$0xff]  }
 0x351   :  { %10793 = vmatprep.subr.msk.mxu1 %vm2370_vm1, %v9164_v43  ;;  %v11243_v7 = vpack.c.bf16 %v9203_v55, %v9202_v45  ;;  %v9302_v45 = vld [vmem:[%s15505_s3 + $0x1c8] sm:$0xff]  ;;  %v9303_v55 = vld [vmem:[%s15505_s3 + $0x1d0] sm:$0xff] }
 0x353   :  { %10769 = vmatmul.mubr.msk.f32.gmra.mrb[2].mxu1 %vm2183_vm2, %v13800_v52 }
 0x354   :  { %10771 = vmatprep.mubr.msk.f32.mxu1 %vm2183_vm2, %v13839_v35  ;;  %10794 = vmatpush3.msk.msra.mxu1 %vm2370_vm1, %v9164_v43  ;;  %v9264_v43 = vld [vmem:[%s15505_s3 + $0x1a8] sm:$0xf] }
 0x355   :  { %11240 = vmatprep.subr.bf16.mxu1 %v11239_v10 }
 0x357   :  { %10772 = vmatmul.mubr.msk.f32.gmra.mrb[4].mxu1 %vm2183_vm2, %v13845_v2 }
 0x358   :  { %10774 = vmatprep.mubr.msk.f32.mxu1 %vm2183_vm2, %v13847_v40 }
 0x35b   :  { %10775 = vmatmul.mubr.msk.f32.gmra.mrb[6].mxu1 %vm2183_vm2, %v13853_v25 }
 0x35c   :  { %10777 = vmatprep.mubr.msk.f32.mxu1 %vm2183_vm2, %v14051_v60 }
 0x35f   :  { %10778 = vmatmul.mubr.msk.f32.gmra.mrb[8].mxu1 %vm2183_vm2, %v14057_v59 }
 0x360   :  { %10780 = vmatprep.mubr.msk.f32.mxu1 %vm2183_vm2, %v14059_v13 }
 0x361   :  { %v14102_v3 = vpop.f32.mrb[192].mxu0 }
 0x362   :  { %v14104_v28 = vpop.f32.mrb[193].mxu0 }
 0x363   :  { %10781 = vmatmul.mubr.msk.f32.gmra.mrb[10].mxu1 %vm2183_vm2, %v14065_v50 }
 0x364   :  { %10783 = vmatprep.mubr.msk.f32.mxu1 %vm2183_vm2, %v14106_v36 }
 0x365   :  { %v14112_v5 = vpop.f32.mrb[194].mxu0 }
 0x366   :  { %v14116_v49 = vpop.f32.mrb[195].mxu0 }
 0x367   :  { %10784 = vmatmul.mubr.msk.f32.gmra.mrb[12].mxu1 %vm2183_vm2, %v14114_v58 }
 0x368   :  { %10786 = vmatprep.mubr.msk.f32.mxu1 %vm2183_vm2, %v14118_v61 }
 0x369   :  { %v14124_v23 = vpop.f32.mrb[196].mxu0 }
 0x36a   :  { %v14128_v48 = vpop.f32.mrb[197].mxu0 }
 0x36b   :  { %10787 = vmatmul.mubr.msk.f32.gmra.mrb[14].mxu1 %vm2183_vm2, %v14126_v16 }
 0x36c   :  { %10795 = vmatprep.mubr.msk.f32.mxu1 %vm2183_vm2, %v13839_v35 }
 0x36d   :  { %v14134_v62 = vpop.f32.mrb[198].mxu0 }
 0x36e   :  { %v14136_v37 = vpop.f32.mrb[199].mxu0 }
 0x36f   :  { %10796 = vmatmul.mubr.msk.f32.vlgmr.msra.gmra.mrb[0].mxu1 %vm2183_vm2, %v13845_v2 }
 0x370   :  { %10798 = vmatprep.mubr.msk.f32.mxu1 %vm2183_vm2, %v13847_v40  ;;  %11242 = vmatpush3.bf16.msra.mxu1 %v11239_v10  ;;  %v14411_v10 = vld [vmem:[#allocation2 + $0x101] ss:$16 sps:$4 sm:$0xff]  }
 0x371   :  { %v14151_v52 = vpop.f32.mrb[200].mxu0  ;;  %10823 = vmatprep.subr.msk.mxu1 %vm2370_vm1, %v9184_v9 }
 0x372   :  { %v14154_v53 = vpop.f32.mrb[201].mxu0 }
 0x373   :  { %10799 = vmatmul.mubr.msk.f32.gmra.mrb[2].mxu1 %vm2183_vm2, %v13853_v25 }
 0x374   :  { %10801 = vmatprep.mubr.msk.f32.mxu1 %vm2183_vm2, %v13890_v11  ;;  %10824 = vmatpush3.msk.msra.mxu1 %vm2370_vm1, %v9184_v9  ;;  %v9284_v9 = vld [vmem:[%s15505_s3 + $0x1c0] sm:$0xf] }
 0x375   :  { %v14161_v20 = vpop.f32.mrb[202].mxu0  ;;  %11244 = vmatprep.subr.bf16.mxu1 %v11243_v7 }
 0x376   :  { %v14163_v27 = vpop.f32.mrb[203].mxu0 }
 0x377   :  { %10802 = vmatmul.mubr.msk.f32.gmra.mrb[4].mxu1 %vm2183_vm2, %v13896_v0 }
 0x378   :  { %10804 = vmatprep.mubr.msk.f32.mxu1 %vm2183_vm2, %v13898_v47 }
 0x379   :  { %v14169_v35 = vpop.f32.mrb[204].mxu0 }
 0x37a   :  { %v14171_v2 = vpop.f32.mrb[205].mxu0 }
 0x37b   :  { %10805 = vmatmul.mubr.msk.f32.gmra.mrb[6].mxu1 %vm2183_vm2, %v13904_v24 }
 0x37c   :  { %10807 = vmatprep.mubr.msk.f32.mxu1 %vm2183_vm2, %v14106_v36 }
 0x37d   :  { %v14177_v40 = vpop.f32.mrb[206].mxu0 }
 0x37e   :  { %v14179_v25 = vpop.f32.mrb[207].mxu0 }
 0x37f   :  { %10808 = vmatmul.mubr.msk.f32.gmra.mrb[8].mxu1 %vm2183_vm2, %v14114_v58 }
 0x380   :  { %10810 = vmatprep.mubr.msk.f32.mxu1 %vm2183_vm2, %v14118_v61 }
 0x383   :  { %10811 = vmatmul.mubr.msk.f32.gmra.mrb[10].mxu1 %vm2183_vm2, %v14126_v16 }
 0x384   :  { %10813 = vmatprep.mubr.msk.f32.mxu1 %vm2183_vm2, %v14185_v4 }
 0x387   :  { %10814 = vmatmul.mubr.msk.f32.gmra.mrb[12].mxu1 %vm2183_vm2, %v14191_v46 }
 0x388   :  { %10816 = vmatprep.mubr.msk.f32.mxu1 %vm2183_vm2, %v14193_v33 }
 0x38b   :  { %10817 = vmatmul.mubr.msk.f32.gmra.mrb[14].mxu1 %vm2183_vm2, %v14199_v41 }
 0x38c   :  { %10825 = vmatprep.mubr.msk.f32.mxu1 %vm2183_vm2, %v13890_v11  ;;  %v11247_v11 = vpack.c.bf16 %v9223_v21, %v9222_v30  ;;  %v9322_v30 = vld [vmem:[%s15505_s3 + $0x1e0] sm:$0xff]  ;;  %v9323_v21 = vld [vmem:[%s15505_s3 + $0x1e8] sm:$0xff] }
 0x38f   :  { %10826 = vmatmul.mubr.msk.f32.vlgmr.msra.gmra.mrb[0].mxu1 %vm2183_vm2, %v13896_v0  ;;  %v14236_v0 = vld [vmem:[#allocation2 + $0x72] ss:$16 sps:$4 sm:$0xff]  }
 0x390   :  { %10828 = vmatprep.mubr.msk.f32.mxu1 %vm2183_vm2, %v13898_v47  ;;  %11246 = vmatpush3.bf16.msra.mxu1 %v11243_v7  ;;  %v14242_v47 = vld [vmem:[#allocation2 + $0x92] ss:$16 sps:$4 sm:$0xff]   ;;  %v14462_v7 = vld [vmem:[#allocation2 + $0x109] ss:$16 sps:$4 sm:$0xff]  }
 0x391   :  { %10853 = vmatprep.subr.msk.mxu1 %vm2370_vm1, %v9204_v17 }
 0x393   :  { %10829 = vmatmul.mubr.msk.f32.gmra.mrb[2].mxu1 %vm2183_vm2, %v13904_v24  ;;  %v14244_v24 = vld [vmem:[#allocation2 + $0x132] ss:$16 sps:$4 sm:$0xff]  }
 0x394   :  { %10831 = vmatprep.mubr.msk.f32.mxu1 %vm2183_vm2, %v13941_v1  ;;  %10854 = vmatpush3.msk.msra.mxu1 %vm2370_vm1, %v9204_v17  ;;  %v9304_v17 = vld [vmem:[%s15505_s3 + $0x1d8] sm:$0xf] }
 0x395   :  { %11248 = vmatprep.subr.bf16.mxu1 %v11247_v11 }
 0x397   :  { %10832 = vmatmul.mubr.msk.f32.gmra.mrb[4].mxu1 %vm2183_vm2, %v13947_v44 }
 0x398   :  { %10834 = vmatprep.mubr.msk.f32.mxu1 %vm2183_vm2, %v13949_v57 }
 0x39b   :  { %10835 = vmatmul.mubr.msk.f32.gmra.mrb[6].mxu1 %vm2183_vm2, %v13955_v15 }
 0x39c   :  { %10837 = vmatprep.mubr.msk.f32.mxu1 %vm2183_vm2, %v14185_v4 }
 0x39f   :  { %10838 = vmatmul.mubr.msk.f32.gmra.mrb[8].mxu1 %vm2183_vm2, %v14191_v46 }
 0x3a0   :  { %10840 = vmatprep.mubr.msk.f32.mxu1 %vm2183_vm2, %v14193_v33 }
 0x3a3   :  { %10841 = vmatmul.mubr.msk.f32.gmra.mrb[10].mxu1 %vm2183_vm2, %v14199_v41 }
 0x3a4   :  { %10843 = vmatprep.mubr.msk.f32.mxu1 %vm2183_vm2, %v14236_v0 }
 0x3a7   :  { %10844 = vmatmul.mubr.msk.f32.gmra.mrb[12].mxu1 %vm2183_vm2, %v14242_v47 }
 0x3a8   :  { %10846 = vmatprep.mubr.msk.f32.mxu1 %vm2183_vm2, %v14244_v24 }
 0x3ab   :  { %10847 = vmatmul.mubr.msk.f32.gmra.mrb[14].mxu1 %vm2183_vm2, %v14250_v42 }
 0x3ac   :  { %10855 = vmatprep.mubr.msk.f32.mxu1 %vm2183_vm2, %v13941_v1  ;;  %v11251_v1 = vpack.c.bf16 %v9243_v8, %v9242_v39  ;;  %v9342_v39 = vld [vmem:[%s15505_s3 + $0x1f8] sm:$0xff]  ;;  %v9343_v8 = vld [vmem:[%s15505_s3 + $0x200] sm:$0xff] }
 0x3af   :  { %10856 = vmatmul.mubr.msk.f32.vlgmr.msra.gmra.mrb[0].mxu1 %vm2183_vm2, %v13947_v44  ;;  %v14287_v44 = vld [vmem:[#allocation2 + $0x7a] ss:$16 sps:$4 sm:$0xff]  }
 0x3b0   :  { %10858 = vmatprep.mubr.msk.f32.mxu1 %vm2183_vm2, %v13949_v57  ;;  %11250 = vmatpush3.bf16.msra.mxu1 %v11247_v11  ;;  %v14293_v57 = vld [vmem:[#allocation2 + $0x9a] ss:$16 sps:$4 sm:$0xff]   ;;  %v14513_v11 = vld [vmem:[#allocation2 + $0x102] ss:$16 sps:$4 sm:$0xff]  }
 0x3b1   :  { %10883 = vmatprep.subr.msk.mxu1 %vm2370_vm1, %v9224_v31 }
 0x3b3   :  { %10859 = vmatmul.mubr.msk.f32.gmra.mrb[2].mxu1 %vm2183_vm2, %v13955_v15  ;;  %v14295_v15 = vld [vmem:[#allocation2 + $0x13a] ss:$16 sps:$4 sm:$0xff]  }
 0x3b4   :  { %10861 = vmatprep.mubr.msk.f32.mxu1 %vm2183_vm2, %v13992_v63  ;;  %10884 = vmatpush3.msk.msra.mxu1 %vm2370_vm1, %v9224_v31  ;;  %v9244_v63 = vld [vmem:[%s15505_s3 + $0x190] sm:$0xf] }
 0x3b5   :  { %11252 = vmatprep.subr.bf16.mxu1 %v11251_v1  ;;  %v9324_v31 = vld [vmem:[%s15505_s3 + $0x1f0] sm:$0xf] }
 0x3b7   :  { %10862 = vmatmul.mubr.msk.f32.gmra.mrb[4].mxu1 %vm2183_vm2, %v13998_v18  ;;  %v9262_v18 = vld [vmem:[%s15505_s3 + $0x198] sm:$0xff] }
 0x3b8   :  { %10864 = vmatprep.mubr.msk.f32.mxu1 %vm2183_vm2, %v14000_v51  ;;  %v9263_v51 = vld [vmem:[%s15505_s3 + $0x1a0] sm:$0xff] }
 0x3bb   :  { %10865 = vmatmul.mubr.msk.f32.gmra.mrb[6].mxu1 %vm2183_vm2, %v14006_v38  ;;  %v11255_v38 = vpack.c.bf16 %v9263_v51, %v9262_v18  ;;  %v12034_v18 = vld [vmem:[#allocation2 + $0xa0] ss:$16 sps:$4 sm:$0xff]  }
 0x3bc   :  { %10867 = vmatprep.mubr.msk.f32.mxu1 %vm2183_vm2, %v14236_v0  ;;  %v12035_v51 = vld [vmem:[#allocation2 + $0x140] ss:$16 sps:$4 sm:$0xff]  }
 0x3bf   :  { %10868 = vmatmul.mubr.msk.f32.gmra.mrb[8].mxu1 %vm2183_vm2, %v14242_v47 }
 0x3c0   :  { %10870 = vmatprep.mubr.msk.f32.mxu1 %vm2183_vm2, %v14244_v24 }
 0x3c3   :  { %10871 = vmatmul.mubr.msk.f32.gmra.mrb[10].mxu1 %vm2183_vm2, %v14250_v42 }
 0x3c4   :  { %10873 = vmatprep.mubr.msk.f32.mxu1 %vm2183_vm2, %v14287_v44 }
 0x3c7   :  { %10874 = vmatmul.mubr.msk.f32.gmra.mrb[12].mxu1 %vm2183_vm2, %v14293_v57 }
 0x3c8   :  { %10876 = vmatprep.mubr.msk.f32.mxu1 %vm2183_vm2, %v14295_v15 }
 0x3cb   :  { %10877 = vmatmul.mubr.msk.f32.gmra.mrb[14].mxu1 %vm2183_vm2, %v14301_v6 }
 0x3cc   :  { %10885 = vmatprep.mubr.msk.f32.mxu1 %vm2183_vm2, %v14035_v12  ;;  %v14346_v12 = vld [vmem:[#allocation2 + $0x28] ss:$16 sps:$4 sm:$0xff]  }
 0x3cf   :  { %10886 = vmatmul.mubr.msk.f32.vlgmr.msra.gmra.mrb[0].mxu1 %vm2183_vm2, %v14041_v19  ;;  %v14352_v19 = vld [vmem:[#allocation2 + $0x48] ss:$16 sps:$4 sm:$0xff]  }
 0x3d0   :  { %10888 = vmatprep.mubr.msk.f32.mxu1 %vm2183_vm2, %v14043_v32  ;;  %11254 = vmatpush3.bf16.msra.mxu1 %v11251_v1  ;;  %v14354_v32 = vld [vmem:[#allocation2 + $0xe8] ss:$16 sps:$4 sm:$0xff]  }
 0x3d1   :  { %10913 = vmatprep.subr.msk.mxu1 %vm2370_vm1, %v9244_v63  ;;  %v14564_v1 = vld [vmem:[#allocation2 + $0x10a] ss:$16 sps:$4 sm:$0xff]  }
 0x3d3   :  { %10889 = vmatmul.mubr.msk.f32.gmra.mrb[2].mxu1 %vm2183_vm2, %v14049_v54  ;;  %v14360_v54 = vld [vmem:[#allocation2 + $0x108] ss:$16 sps:$4 sm:$0xff]  }
 0x3d4   :  { %10891 = vmatprep.mubr.msk.f32.mxu1 %vm2183_vm2, %v14051_v60  ;;  %10914 = vmatpush3.msk.msra.mxu1 %vm2370_vm1, %v9244_v63  ;;  %v12033_v63 = vld [vmem:[#allocation2 + $0x80] ss:$16 sps:$4 sm:$0xff]  }
 0x3d5   :  { %11256 = vmatprep.subr.bf16.mxu1 %v11255_v38 }
 0x3d7   :  { %10892 = vmatmul.mubr.msk.f32.gmra.mrb[4].mxu1 %vm2183_vm2, %v14057_v59 }
 0x3d8   :  { %10894 = vmatprep.mubr.msk.f32.mxu1 %vm2183_vm2, %v14059_v13 }
 0x3db   :  { %10895 = vmatmul.mubr.msk.f32.gmra.mrb[6].mxu1 %vm2183_vm2, %v14065_v50 }
 0x3dc   :  { %10897 = vmatprep.mubr.msk.f32.mxu1 %vm2183_vm2, %v14330_v26 }
 0x3df   :  { %10898 = vmatmul.mubr.msk.f32.gmra.mrb[8].mxu1 %vm2183_vm2, %v14336_v34 }
 0x3e0   :  { %10900 = vmatprep.mubr.msk.f32.mxu1 %vm2183_vm2, %v14338_v22 }
 0x3e3   :  { %10901 = vmatmul.mubr.msk.f32.gmra.mrb[10].mxu1 %vm2183_vm2, %v14344_v56 }
 0x3e4   :  { %10903 = vmatprep.mubr.msk.f32.mxu1 %vm2183_vm2, %v14346_v12 }
 0x3e7   :  { %10904 = vmatmul.mubr.msk.f32.gmra.mrb[12].mxu1 %vm2183_vm2, %v14352_v19 }
 0x3e8   :  { %10906 = vmatprep.mubr.msk.f32.mxu1 %vm2183_vm2, %v14354_v32 }
 0x3eb   :  { %10907 = vmatmul.mubr.msk.f32.gmra.mrb[14].mxu1 %vm2183_vm2, %v14360_v54 }
 0x3ec   :  { %10915 = vmatprep.mubr.msk.f32.mxu1 %vm2183_vm2, %v14051_v60  ;;  %v11259_v60 = vpack.c.bf16 %v9283_v29, %v9282_v14  ;;  %v9382_v14 = vld [vmem:[%s15505_s3 + $0x228] sm:$0xff]  ;;  %v9383_v29 = vld [vmem:[%s15505_s3 + $0x230] sm:$0xff] }
 0x3ef   :  { %10916 = vmatmul.mubr.msk.f32.vlgmr.msra.gmra.mrb[0].mxu1 %vm2183_vm2, %v14057_v59  ;;  %v14397_v59 = vld [vmem:[#allocation2 + $0x21] ss:$16 sps:$4 sm:$0xff]  }
 0x3f0   :  { %10918 = vmatprep.mubr.msk.f32.mxu1 %vm2183_vm2, %v14059_v13  ;;  %11258 = vmatpush3.bf16.msra.mxu1 %v11255_v38  ;;  %v14403_v13 = vld [vmem:[#allocation2 + $0x41] ss:$16 sps:$4 sm:$0xff]  }
 0x3f1   :  { %10943 = vmatprep.subr.msk.mxu1 %vm2370_vm1, %v9264_v43  ;;  %v12036_v38 = vld [vmem:[#allocation2 + $0x160] ss:$16 sps:$4 sm:$0xff]  }
 0x3f3   :  { %10919 = vmatmul.mubr.msk.f32.gmra.mrb[2].mxu1 %vm2183_vm2, %v14065_v50  ;;  %v14405_v50 = vld [vmem:[#allocation2 + $0xe1] ss:$16 sps:$4 sm:$0xff]  }
 0x3f4   :  { %10921 = vmatprep.mubr.msk.f32.mxu1 %vm2183_vm2, %v14106_v36  ;;  %10944 = vmatpush3.msk.msra.mxu1 %vm2370_vm1, %v9264_v43  ;;  %v9364_v43 = vld [vmem:[%s15505_s3 + $0x220] sm:$0xf] }
 0x3f5   :  { %11260 = vmatprep.subr.bf16.mxu1 %v11259_v60 }
 0x3f7   :  { %10922 = vmatmul.mubr.msk.f32.gmra.mrb[4].mxu1 %vm2183_vm2, %v14114_v58 }
 0x3f8   :  { %10924 = vmatprep.mubr.msk.f32.mxu1 %vm2183_vm2, %v14118_v61 }
 0x3fb   :  { %10925 = vmatmul.mubr.msk.f32.gmra.mrb[6].mxu1 %vm2183_vm2, %v14126_v16 }
 0x3fc   :  { %10927 = vmatprep.mubr.msk.f32.mxu1 %vm2183_vm2, %v14346_v12 }
 0x3ff   :  { %10928 = vmatmul.mubr.msk.f32.gmra.mrb[8].mxu1 %vm2183_vm2, %v14352_v19 }
 0x400   :  { %10930 = vmatprep.mubr.msk.f32.mxu1 %vm2183_vm2, %v14354_v32 }
 0x403   :  { %10931 = vmatmul.mubr.msk.f32.gmra.mrb[10].mxu1 %vm2183_vm2, %v14360_v54 }
 0x404   :  { %10933 = vmatprep.mubr.msk.f32.mxu1 %vm2183_vm2, %v14397_v59 }
 0x407   :  { %10934 = vmatmul.mubr.msk.f32.gmra.mrb[12].mxu1 %vm2183_vm2, %v14403_v13 }
 0x408   :  { %10936 = vmatprep.mubr.msk.f32.mxu1 %vm2183_vm2, %v14405_v50 }
 0x40b   :  { %10937 = vmatmul.mubr.msk.f32.gmra.mrb[14].mxu1 %vm2183_vm2, %v14411_v10 }
 0x40c   :  { %10945 = vmatprep.mubr.msk.f32.mxu1 %vm2183_vm2, %v14106_v36  ;;  %v11263_v36 = vpack.c.bf16 %v9303_v55, %v9302_v45  ;;  %v9402_v45 = vld [vmem:[%s15505_s3 + $0x240] sm:$0xff]  ;;  %v9403_v55 = vld [vmem:[%s15505_s3 + $0x248] sm:$0xff] }
 0x40f   :  { %10946 = vmatmul.mubr.msk.f32.vlgmr.msra.gmra.mrb[0].mxu1 %vm2183_vm2, %v14114_v58  ;;  %v14448_v58 = vld [vmem:[#allocation2 + $0x29] ss:$16 sps:$4 sm:$0xff]  }
 0x410   :  { %10948 = vmatprep.mubr.msk.f32.mxu1 %vm2183_vm2, %v14118_v61  ;;  %11262 = vmatpush3.bf16.msra.mxu1 %v11259_v60  ;;  %v14454_v61 = vld [vmem:[#allocation2 + $0x49] ss:$16 sps:$4 sm:$0xff]   ;;  %v12044_v60 = vld [vmem:[#allocation2 + $0x161] ss:$16 sps:$4 sm:$0xff]  }
 0x411   :  { %10973 = vmatprep.subr.msk.mxu1 %vm2370_vm1, %v9284_v9 }
 0x413   :  { %10949 = vmatmul.mubr.msk.f32.gmra.mrb[2].mxu1 %vm2183_vm2, %v14126_v16  ;;  %v14456_v16 = vld [vmem:[#allocation2 + $0xe9] ss:$16 sps:$4 sm:$0xff]  }
 0x414   :  { %10951 = vmatprep.mubr.msk.f32.mxu1 %vm2183_vm2, %v14185_v4  ;;  %10974 = vmatpush3.msk.msra.mxu1 %vm2370_vm1, %v9284_v9  ;;  %v9384_v9 = vld [vmem:[%s15505_s3 + $0x238] sm:$0xf] }
 0x415   :  { %11264 = vmatprep.subr.bf16.mxu1 %v11263_v36 }
 0x417   :  { %10952 = vmatmul.mubr.msk.f32.gmra.mrb[4].mxu1 %vm2183_vm2, %v14191_v46 }
 0x418   :  { %10954 = vmatprep.mubr.msk.f32.mxu1 %vm2183_vm2, %v14193_v33 }
 0x41b   :  { %10955 = vmatmul.mubr.msk.f32.gmra.mrb[6].mxu1 %vm2183_vm2, %v14199_v41 }
 0x41c   :  { %10957 = vmatprep.mubr.msk.f32.mxu1 %vm2183_vm2, %v14397_v59 }
 0x41f   :  { %10958 = vmatmul.mubr.msk.f32.gmra.mrb[8].mxu1 %vm2183_vm2, %v14403_v13 }
 0x420   :  { %10960 = vmatprep.mubr.msk.f32.mxu1 %vm2183_vm2, %v14405_v50 }
 0x423   :  { %10961 = vmatmul.mubr.msk.f32.gmra.mrb[10].mxu1 %vm2183_vm2, %v14411_v10 }
 0x424   :  { %10963 = vmatprep.mubr.msk.f32.mxu1 %vm2183_vm2, %v14448_v58 }
 0x427   :  { %10964 = vmatmul.mubr.msk.f32.gmra.mrb[12].mxu1 %vm2183_vm2, %v14454_v61 }
 0x428   :  { %10966 = vmatprep.mubr.msk.f32.mxu1 %vm2183_vm2, %v14456_v16 }
 0x42b   :  { %10967 = vmatmul.mubr.msk.f32.gmra.mrb[14].mxu1 %vm2183_vm2, %v14462_v7 }
 0x42c   :  { %10975 = vmatprep.mubr.msk.f32.mxu1 %vm2183_vm2, %v14185_v4  ;;  %v11267_v4 = vpack.c.bf16 %v9323_v21, %v9322_v30  ;;  %v12053_v30 = vld [vmem:[#allocation2 + $0x8a] ss:$16 sps:$4 sm:$0xff]  }
 0x42d   :  { %v12054_v21 = vld [vmem:[#allocation2 + $0xaa] ss:$16 sps:$4 sm:$0xff]  }
 0x42f   :  { %10976 = vmatmul.mubr.msk.f32.vlgmr.msra.gmra.mrb[0].mxu1 %vm2183_vm2, %v14191_v46  ;;  %v14499_v46 = vld [vmem:[#allocation2 + $0x22] ss:$16 sps:$4 sm:$0xff]  }
 0x430   :  { %10978 = vmatprep.mubr.msk.f32.mxu1 %vm2183_vm2, %v14193_v33  ;;  %11266 = vmatpush3.bf16.msra.mxu1 %v11263_v36  ;;  %v14505_v33 = vld [vmem:[#allocation2 + $0x42] ss:$16 sps:$4 sm:$0xff]   ;;  %v12048_v36 = vld [vmem:[#allocation2 + $0x169] ss:$16 sps:$4 sm:$0xff]  }
 0x431   :  { %11003 = vmatprep.subr.msk.mxu1 %vm2370_vm1, %v9304_v17 }
 0x433   :  { %10979 = vmatmul.mubr.msk.f32.gmra.mrb[2].mxu1 %vm2183_vm2, %v14199_v41  ;;  %v14507_v41 = vld [vmem:[#allocation2 + $0xe2] ss:$16 sps:$4 sm:$0xff]  }
 0x434   :  { %10981 = vmatprep.mubr.msk.f32.mxu1 %vm2183_vm2, %v14236_v0  ;;  %11004 = vmatpush3.msk.msra.mxu1 %vm2370_vm1, %v9304_v17  ;;  %v9404_v17 = vld [vmem:[%s15505_s3 + $0x250] sm:$0xf] }
 0x435   :  { %11268 = vmatprep.subr.bf16.mxu1 %v11267_v4 }
 0x437   :  { %10982 = vmatmul.mubr.msk.f32.gmra.mrb[4].mxu1 %vm2183_vm2, %v14242_v47 }
 0x438   :  { %10984 = vmatprep.mubr.msk.f32.mxu1 %vm2183_vm2, %v14244_v24 }
 0x43b   :  { %10985 = vmatmul.mubr.msk.f32.gmra.mrb[6].mxu1 %vm2183_vm2, %v14250_v42 }
 0x43c   :  { %10987 = vmatprep.mubr.msk.f32.mxu1 %vm2183_vm2, %v14448_v58 }
 0x43f   :  { %10988 = vmatmul.mubr.msk.f32.gmra.mrb[8].mxu1 %vm2183_vm2, %v14454_v61 }
 0x440   :  { %10990 = vmatprep.mubr.msk.f32.mxu1 %vm2183_vm2, %v14456_v16 }
 0x443   :  { %10991 = vmatmul.mubr.msk.f32.gmra.mrb[10].mxu1 %vm2183_vm2, %v14462_v7 }
 0x444   :  { %10993 = vmatprep.mubr.msk.f32.mxu1 %vm2183_vm2, %v14499_v46 }
 0x447   :  { %10994 = vmatmul.mubr.msk.f32.gmra.mrb[12].mxu1 %vm2183_vm2, %v14505_v33 }
 0x448   :  { %10996 = vmatprep.mubr.msk.f32.mxu1 %vm2183_vm2, %v14507_v41 }
 0x44b   :  { %10997 = vmatmul.mubr.msk.f32.gmra.mrb[14].mxu1 %vm2183_vm2, %v14513_v11 }
 0x44c   :  { %11005 = vmatprep.mubr.msk.f32.mxu1 %vm2183_vm2, %v14236_v0  ;;  %v11271_v0 = vpack.c.bf16 %v9343_v8, %v9342_v39  ;;  %v7977_v39 = vld [vmem:[%s15508_s6 + $0x10] sm:$0xff]  ;;  %v7980_v8 = vld [vmem:[%s15508_s6 + $0x28] sm:$0xff] }
 0x44f   :  { %11006 = vmatmul.mubr.msk.f32.vlgmr.msra.gmra.mrb[0].mxu1 %vm2183_vm2, %v14242_v47  ;;  %v14550_v47 = vld [vmem:[#allocation2 + $0x2a] ss:$16 sps:$4 sm:$0xff]  }
 0x450   :  { %11008 = vmatprep.mubr.msk.f32.mxu1 %vm2183_vm2, %v14244_v24  ;;  %11270 = vmatpush3.bf16.msra.mxu1 %v11267_v4  ;;  %v14556_v24 = vld [vmem:[#allocation2 + $0x4a] ss:$16 sps:$4 sm:$0xff]  }
 0x451   :  { %11033 = vmatprep.subr.msk.mxu1 %vm2370_vm1, %v9324_v31  ;;  %v12055_v4 = vld [vmem:[#allocation2 + $0x14a] ss:$16 sps:$4 sm:$0xff]  }
 0x453   :  { %11009 = vmatmul.mubr.msk.f32.gmra.mrb[2].mxu1 %vm2183_vm2, %v14250_v42  ;;  %v14558_v42 = vld [vmem:[#allocation2 + $0xea] ss:$16 sps:$4 sm:$0xff]  }
 0x454   :  { %11011 = vmatprep.mubr.msk.f32.mxu1 %vm2183_vm2, %v14287_v44  ;;  %11034 = vmatpush3.msk.msra.mxu1 %vm2370_vm1, %v9324_v31  ;;  %v9344_v44 = vld [vmem:[%s15505_s3 + $0x208] sm:$0xf] }
 0x455   :  { %11272 = vmatprep.subr.bf16.mxu1 %v11271_v0 }
 0x457   :  { %11012 = vmatmul.mubr.msk.f32.gmra.mrb[4].mxu1 %vm2183_vm2, %v14293_v57  ;;  %v9362_v57 = vld [vmem:[%s15505_s3 + $0x210] sm:$0xff] }
 0x458   :  { %11014 = vmatprep.mubr.msk.f32.mxu1 %vm2183_vm2, %v14295_v15  ;;  %v9363_v15 = vld [vmem:[%s15505_s3 + $0x218] sm:$0xff]  ;;  %s12102_s3 = smov 80  }
 0x45b   :  { %11015 = vmatmul.mubr.msk.f32.gmra.mrb[6].mxu1 %vm2183_vm2, %v14301_v6  ;;  %v11275_v6 = vpack.c.bf16 %v9363_v15, %v9362_v57  ;;  %v7986_v57 = vld [vmem:[%s15508_s6 + $0x58] sm:$0xff] }
 0x45c   :  { %11017 = vmatprep.mubr.msk.f32.mxu1 %vm2183_vm2, %v14499_v46 }
 0x45f   :  { %11018 = vmatmul.mubr.msk.f32.gmra.mrb[8].mxu1 %vm2183_vm2, %v14505_v33 }
 0x460   :  { %11020 = vmatprep.mubr.msk.f32.mxu1 %vm2183_vm2, %v14507_v41 }
 0x463   :  { %11021 = vmatmul.mubr.msk.f32.gmra.mrb[10].mxu1 %vm2183_vm2, %v14513_v11 }
 0x464   :  { %11023 = vmatprep.mubr.msk.f32.mxu1 %vm2183_vm2, %v14550_v47 }
 0x467   :  { %11024 = vmatmul.mubr.msk.f32.gmra.mrb[12].mxu1 %vm2183_vm2, %v14556_v24 }
 0x468   :  { %11026 = vmatprep.mubr.msk.f32.mxu1 %vm2183_vm2, %v14558_v42 }
 0x46b   :  { %11027 = vmatmul.mubr.msk.f32.gmra.mrb[14].mxu1 %vm2183_vm2, %v14564_v1 }
 0x46c   :  { %11035 = vmatprep.mubr.msk.f32.mxu1 %vm2183_vm2, %v14330_v26  ;;  %v12037_v26 = vld [vmem:[#allocation2 + $0x88] ss:$16 sps:$4 sm:$0xff]  }
 0x46f   :  { %11036 = vmatmul.mubr.msk.f32.vlgmr.msra.gmra.mrb[0].mxu1 %vm2183_vm2, %v14336_v34  ;;  %v12038_v34 = vld [vmem:[#allocation2 + $0xa8] ss:$16 sps:$4 sm:$0xff]  }
 0x470   :  { %11038 = vmatprep.mubr.msk.f32.mxu1 %vm2183_vm2, %v14338_v22  ;;  %11274 = vmatpush3.bf16.msra.mxu1 %v11271_v0  ;;  %v12039_v22 = vld [vmem:[#allocation2 + $0x148] ss:$16 sps:$4 sm:$0xff]  }
 0x471   :  { %11063 = vmatprep.subr.msk.mxu1 %vm2370_vm1, %v9344_v44  ;;  %v7982_v0 = vld [vmem:[%s15508_s6 + $0x38] sm:$0xff] }
 0x473   :  { %11039 = vmatmul.mubr.msk.f32.gmra.mrb[2].mxu1 %vm2183_vm2, %v14344_v56  ;;  %v12040_v56 = vld [vmem:[#allocation2 + $0x168] ss:$16 sps:$4 sm:$0xff]  }
 0x474   :  { %11041 = vmatprep.mubr.msk.f32.mxu1 %vm2183_vm2, %v14346_v12  ;;  %11064 = vmatpush3.msk.msra.mxu1 %vm2370_vm1, %v9344_v44  ;;  %v7984_v44 = vld [vmem:[%s15508_s6 + $0x48] sm:$0xff] }
 0x475   :  { %11276 = vmatprep.subr.bf16.mxu1 %v11275_v6 }
 0x477   :  { %11042 = vmatmul.mubr.msk.f32.gmra.mrb[4].mxu1 %vm2183_vm2, %v14352_v19 }
 0x478   :  { %11044 = vmatprep.mubr.msk.f32.mxu1 %vm2183_vm2, %v14354_v32 }
 0x47b   :  { %11045 = vmatmul.mubr.msk.f32.gmra.mrb[6].mxu1 %vm2183_vm2, %v14360_v54 }
 0x47c   :  { %11047 = vmatprep.mubr.msk.f32.mxu1 %vm2183_vm2, %v12033_v63  ;;  %v7983_v63 = vld [vmem:[%s15508_s6 + $0x40] sm:$0xff] }
 0x47f   :  { %11048 = vmatmul.mubr.msk.f32.gmra.mrb[8].mxu1 %vm2183_vm2, %v12034_v18  ;;  %v7985_v18 = vld [vmem:[%s15508_s6 + $0x50] sm:$0xff] }
 0x480   :  { %11050 = vmatprep.mubr.msk.f32.mxu1 %vm2183_vm2, %v12035_v51  ;;  %v7988_v51 = vld [vmem:[%s15508_s6 + $0x68] sm:$0xff] }
 0x483   :  { %11051 = vmatmul.mubr.msk.f32.gmra.mrb[10].mxu1 %vm2183_vm2, %v12036_v38  ;;  %v7990_v38 = vld [vmem:[%s15508_s6 + $0x78] sm:$0xff] }
 0x484   :  { %11053 = vmatprep.mubr.msk.f32.mxu1 %vm2183_vm2, %v12037_v26 }
 0x487   :  { %11054 = vmatmul.mubr.msk.f32.gmra.mrb[12].mxu1 %vm2183_vm2, %v12038_v34 }
 0x488   :  { %11056 = vmatprep.mubr.msk.f32.mxu1 %vm2183_vm2, %v12039_v22 }
 0x48b   :  { %11057 = vmatmul.mubr.msk.f32.gmra.mrb[14].mxu1 %vm2183_vm2, %v12040_v56 }
 0x48c   :  { %11065 = vmatprep.mubr.msk.f32.mxu1 %vm2183_vm2, %v14346_v12  ;;  %v11279_v12 = vpack.c.bf16 %v9383_v29, %v9382_v14  ;;  %v7994_v14 = vld [vmem:[%s15508_s6 + $0x98] sm:$0xff] }
 0x48f   :  { %11066 = vmatmul.mubr.msk.f32.vlgmr.msra.gmra.mrb[0].mxu1 %vm2183_vm2, %v14352_v19  ;;  %v12041_v19 = vld [vmem:[#allocation2 + $0x81] ss:$16 sps:$4 sm:$0xff]  }
 0x490   :  { %11068 = vmatprep.mubr.msk.f32.mxu1 %vm2183_vm2, %v14354_v32  ;;  %11278 = vmatpush3.bf16.msra.mxu1 %v11275_v6  ;;  %v12042_v32 = vld [vmem:[#allocation2 + $0xa1] ss:$16 sps:$4 sm:$0xff]   ;;  %v11295_v6 = vpack.c.bf16 %v7986_v57, %v7984_v44 }
 0x491   :  { %11093 = vmatprep.subr.msk.mxu1 %vm2370_vm1, %v9364_v43 }
 0x493   :  { %11069 = vmatmul.mubr.msk.f32.gmra.mrb[2].mxu1 %vm2183_vm2, %v14360_v54  ;;  %v12043_v54 = vld [vmem:[#allocation2 + $0x141] ss:$16 sps:$4 sm:$0xff]  }
 0x494   :  { %11071 = vmatprep.mubr.msk.f32.mxu1 %vm2183_vm2, %v14397_v59  ;;  %11094 = vmatpush3.msk.msra.mxu1 %vm2370_vm1, %v9364_v43  ;;  %v7992_v43 = vld [vmem:[%s15508_s6 + $0x88] sm:$0xff] }
 0x495   :  { %11280 = vmatprep.subr.bf16.mxu1 %v11279_v12 }
 0x497   :  { %11072 = vmatmul.mubr.msk.f32.gmra.mrb[4].mxu1 %vm2183_vm2, %v14403_v13 }
 0x498   :  { %11074 = vmatprep.mubr.msk.f32.mxu1 %vm2183_vm2, %v14405_v50 }
 0x49b   :  { %11075 = vmatmul.mubr.msk.f32.gmra.mrb[6].mxu1 %vm2183_vm2, %v14411_v10 }
 0x49c   :  { %11077 = vmatprep.mubr.msk.f32.mxu1 %vm2183_vm2, %v12037_v26  ;;  %v11297_v26 = vpack.c.bf16 %v7985_v18, %v7983_v63 }
 0x49f   :  { %11078 = vmatmul.mubr.msk.f32.gmra.mrb[8].mxu1 %vm2183_vm2, %v12038_v34  ;;  %v11299_v34 = vpack.c.bf16 %v7990_v38, %v7988_v51 }
 0x4a0   :  { %11080 = vmatprep.mubr.msk.f32.mxu1 %vm2183_vm2, %v12039_v22  ;;  %v7987_v22 = vld [vmem:[%s15508_s6 + $0x60] sm:$0xff] }
 0x4a3   :  { %11081 = vmatmul.mubr.msk.f32.gmra.mrb[10].mxu1 %vm2183_vm2, %v12040_v56  ;;  %v7989_v56 = vld [vmem:[%s15508_s6 + $0x70] sm:$0xff] }
 0x4a4   :  { %11083 = vmatprep.mubr.msk.f32.mxu1 %vm2183_vm2, %v12041_v19  ;;  %v11301_v29 = vpack.c.bf16 %v7989_v56, %v7987_v22 }
 0x4a7   :  { %11084 = vmatmul.mubr.msk.f32.gmra.mrb[12].mxu1 %vm2183_vm2, %v12042_v32 }
 0x4a8   :  { %11086 = vmatprep.mubr.msk.f32.mxu1 %vm2183_vm2, %v12043_v54 }
 0x4ab   :  { %11087 = vmatmul.mubr.msk.f32.gmra.mrb[14].mxu1 %vm2183_vm2, %v12044_v60 }
 0x4ac   :  { %11095 = vmatprep.mubr.msk.f32.mxu1 %vm2183_vm2, %v14397_v59  ;;  %v11283_v59 = vpack.c.bf16 %v9403_v55, %v9402_v45  ;;  %v7995_v55 = vld [vmem:[%s15508_s6 + $0xa0] sm:$0xff] }
 0x4af   :  { %11096 = vmatmul.mubr.msk.f32.vlgmr.msra.gmra.mrb[0].mxu1 %vm2183_vm2, %v14403_v13  ;;  %v12045_v13 = vld [vmem:[#allocation2 + $0x89] ss:$16 sps:$4 sm:$0xff]  }
 0x4b0   :  { %11098 = vmatprep.mubr.msk.f32.mxu1 %vm2183_vm2, %v14405_v50  ;;  %11282 = vmatpush3.bf16.msra.mxu1 %v11279_v12  ;;  %v12046_v50 = vld [vmem:[#allocation2 + $0xa9] ss:$16 sps:$4 sm:$0xff]   ;;  %v11303_v12 = vpack.c.bf16 %v7994_v14, %v7992_v43 }
 0x4b1   :  { %11123 = vmatprep.subr.msk.mxu1 %vm2370_vm1, %v9384_v9 }
 0x4b3   :  { %11099 = vmatmul.mubr.msk.f32.gmra.mrb[2].mxu1 %vm2183_vm2, %v14411_v10  ;;  %v12047_v10 = vld [vmem:[#allocation2 + $0x149] ss:$16 sps:$4 sm:$0xff]  }
 0x4b4   :  { %11101 = vmatprep.mubr.msk.f32.mxu1 %vm2183_vm2, %v14448_v58  ;;  %11124 = vmatpush3.msk.msra.mxu1 %vm2370_vm1, %v9384_v9 }
 0x4b5   :  { %11284 = vmatprep.subr.bf16.mxu1 %v11283_v59 }
 0x4b7   :  { %11102 = vmatmul.mubr.msk.f32.gmra.mrb[4].mxu1 %vm2183_vm2, %v14454_v61 }
 0x4b8   :  { %11104 = vmatprep.mubr.msk.f32.mxu1 %vm2183_vm2, %v14456_v16 }
 0x4bb   :  { %11105 = vmatmul.mubr.msk.f32.gmra.mrb[6].mxu1 %vm2183_vm2, %v14462_v7 }
 0x4bc   :  { %11107 = vmatprep.mubr.msk.f32.mxu1 %vm2183_vm2, %v12041_v19  ;;  %v7991_v19 = vld [vmem:[%s15508_s6 + $0x80] sm:$0xff] }
 0x4bf   :  { %11108 = vmatmul.mubr.msk.f32.gmra.mrb[8].mxu1 %vm2183_vm2, %v12042_v32  ;;  %v7993_v32 = vld [vmem:[%s15508_s6 + $0x90] sm:$0xff] }
 0x4c0   :  { %11110 = vmatprep.mubr.msk.f32.mxu1 %vm2183_vm2, %v12043_v54  ;;  %v7996_v54 = vld [vmem:[%s15508_s6 + $0xa8] sm:$0xff]  ;;  %v11305_v9 = vpack.c.bf16 %v7993_v32, %v7991_v19 }
 0x4c3   :  { %11111 = vmatmul.mubr.msk.f32.gmra.mrb[10].mxu1 %vm2183_vm2, %v12044_v60  ;;  %v7998_v60 = vld [vmem:[%s15508_s6 + $0xb8] sm:$0xff] }
 0x4c4   :  { %11113 = vmatprep.mubr.msk.f32.mxu1 %vm2183_vm2, %v12045_v13  ;;  %v11307_v45 = vpack.c.bf16 %v7998_v60, %v7996_v54 }
 0x4c7   :  { %11114 = vmatmul.mubr.msk.f32.gmra.mrb[12].mxu1 %vm2183_vm2, %v12046_v50 }
 0x4c8   :  { %11116 = vmatprep.mubr.msk.f32.mxu1 %vm2183_vm2, %v12047_v10 }
 0x4cb   :  { %11117 = vmatmul.mubr.msk.f32.gmra.mrb[14].mxu1 %vm2183_vm2, %v12048_v36 }
 0x4cc   :  { %11125 = vmatprep.mubr.msk.f32.mxu1 %vm2183_vm2, %v14448_v58  ;;  %v12049_v58 = vld [vmem:[#allocation2 + $0x82] ss:$16 sps:$4 sm:$0xff]  }
 0x4cf   :  { %11126 = vmatmul.mubr.msk.f32.vlgmr.msra.gmra.mrb[0].mxu1 %vm2183_vm2, %v14454_v61  ;;  %v12050_v61 = vld [vmem:[#allocation2 + $0xa2] ss:$16 sps:$4 sm:$0xff]  }
 0x4d0   :  { %11128 = vmatprep.mubr.msk.f32.mxu1 %vm2183_vm2, %v14456_v16  ;;  %11286 = vmatpush3.bf16.msra.mxu1 %v11283_v59  ;;  %v12051_v16 = vld [vmem:[#allocation2 + $0x142] ss:$16 sps:$4 sm:$0xff]  }
 0x4d1   :  { %11153 = vmatprep.subr.msk.mxu1 %vm2370_vm1, %v9404_v17  ;;  %v7997_v59 = vld [vmem:[%s15508_s6 + $0xb0] sm:$0xff] }
 0x4d3   :  { %11129 = vmatmul.mubr.msk.f32.gmra.mrb[2].mxu1 %vm2183_vm2, %v14462_v7  ;;  %v12052_v7 = vld [vmem:[#allocation2 + $0x162] ss:$16 sps:$4 sm:$0xff]  }
 0x4d4   :  { %11131 = vmatprep.mubr.msk.f32.mxu1 %vm2183_vm2, %v14499_v46  ;;  %11154 = vmatpush3.msk.msra.mxu1 %vm2370_vm1, %v9404_v17 }
 0x4d7   :  { %11132 = vmatmul.mubr.msk.f32.gmra.mrb[4].mxu1 %vm2183_vm2, %v14505_v33 }
 0x4d8   :  { %11134 = vmatprep.mubr.msk.f32.mxu1 %vm2183_vm2, %v14507_v41 }
 0x4db   :  { %11135 = vmatmul.mubr.msk.f32.gmra.mrb[6].mxu1 %vm2183_vm2, %v14513_v11 }
 0x4dc   :  { %11137 = vmatprep.mubr.msk.f32.mxu1 %vm2183_vm2, %v12045_v13  ;;  %v11309_v13 = vpack.c.bf16 %v7997_v59, %v7995_v55 }
 0x4df   :  { %11138 = vmatmul.mubr.msk.f32.gmra.mrb[8].mxu1 %vm2183_vm2, %v12046_v50 }
 0x4e0   :  { %11140 = vmatprep.mubr.msk.f32.mxu1 %vm2183_vm2, %v12047_v10 }
 0x4e3   :  { %11141 = vmatmul.mubr.msk.f32.gmra.mrb[10].mxu1 %vm2183_vm2, %v12048_v36 }
 0x4e4   :  { %11143 = vmatprep.mubr.msk.f32.mxu1 %vm2183_vm2, %v12049_v58 }
 0x4e7   :  { %11144 = vmatmul.mubr.msk.f32.gmra.mrb[12].mxu1 %vm2183_vm2, %v12050_v61 }
 0x4e8   :  { %11146 = vmatprep.mubr.msk.f32.mxu1 %vm2183_vm2, %v12051_v16 }
 0x4eb   :  { %11147 = vmatmul.mubr.msk.f32.gmra.mrb[14].mxu1 %vm2183_vm2, %v12052_v7 }
 0x4ec   :  { %11155 = vmatprep.mubr.msk.f32.mxu1 %vm2183_vm2, %v14499_v46  ;;  %v12056_v46 = vld [vmem:[#allocation2 + $0x16a] ss:$16 sps:$4 sm:$0xff]  }
 0x4ef   :  { %11156 = vmatmul.mubr.msk.f32.vlgmr.msra.gmra.mrb[0].mxu1 %vm2183_vm2, %v14505_v33  ;;  %v7976_v33 = vld [vmem:[%s15508_s6 + $0x8] sm:$0xff] }
 0x4f0   :  { %11158 = vmatprep.mubr.msk.f32.mxu1 %vm2183_vm2, %v14507_v41  ;;  %v7978_v41 = vld [vmem:[%s15508_s6 + $0x18] sm:$0xff] }
 0x4f1   :  { %v11287_v31 = vpack.c.bf16 %v7978_v41, %v7976_v33 }
 0x4f3   :  { %11159 = vmatmul.mubr.msk.f32.gmra.mrb[2].mxu1 %vm2183_vm2, %v14513_v11  ;;  %v7975_v11 = vld [vmem:[%s15508_s6] sm:$0xff]  ;;  %11288 = vmatprep.subr.bf16.mxu0 %v11287_v31 }
 0x4f4   :  { %11161 = vmatprep.mubr.msk.f32.mxu1 %vm2183_vm2, %v14550_v47  ;;  %v11289_v47 = vpack.c.bf16 %v7977_v39, %v7975_v11 }
 0x4f6   :  { %11290 = vmatpush1.bf16.msra.mxu0 %v11289_v47 }
 0x4f7   :  { %11162 = vmatmul.mubr.msk.f32.gmra.mrb[4].mxu1 %vm2183_vm2, %v14556_v24  ;;  %v11291_v24 = vpack.c.bf16 %v7982_v0, %v7980_v8 }
 0x4f8   :  { %11164 = vmatprep.mubr.msk.f32.mxu1 %vm2183_vm2, %v14558_v42  ;;  %v7979_v42 = vld [vmem:[%s15508_s6 + $0x20] sm:$0xff] }
 0x4f9   :  { %11292 = vmatprep.subr.bf16.mxu0 %v11291_v24 }
 0x4fb   :  { %11165 = vmatmul.mubr.msk.f32.gmra.mrb[6].mxu1 %vm2183_vm2, %v14564_v1  ;;  %v7981_v1 = vld [vmem:[%s15508_s6 + $0x30] sm:$0xff] }
 0x4fc   :  { %11167 = vmatprep.mubr.msk.f32.mxu1 %vm2183_vm2, %v12049_v58  ;;  %v11293_v15 = vpack.c.bf16 %v7981_v1, %v7979_v42 }
 0x4fe   :  { %11294 = vmatpush1.bf16.msra.mxu0 %v11293_v15 }
 0x4ff   :  { %11168 = vmatmul.mubr.msk.f32.gmra.mrb[8].mxu1 %vm2183_vm2, %v12050_v61  ;;  %11296 = vmatprep.subr.bf16.mxu0 %v11295_v6 }
 0x500   :  { %11170 = vmatprep.mubr.msk.f32.mxu1 %vm2183_vm2, %v12051_v16 }
 0x502   :  { %11298 = vmatpush1.bf16.msra.mxu0 %v11297_v26 }
 0x503   :  { %11171 = vmatmul.mubr.msk.f32.gmra.mrb[10].mxu1 %vm2183_vm2, %v12052_v7  ;;  %11300 = vmatprep.subr.bf16.mxu0 %v11299_v34  ;;  %v9422_v7 = vld [vmem:[%s15506_s4] ss:$0 sm:$0xff]  ;;  %s12100_s4 = smov 40  }
 0x504   :  { %11173 = vmatprep.mubr.msk.f32.mxu1 %vm2183_vm2, %v12053_v30 }
 0x506   :  { %11302 = vmatpush1.bf16.msra.mxu0 %v11301_v29 }
 0x507   :  { %11174 = vmatmul.mubr.msk.f32.gmra.mrb[12].mxu1 %vm2183_vm2, %v12054_v21  ;;  %11304 = vmatprep.subr.bf16.mxu0 %v11303_v12 }
 0x508   :  { %11176 = vmatprep.mubr.msk.f32.mxu1 %vm2183_vm2, %v12055_v4 }
 0x50a   :  { %11306 = vmatpush1.bf16.msra.mxu0 %v11305_v9 }
 0x50b   :  { %11177 = vmatmul.mubr.msk.f32.gmra.mrb[14].mxu1 %vm2183_vm2, %v12056_v46  ;;  %11308 = vmatprep.subr.bf16.mxu0 %v11307_v45 }
 0x50e   :  { %11310 = vmatpush1.bf16.msra.mxu0 %v11309_v13 }
 0x5c2   :  { %v11157_v50 = vpop.f32.mrb[0].mxu1 }
 0x5c3   :  { %v11505_v10 = vadd.f32 %v11157_v50, %v14102_v3  ;;  %v7324_v36 = vpop.f32.mrb[1].mxu1 }
 0x5c4   :  { %v11506_v17 = vadd.f32 %v7324_v36, %v14104_v28 }
 0x5c5   :  { %v7427_v4 = vadd.f32 %v11505_v10, %v9422_v7 }
 0x5c6   :  { %v11160_v58 = vpop.f32.mrb[2].mxu1  ;;  %v7426_v41 = vadd.f32 %v11506_v17, %v9422_v7 }
 0x5c7   :  { %v11507_v61 = vadd.f32 %v11160_v58, %v14112_v5  ;;  %v7334_v16 = vpop.f32.mrb[3].mxu1  ;;  %v7443_v39 = vmax.f32 %v7427_v4, 0.0 }
 0x5c8   :  { %v11508_v30 = vadd.f32 %v7334_v16, %v14116_v49  ;;  %v7442_v24 = vmax.f32 %v7426_v41, 0.0 }
 0x5c9   :  { %v7429_v5 = vadd.f32 %v11507_v61, %v9422_v7 }
 0x5ca   :  { %v11163_v21 = vpop.f32.mrb[4].mxu1  ;;  %v7428_v42 = vadd.f32 %v11508_v30, %v9422_v7 }
 0x5cb   :  { %v11509_v46 = vadd.f32 %v11163_v21, %v14124_v23  ;;  %v7344_v33 = vpop.f32.mrb[5].mxu1 }
 0x5cc   :  { %v11510_v3 = vadd.f32 %v7344_v33, %v14128_v48  ;;  %v7445_v48 = vmax.f32 %v7429_v5, 0.0  ;;  %v7444_v38 = vmax.f32 %v7428_v42, 0.0  ;;  %v8004_v5 = vld [vmem:[%s15508_s6 + $0xe8] sm:$0xff]  ;;  %v8003_v42 = vld [vmem:[%s15508_s6 + $0xe0] sm:$0xff] }
 0x5cd   :  { %v7431_v11 = vadd.f32 %v11509_v46, %v9422_v7 }
 0x5ce   :  { %v7430_v28 = vadd.f32 %v11510_v3, %v9422_v7  ;;  %v11166_v31 = vpop.f32.mrb[6].mxu1 }
 0x5cf   :  { %v7447_v8 = vmax.f32 %v7431_v11, 0.0  ;;  %v11511_v0 = vadd.f32 %v11166_v31, %v14134_v62  ;;  %v7354_v47 = vpop.f32.mrb[7].mxu1  ;;  %v7999_v11 = vld [vmem:[%s15508_s6 + $0xc0] sm:$0xff]  ;;  %v8001_v31 = vld [vmem:[%s15508_s6 + $0xd0] sm:$0xff] }
 0x5d0   :  { %v7446_v49 = vmax.f32 %v7430_v28, 0.0  ;;  %v11512_v1 = vadd.f32 %v7354_v47, %v14136_v37 }
 0x5d1   :  { %v7459_v44 = vmax.f32 %v7443_v39, %v7447_v8  ;;  %v7433_v23 = vadd.f32 %v11511_v0, %v9422_v7  ;;  %v11313_v39 = vpack.c.bf16 %v8001_v31, %v7999_v11  ;;  %v8006_v8 = vld [vmem:[%s15508_s6 + $0xf8] sm:$0xff] }
 0x5d2   :  { %v7458_v57 = vmax.f32 %v7442_v24, %v7446_v49  ;;  %v7432_v15 = vadd.f32 %v11512_v1, %v9422_v7  ;;  %v11169_v6 = vpop.f32.mrb[8].mxu1  ;;  %v11315_v24 = vpack.c.bf16 %v8006_v8, %v8004_v5  ;;  %v8005_v49 = vld [vmem:[%s15508_s6 + $0xf0] sm:$0xff] }
 0x5d3   :  { %v7449_v63 = vmax.f32 %v7433_v23, 0.0  ;;  %v11513_v18 = vadd.f32 %v11169_v6, %v14151_v52  ;;  %v7364_v51 = vpop.f32.mrb[9].mxu1 }
 0x5d4   :  { %v7448_v26 = vmax.f32 %v7432_v15, 0.0  ;;  %v11514_v62 = vadd.f32 %v7364_v51, %v14154_v53 }
 0x5d5   :  { %v7461_v34 = vmax.f32 %v7445_v48, %v7449_v63  ;;  %v7435_v12 = vadd.f32 %v11513_v18, %v9422_v7 }
 0x5d6   :  { %v7460_v22 = vmax.f32 %v7444_v38, %v7448_v26  ;;  %v11172_v56 = vpop.f32.mrb[10].mxu1  ;;  %v7434_v54 = vadd.f32 %v11514_v62, %v9422_v7 }
 0x5d7   :  { %v11515_v43 = vadd.f32 %v11172_v56, %v14161_v20  ;;  %v7374_v37 = vpop.f32.mrb[11].mxu1  ;;  %v7451_v53 = vmax.f32 %v7435_v12, 0.0 }
 0x5d8   :  { %v11516_v14 = vadd.f32 %v7374_v37, %v14163_v27  ;;  %v7450_v50 = vmax.f32 %v7434_v54, 0.0 }
 0x5d9   :  { %v7437_v55 = vadd.f32 %v11515_v43, %v9422_v7 }
 0x5da   :  { %v11175_v29 = vpop.f32.mrb[12].mxu1  ;;  %v7436_v10 = vadd.f32 %v11516_v14, %v9422_v7  ;;  %v8008_v14 = vld [vmem:[%s15508_s6 + $0x108] sm:$0xff] }
 0x5db   :  { %v11517_v19 = vadd.f32 %v11175_v29, %v14169_v35  ;;  %v7384_v32 = vpop.f32.mrb[13].mxu1  ;;  %v7453_v16 = vmax.f32 %v7437_v55, 0.0 }
 0x5dc   :  { %v11518_v52 = vadd.f32 %v7384_v32, %v14171_v2  ;;  %v7452_v21 = vmax.f32 %v7436_v10, 0.0 }
 0x5dd   :  { %v7439_v60 = vadd.f32 %v11517_v19, %v9422_v7 }
 0x5de   :  { %v7438_v9 = vadd.f32 %v11518_v52, %v9422_v7  ;;  %v11178_v45 = vpop.f32.mrb[14].mxu1  ;;  %v8010_v52 = vld [vmem:[%s15508_s6 + $0x118] sm:$0xff] }
 0x5df   :  { %v7455_v59 = vmax.f32 %v7439_v60, 0.0  ;;  %v11519_v13 = vadd.f32 %v11178_v45, %v14177_v40  ;;  %v7394_v20 = vpop.f32.mrb[15].mxu1  ;;  %v8007_v60 = vld [vmem:[%s15508_s6 + $0x100] sm:$0xff] }
 0x5e0   :  { %v7454_v27 = vmax.f32 %v7438_v9, 0.0  ;;  %v11520_v36 = vadd.f32 %v7394_v20, %v14179_v25  ;;  %v8000_v25 = vld [vmem:[%s15508_s6 + $0xc8] sm:$0xff] }
 0x5e1   :  { %v7463_v17 = vmax.f32 %v7451_v53, %v7455_v59  ;;  %v7441_v35 = vadd.f32 %v11519_v13, %v9422_v7  ;;  %v8009_v13 = vld [vmem:[%s15508_s6 + $0x110] sm:$0xff] }
 0x5e2   :  { %v7462_v58 = vmax.f32 %v7450_v50, %v7454_v27  ;;  %v7440_v61 = vadd.f32 %v11520_v36, %v9422_v7  ;;  %v8002_v7 = vld [vmem:[%s15508_s6 + $0xd8] sm:$0xff]  ;;  %v11319_v27 = vpack.c.bf16 %v8010_v52, %v8008_v14  ;;  %v8012_v36 = vld [vmem:[%s15508_s6 + $0x128] sm:$0xff] }
 0x5e3   :  { %v7467_v2 = vmax.f32 %v7459_v44, %v7463_v17  ;;  %v7457_v30 = vmax.f32 %v7441_v35, 0.0  ;;  %v11311_v28 = vpack.c.bf16 %v8002_v7, %v8000_v25  ;;  %v8011_v25 = vld [vmem:[%s15508_s6 + $0x120] sm:$0xff] }
 0x5e4   :  { %v7466_v4 = vmax.f32 %v7458_v57, %v7462_v58  ;;  %v7456_v46 = vmax.f32 %v7440_v61, 0.0  ;;  %v11317_v57 = vpack.c.bf16 %v8005_v49, %v8003_v42  ;;  %v11321_v61 = vpack.c.bf16 %v8009_v13, %v8007_v60 }
 0x5e5   :  { %7471 = vst.msk [vmem:[#allocation3 + $0x8] sm:$0xff] %vm2183_vm2, %v7467_v2  ;;  %v7465_v33 = vmax.f32 %v7453_v16, %v7457_v30  ;;  %11312 = vmatprep.subr.bf16.mxu0 %v11311_v28  ;;  %v8014_v16 = vld [vmem:[%s15508_s6 + $0x138] sm:$0xff] }
 0x5e6   :  { %7470 = vst.msk [vmem:[#allocation3] sm:$0xff] %vm2183_vm2, %v7466_v4  ;;  %v7464_v40 = vmax.f32 %v7452_v21, %v7456_v46  ;;  %11314 = vmatpush1.bf16.msra.mxu0 %v11313_v39  ;;  %v8013_v39 = vld [vmem:[%s15508_s6 + $0x130] sm:$0xff] }
 0x5e7   :  { %v7469_v41 = vmax.f32 %v7461_v34, %v7465_v33  ;;  %11316 = vmatprep.subr.bf16.mxu0 %v11315_v24 }
 0x5e8   :  { %v7468_v3 = vmax.f32 %v7460_v22, %v7464_v40 }
 0x5e9   :  { %7473 = vst.msk [vmem:[#allocation3 + $0x18] sm:$0xff] %vm2183_vm2, %v7469_v41 }
 0x5ea   :  { %7472 = vst.msk [vmem:[#allocation3 + $0x10] sm:$0xff] %vm2183_vm2, %v7468_v3  ;;  %11318 = vmatpush1.bf16.msra.mxu0 %v11317_v57  ;;  %v11323_v3 = vpack.c.bf16 %v8014_v16, %v8012_v36  ;;  %vm7721_vm2 = vcmask 255072  }
 0x5eb   :  { %11320 = vmatprep.subr.bf16.mxu0 %v11319_v27 }
 0x5ec   :  { %v9441_v0 = vld.sshfl [vmem:[#allocation3 + $0x9] sm:$0x1 pattern:$0x76325410] }
 0x5ed   :  { %v9439_v44 = vld.sshfl [vmem:[#allocation3 + $0x8] sm:$0x1 pattern:$0x76325410] }
 0x5ee   :  { %v9429_v6 = vld.sshfl [vmem:[#allocation3 + $0x3] sm:$0x1 pattern:$0x76325410]  ;;  %11322 = vmatpush1.bf16.msra.mxu0 %v11321_v61 }
 0x5ef   :  { %v9425_v62 = vld.sshfl [vmem:[#allocation3 + $0x1] sm:$0x1 pattern:$0x76325410]  ;;  %11324 = vmatprep.subr.bf16.mxu0 %v11323_v3 }
 0x5f0   :  { %v9442_v47 = vld.sshfl [vmem:[#allocation3 + $0x19] sm:$0x1 pattern:$0x76325410] }
 0x5f1   :  { %v7773_v1 = vrot.slane %v9442_v47, 7  ;;  %v9440_v23 = vld.sshfl [vmem:[#allocation3 + $0x18] sm:$0x1 pattern:$0x76325410]  ;;  %v8016_v47 = vld [vmem:[%s15508_s6 + $0x148] sm:$0xff] }
 0x5f2   :  { %v7743_v15 = vrot.slane %v9440_v23, 7  ;;  %v9430_v48 = vld.sshfl [vmem:[#allocation3 + $0x13] sm:$0x1 pattern:$0x76325410]  ;;  %v8018_v23 = vld [vmem:[%s15508_s6 + $0x158] sm:$0xff] }
 0x5f3   :  { %v7774_v63 = vsel %vm7497_vm3, %v7773_v1, %v9441_v0  ;;  %v7588_v18 = vrot.slane %v9430_v48, 7  ;;  %v9426_v51 = vld.sshfl [vmem:[#allocation3 + $0x11] sm:$0x1 pattern:$0x76325410]  ;;  %v11325_v0 = vpack.c.bf16 %v8013_v39, %v8011_v25  ;;  %v11327_v48 = vpack.c.bf16 %v8018_v23, %v8016_v47 }
 0x5f4   :  { %v7775_v38 = vsel %vm7499_vm4, %v7773_v1, %v7774_v63  ;;  %v7744_v26 = vsel %vm7497_vm3, %v7743_v15, %v9439_v44  ;;  %v7528_v34 = vrot.slane %v9426_v51, 7  ;;  %v9436_v37 = vld.sshfl [vmem:[#allocation3 + $0x16] sm:$0x1 pattern:$0x76325410]  ;;  %v8015_v63 = vld [vmem:[%s15508_s6 + $0x140] sm:$0xff] }
 0x5f5   :  { %v7776_v22 = vsel %vm7501_vm5, %v7773_v1, %v7775_v38  ;;  %v7745_v56 = vsel %vm7499_vm4, %v7743_v15, %v7744_v26  ;;  %v7589_v43 = vsel %vm7497_vm3, %v7588_v18, %v9429_v6  ;;  %v9435_v54 = vld.sshfl [vmem:[#allocation3 + $0x6] sm:$0x1 pattern:$0x76325410]  ;;  %v7678_v55 = vrot.slane %v9436_v37, 7  ;;  %11326 = vmatpush1.bf16.msra.mxu0 %v11325_v0 }
 0x5f6   :  { %v7777_v29 = vsel %vm7503_vm6, %v7773_v1, %v7776_v22  ;;  %v7746_v12 = vsel %vm7501_vm5, %v7743_v15, %v7745_v56  ;;  %v7590_v19 = vsel %vm7499_vm4, %v7588_v18, %v7589_v43  ;;  %v7529_v32 = vsel %vm7497_vm3, %v7528_v34, %v9425_v62  ;;  %v9428_v59 = vld.sshfl [vmem:[#allocation3 + $0x12] sm:$0x1 pattern:$0x76325410]  ;;  %11328 = vmatprep.subr.bf16.mxu0 %v11327_v48  ;;  %v8027_v48 = vld [vmem:[%s15508_s6 + $0x1a0] sm:$0xff] }
 0x5f7   :  { %7778 = vrot.lane.b32.xlu0 %v7777_v29, %s12096_s0  ;;  %v7747_v9 = vsel %vm7503_vm6, %v7743_v15, %v7746_v12  ;;  %v7591_v45 = vsel %vm7501_vm5, %v7588_v18, %v7590_v19  ;;  %v7530_v53 = vsel %vm7499_vm4, %v7528_v34, %v7529_v32  ;;  %v9427_v50 = vld.sshfl [vmem:[#allocation3 + $0x2] sm:$0x1 pattern:$0x76325410]  ;;  %v7558_v10 = vrot.slane %v9428_v59, 7  ;;  %v8020_v12 = vld [vmem:[%s15508_s6 + $0x168] sm:$0xff] }
 0x5f8   :  { %7748 = vrot.lane.b32.xlu1 %v7747_v9, %s12097_s16  ;;  %v7531_v20 = vsel %vm7501_vm5, %v7528_v34, %v7530_v53  ;;  %v7592_v17 = vsel %vm7503_vm6, %v7588_v18, %v7591_v45  ;;  %v7679_v35 = vsel %vm7497_vm3, %v7678_v55, %v9435_v54  ;;  %v9434_v58 = vld.sshfl [vmem:[#allocation3 + $0x15] sm:$0x1 pattern:$0x76325410]  ;;  %s12101_s16 = smov 120   ;;  %s12106_s0 = smov 12  }
 0x5f9   :  { %v7532_v2 = vsel %vm7503_vm6, %v7528_v34, %v7531_v20  ;;  %v7680_v30 = vsel %vm7499_vm4, %v7678_v55, %v7679_v35  ;;  %v7559_v21 = vsel %vm7497_vm3, %v7558_v10, %v9427_v50  ;;  %v9433_v4 = vld.sshfl [vmem:[#allocation3 + $0x5] sm:$0x1 pattern:$0x76325410]  ;;  %v7648_v46 = vrot.slane %v9434_v58, 7  ;;  %v8017_v18 = vld [vmem:[%s15508_s6 + $0x150] sm:$0xff] }
 0x5fa   :  { %v7681_v33 = vsel %vm7501_vm5, %v7678_v55, %v7680_v30  ;;  %v7560_v40 = vsel %vm7499_vm4, %v7558_v10, %v7559_v21  ;;  %v9432_v41 = vld.sshfl [vmem:[#allocation3 + $0x14] sm:$0x1 pattern:$0x76325410]  ;;  %v11329_v34 = vpack.c.bf16 %v8017_v18, %v8015_v63  ;;  %v8019_v50 = vld [vmem:[%s15508_s6 + $0x160] sm:$0xff] }
 0x5fb   :  { %7533 = vrot.lane.b32.xlu0 %v7532_v2, %s12098_s20  ;;  %v7561_v7 = vsel %vm7501_vm5, %v7558_v10, %v7560_v40  ;;  %v7649_v11 = vsel %vm7497_vm3, %v7648_v46, %v9433_v4  ;;  %v9431_v28 = vld.sshfl [vmem:[#allocation3 + $0x4] sm:$0x1 pattern:$0x76325410]  ;;  %v7618_v31 = vrot.slane %v9432_v41, 7  ;;  %v7682_v24 = vsel %vm7503_vm6, %v7678_v55, %v7681_v33  ;;  %v8022_v55 = vld [vmem:[%s15508_s6 + $0x178] sm:$0xff] }
 0x5fc   :  { %7593 = vrot.lane.b32.xlu1 %v7592_v17, %s12099_s23  ;;  %v7650_v5 = vsel %vm7499_vm4, %v7648_v46, %v7649_v11  ;;  %v9448_v8 = vld.sshfl [vmem:[#allocation3 + $0x1c] sm:$0x1 pattern:$0x76325410]  ;;  %v7562_v42 = vsel %vm7503_vm6, %v7558_v10, %v7561_v7  ;;  %11330 = vmatpush1.bf16.msra.mxu0 %v11329_v34  ;;  %v11331_v20 = vpack.c.bf16 %v8022_v55, %v8020_v12  ;;  %v8021_v10 = vld [vmem:[%s15508_s6 + $0x170] sm:$0xff]  ;;  %v8024_v40 = vld [vmem:[%s15508_s6 + $0x188] sm:$0xff] }
 0x5fd   :  { %v7619_v49 = vsel %vm7497_vm3, %v7618_v31, %v9431_v28  ;;  %v9447_v1 = vld.sshfl [vmem:[#allocation3 + $0xc] sm:$0x1 pattern:$0x76325410]  ;;  %v7863_v44 = vrot.slane %v9448_v8, 7  ;;  %v7651_v57 = vsel %vm7501_vm5, %v7648_v46, %v7650_v5  ;;  %v11333_v58 = vpack.c.bf16 %v8021_v10, %v8019_v50  ;;  %v8029_v18 = vld [vmem:[%s15508_s6 + $0x1b0] sm:$0xff] }
 0x5fe   :  { %v7620_v15 = vsel %vm7499_vm4, %v7618_v31, %v7619_v49  ;;  %v9444_v6 = vld.sshfl [vmem:[#allocation3 + $0x1a] sm:$0x1 pattern:$0x76325410]  ;;  %v7652_v19 = vsel %vm7503_vm6, %v7648_v46, %v7651_v57  ;;  %11332 = vmatprep.subr.bf16.mxu0 %v11331_v20  ;;  %v8025_v49 = vld [vmem:[%s15508_s6 + $0x190] sm:$0xff]  ;;  %s12110_s20 = smov 44  }
 0x5ff   :  { %7563 = vrot.lane.b32.xlu0 %v7562_v42, %s12100_s4  ;;  %v7621_v51 = vsel %vm7501_vm5, %v7618_v31, %v7620_v15  ;;  %v7864_v38 = vsel %vm7497_vm3, %v7863_v44, %v9447_v1  ;;  %v9443_v26 = vld.sshfl [vmem:[#allocation3 + $0xa] sm:$0x1 pattern:$0x76325410]  ;;  %v7803_v62 = vrot.slane %v9444_v6, 7  ;;  %v8023_v42 = vld [vmem:[%s15508_s6 + $0x180] sm:$0xff] }
 0x600   :  { %7683 = vrot.lane.b32.xlu1 %v7682_v24, %s12101_s16  ;;  %v7865_v22 = vsel %vm7499_vm4, %v7863_v44, %v7864_v38  ;;  %v9446_v56 = vld.sshfl [vmem:[#allocation3 + $0x1b] sm:$0x1 pattern:$0x76325410]  ;;  %v7622_v43 = vsel %vm7503_vm6, %v7618_v31, %v7621_v51  ;;  %11334 = vmatpush1.bf16.msra.mxu0 %v11333_v58  ;;  %v11337_v57 = vpack.c.bf16 %v8025_v49, %v8023_v42  ;;  %v8028_v15 = vld [vmem:[%s15508_s6 + $0x1a8] sm:$0xff]  ;;  %s12108_s4 = smov 4  }
 0x601   :  { %v7804_v37 = vsel %vm7497_vm3, %v7803_v62, %v9443_v26  ;;  %v9445_v14 = vld.sshfl [vmem:[#allocation3 + $0xb] sm:$0x1 pattern:$0x76325410]  ;;  %v7833_v29 = vrot.slane %v9446_v56, 7  ;;  %v7866_v52 = vsel %vm7501_vm5, %v7863_v44, %v7865_v22  ;;  %v8026_v31 = vld [vmem:[%s15508_s6 + $0x198] sm:$0xff]  ;;  %v11341_v22 = vpack.c.bf16 %v8029_v18, %v8027_v48 }
 0x602   :  { %v7805_v32 = vsel %vm7499_vm4, %v7803_v62, %v7804_v37  ;;  %v9438_v54 = vld.sshfl [vmem:[#allocation3 + $0x17] sm:$0x1 pattern:$0x76325410]  ;;  %v7867_v61 = vsel %vm7503_vm6, %v7863_v44, %v7866_v52  ;;  %v11335_v24 = vpack.c.bf16 %v8026_v31, %v8024_v40  ;;  %v8030_v6 = vld [vmem:[%s15508_s6 + $0x1b8] sm:$0xff]  ;;  %v8032_v51 = vld [vmem:[%s15508_s6 + $0x1c8] sm:$0xff] }
 0x603   :  { %7623 = vrot.lane.b32.xlu0 %v7622_v43, %s12102_s3  ;;  %v7806_v60 = vsel %vm7501_vm5, %v7803_v62, %v7805_v32  ;;  %v7834_v9 = vsel %vm7497_vm3, %v7833_v29, %v9445_v14  ;;  %v9437_v45 = vld.sshfl [vmem:[#allocation3 + $0x7] sm:$0x1 pattern:$0x76325410]  ;;  %v7713_v53 = vrot.slane %v9438_v54, 7  ;;  %v8034_v38 = vld [vmem:[%s15508_s6 + $0x1d8] sm:$0xff]  ;;  %v11339_v34 = vpack.c.bf16 %v8030_v6, %v8028_v15 }
 0x604   :  { %7653 = vrot.lane.b32.xlu1 %v7652_v19, %s12103_s19  ;;  %v7835_v59 = vsel %vm7499_vm4, %v7833_v29, %v7834_v9  ;;  %v9452_v13 = vld.sshfl [vmem:[#allocation3 + $0x1e] sm:$0x1 pattern:$0x76325410]  ;;  %v7807_v27 = vsel %vm7503_vm6, %v7803_v62, %v7806_v60  ;;  %11336 = vmatprep.subr.bf16.mxu0 %v11335_v24  ;;  %v11343_v14 = vpack.c.bf16 %v8034_v38, %v8032_v51  ;;  %v8033_v12 = vld [vmem:[%s15508_s6 + $0x1d0] sm:$0xff]  ;;  %s12109_s16 = smov 24  }
 0x605   :  { %v7714_v36 = vsel %vm7497_vm3, %v7713_v53, %v9437_v45  ;;  %v9451_v17 = vld.sshfl [vmem:[#allocation3 + $0xe] sm:$0x1 pattern:$0x76325410]  ;;  %v7928_v35 = vrot.slane %v9452_v13, 7  ;;  %v7836_v30 = vsel %vm7501_vm5, %v7833_v29, %v7835_v59  ;;  %11338 = vmatpush1.bf16.msra.mxu0 %v11337_v57  ;;  %v8038_v54 = vld [vmem:[%s15508_s6 + $0x1f8] sm:$0xff] }
 0x606   :  { %v7715_v16 = vsel %vm7499_vm4, %v7713_v53, %v7714_v36  ;;  %v9450_v2 = vld.sshfl [vmem:[#allocation3 + $0x1d] sm:$0x1 pattern:$0x76325410]  ;;  %v7837_v39 = vsel %vm7503_vm6, %v7833_v29, %v7836_v30  ;;  %v8031_v29 = vld [vmem:[%s15508_s6 + $0x1c0] sm:$0xff]  ;;  %11340 = vmatprep.subr.bf16.mxu0 %v11339_v34  ;;  %v8036_v32 = vld [vmem:[%s15508_s6 + $0x1e8] sm:$0xff] }
 0x607   :  { %7808 = vrot.lane.b32.xlu0 %v7807_v27, %s12104_s26  ;;  %v7716_v21 = vsel %vm7501_vm5, %v7713_v53, %v7715_v16  ;;  %v7929_v4 = vsel %vm7497_vm3, %v7928_v35, %v9451_v17  ;;  %v9449_v46 = vld.sshfl [vmem:[#allocation3 + $0xd] sm:$0x1 pattern:$0x76325410]  ;;  %v7898_v33 = vrot.slane %v9450_v2, 7  ;;  %v11345_v9 = vpack.c.bf16 %v8033_v12, %v8031_v29  ;;  %v8037_v55 = vld [vmem:[%s15508_s6 + $0x1f0] sm:$0xff] }
 0x608   :  { %7868 = vrot.lane.b32.xlu1 %v7867_v61, %s12105_s2  ;;  %v7930_v41 = vsel %vm7499_vm4, %v7928_v35, %v7929_v4  ;;  %v9454_v3 = vld.sshfl [vmem:[#allocation3 + $0x1f] sm:$0x1 pattern:$0x76325410]  ;;  %v7717_v25 = vsel %vm7503_vm6, %v7713_v53, %v7716_v21  ;;  %v11347_v45 = vpack.c.bf16 %v8038_v54, %v8036_v32  ;;  %v8035_v53 = vld [vmem:[%s15508_s6 + $0x1e0] sm:$0xff]  ;;  %v8040_v59 = vld [vmem:[%s15508_s6 + $0x208] sm:$0xff] }
 0x609   :  { %v7899_v7 = vsel %vm7497_vm3, %v7898_v33, %v9449_v46  ;;  %v9453_v11 = vld.sshfl [vmem:[#allocation3 + $0xf] sm:$0x1 pattern:$0x76325410]  ;;  %v7958_v28 = vrot.slane %v9454_v3, 7  ;;  %v7931_v5 = vsel %vm7501_vm5, %v7928_v35, %v7930_v41  ;;  %11342 = vmatpush1.bf16.msra.mxu0 %v11341_v22  ;;  %v8042_v13 = vld [vmem:[%s15508_s6 + $0x218] sm:$0xff]  ;;  %v11349_v20 = vpack.c.bf16 %v8037_v55, %v8035_v53 }
 0x60a   :  { %v7900_v8 = vsel %vm7499_vm4, %v7898_v33, %v7899_v7  ;;  %v9423_v0 = vld.sshfl [vmem:[#allocation3] sm:$0x1 pattern:$0x76325410]  ;;  %v7932_v56 = vsel %vm7503_vm6, %v7928_v35, %v7931_v5  ;;  %11344 = vmatprep.subr.bf16.mxu0 %v11343_v14  ;;  %v11351_v50 = vpack.c.bf16 %v8042_v13, %v8040_v59  ;;  %v8041_v24 = vld [vmem:[%s15508_s6 + $0x210] sm:$0xff]  ;;  %v8044_v49 = vld [vmem:[%s15508_s6 + $0x228] sm:$0xff] }
 0x60b   :  { %7718 = vrot.lane.b32.xlu0 %v7717_v25, %s12106_s0  ;;  %v9424_v47 = vld.sshfl [vmem:[#allocation3 + $0x10] sm:$0x1 pattern:$0x76325410]  ;;  %v7901_v1 = vsel %vm7501_vm5, %v7898_v33, %v7900_v8  ;;  %v7959_v44 = vsel %vm7497_vm3, %v7958_v28, %v9453_v11  ;;  %v12111_v25 = vmov 1983009808   ;;  %v8060_v11 = vlaneseq }
 0x60c   :  { %7838 = vrot.lane.b32.xlu1 %v7837_v39, %s12107_s18  ;;  %v7496_v23 = vrot.slane %v9424_v47, 7  ;;  %v7960_v63 = vsel %vm7499_vm4, %v7958_v28, %v7959_v44  ;;  %v7902_v26 = vsel %vm7503_vm6, %v7898_v33, %v7901_v1  ;;  %v8058_v7 = vunpack.c.l.s4 %v12111_v25  ;;  %v8039_v47 = vld [vmem:[%s15508_s6 + $0x200] sm:$0xff]  ;;  %v8046_v1 = vld [vmem:[%s15508_s6 + $0x238] sm:$0xff]  ;;  %v8045_v6 = vld [vmem:[%s15508_s6 + $0x230] sm:$0xff] }
 0x60d   :  { %v7961_v43 = vsel %vm7501_vm5, %v7958_v28, %v7960_v63  ;;  %11346 = vmatpush1.bf16.msra.mxu0 %v11345_v9  ;;  %v15012_v5 = vshrl.u32 %v8060_v11, 7  ;;  %v11355_v57 = vpack.c.bf16 %v8046_v1, %v8044_v49  ;;  %v8043_v15 = vld [vmem:[%s15508_s6 + $0x220] sm:$0xff]  ;;  %v8048_v48 = vld [vmem:[%s15508_s6 + $0x248] sm:$0xff]  ;;  %v8050_v63 = vld [vmem:[%s15508_s6 + $0x258] sm:$0xff]  ;;  %v12112_v51 = vmov 0.0  }
 0x60e   :  { %v7498_v62 = vsel %vm7497_vm3, %v7496_v23, %v9423_v0  ;;  %v7962_v60 = vsel %vm7503_vm6, %v7958_v28, %v7961_v43  ;;  %11348 = vmatprep.subr.bf16.mxu0 %v11347_v45  ;;  %vm7751_vm3 = vcmask 419072   ;;  %v8059_v39 = vunpack.c.0.s8 %v8058_v7  ;;  %v8052_v34 = vld [vmem:[%s15508_s6 + $0x268] sm:$0xff]  ;;  %v8054_v22 = vld [vmem:[%s15508_s6 + $0x278] sm:$0xff]  ;;  %v8053_v14 = vld [vmem:[%s15508_s6 + $0x270] sm:$0xff] }
 0x60f   :  { %7903 = vrot.lane.b32.xlu0 %v7902_v26, %s12108_s4  ;;  %v7500_v37 = vsel %vm7499_vm4, %v7496_v23, %v7498_v62  ;;  %vm7781_vm4 = vcmask 583072   ;;  %v11357_v18 = vpack.c.bf16 %v8045_v6, %v8043_v15  ;;  %v11359_v38 = vpack.c.bf16 %v8050_v63, %v8048_v48  ;;  %v8047_v26 = vld [vmem:[%s15508_s6 + $0x240] sm:$0xff]  ;;  %v8049_v62 = vld [vmem:[%s15508_s6 + $0x250] sm:$0xff]  ;;  %v7971_v29 = vld [vmem:[%s15507_s5 + $0x8] sm:$0xff] }
 0x610   :  { %7933 = vrot.lane.b32.xlu1 %v7932_v56, %s12109_s16  ;;  %v7502_v19 = vsel %vm7501_vm5, %v7496_v23, %v7500_v37  ;;  %vm7874_vm5 = vcmask 1042304   ;;  %v8062_v8 = vsub.s32 %v8059_v39, %v15012_v5  ;;  %v11361_v56 = vpack.c.bf16 %v8049_v62, %v8047_v26  ;;  %v8051_v37 = vld [vmem:[%s15508_s6 + $0x260] sm:$0xff]  ;;  %v7973_v12 = vld [vmem:[%s15507_s5 + $0x18] sm:$0xf]  ;;  %v8319_v9 = vld [vmem:[%s15510_s8 + $0x8] sm:$0xff]  ;;  %s12115_s16 = smov [#allocation6]  }
 0x611   :  { %v7504_v52 = vsel %vm7503_vm6, %v7496_v23, %v7502_v19  ;;  %11350 = vmatpush1.bf16.msra.mxu0 %v11349_v20  ;;  %vm7875_vm6 = vcmask 27650   ;;  %v11353_v23 = vpack.c.bf16 %v8041_v24, %v8039_v47  ;;  %v11363_v43 = vpack.c.bf16 %v8054_v22, %v8052_v34  ;;  %v8321_v45 = vld [vmem:[%s15510_s8 + $0x18] sm:$0xff]  ;;  %v7968_v13 = vld [vmem:[%s15503_s1] sm:$0x3]  ;;  %v8332_v7 = vld [vmem:[%s15510_s8 + $0x70] sm:$0xff]  ;;  %s8725_s17 = sshll.u32 %s12115_s16, 4  ;;  %s8726_s17 = int_to_ptr.vmem [resolvable:$true] %s8725_s17 }
 0x612   :  { %7507 = vst.msk [vmem:[#allocation4] sm:$0x3] %vm7506_vm7, %v7504_v52  ;;  %11352 = vmatprep.subr.bf16.mxu0 %v11351_v50  ;;  %vm7811_vm7 = vcmask 747072   ;;  %v11365_v19 = vpack.c.bf16 %v8053_v14, %v8051_v37  ;;  %v11367_v54 = vpack.c.bf16 %v7973_v12, %v7971_v29  ;;  %v7970_v52 = vld [vmem:[%s15507_s5] sm:$0xff]  ;;  %v11373_v59 = vpack.c.bf16 %v8321_v45, %v8319_v9  ;;  %v8320_v50 = vld [vmem:[%s15510_s8 + $0x10] sm:$0xff]  ;;  %v8335_v11 = vld [vmem:[%s15510_s8 + $0x88] sm:$0xff]  ;;  %p12077_p1 = scmp.lt.s32.totalorder %s8726_s17, %s8726_s17 }
 0x613   :  { %7963 = vrot.lane.b32.xlu0 %v7962_v60, %s12110_s20  ;;  %v7972_v60 = vld [vmem:[%s15507_s5 + $0x10] sm:$0xf]  ;;  %v8318_v20 = vld [vmem:[%s15510_s8] sm:$0xff]  ;;  %v8339_v47 = vld [vmem:[%s15510_s8 + $0xa8] sm:$0xff]  ;;  %s12076_s1 = scalar_lea.vmem %s8726_s17, 32 }
 0x614   :  { %v11370_v53 = vpack.c.bf16 %v7972_v60, %v7970_v52  ;;  %v8330_v25 = vld [vmem:[%s15510_s8 + $0x60] sm:$0xff]  ;;  %v8341_v24 = vld [vmem:[%s15510_s8 + $0xb8] sm:$0xff]  ;;  %v8344_v63 = vld [vmem:[%s15510_s8 + $0xd0] sm:$0xff] }
 0x615   :  { %v11393_v49 = vpack.c.bf16 %v8341_v24, %v8339_v47  ;;  %v8338_v1 = vld [vmem:[%s15510_s8 + $0xa0] sm:$0xff]  ;;  %v8348_v22 = vld [vmem:[%s15510_s8 + $0xf0] sm:$0xff]  ;;  %v8353_v37 = vld [vmem:[%s15510_s8 + $0x118] sm:$0xff] }
 0x616   :  { %v8342_v48 = vld [vmem:[%s15510_s8 + $0xc0] sm:$0xff]  ;;  %v8352_v12 = vld [vmem:[%s15510_s8 + $0x110] sm:$0xff]  ;;  %v8359_v45 = vld [vmem:[%s15510_s8 + $0x148] sm:$0xff] }
 0x617   :  { %v11399_v26 = vpack.c.bf16 %v8344_v63, %v8342_v48  ;;  %v8346_v34 = vld [vmem:[%s15510_s8 + $0xe0] sm:$0xff]  ;;  %v8356_v60 = vld [vmem:[%s15510_s8 + $0x130] sm:$0xff] }
 0x618   :  { %v8350_v29 = vld [vmem:[%s15510_s8 + $0x100] sm:$0xff]  ;;  %v8469_v63 = vld [vmem:[%s15512_s10 + $0x50] sm:$0xff] }
 0x619   :  { %v8354_v52 = vld [vmem:[%s15510_s8 + $0x120] sm:$0xff] }
 0x61a   :  { %v8467_v48 = vld [vmem:[%s15512_s10 + $0x40] sm:$0xff] }
 0x669   :  { %v7779_v10 = vpop.permute.xlu0 %7778 }
 0x66a   :  { %v7749_v27 = vpop.permute.xlu1 %7748 }
 0x66d   :  { %v7534_v36 = vpop.permute.xlu0 %7533 }
 0x66e   :  { %v7594_v17 = vpop.permute.xlu1 %7593  ;;  %7537 = vst.msk [vmem:[#allocation4] sm:$0x3] %vm7536_vm8, %v7534_v36  ;;  %vm7871_vm8 = vcmask 916480   ;;  %v7969_v36 = vmul.f32 0.01, %v7968_v13  ;;  %v8358_v13 = vld [vmem:[%s15510_s8 + $0x140] sm:$0xff] }
 0x671   :  { %v7564_v35 = vpop.permute.xlu0 %7563 }
 0x672   :  { %v7684_v58 = vpop.permute.xlu1 %7683  ;;  %7567 = vst.msk [vmem:[#allocation4] sm:$0x3] %vm7566_vm9, %v7564_v35  ;;  %vm7841_vm9 = vcmask 911072  }
 0x673   :  { %v7685_v61 = vrot.slane %v7684_v58, 6  ;;  %7597 = vst.msk [vmem:[#allocation4] sm:$0x3] %vm7596_vm10, %v7594_v17  ;;  %vm7876_vm10 = vmor %vm7875_vm6, %vm7874_vm5  ;;  %v11375_v17 = vpack.c.bf16 %v8320_v50, %v8318_v20  ;;  %v8360_v20 = vld [vmem:[%s15510_s8 + $0x150] sm:$0xff]  ;;  %v8363_v50 = vld [vmem:[%s15510_s8 + $0x168] sm:$0xff]  ;;  %vm8717_vm5 = vcmask 0  }
 0x675   :  { %v7624_v16 = vpop.permute.xlu0 %7623  ;;  %v7687_v30 = vsel %vm7686_vm14, %v7685_v61, %v7684_v58  ;;  %vm12113_vm14 = vmmov 1   ;;  %v8322_v58 = vld [vmem:[%s15510_s8 + $0x20] sm:$0xff]  ;;  %v8324_v61 = vld [vmem:[%s15510_s8 + $0x30] sm:$0xff] }
 0x676   :  { %v7654_v2 = vpop.permute.xlu1 %7653  ;;  %7627 = vst.msk [vmem:[#allocation4] sm:$0x3] %vm7626_vm13, %v7624_v16  ;;  %vm7966_vm13 = vcmask 517472   ;;  %v8327_v16 = vld [vmem:[%s15510_s8 + $0x48] sm:$0xff] }
 0x677   :  { %7657 = vst.msk [vmem:[#allocation4] sm:$0x3] %vm7656_vm15, %v7654_v2  ;;  %vm11368_vm15 = vmpackc.low %vm2370_vm1, %vm12113_vm14  ;;  %vm8219_vm1 = vcmask 97280   ;;  %v8329_v2 = vld [vmem:[%s15510_s8 + $0x58] sm:$0xff] }
 0x678   :  { %7692 = vst.msk [vmem:[#allocation4] sm:$0xf] %vm7691_vm0, %v7687_v30  ;;  %vm8074_vm0 = vcmask 523264   ;;  %v11379_v30 = vpack.c.bf16 %v8324_v61, %v8322_v58  ;;  %v8367_v61 = vld [vmem:[%s15510_s8 + $0x188] sm:$0xff] }
 0x679   :  { %v7809_v21 = vpop.permute.xlu0 %7808 }
 0x67a   :  { %v7869_v4 = vpop.permute.xlu1 %7868 }
 0x67b   :  { %v7870_v33 = vrot.slane %v7869_v4, 6 }
 0x67d   :  { %v7719_v46 = vpop.permute.xlu0 %7718  ;;  %v7872_v3 = vsel %vm7871_vm8, %v7870_v33, %v7869_v4  ;;  %v8326_v4 = vld [vmem:[%s15510_s8 + $0x40] sm:$0xff]  ;;  %v8331_v33 = vld [vmem:[%s15510_s8 + $0x68] sm:$0xff] }
 0x67e   :  { %v7839_v40 = vpop.permute.xlu1 %7838  ;;  %7722 = vst.msk [vmem:[#allocation4 + $0x2] sm:$0x3] %vm7721_vm2, %v7719_v46  ;;  %v8328_v46 = vld [vmem:[%s15510_s8 + $0x50] sm:$0xff]  ;;  %vm8380_vm2 = vcmask 588800  }
 0x67f   :  { %7752 = vst.msk [vmem:[#allocation4 + $0x2] sm:$0x3] %vm7751_vm3, %v7749_v27  ;;  %v8325_v27 = vld [vmem:[%s15510_s8 + $0x38] sm:$0xff]  ;;  %vm8599_vm3 = vcmask 1041408  }
 0x680   :  { %7782 = vst.msk [vmem:[#allocation4 + $0x2] sm:$0x3] %vm7781_vm4, %v7779_v10  ;;  %v8323_v10 = vld [vmem:[%s15510_s8 + $0x28] sm:$0xff]  ;;  %vm8607_vm4 = vcmask 582656  }
 0x681   :  { %v7904_v41 = vpop.permute.xlu0 %7903  ;;  %7812 = vst.msk [vmem:[#allocation4 + $0x2] sm:$0x3] %vm7811_vm7, %v7809_v21  ;;  %v11377_v35 = vpack.c.bf16 %v8325_v27, %v8323_v10  ;;  %v11381_v21 = vpack.c.bf16 %v8329_v2, %v8327_v16  ;;  %v8365_v10 = vld [vmem:[%s15510_s8 + $0x178] sm:$0xff]  ;;  %v11415_v27 = vpack.c.bf16 %v8360_v20, %v8358_v13  ;;  %v8460_v16 = vld [vmem:[%s15512_s10 + $0x8] sm:$0xff]  ;;  %v8483_v13 = vld [vmem:[%s15512_s10 + $0xc0] sm:$0xff] }
 0x682   :  { %7842 = vst.msk [vmem:[#allocation4 + $0x2] sm:$0x3] %vm7841_vm9, %v7839_v40  ;;  %v7934_v28 = vpop.permute.xlu1 %7933  ;;  %v8333_v40 = vld [vmem:[%s15510_s8 + $0x78] sm:$0xff]  ;;  %v8485_v20 = vld [vmem:[%s15512_s10 + $0xd0] sm:$0xff] }
 0x683   :  { %7877 = vst.msk [vmem:[#allocation4 + $0x2] sm:$0xf] %vm7876_vm10, %v7872_v3  ;;  %v11385_v3 = vpack.c.bf16 %v8333_v40, %v8331_v33  ;;  %v8462_v2 = vld [vmem:[%s15512_s10 + $0x18] sm:$0xff]  ;;  %v15238_v33 = vsub.s32 1, %v15012_v5 }
 0x684   :  { %7907 = vst.msk [vmem:[#allocation4 + $0x4] sm:$0x3] %vm7906_vm11, %v7904_v41  ;;  %v11383_v41 = vpack.c.bf16 %v8328_v46, %v8326_v4  ;;  %v15232_v4 = vsub.s32 0, %v15012_v5  ;;  %v8300_v46 = vld [vmem:[%s15509_s7] sm:$0x3]  ;;  %v8461_v5 = vld [vmem:[%s15512_s10 + $0x10] sm:$0xff] }
 0x685   :  { %v7964_v31 = vpop.permute.xlu0 %7963  ;;  %7937 = vst.msk [vmem:[#allocation4 + $0x4] sm:$0x3] %vm7936_vm12, %v7934_v28  ;;  %v8337_v28 = vld [vmem:[%s15510_s8 + $0x98] sm:$0xff] }
 0x686   :  { %7967 = vst.msk [vmem:[#allocation4 + $0x4] sm:$0x3] %vm7966_vm13, %v7964_v31  ;;  %v11387_v31 = vpack.c.bf16 %v8332_v7, %v8330_v25  ;;  %v11389_v39 = vpack.c.bf16 %v8337_v28, %v8335_v11  ;;  %v8305_v40 = vrot.slane %v8300_v46, %v15232_v4 }
 0x68d   :  { %v7974_v0 = vld [vmem:[#allocation4] sm:$0x3f] }
 0x68e   :  { %v8063_v42 = vrot.slane %v7974_v0, %v8062_v8  ;;  %v8056_v32 = vcombine.high %v7974_v0, %v7974_v0  ;;  %v8336_v0 = vld [vmem:[%s15510_s8 + $0x90] sm:$0xff] }
 0x690   :  { %v8071_v44 = vcombine.high %v8063_v42, %v8063_v42  ;;  %v8070_v55 = vrot.slane %v8056_v32, %v8062_v8  ;;  %v8334_v8 = vld [vmem:[%s15510_s8 + $0x80] sm:$0xff]  ;;  %v11407_v32 = vpack.c.bf16 %v8352_v12, %v8350_v29  ;;  %v8477_v12 = vld [vmem:[%s15512_s10 + $0x90] sm:$0xff] }
 0x691   :  { %v8475_v29 = vld [vmem:[%s15512_s10 + $0x80] sm:$0xff] }
 0x692   :  { %8141 = vmatprep.mubr.f32.mxu0 %v8071_v44  ;;  %v8340_v44 = vld [vmem:[%s15510_s8 + $0xb0] sm:$0xff] }
 0x693   :  { %8142 = vmatmul.mubr.f32.vlgmr.msra.gmra.mrb[208].mxu0 %v8063_v42  ;;  %v11391_v42 = vpack.c.bf16 %v8336_v0, %v8334_v8  ;;  %v11395_v15 = vpack.c.bf16 %v8340_v44, %v8338_v1  ;;  %v8464_v8 = vld [vmem:[%s15512_s10 + $0x28] sm:$0xff]  ;;  %v8466_v0 = vld [vmem:[%s15512_s10 + $0x38] sm:$0xff]  ;;  %v8465_v1 = vld [vmem:[%s15512_s10 + $0x30] sm:$0xff] }
 0x694   :  { %11354 = vmatpush1.bf16.msra.mxu0 %v11353_v23  ;;  %8212 = vmatprep.mubr.f32.mxu0 %v12112_v51  ;;  %v8343_v23 = vld [vmem:[%s15510_s8 + $0xc8] sm:$0xff] }
 0x695   :  { %11356 = vmatprep.subr.bf16.mxu0 %v11355_v57  ;;  %v8345_v57 = vld [vmem:[%s15510_s8 + $0xd8] sm:$0xff] }
 0x696   :  { %v11397_v6 = vpack.c.bf16 %v8345_v57, %v8343_v23  ;;  %v8468_v23 = vld [vmem:[%s15512_s10 + $0x48] sm:$0xff]  ;;  %v8470_v57 = vld [vmem:[%s15512_s10 + $0x58] sm:$0xff] }
 0x698   :  { %11358 = vmatpush1.bf16.msra.mxu0 %v11357_v18  ;;  %v8347_v18 = vld [vmem:[%s15510_s8 + $0xe8] sm:$0xff] }
 0x699   :  { %11360 = vmatprep.subr.bf16.mxu0 %v11359_v38  ;;  %v8349_v38 = vld [vmem:[%s15510_s8 + $0xf8] sm:$0xff] }
 0x69a   :  { %v11401_v62 = vpack.c.bf16 %v8349_v38, %v8347_v18  ;;  %v8472_v18 = vld [vmem:[%s15512_s10 + $0x68] sm:$0xff]  ;;  %v8474_v38 = vld [vmem:[%s15512_s10 + $0x78] sm:$0xff] }
 0x69c   :  { %11362 = vmatpush1.bf16.msra.mxu0 %v11361_v56  ;;  %v11403_v56 = vpack.c.bf16 %v8348_v22, %v8346_v34  ;;  %v8471_v34 = vld [vmem:[%s15512_s10 + $0x60] sm:$0xff]  ;;  %v8473_v22 = vld [vmem:[%s15512_s10 + $0x70] sm:$0xff] }
 0x69d   :  { %11364 = vmatprep.subr.bf16.mxu0 %v11363_v43  ;;  %v8351_v43 = vld [vmem:[%s15510_s8 + $0x108] sm:$0xff] }
 0x69e   :  { %v11405_v14 = vpack.c.bf16 %v8353_v37, %v8351_v43  ;;  %v8478_v43 = vld [vmem:[%s15512_s10 + $0x98] sm:$0xff]  ;;  %v11435_v37 = vpack.c.bf16 %v8473_v22, %v8471_v34 }
 0x6a0   :  { %11366 = vmatpush1.bf16.msra.mxu0 %v11365_v19  ;;  %v8355_v19 = vld [vmem:[%s15510_s8 + $0x128] sm:$0xff] }
 0x6a1   :  { %11369 = vmatprep.subr.msk.bf16.mxu0 %vm11368_vm15, %v11367_v54  ;;  %v8357_v54 = vld [vmem:[%s15510_s8 + $0x138] sm:$0xff] }
 0x6a2   :  { %v11409_v9 = vpack.c.bf16 %v8357_v54, %v8355_v19  ;;  %v8480_v19 = vld [vmem:[%s15512_s10 + $0xa8] sm:$0xff]  ;;  %v11439_v54 = vpack.c.bf16 %v8477_v12, %v8475_v29  ;;  %v8619_v29 = vld [vmem:[%s15514_s12 + $0x10] sm:$0xff]  ;;  %v8620_v12 = vld [vmem:[%s15514_s12 + $0x18] sm:$0xff] }
 0x6a3   :  { %9455 = vmatmul.mubr.msk.f32.vlgmr.msra.gmra.mrb[208].mxu0 %vm8074_vm0, %v8070_v55  ;;  %v11411_v55 = vpack.c.bf16 %v8356_v60, %v8354_v52  ;;  %v8479_v60 = vld [vmem:[%s15512_s10 + $0xa0] sm:$0xff] }
 0x6a4   :  { %11372 = vmatpush1.bf16.msk.msra.mxu0 %vm11368_vm15, %v11370_v53  ;;  %8293 = vmatprep.mubr.f32.mxu0 %v12112_v51  ;;  %v8361_v53 = vld [vmem:[%s15510_s8 + $0x158] sm:$0xff] }
 0x6a5   :  { %11374 = vmatprep.subr.bf16.mxu0 %v11373_v59  ;;  %v11413_v59 = vpack.c.bf16 %v8361_v53, %v8359_v45  ;;  %v8484_v45 = vld [vmem:[%s15512_s10 + $0xc8] sm:$0xff]  ;;  %v8486_v53 = vld [vmem:[%s15512_s10 + $0xd8] sm:$0xff] }
 0x6ab   :  { %9458 = vmatmul.mubr.msk.f32.vlgmr.msra.gmra.mrb[208].mxu0 %vm8219_vm1, %v7969_v36  ;;  %v11417_v36 = vpack.c.bf16 %v8365_v10, %v8363_v50  ;;  %v8488_v50 = vld [vmem:[%s15512_s10 + $0xe8] sm:$0xff]  ;;  %v8490_v10 = vld [vmem:[%s15512_s10 + $0xf8] sm:$0xff] }
 0x6ac   :  { %11376 = vmatpush1.bf16.msra.mxu0 %v11375_v17  ;;  %v8362_v17 = vld [vmem:[%s15510_s8 + $0x160] sm:$0xff] }
 0x6ad   :  { %11378 = vmatprep.subr.bf16.mxu0 %v11377_v35  ;;  %v8364_v35 = vld [vmem:[%s15510_s8 + $0x170] sm:$0xff] }
 0x6ae   :  { %v11419_v58 = vpack.c.bf16 %v8364_v35, %v8362_v17  ;;  %v8487_v17 = vld [vmem:[%s15512_s10 + $0xe0] sm:$0xff]  ;;  %v8489_v35 = vld [vmem:[%s15512_s10 + $0xf0] sm:$0xff] }
 0x6b0   :  { %11380 = vmatpush1.bf16.msra.mxu0 %v11379_v30  ;;  %v8366_v30 = vld [vmem:[%s15510_s8 + $0x180] sm:$0xff] }
 0x6b1   :  { %11382 = vmatprep.subr.bf16.mxu0 %v11381_v21  ;;  %v11421_v21 = vpack.c.bf16 %v8462_v2, %v8460_v16  ;;  %v8494_v16 = vld [vmem:[%s15512_s10 + $0x118] sm:$0xff] }
 0x6b4   :  { %11384 = vmatpush1.bf16.msra.mxu0 %v11383_v41  ;;  %v8309_v41 = vrot.slane %v8300_v46, %v15238_v33  ;;  %v8496_v46 = vld [vmem:[%s15512_s10 + $0x128] sm:$0xff] }
 0x6b5   :  { %11386 = vmatprep.subr.bf16.mxu0 %v11385_v3 }
 0x6b8   :  { %11388 = vmatpush1.bf16.msra.mxu0 %v11387_v31 }
 0x6b9   :  { %11390 = vmatprep.subr.bf16.mxu0 %v11389_v39  ;;  %v8459_v39 = vld [vmem:[%s15512_s10] sm:$0xff] }
 0x6ba   :  { %v11423_v47 = vpack.c.bf16 %v8461_v5, %v8459_v39  ;;  %v8499_v5 = vld [vmem:[%s15512_s10 + $0x140] sm:$0xff] }
 0x6bc   :  { %11392 = vmatpush1.bf16.msra.mxu0 %v11391_v42  ;;  %v11425_v42 = vpack.c.bf16 %v8466_v0, %v8464_v8  ;;  %v8501_v8 = vld [vmem:[%s15512_s10 + $0x150] sm:$0xff]  ;;  %v8504_v0 = vld [vmem:[%s15512_s10 + $0x168] sm:$0xff] }
 0x6bd   :  { %11394 = vmatprep.subr.bf16.mxu0 %v11393_v49  ;;  %v8463_v49 = vld [vmem:[%s15512_s10 + $0x20] sm:$0xff] }
 0x6c0   :  { %11396 = vmatpush1.bf16.msra.mxu0 %v11395_v15  ;;  %v11427_v15 = vpack.c.bf16 %v8465_v1, %v8463_v49  ;;  %v8503_v49 = vld [vmem:[%s15512_s10 + $0x160] sm:$0xff]  ;;  %v8505_v1 = vld [vmem:[%s15512_s10 + $0x170] sm:$0xff] }
 0x6c1   :  { %11398 = vmatprep.subr.bf16.mxu0 %v11397_v6  ;;  %v11429_v6 = vpack.c.bf16 %v8470_v57, %v8468_v23  ;;  %v8508_v23 = vld [vmem:[%s15512_s10 + $0x188] sm:$0xff]  ;;  %v8507_v57 = vld [vmem:[%s15512_s10 + $0x180] sm:$0xff] }
 0x6c4   :  { %11400 = vmatpush1.bf16.msra.mxu0 %v11399_v26  ;;  %v11431_v26 = vpack.c.bf16 %v8469_v63, %v8467_v48 }
 0x6c5   :  { %11402 = vmatprep.subr.bf16.mxu0 %v11401_v62  ;;  %v11433_v62 = vpack.c.bf16 %v8474_v38, %v8472_v18 }
 0x6c8   :  { %11404 = vmatpush1.bf16.msra.mxu0 %v11403_v56  ;;  %v8476_v56 = vld [vmem:[%s15512_s10 + $0x88] sm:$0xff] }
 0x6c9   :  { %11406 = vmatprep.subr.bf16.mxu0 %v11405_v14  ;;  %v11437_v14 = vpack.c.bf16 %v8478_v43, %v8476_v56  ;;  %v8617_v56 = vld [vmem:[%s15514_s12] sm:$0xff]  ;;  %v8618_v43 = vld [vmem:[%s15514_s12 + $0x8] sm:$0xff] }
 0x6cc   :  { %11408 = vmatpush1.bf16.msra.mxu0 %v11407_v32  ;;  %v8482_v32 = vld [vmem:[%s15512_s10 + $0xb8] sm:$0xff] }
 0x6cd   :  { %11410 = vmatprep.subr.bf16.mxu0 %v11409_v9  ;;  %v11441_v52 = vpack.c.bf16 %v8482_v32, %v8480_v19  ;;  %v8481_v9 = vld [vmem:[%s15512_s10 + $0xb0] sm:$0xff]  ;;  %v11473_v32 = vpack.c.bf16 %v8620_v12, %v8619_v29 }
 0x6d0   :  { %11412 = vmatpush1.bf16.msra.mxu0 %v11411_v55  ;;  %v11443_v55 = vpack.c.bf16 %v8481_v9, %v8479_v60  ;;  %v8623_v9 = vld [vmem:[%s15514_s12 + $0x30] sm:$0xff] }
 0x6d1   :  { %11414 = vmatprep.subr.bf16.mxu0 %v11413_v59  ;;  %v11445_v59 = vpack.c.bf16 %v8486_v53, %v8484_v45  ;;  %v8624_v45 = vld [vmem:[%s15514_s12 + $0x38] sm:$0xff] }
 0x6d2   :  { %v11479_v53 = vpack.c.bf16 %v8624_v45, %v8623_v9 }
 0x6d4   :  { %11416 = vmatpush1.bf16.msra.mxu0 %v11415_v27  ;;  %v11447_v27 = vpack.c.bf16 %v8485_v20, %v8483_v13  ;;  %v8627_v20 = vld [vmem:[%s15514_s12 + $0x50] sm:$0xff] }
 0x6d5   :  { %11418 = vmatprep.subr.bf16.mxu0 %v11417_v36  ;;  %v11449_v36 = vpack.c.bf16 %v8490_v10, %v8488_v50  ;;  %v8628_v50 = vld [vmem:[%s15514_s12 + $0x58] sm:$0xff] }
 0x6d6   :  { %v11485_v10 = vpack.c.bf16 %v8628_v50, %v8627_v20 }
 0x6d8   :  { %11420 = vmatpush1.bf16.msra.mxu0 %v11419_v58  ;;  %v11451_v58 = vpack.c.bf16 %v8489_v35, %v8487_v17  ;;  %v8631_v35 = vld [vmem:[%s15514_s12 + $0x70] sm:$0xff] }
 0x6d9   :  { %8432 = vmatprep.subr.mxu0 %v8367_v61  ;;  %v8492_v61 = vld [vmem:[%s15512_s10 + $0x108] sm:$0xff] }
 0x6da   :  { %v11453_v2 = vpack.c.bf16 %v8494_v16, %v8492_v61  ;;  %v8633_v16 = vld [vmem:[%s15514_s12 + $0x80] sm:$0xff] }
 0x6dc   :  { %8433 = vmatpush1.msra.mxu0 %v8366_v30  ;;  %v8491_v30 = vld [vmem:[%s15512_s10 + $0x100] sm:$0xff] }
 0x6dd   :  { %11422 = vmatprep.subr.bf16.mxu0 %v11421_v21  ;;  %v8493_v21 = vld [vmem:[%s15512_s10 + $0x110] sm:$0xff] }
 0x77e   :  { %v8295_v3 = vpop.f32.mrb[208].mxu0 }
 0x77f   :  { %v8312_v25 = vadd.f32 %v8305_v40, %v8295_v3  ;;  %v8297_v7 = vpop.f32.mrb[209].mxu0  ;;  %v11455_v40 = vpack.c.bf16 %v8493_v21, %v8491_v30  ;;  %v8495_v3 = vld [vmem:[%s15512_s10 + $0x120] sm:$0xff]  ;;  %v8635_v21 = vld [vmem:[%s15514_s12 + $0x90] sm:$0xff] }
 0x780   :  { %v8313_v11 = vadd.f32 %v8309_v41, %v8297_v7  ;;  %v8498_v41 = vld [vmem:[%s15512_s10 + $0x138] sm:$0xff] }
 0x781   :  { %v8314_v28 = vmul.f32 0.01, %v8312_v25  ;;  %v8497_v25 = vld [vmem:[%s15512_s10 + $0x130] sm:$0xff]  ;;  %v11457_v7 = vpack.c.bf16 %v8498_v41, %v8496_v46  ;;  %v8636_v46 = vld [vmem:[%s15514_s12 + $0x98] sm:$0xff]  ;;  %v8637_v41 = vld [vmem:[%s15514_s12 + $0xa0] sm:$0xff] }
 0x782   :  { %v8315_v31 = vmul.f32 0.01, %v8313_v11  ;;  %v8500_v11 = vld [vmem:[%s15512_s10 + $0x148] sm:$0xff] }
 0x784   :  { %12058 = vtanh.f32 %v8315_v31  ;;  %v11459_v31 = vpack.c.bf16 %v8497_v25, %v8495_v3  ;;  %v8638_v3 = vld [vmem:[%s15514_s12 + $0xa8] sm:$0xff] }
 0x785   :  { %12060 = vtanh.f32 %v8314_v28  ;;  %v8502_v28 = vld [vmem:[%s15512_s10 + $0x158] sm:$0xff]  ;;  %v11500_v25 = vpack.c.bf16 %v8638_v3, %v8637_v41 }
 0x786   :  { %v11461_v39 = vpack.c.bf16 %v8502_v28, %v8500_v11  ;;  %v8640_v11 = vld [vmem:[%s15514_s12 + $0xb8] sm:$0xff] }
 0x78e   :  { %v12059_v24 = vpop.eup %12058 }
 0x78f   :  { %v12061_v44 = vpop.eup %12060  ;;  %9459 = vmatprep.mubr.msk.f32.mxu0 %vm8380_vm2, %v12059_v24  ;;  %v11463_v24 = vpack.c.bf16 %v8501_v8, %v8499_v5 }
 0x790   :  { %8449 = vmatmul.mubr.f32.vlgmr.msra.gmra.mrb[210].mxu0 %v12061_v44  ;;  %v11467_v44 = vpack.c.bf16 %v8505_v1, %v8503_v49 }
 0x791   :  { %11424 = vmatpush1.bf16.msra.mxu0 %v11423_v47  ;;  %v8506_v47 = vld [vmem:[%s15512_s10 + $0x178] sm:$0xff]  ;;  %s12072_s10 = scalar_lea.vmem %s8726_s17, 16 }
 0x792   :  { %11426 = vmatprep.subr.bf16.mxu0 %v11425_v42  ;;  %v11465_v42 = vpack.c.bf16 %v8506_v47, %v8504_v0  ;;  %p12073_p0 = scmp.ne.s32.totalorder %s8726_s17, %s12072_s10  ;;  %p12078_p2 = scmp.lt.s32.totalorder %s12076_s1, %s12072_s10 }
 0x794   :  { %p12079_p3 = por %p12078_p2, %p12077_p1 }
 0x795   :  { %11428 = vmatpush1.bf16.msra.mxu0 %v11427_v15  ;;  %v12114_v15 = vmov 0.0|0.0  }
 0x796   :  { %11430 = vmatprep.subr.bf16.mxu0 %v11429_v6  ;;  %v8368_v6 = vld [vmem:[%s15511_s9] sm:$0x3]  ;;  %p12080_p4 = pnand %p12079_p3, %p12073_p0 }
 0x797   :  { %v8373_v48 = vrot.slane %v8368_v6, %v15232_v4  ;;  %v8377_v63 = vrot.slane %v8368_v6, %v15238_v33 }
 0x799   :  { %11432 = vmatpush1.bf16.msra.mxu0 %v11431_v26 }
 0x79a   :  { %11434 = vmatprep.subr.bf16.mxu0 %v11433_v62 }
 0x79d   :  { %11436 = vmatpush1.bf16.msra.mxu0 %v11435_v37  ;;  %v11470_v37 = vpack.c.bf16 %v8618_v43, %v8617_v56 }
 0x79e   :  { %11438 = vmatprep.subr.bf16.mxu0 %v11437_v14 }
 0x7a1   :  { %11440 = vmatpush1.bf16.msra.mxu0 %v11439_v54  ;;  %v8621_v54 = vld [vmem:[%s15514_s12 + $0x20] sm:$0xff] }
 0x7a2   :  { %11442 = vmatprep.subr.bf16.mxu0 %v11441_v52  ;;  %v8622_v52 = vld [vmem:[%s15514_s12 + $0x28] sm:$0xff] }
 0x7a3   :  { %v11476_v60 = vpack.c.bf16 %v8622_v52, %v8621_v54 }
 0x7a5   :  { %11444 = vmatpush1.bf16.msra.mxu0 %v11443_v55  ;;  %v8625_v55 = vld [vmem:[%s15514_s12 + $0x40] sm:$0xff] }
 0x7a6   :  { %11446 = vmatprep.subr.bf16.mxu0 %v11445_v59  ;;  %v8626_v59 = vld [vmem:[%s15514_s12 + $0x48] sm:$0xff] }
 0x7a7   :  { %v11482_v13 = vpack.c.bf16 %v8626_v59, %v8625_v55 }
 0x7a9   :  { %11448 = vmatpush1.bf16.msra.mxu0 %v11447_v27  ;;  %v8629_v27 = vld [vmem:[%s15514_s12 + $0x60] sm:$0xff] }
 0x7aa   :  { %11450 = vmatprep.subr.bf16.mxu0 %v11449_v36  ;;  %v8630_v36 = vld [vmem:[%s15514_s12 + $0x68] sm:$0xff] }
 0x7ab   :  { %v11488_v17 = vpack.c.bf16 %v8630_v36, %v8629_v27 }
 0x7ad   :  { %11452 = vmatpush1.bf16.msra.mxu0 %v11451_v58  ;;  %v8632_v58 = vld [vmem:[%s15514_s12 + $0x78] sm:$0xff] }
 0x7ae   :  { %11454 = vmatprep.subr.bf16.mxu0 %v11453_v2  ;;  %v11491_v61 = vpack.c.bf16 %v8632_v58, %v8631_v35  ;;  %v8634_v2 = vld [vmem:[%s15514_s12 + $0x88] sm:$0xff] }
 0x7af   :  { %v11494_v30 = vpack.c.bf16 %v8634_v2, %v8633_v16 }
 0x7b1   :  { %11456 = vmatpush1.bf16.msra.mxu0 %v11455_v40  ;;  %v11497_v40 = vpack.c.bf16 %v8636_v46, %v8635_v21 }
 0x7b2   :  { %11458 = vmatprep.subr.bf16.mxu0 %v11457_v7  ;;  %v8639_v7 = vld [vmem:[%s15514_s12 + $0xb0] sm:$0xff] }
 0x7b3   :  { %v11503_v28 = vpack.c.bf16 %v8640_v11, %v8639_v7 }
 0x7b5   :  { %11460 = vmatpush1.bf16.msra.mxu0 %v11459_v31  ;;  %v8641_v31 = vld [vmem:[%s15514_s12 + $0xc0] sm:$0xff] }
 0x7b6   :  { %11462 = vmatprep.subr.bf16.mxu0 %v11461_v39  ;;  %v8509_v39 = vld [vmem:[%s15513_s11] sm:$0x3] }
 0x7b7   :  { %v8514_v5 = vrot.slane %v8509_v39, %v15232_v4  ;;  %v8518_v8 = vrot.slane %v8509_v39, %v15238_v33 }
 0x7b9   :  { %11464 = vmatpush1.bf16.msra.mxu0 %v11463_v24 }
 0x7ba   :  { %11466 = vmatprep.subr.bf16.mxu0 %v11465_v42 }
 0x7bd   :  { %11468 = vmatpush1.bf16.msra.mxu0 %v11467_v44 }
 0x7be   :  { %8572 = vmatprep.subr.mxu0 %v8508_v23 }
 0x7c1   :  { %8573 = vmatpush1.msra.mxu0 %v8507_v57 }
 0x7c2   :  { %11469 = vmatprep.subr.bf16.mxu0 %v12114_v15 }
 0x863   :  { %v8450_v18 = vpop.f32.mrb[210].mxu0 }
 0x864   :  { %v8451_v38 = vadd.f32 %v8450_v18, %v8373_v48  ;;  %v8452_v26 = vpop.f32.mrb[211].mxu0 }
 0x865   :  { %v8453_v62 = vadd.f32 %v8452_v26, %v8377_v63 }
 0x866   :  { %v8455_v34 = vmul.f32 0.01, %v8451_v38 }
 0x867   :  { %v8456_v22 = vmul.f32 0.01, %v8453_v62 }
 0x869   :  { %12062 = vtanh.f32 %v8456_v22 }
 0x86a   :  { %12064 = vtanh.f32 %v8455_v34 }
 0x873   :  { %v12063_v14 = vpop.eup %12062 }
 0x874   :  { %v12065_v19 = vpop.eup %12064  ;;  %9460 = vmatprep.mubr.msk.f32.mxu0 %vm8380_vm2, %v12063_v14 }
 0x875   :  { %8589 = vmatmul.mubr.f32.vlgmr.msra.gmra.mrb[212].mxu0 %v12065_v19 }
 0x876   :  { %11471 = vmatpush1.bf16.msra.mxu0 %v11470_v37  ;;  %v8643_v37 = vstv %s15515_s13 }
 0x877   :  { %11472 = vmatprep.subr.bf16.mxu0 %v12114_v15 }
 0x87a   :  { %11474 = vmatpush1.bf16.msra.mxu0 %v11473_v32 }
 0x87b   :  { %11475 = vmatprep.subr.bf16.mxu0 %v12114_v15 }
 0x87e   :  { %11477 = vmatpush1.bf16.msra.mxu0 %v11476_v60 }
 0x87f   :  { %11478 = vmatprep.subr.bf16.mxu0 %v12114_v15 }
 0x882   :  { %11480 = vmatpush1.bf16.msra.mxu0 %v11479_v53 }
 0x883   :  { %11481 = vmatprep.subr.bf16.mxu0 %v12114_v15 }
 0x886   :  { %11483 = vmatpush1.bf16.msra.mxu0 %v11482_v13 }
 0x887   :  { %11484 = vmatprep.subr.bf16.mxu0 %v12114_v15 }
 0x88a   :  { %11486 = vmatpush1.bf16.msra.mxu0 %v11485_v10 }
 0x88b   :  { %11487 = vmatprep.subr.bf16.mxu0 %v12114_v15 }
 0x88e   :  { %11489 = vmatpush1.bf16.msra.mxu0 %v11488_v17 }
 0x88f   :  { %11490 = vmatprep.subr.bf16.mxu0 %v12114_v15 }
 0x892   :  { %11492 = vmatpush1.bf16.msra.mxu0 %v11491_v61 }
 0x893   :  { %11493 = vmatprep.subr.bf16.mxu0 %v12114_v15 }
 0x896   :  { %11495 = vmatpush1.bf16.msra.mxu0 %v11494_v30 }
 0x897   :  { %11496 = vmatprep.subr.bf16.mxu0 %v12114_v15 }
 0x89a   :  { %11498 = vmatpush1.bf16.msra.mxu0 %v11497_v40 }
 0x89b   :  { %11499 = vmatprep.subr.bf16.mxu0 %v12114_v15 }
 0x89e   :  { %11501 = vmatpush1.bf16.msra.mxu0 %v11500_v25 }
 0x89f   :  { %11502 = vmatprep.subr.bf16.mxu0 %v12114_v15 }
 0x8a2   :  { %11504 = vmatpush1.bf16.msra.mxu0 %v11503_v28 }
 0x8a3   :  { %8695 = vmatprep.subr.mxu0 %v12112_v51 }
 0x8a6   :  { %8696 = vmatpush1.msra.mxu0 %v8641_v31 }
 0x948   :  { %v8590_v0 = vpop.f32.mrb[212].mxu0 }
 0x949   :  { %v8591_v47 = vadd.f32 %v8590_v0, %v8514_v5  ;;  %v8592_v24 = vpop.f32.mrb[213].mxu0 }
 0x94a   :  { %v8593_v42 = vadd.f32 %v8592_v24, %v8518_v8 }
 0x94b   :  { %v8595_v49 = vmul.f32 0.01, %v8591_v47 }
 0x94c   :  { %v8596_v1 = vmul.f32 0.01, %v8593_v42 }
 0x94d   :  { %12066 = vtanh.f32 %v8595_v49 }
 0x94e   :  { %12068 = vtanh.f32 %v8596_v1 }
 0x957   :  { %v12067_v51 = vpop.eup %12066 }
 0x958   :  { %v12069_v44 = vpop.eup %12068  ;;  %v8600_v23 = vsel %vm8599_vm3, %v12067_v51, 0.0 }
 0x959   :  { %v8601_v57 = vrot.slane %v8600_v23, 4  ;;  %v8608_v15 = vsel %vm8607_vm4, %v12069_v44, 0.0 }
 0x95a   :  { %v8609_v6 = vrot.slane %v8608_v15, 4 }
 0x95b   :  { %v8602_v48 = vadd.f32 %v8601_v57, %v8600_v23 }
 0x95c   :  { %v8610_v4 = vadd.f32 %v8609_v6, %v8608_v15 }
 0x95d   :  { %v8603_v63 = vrot.slane %v8602_v48, 2 }
 0x95e   :  { %v8611_v33 = vrot.slane %v8610_v4, 2 }
 0x95f   :  { %v8604_v18 = vadd.f32 %v8603_v63, %v8602_v48 }
 0x960   :  { %v8612_v38 = vadd.f32 %v8611_v33, %v8610_v4 }
 0x961   :  { %v8605_v26 = vrot.slane %v8604_v18, 1 }
 0x962   :  { %v8613_v62 = vrot.slane %v8612_v38, 1 }
 0x963   :  { %v8606_v34 = vadd.f32 %v8605_v26, %v8604_v18 }
 0x964   :  { %v8614_v22 = vadd.f32 %v8613_v62, %v8612_v38 }
 0x965   :  { %v8615_v43 = vmul.f32 0.5, %v8606_v34 }
 0x966   :  { %v8616_v56 = vmul.f32 0.5, %v8614_v22 }
 0x968   :  { %9461 = vmatprep.mubr.msk.f32.mxu0 %vm8380_vm2, %v8616_v56 }
 0x969   :  { %8712 = vmatmul.mubr.f32.vlgmr.msra.gmra.mrb[214].mxu0 %v8615_v43 }
 0xa3c   :  { %v8713_v14 = vpop.f32.mrb[214].mxu0 }
 0xa3d   :  { %v8714_v29 = vadd.f32 %v8713_v14, %v8643_v37  ;;  %v8715_v12 = vpop.f32.mrb[215].mxu0 }
 0xa3f   :  { %8718 = vst.msk [vmem:[#allocation6] sm:$0x1] %vm8717_vm5, %v8714_v29 }
 0xa40   :  { %12083 = shalt.err (!%p12080_p4)
}
 0xa41   :  { %s12084_s13 = scalar_lea.hbm %s15516_s14, 16 }
 0xa42   :  { %p12085_p5 = scmp.ne.s32.totalorder %s15516_s14, %s12084_s13  ;;  %p12088_p6 = scmp.lt.u32.totalorder %s12084_s13, %s15516_s14 }
 0xa44   :  { %p12090_p7 = pnand %p12088_p6, %p12085_p5 }
 0xa46   :  { %12093 = shalt.err (!%p12090_p7)
}
 0xa47   :  { %8728 = dma.vmem_to_hbm [thread:$0]  %s8726_s17, 16, %s15516_s14, [#allocation7]  }
 0xa48   :  { %12094 = dma.done.wait [#allocation7], 16  }
 0xa49   :  { %12095 = vsyncadd [#allocation7], 4294967280 }
 0xa4a   :  { %8732 = vsyncpa [#allocation7], 1 }

</bundles_post_ra>
